<compile_context>
chip_gen: v7x
topology: tpu7x:2x2x1
jax: 0.10.0
libtpu: 0.0.40
codegen_flags: <defaults>
</compile_context>

<pallas_src>
import functools

import jax
import jax.numpy as jnp
from jax.experimental import pallas as pl
from jax.experimental.pallas import tpu as pltpu

EPS = 1e-5  # nn.GroupNorm default


def _silu(x):
    # x * sigmoid(x); the divide goes to the EUP slot.
    return x * pl.reciprocal(1.0 + jnp.exp(-x), approx=True)


def _group_norm(h, gamma, beta, m_cg, m_gc, n_per_group):
    # h: [HW, C] f32.  Group statistics via tiny matmuls against one-hot group
    # membership matrices (no cross-lane reshape in the kernel).
    s = jnp.sum(h, axis=0, keepdims=True)                               # [1, C]
    ss = jnp.sum(h * h, axis=0, keepdims=True)                          # [1, C]
    gs = jnp.dot(s, m_cg, preferred_element_type=jnp.float32)           # [1, G]
    gss = jnp.dot(ss, m_cg, preferred_element_type=jnp.float32)         # [1, G]
    gmean = gs / n_per_group
    gvar = gss / n_per_group - gmean * gmean                            # biased var
    ginv = jax.lax.rsqrt(gvar + EPS)
    cmean = jnp.dot(gmean, m_gc, preferred_element_type=jnp.float32)    # [1, C]
    cinv = jnp.dot(ginv, m_gc, preferred_element_type=jnp.float32)      # [1, C]
    return (h - cmean) * cinv * gamma + beta


def _im2col_taps(xp, h, w):
    # xp: [h+2, w+2, C] value -> [h*w, 9*C] with the 9 taps packed into the
    # matmul contraction dim (tap-major, channel-minor; tap k = 3*dy + dx).
    slabs = []
    for dy in range(3):
        for dx in range(3):
            slabs.append(xp[dy:dy + h, dx:dx + w, :])
    cols = jnp.concatenate(slabs, axis=-1)          # [h, w, 9*C]
    return cols.reshape(h * w, cols.shape[-1])      # [h*w, 9*C]


def _resblock_kernel(xpad_ref, temb_ref, w1_ref, b1_ref, w2_ref, b2_ref,
                     ws_ref, bs_ref, g1_ref, be1_ref, g2_ref, be2_ref,
                     mcg_ref, mgc_ref, out_ref, hpad_ref,
                     *, height, width, n_per_group):
    h_, w_ = height, width
    hw = h_ * w_
    cout = w1_ref.shape[1]
    cin = ws_ref.shape[0]

    # ---- conv1: one matmul over K = 9*Cin ----------------------------------
    xp = xpad_ref[0].astype(jnp.float32)                        # [H+2, W+2, Cin]
    cols1 = _im2col_taps(xp, h_, w_)                            # [HW, 9*Cin]
    h1 = jnp.dot(cols1.astype(jnp.bfloat16), w1_ref[...],
                 preferred_element_type=jnp.float32)            # [HW, Cout]
    h1 = h1 + b1_ref[...]
    h1 = _group_norm(h1, g1_ref[...], be1_ref[...], mcg_ref[...], mgc_ref[...],
                     n_per_group)
    h1 = _silu(h1)
    h1 = h1 + temb_ref[0]                                       # [1, Cout] bcast

    # ---- conv2: taps sliced from a zero-halo VMEM scratch (h1 stays on-chip)
    hpad_ref[...] = jnp.zeros((h_ + 2, w_ + 2, cout), jnp.float32)
    hpad_ref[1:h_ + 1, 1:w_ + 1, :] = h1.reshape(h_, w_, cout)
    cols2 = _im2col_taps(hpad_ref[...], h_, w_)                 # [HW, 9*Cout]
    h2 = jnp.dot(cols2.astype(jnp.bfloat16), w2_ref[...],
                 preferred_element_type=jnp.float32)
    h2 = h2 + b2_ref[...]
    h2 = _group_norm(h2, g2_ref[...], be2_ref[...], mcg_ref[...], mgc_ref[...],
                     n_per_group)
    h2 = _silu(h2)

    # ---- 1x1-conv shortcut on the (unpadded) input -------------------------
    xflat = xp[1:h_ + 1, 1:w_ + 1, :].reshape(hw, cin)
    sc = jnp.dot(xflat.astype(jnp.bfloat16), ws_ref[...],
                 preferred_element_type=jnp.float32) + bs_ref[...]
    out_ref[0] = (h2 + sc).astype(out_ref.dtype)


def _down_kernel(cols_ref, wd_ref, bd_ref, out_ref):
    # Stride-2 3x3 conv as a single matmul over glue-packed taps (K = 9*Cout).
    y = jnp.dot(cols_ref[0], wd_ref[...], preferred_element_type=jnp.float32)
    out_ref[0] = (y + bd_ref[...]).astype(out_ref.dtype)


def _full_spec(shape):
    n = len(shape)
    return pl.BlockSpec(tuple(shape), lambda i, n=n: (0,) * n)


def _batched_spec(shape):
    n = len(shape)
    blk = (1,) + tuple(shape[1:])
    return pl.BlockSpec(blk, lambda i, n=n: (i,) + (0,) * (n - 1))


def down_block(x_nchw, t, params, num_groups=8):
    b, cin, h, w = x_nchw.shape
    cout = params["w1"].shape[2]
    hw = h * w
    cpg = cout // num_groups
    n_per_group = float(hw * cpg)

    # NCHW -> NHWC, halo-pad once; ship activations to the kernel in bf16.
    x_nhwc = jnp.transpose(x_nchw, (0, 2, 3, 1)).astype(jnp.float32)
    xpad = jnp.pad(x_nhwc, ((0, 0), (1, 1), (1, 1), (0, 0))).astype(jnp.bfloat16)

    # Hoisted time embedding: per-sample channel bias [B, 1, Cout] (f32).
    temb = (t.astype(jnp.float32) @ params["wt"] + params["bt"]).reshape(b, 1, cout)

    # Conv weights with taps folded into the contraction dim (k-major, cin-minor).
    w1p = params["w1"].reshape(9 * cin, cout).astype(jnp.bfloat16)
    w2p = params["w2"].reshape(9 * cout, cout).astype(jnp.bfloat16)
    wsp = params["ws"].astype(jnp.bfloat16)

    # One-hot group-membership matrices for GroupNorm statistics.
    groups = jnp.arange(cout) // cpg
    m_cg = (groups[:, None] == jnp.arange(num_groups)[None, :]).astype(jnp.float32)
    m_gc = m_cg.T

    cparams = pltpu.CompilerParams(
        dimension_semantics=("parallel",),
        vmem_limit_bytes=64 * 1024 * 1024,
    )

    # TODO(synk): for large H*W on v7x (64 MiB VMEM), tile the spatial axis and
    # accumulate GroupNorm statistics across tiles (two-pass) instead of the
    # single whole-image block per sample used here.
    res = pl.pallas_call(
        functools.partial(_resblock_kernel, height=h, width=w,
                          n_per_group=n_per_group),
        out_shape=jax.ShapeDtypeStruct((b, hw, cout), jnp.bfloat16),
        grid=(b,),
        in_specs=[
            _batched_spec(xpad.shape), _batched_spec(temb.shape),
            _full_spec(w1p.shape), _full_spec(params["b1"].shape),
            _full_spec(w2p.shape), _full_spec(params["b2"].shape),
            _full_spec(wsp.shape), _full_spec(params["bs"].shape),
            _full_spec(params["g1"].shape), _full_spec(params["be1"].shape),
            _full_spec(params["g2"].shape), _full_spec(params["be2"].shape),
            _full_spec(m_cg.shape), _full_spec(m_gc.shape),
        ],
        out_specs=_batched_spec((b, hw, cout)),
        scratch_shapes=[pltpu.VMEM((h + 2, w + 2, cout), jnp.float32)],
        compiler_params=cparams,
    )(xpad, temb, w1p, params["b1"], w2p, params["b2"], wsp, params["bs"],
      params["g1"], params["be1"], params["g2"], params["be2"], m_cg, m_gc)

    # ---- down conv: 3x3, stride 2, padding 1 -------------------------------
    ho = (h - 1) // 2 + 1
    wo = (w - 1) // 2 + 1
    rp = jnp.pad(res.reshape(b, h, w, cout), ((0, 0), (1, 1), (1, 1), (0, 0)))
    slabs = []
    for dy in range(3):
        for dx in range(3):
            slabs.append(rp[:, dy:dy + 2 * (ho - 1) + 1:2,
                            dx:dx + 2 * (wo - 1) + 1:2, :])
    dcols = jnp.concatenate(slabs, axis=-1).reshape(b, ho * wo, 9 * cout)
    wdp = params["wd"].reshape(9 * cout, cout).astype(jnp.bfloat16)

    out = pl.pallas_call(
        _down_kernel,
        out_shape=jax.ShapeDtypeStruct((b, ho * wo, cout), jnp.float32),
        grid=(b,),
        in_specs=[_batched_spec(dcols.shape), _full_spec(wdp.shape),
                  _full_spec(params["bd"].shape)],
        out_specs=_batched_spec((b, ho * wo, cout)),
        compiler_params=cparams,
    )(dcols, wdp, params["bd"])

    return jnp.transpose(out.reshape(b, ho, wo, cout), (0, 3, 1, 2))


def init_params(key, cin, cout, tch):
    ks = jax.random.split(key, 10)
    f32 = jnp.float32
    return {
        # conv1: torch weight [Cout, Cin, 3, 3] stored as [9, Cin, Cout] (k = 3*dy+dx)
        "w1": 0.1 * jax.random.normal(ks[0], (9, cin, cout), f32),
        "b1": 0.1 * jax.random.normal(ks[1], (1, cout), f32),
        "w2": 0.1 * jax.random.normal(ks[2], (9, cout, cout), f32),
        "b2": 0.1 * jax.random.normal(ks[3], (1, cout), f32),
        # time_mlp: Linear(tch, cout) as [Tc, Cout]
        "wt": 0.1 * jax.random.normal(ks[4], (tch, cout), f32),
        "bt": 0.1 * jax.random.normal(ks[5], (1, cout), f32),
        # GroupNorm affine params (PyTorch init: weight=1, bias=0)
        "g1": jnp.ones((1, cout), f32),
        "be1": jnp.zeros((1, cout), f32),
        "g2": jnp.ones((1, cout), f32),
        "be2": jnp.zeros((1, cout), f32),
        # shortcut 1x1 conv (in_channels != out_channels)
        "ws": 0.1 * jax.random.normal(ks[6], (cin, cout), f32),
        "bs": 0.1 * jax.random.normal(ks[7], (1, cout), f32),
        # downsampling conv: 3x3 stride 2, stored as [9, Cout, Cout]
        "wd": 0.1 * jax.random.normal(ks[8], (9, cout, cout), f32),
        "bd": 0.1 * jax.random.normal(ks[9], (1, cout), f32),
    }


if __name__ == "__main__":
    B, CIN, COUT, H, W, TCH = 2, 4, 8, 16, 16, 32
    key = jax.random.PRNGKey(0)
    kx, kt, kp = jax.random.split(key, 3)
    x = jax.random.normal(kx, (B, CIN, H, W), jnp.float32)
    t = jax.random.normal(kt, (B, TCH), jnp.float32)
    params = init_params(kp, CIN, COUT, TCH)

    down_fn = jax.jit(functools.partial(down_block, num_groups=8))
    out = jax.block_until_ready(down_fn(x, t, params))
    assert out.shape == (B, COUT, H // 2, W // 2), out.shape
    assert bool(jnp.all(jnp.isfinite(out)))
    print("KERNEL_OK")
</pallas_src>

<mosaic_0001>
module attributes {stable_mosaic.version = 11 : i64} {
  func.func @_resblock_kernel(%arg0: i32, %arg1: memref<1x18x18x4xbf16, #tpu.memory_space<vmem>>, %arg2: memref<1x1x8xf32, #tpu.memory_space<vmem>>, %arg3: memref<36x8xbf16, #tpu.memory_space<vmem>>, %arg4: memref<1x8xf32, #tpu.memory_space<vmem>>, %arg5: memref<72x8xbf16, #tpu.memory_space<vmem>>, %arg6: memref<1x8xf32, #tpu.memory_space<vmem>>, %arg7: memref<4x8xbf16, #tpu.memory_space<vmem>>, %arg8: memref<1x8xf32, #tpu.memory_space<vmem>>, %arg9: memref<1x8xf32, #tpu.memory_space<vmem>>, %arg10: memref<1x8xf32, #tpu.memory_space<vmem>>, %arg11: memref<1x8xf32, #tpu.memory_space<vmem>>, %arg12: memref<1x8xf32, #tpu.memory_space<vmem>>, %arg13: memref<8x8xf32, #tpu.memory_space<vmem>>, %arg14: memref<8x8xf32, #tpu.memory_space<vmem>>, %arg15: memref<1x256x8xbf16, #tpu.memory_space<vmem>>, %arg16: memref<18x18x8xf32, #tpu.memory_space<vmem>>) attributes {dimension_semantics = [#tpu.dimension_semantics<parallel>], iteration_bounds = array<i64: 2>, scalar_prefetch = 0 : i64, scratch_operands = 1 : i64, tpu.core_type = #tpu.core_type<tc>, window_params = [{transform_indices = @transform_0, window_bounds = array<i64: 1, 18, 18, 4>}, {transform_indices = @transform_1, window_bounds = array<i64: 1, 1, 8>}, {pipeline_mode = #tpu.pipeline_mode<synchronous>, transform_indices = @transform_2, window_bounds = array<i64: 36, 8>}, {pipeline_mode = #tpu.pipeline_mode<synchronous>, transform_indices = @transform_3, window_bounds = array<i64: 1, 8>}, {pipeline_mode = #tpu.pipeline_mode<synchronous>, transform_indices = @transform_4, window_bounds = array<i64: 72, 8>}, {pipeline_mode = #tpu.pipeline_mode<synchronous>, transform_indices = @transform_5, window_bounds = array<i64: 1, 8>}, {pipeline_mode = #tpu.pipeline_mode<synchronous>, transform_indices = @transform_6, window_bounds = array<i64: 4, 8>}, {pipeline_mode = #tpu.pipeline_mode<synchronous>, transform_indices = @transform_7, window_bounds = array<i64: 1, 8>}, {pipeline_mode = #tpu.pipeline_mode<synchronous>, transform_indices = @transform_8, window_bounds = array<i64: 1, 8>}, {pipeline_mode = #tpu.pipeline_mode<synchronous>, transform_indices = @transform_9, window_bounds = array<i64: 1, 8>}, {pipeline_mode = #tpu.pipeline_mode<synchronous>, transform_indices = @transform_10, window_bounds = array<i64: 1, 8>}, {pipeline_mode = #tpu.pipeline_mode<synchronous>, transform_indices = @transform_11, window_bounds = array<i64: 1, 8>}, {pipeline_mode = #tpu.pipeline_mode<synchronous>, transform_indices = @transform_12, window_bounds = array<i64: 8, 8>}, {pipeline_mode = #tpu.pipeline_mode<synchronous>, transform_indices = @transform_13, window_bounds = array<i64: 8, 8>}, {transform_indices = @transform_14, window_bounds = array<i64: 1, 256, 8>}]} {
    %c0 = arith.constant 0 : index
    %c0_0 = arith.constant 0 : index
    %c0_1 = arith.constant 0 : index
    %c0_2 = arith.constant 0 : index
    %0 = vector.load %arg1[%c0, %c0_0, %c0_1, %c0_2] : memref<1x18x18x4xbf16, #tpu.memory_space<vmem>>, vector<1x18x18x4xbf16>
    %1 = vector.shape_cast %0 : vector<1x18x18x4xbf16> to vector<18x18x4xbf16>
    %2 = arith.extf %1 : vector<18x18x4xbf16> to vector<18x18x4xf32>
    %3 = vector.extract_strided_slice %2 {offsets = [0, 0, 0], sizes = [16, 16, 4], strides = [1, 1, 1]} : vector<18x18x4xf32> to vector<16x16x4xf32>
    %4 = vector.extract_strided_slice %2 {offsets = [0, 1, 0], sizes = [16, 16, 4], strides = [1, 1, 1]} : vector<18x18x4xf32> to vector<16x16x4xf32>
    %5 = vector.extract_strided_slice %2 {offsets = [0, 2, 0], sizes = [16, 16, 4], strides = [1, 1, 1]} : vector<18x18x4xf32> to vector<16x16x4xf32>
    %6 = vector.extract_strided_slice %2 {offsets = [1, 0, 0], sizes = [16, 16, 4], strides = [1, 1, 1]} : vector<18x18x4xf32> to vector<16x16x4xf32>
    %7 = vector.extract_strided_slice %2 {offsets = [1, 1, 0], sizes = [16, 16, 4], strides = [1, 1, 1]} : vector<18x18x4xf32> to vector<16x16x4xf32>
    %8 = vector.extract_strided_slice %2 {offsets = [1, 2, 0], sizes = [16, 16, 4], strides = [1, 1, 1]} : vector<18x18x4xf32> to vector<16x16x4xf32>
    %9 = vector.extract_strided_slice %2 {offsets = [2, 0, 0], sizes = [16, 16, 4], strides = [1, 1, 1]} : vector<18x18x4xf32> to vector<16x16x4xf32>
    %10 = vector.extract_strided_slice %2 {offsets = [2, 1, 0], sizes = [16, 16, 4], strides = [1, 1, 1]} : vector<18x18x4xf32> to vector<16x16x4xf32>
    %11 = vector.extract_strided_slice %2 {offsets = [2, 2, 0], sizes = [16, 16, 4], strides = [1, 1, 1]} : vector<18x18x4xf32> to vector<16x16x4xf32>
    %12 = tpu.concatenate %3, %4, %5, %6, %7, %8, %9, %10, %11 in 2 : vector<16x16x4xf32>, vector<16x16x4xf32>, vector<16x16x4xf32>, vector<16x16x4xf32>, vector<16x16x4xf32>, vector<16x16x4xf32>, vector<16x16x4xf32>, vector<16x16x4xf32>, vector<16x16x4xf32> -> vector<16x16x36xf32>
    %13 = vector.shape_cast %12 : vector<16x16x36xf32> to vector<256x36xf32>
    %14 = arith.truncf %13 : vector<256x36xf32> to vector<256x36xbf16>
    %c0_3 = arith.constant 0 : index
    %c0_4 = arith.constant 0 : index
    %15 = vector.load %arg3[%c0_3, %c0_4] : memref<36x8xbf16, #tpu.memory_space<vmem>>, vector<36x8xbf16>
    %cst = arith.constant dense<0.000000e+00> : vector<256x8xf32>
    %16 = tpu.matmul %14, %15, %cst {dimension_numbers = #tpu.dot_dimension_numbers<[1], [0], [0], [1], [0, 0, 1, 1], [], []>} : vector<256x36xbf16>, vector<36x8xbf16>, vector<256x8xf32> -> vector<256x8xf32>
    %c0_5 = arith.constant 0 : index
    %c0_6 = arith.constant 0 : index
    %17 = vector.load %arg4[%c0_5, %c0_6] : memref<1x8xf32, #tpu.memory_space<vmem>>, vector<1x8xf32>
    %18 = vector.broadcast %17 : vector<1x8xf32> to vector<256x8xf32>
    %19 = arith.addf %16, %18 : vector<256x8xf32>
    %c0_7 = arith.constant 0 : index
    %c0_8 = arith.constant 0 : index
    %20 = vector.load %arg9[%c0_7, %c0_8] : memref<1x8xf32, #tpu.memory_space<vmem>>, vector<1x8xf32>
    %c0_9 = arith.constant 0 : index
    %c0_10 = arith.constant 0 : index
    %21 = vector.load %arg10[%c0_9, %c0_10] : memref<1x8xf32, #tpu.memory_space<vmem>>, vector<1x8xf32>
    %c0_11 = arith.constant 0 : index
    %c0_12 = arith.constant 0 : index
    %22 = vector.load %arg13[%c0_11, %c0_12] : memref<8x8xf32, #tpu.memory_space<vmem>>, vector<8x8xf32>
    %c0_13 = arith.constant 0 : index
    %c0_14 = arith.constant 0 : index
    %23 = vector.load %arg14[%c0_13, %c0_14] : memref<8x8xf32, #tpu.memory_space<vmem>>, vector<8x8xf32>
    %cst_15 = arith.constant dense<0.000000e+00> : vector<8xf32>
    %24 = vector.multi_reduction <add>, %19, %cst_15 [0] : vector<256x8xf32> to vector<8xf32>
    %25 = vector.shape_cast %24 : vector<8xf32> to vector<1x8xf32>
    %26 = arith.mulf %19, %19 : vector<256x8xf32>
    %cst_16 = arith.constant dense<0.000000e+00> : vector<8xf32>
    %27 = vector.multi_reduction <add>, %26, %cst_16 [0] : vector<256x8xf32> to vector<8xf32>
    %28 = vector.shape_cast %27 : vector<8xf32> to vector<1x8xf32>
    %cst_17 = arith.constant dense<0.000000e+00> : vector<1x8xf32>
    %29 = tpu.matmul %25, %22, %cst_17 {dimension_numbers = #tpu.dot_dimension_numbers<[1], [0], [0], [1], [0, 0, 1, 1], [], []>} : vector<1x8xf32>, vector<8x8xf32>, vector<1x8xf32> -> vector<1x8xf32>
    %cst_18 = arith.constant dense<0.000000e+00> : vector<1x8xf32>
    %30 = tpu.matmul %28, %22, %cst_18 {dimension_numbers = #tpu.dot_dimension_numbers<[1], [0], [0], [1], [0, 0, 1, 1], [], []>} : vector<1x8xf32>, vector<8x8xf32>, vector<1x8xf32> -> vector<1x8xf32>
    %cst_19 = arith.constant 2.560000e+02 : f32
    %31 = vector.broadcast %cst_19 : f32 to vector<1x8xf32>
    %32 = arith.divf %29, %31 : vector<1x8xf32>
    %cst_20 = arith.constant 2.560000e+02 : f32
    %33 = vector.broadcast %cst_20 : f32 to vector<1x8xf32>
    %34 = arith.divf %30, %33 : vector<1x8xf32>
    %35 = arith.mulf %32, %32 : vector<1x8xf32>
    %36 = arith.subf %34, %35 : vector<1x8xf32>
    %cst_21 = arith.constant 9.99999974E-6 : f32
    %37 = vector.broadcast %cst_21 : f32 to vector<1x8xf32>
    %38 = arith.addf %36, %37 : vector<1x8xf32>
    %39 = math.rsqrt %38 : vector<1x8xf32>
    %cst_22 = arith.constant dense<0.000000e+00> : vector<1x8xf32>
    %40 = tpu.matmul %32, %23, %cst_22 {dimension_numbers = #tpu.dot_dimension_numbers<[1], [0], [0], [1], [0, 0, 1, 1], [], []>} : vector<1x8xf32>, vector<8x8xf32>, vector<1x8xf32> -> vector<1x8xf32>
    %cst_23 = arith.constant dense<0.000000e+00> : vector<1x8xf32>
    %41 = tpu.matmul %39, %23, %cst_23 {dimension_numbers = #tpu.dot_dimension_numbers<[1], [0], [0], [1], [0, 0, 1, 1], [], []>} : vector<1x8xf32>, vector<8x8xf32>, vector<1x8xf32> -> vector<1x8xf32>
    %42 = vector.broadcast %40 : vector<1x8xf32> to vector<256x8xf32>
    %43 = arith.subf %19, %42 : vector<256x8xf32>
    %44 = vector.broadcast %41 : vector<1x8xf32> to vector<256x8xf32>
    %45 = arith.mulf %43, %44 : vector<256x8xf32>
    %46 = vector.broadcast %20 : vector<1x8xf32> to vector<256x8xf32>
    %47 = arith.mulf %45, %46 : vector<256x8xf32>
    %48 = vector.broadcast %21 : vector<1x8xf32> to vector<256x8xf32>
    %49 = arith.addf %47, %48 : vector<256x8xf32>
    %cst_24 = arith.constant 0.000000e+00 : f32
    %50 = vector.broadcast %cst_24 : f32 to vector<256x8xf32>
    %51 = arith.subf %50, %49 : vector<256x8xf32>
    %52 = math.exp %51 : vector<256x8xf32>
    %cst_25 = arith.constant 1.000000e+00 : f32
    %53 = vector.broadcast %cst_25 : f32 to vector<256x8xf32>
    %54 = arith.addf %53, %52 : vector<256x8xf32>
    %55 = tpu.reciprocal %54 {approx = true} : vector<256x8xf32> -> vector<256x8xf32>
    %56 = arith.mulf %49, %55 : vector<256x8xf32>
    %c0_26 = arith.constant 0 : index
    %c0_27 = arith.constant 0 : index
    %c0_28 = arith.constant 0 : index
    %57 = vector.load %arg2[%c0_26, %c0_27, %c0_28] : memref<1x1x8xf32, #tpu.memory_space<vmem>>, vector<1x1x8xf32>
    %58 = vector.shape_cast %57 : vector<1x1x8xf32> to vector<1x8xf32>
    %59 = vector.broadcast %58 : vector<1x8xf32> to vector<256x8xf32>
    %60 = arith.addf %56, %59 : vector<256x8xf32>
    %cst_29 = arith.constant 0.000000e+00 : f32
    %61 = vector.broadcast %cst_29 : f32 to vector<18x18x8xf32>
    %c0_30 = arith.constant 0 : index
    %c0_31 = arith.constant 0 : index
    %c0_32 = arith.constant 0 : index
    %62 = vector.load %arg16[%c0_30, %c0_31, %c0_32] : memref<18x18x8xf32, #tpu.memory_space<vmem>>, vector<18x18x8xf32>
    tpu.vector_store %arg16[%c0_30, %c0_31, %c0_32], %61 {strides = array<i32>} : memref<18x18x8xf32, #tpu.memory_space<vmem>>, vector<18x18x8xf32>,
    %63 = vector.shape_cast %60 : vector<256x8xf32> to vector<16x16x8xf32>
    %c1 = arith.constant 1 : index
    %c1_33 = arith.constant 1 : index
    %c0_34 = arith.constant 0 : index
    %64 = vector.load %arg16[%c1, %c1_33, %c0_34] : memref<18x18x8xf32, #tpu.memory_space<vmem>>, vector<16x16x8xf32>
    tpu.vector_store %arg16[%c1, %c1_33, %c0_34], %63 {strides = array<i32>} : memref<18x18x8xf32, #tpu.memory_space<vmem>>, vector<16x16x8xf32>,
    %c0_35 = arith.constant 0 : index
    %c0_36 = arith.constant 0 : index
    %c0_37 = arith.constant 0 : index
    %65 = vector.load %arg16[%c0_35, %c0_36, %c0_37] : memref<18x18x8xf32, #tpu.memory_space<vmem>>, vector<18x18x8xf32>
    %66 = vector.extract_strided_slice %65 {offsets = [0, 0, 0], sizes = [16, 16, 8], strides = [1, 1, 1]} : vector<18x18x8xf32> to vector<16x16x8xf32>
    %67 = vector.extract_strided_slice %65 {offsets = [0, 1, 0], sizes = [16, 16, 8], strides = [1, 1, 1]} : vector<18x18x8xf32> to vector<16x16x8xf32>
    %68 = vector.extract_strided_slice %65 {offsets = [0, 2, 0], sizes = [16, 16, 8], strides = [1, 1, 1]} : vector<18x18x8xf32> to vector<16x16x8xf32>
    %69 = vector.extract_strided_slice %65 {offsets = [1, 0, 0], sizes = [16, 16, 8], strides = [1, 1, 1]} : vector<18x18x8xf32> to vector<16x16x8xf32>
    %70 = vector.extract_strided_slice %65 {offsets = [1, 1, 0], sizes = [16, 16, 8], strides = [1, 1, 1]} : vector<18x18x8xf32> to vector<16x16x8xf32>
    %71 = vector.extract_strided_slice %65 {offsets = [1, 2, 0], sizes = [16, 16, 8], strides = [1, 1, 1]} : vector<18x18x8xf32> to vector<16x16x8xf32>
    %72 = vector.extract_strided_slice %65 {offsets = [2, 0, 0], sizes = [16, 16, 8], strides = [1, 1, 1]} : vector<18x18x8xf32> to vector<16x16x8xf32>
    %73 = vector.extract_strided_slice %65 {offsets = [2, 1, 0], sizes = [16, 16, 8], strides = [1, 1, 1]} : vector<18x18x8xf32> to vector<16x16x8xf32>
    %74 = vector.extract_strided_slice %65 {offsets = [2, 2, 0], sizes = [16, 16, 8], strides = [1, 1, 1]} : vector<18x18x8xf32> to vector<16x16x8xf32>
    %75 = tpu.concatenate %66, %67, %68, %69, %70, %71, %72, %73, %74 in 2 : vector<16x16x8xf32>, vector<16x16x8xf32>, vector<16x16x8xf32>, vector<16x16x8xf32>, vector<16x16x8xf32>, vector<16x16x8xf32>, vector<16x16x8xf32>, vector<16x16x8xf32>, vector<16x16x8xf32> -> vector<16x16x72xf32>
    %76 = vector.shape_cast %75 : vector<16x16x72xf32> to vector<256x72xf32>
    %77 = arith.truncf %76 : vector<256x72xf32> to vector<256x72xbf16>
    %c0_38 = arith.constant 0 : index
    %c0_39 = arith.constant 0 : index
    %78 = vector.load %arg5[%c0_38, %c0_39] : memref<72x8xbf16, #tpu.memory_space<vmem>>, vector<72x8xbf16>
    %cst_40 = arith.constant dense<0.000000e+00> : vector<256x8xf32>
    %79 = tpu.matmul %77, %78, %cst_40 {dimension_numbers = #tpu.dot_dimension_numbers<[1], [0], [0], [1], [0, 0, 1, 1], [], []>} : vector<256x72xbf16>, vector<72x8xbf16>, vector<256x8xf32> -> vector<256x8xf32>
    %c0_41 = arith.constant 0 : index
    %c0_42 = arith.constant 0 : index
    %80 = vector.load %arg6[%c0_41, %c0_42] : memref<1x8xf32, #tpu.memory_space<vmem>>, vector<1x8xf32>
    %81 = vector.broadcast %80 : vector<1x8xf32> to vector<256x8xf32>
    %82 = arith.addf %79, %81 : vector<256x8xf32>
    %c0_43 = arith.constant 0 : index
    %c0_44 = arith.constant 0 : index
    %83 = vector.load %arg11[%c0_43, %c0_44] : memref<1x8xf32, #tpu.memory_space<vmem>>, vector<1x8xf32>
    %c0_45 = arith.constant 0 : index
    %c0_46 = arith.constant 0 : index
    %84 = vector.load %arg12[%c0_45, %c0_46] : memref<1x8xf32, #tpu.memory_space<vmem>>, vector<1x8xf32>
    %c0_47 = arith.constant 0 : index
    %c0_48 = arith.constant 0 : index
    %85 = vector.load %arg13[%c0_47, %c0_48] : memref<8x8xf32, #tpu.memory_space<vmem>>, vector<8x8xf32>
    %c0_49 = arith.constant 0 : index
    %c0_50 = arith.constant 0 : index
    %86 = vector.load %arg14[%c0_49, %c0_50] : memref<8x8xf32, #tpu.memory_space<vmem>>, vector<8x8xf32>
    %cst_51 = arith.constant dense<0.000000e+00> : vector<8xf32>
    %87 = vector.multi_reduction <add>, %82, %cst_51 [0] : vector<256x8xf32> to vector<8xf32>
    %88 = vector.shape_cast %87 : vector<8xf32> to vector<1x8xf32>
    %89 = arith.mulf %82, %82 : vector<256x8xf32>
    %cst_52 = arith.constant dense<0.000000e+00> : vector<8xf32>
    %90 = vector.multi_reduction <add>, %89, %cst_52 [0] : vector<256x8xf32> to vector<8xf32>
    %91 = vector.shape_cast %90 : vector<8xf32> to vector<1x8xf32>
    %cst_53 = arith.constant dense<0.000000e+00> : vector<1x8xf32>
    %92 = tpu.matmul %88, %85, %cst_53 {dimension_numbers = #tpu.dot_dimension_numbers<[1], [0], [0], [1], [0, 0, 1, 1], [], []>} : vector<1x8xf32>, vector<8x8xf32>, vector<1x8xf32> -> vector<1x8xf32>
    %cst_54 = arith.constant dense<0.000000e+00> : vector<1x8xf32>
    %93 = tpu.matmul %91, %85, %cst_54 {dimension_numbers = #tpu.dot_dimension_numbers<[1], [0], [0], [1], [0, 0, 1, 1], [], []>} : vector<1x8xf32>, vector<8x8xf32>, vector<1x8xf32> -> vector<1x8xf32>
    %cst_55 = arith.constant 2.560000e+02 : f32
    %94 = vector.broadcast %cst_55 : f32 to vector<1x8xf32>
    %95 = arith.divf %92, %94 : vector<1x8xf32>
    %cst_56 = arith.constant 2.560000e+02 : f32
    %96 = vector.broadcast %cst_56 : f32 to vector<1x8xf32>
    %97 = arith.divf %93, %96 : vector<1x8xf32>
    %98 = arith.mulf %95, %95 : vector<1x8xf32>
    %99 = arith.subf %97, %98 : vector<1x8xf32>
    %cst_57 = arith.constant 9.99999974E-6 : f32
    %100 = vector.broadcast %cst_57 : f32 to vector<1x8xf32>
    %101 = arith.addf %99, %100 : vector<1x8xf32>
    %102 = math.rsqrt %101 : vector<1x8xf32>
    %cst_58 = arith.constant dense<0.000000e+00> : vector<1x8xf32>
    %103 = tpu.matmul %95, %86, %cst_58 {dimension_numbers = #tpu.dot_dimension_numbers<[1], [0], [0], [1], [0, 0, 1, 1], [], []>} : vector<1x8xf32>, vector<8x8xf32>, vector<1x8xf32> -> vector<1x8xf32>
    %cst_59 = arith.constant dense<0.000000e+00> : vector<1x8xf32>
    %104 = tpu.matmul %102, %86, %cst_59 {dimension_numbers = #tpu.dot_dimension_numbers<[1], [0], [0], [1], [0, 0, 1, 1], [], []>} : vector<1x8xf32>, vector<8x8xf32>, vector<1x8xf32> -> vector<1x8xf32>
    %105 = vector.broadcast %103 : vector<1x8xf32> to vector<256x8xf32>
    %106 = arith.subf %82, %105 : vector<256x8xf32>
    %107 = vector.broadcast %104 : vector<1x8xf32> to vector<256x8xf32>
    %108 = arith.mulf %106, %107 : vector<256x8xf32>
    %109 = vector.broadcast %83 : vector<1x8xf32> to vector<256x8xf32>
    %110 = arith.mulf %108, %109 : vector<256x8xf32>
    %111 = vector.broadcast %84 : vector<1x8xf32> to vector<256x8xf32>
    %112 = arith.addf %110, %111 : vector<256x8xf32>
    %cst_60 = arith.constant 0.000000e+00 : f32
    %113 = vector.broadcast %cst_60 : f32 to vector<256x8xf32>
    %114 = arith.subf %113, %112 : vector<256x8xf32>
    %115 = math.exp %114 : vector<256x8xf32>
    %cst_61 = arith.constant 1.000000e+00 : f32
    %116 = vector.broadcast %cst_61 : f32 to vector<256x8xf32>
    %117 = arith.addf %116, %115 : vector<256x8xf32>
    %118 = tpu.reciprocal %117 {approx = true} : vector<256x8xf32> -> vector<256x8xf32>
    %119 = arith.mulf %112, %118 : vector<256x8xf32>
    %120 = vector.extract_strided_slice %2 {offsets = [1, 1, 0], sizes = [16, 16, 4], strides = [1, 1, 1]} : vector<18x18x4xf32> to vector<16x16x4xf32>
    %121 = vector.shape_cast %120 : vector<16x16x4xf32> to vector<256x4xf32>
    %122 = arith.truncf %121 : vector<256x4xf32> to vector<256x4xbf16>
    %c0_62 = arith.constant 0 : index
    %c0_63 = arith.constant 0 : index
    %123 = vector.load %arg7[%c0_62, %c0_63] : memref<4x8xbf16, #tpu.memory_space<vmem>>, vector<4x8xbf16>
    %cst_64 = arith.constant dense<0.000000e+00> : vector<256x8xf32>
    %124 = tpu.matmul %122, %123, %cst_64 {dimension_numbers = #tpu.dot_dimension_numbers<[1], [0], [0], [1], [0, 0, 1, 1], [], []>} : vector<256x4xbf16>, vector<4x8xbf16>, vector<256x8xf32> -> vector<256x8xf32>
    %c0_65 = arith.constant 0 : index
    %c0_66 = arith.constant 0 : index
    %125 = vector.load %arg8[%c0_65, %c0_66] : memref<1x8xf32, #tpu.memory_space<vmem>>, vector<1x8xf32>
    %126 = vector.broadcast %125 : vector<1x8xf32> to vector<256x8xf32>
    %127 = arith.addf %124, %126 : vector<256x8xf32>
    %128 = arith.addf %119, %127 : vector<256x8xf32>
    %129 = arith.truncf %128 : vector<256x8xf32> to vector<256x8xbf16>
    %c0_67 = arith.constant 0 : index
    %c0_68 = arith.constant 0 : index
    %c0_69 = arith.constant 0 : index
    %130 = vector.load %arg15[%c0_67, %c0_68, %c0_69] : memref<1x256x8xbf16, #tpu.memory_space<vmem>>, vector<1x256x8xbf16>
    %131 = vector.shape_cast %130 : vector<1x256x8xbf16> to vector<256x8xbf16>
    %132 = vector.shape_cast %129 : vector<256x8xbf16> to vector<1x256x8xbf16>
    tpu.vector_store %arg15[%c0_67, %c0_68, %c0_69], %132 {strides = array<i32>} : memref<1x256x8xbf16, #tpu.memory_space<vmem>>, vector<1x256x8xbf16>,
    return
  }
  func.func @transform_0(%arg0: i32) -> (i32, i32, i32, i32) {
    %c0_i32 = arith.constant 0 : i32
    %c0_i32_0 = arith.constant 0 : i32
    %c0_i32_1 = arith.constant 0 : i32
    %c0_i32_2 = arith.constant 0 : i32
    return %arg0, %c0_i32, %c0_i32_0, %c0_i32_1 : i32, i32, i32, i32
  }
  func.func @transform_1(%arg0: i32) -> (i32, i32, i32) {
    %c0_i32 = arith.constant 0 : i32
    %c0_i32_0 = arith.constant 0 : i32
    %c0_i32_1 = arith.constant 0 : i32
    return %arg0, %c0_i32, %c0_i32_0 : i32, i32, i32
  }
  func.func @transform_2(%arg0: i32) -> (i32, i32) {
    %c0_i32 = arith.constant 0 : i32
    %c0_i32_0 = arith.constant 0 : i32
    %c0_i32_1 = arith.constant 0 : i32
    return %c0_i32, %c0_i32_0 : i32, i32
  }
  func.func @transform_3(%arg0: i32) -> (i32, i32) {
    %c0_i32 = arith.constant 0 : i32
    %c0_i32_0 = arith.constant 0 : i32
    %c0_i32_1 = arith.constant 0 : i32
    return %c0_i32, %c0_i32_0 : i32, i32
  }
  func.func @transform_4(%arg0: i32) -> (i32, i32) {
    %c0_i32 = arith.constant 0 : i32
    %c0_i32_0 = arith.constant 0 : i32
    %c0_i32_1 = arith.constant 0 : i32
    return %c0_i32, %c0_i32_0 : i32, i32
  }
  func.func @transform_5(%arg0: i32) -> (i32, i32) {
    %c0_i32 = arith.constant 0 : i32
    %c0_i32_0 = arith.constant 0 : i32
    %c0_i32_1 = arith.constant 0 : i32
    return %c0_i32, %c0_i32_0 : i32, i32
  }
  func.func @transform_6(%arg0: i32) -> (i32, i32) {
    %c0_i32 = arith.constant 0 : i32
    %c0_i32_0 = arith.constant 0 : i32
    %c0_i32_1 = arith.constant 0 : i32
    return %c0_i32, %c0_i32_0 : i32, i32
  }
  func.func @transform_7(%arg0: i32) -> (i32, i32) {
    %c0_i32 = arith.constant 0 : i32
    %c0_i32_0 = arith.constant 0 : i32
    %c0_i32_1 = arith.constant 0 : i32
    return %c0_i32, %c0_i32_0 : i32, i32
  }
  func.func @transform_8(%arg0: i32) -> (i32, i32) {
    %c0_i32 = arith.constant 0 : i32
    %c0_i32_0 = arith.constant 0 : i32
    %c0_i32_1 = arith.constant 0 : i32
    return %c0_i32, %c0_i32_0 : i32, i32
  }
  func.func @transform_9(%arg0: i32) -> (i32, i32) {
    %c0_i32 = arith.constant 0 : i32
    %c0_i32_0 = arith.constant 0 : i32
    %c0_i32_1 = arith.constant 0 : i32
    return %c0_i32, %c0_i32_0 : i32, i32
  }
  func.func @transform_10(%arg0: i32) -> (i32, i32) {
    %c0_i32 = arith.constant 0 : i32
    %c0_i32_0 = arith.constant 0 : i32
    %c0_i32_1 = arith.constant 0 : i32
    return %c0_i32, %c0_i32_0 : i32, i32
  }
  func.func @transform_11(%arg0: i32) -> (i32, i32) {
    %c0_i32 = arith.constant 0 : i32
    %c0_i32_0 = arith.constant 0 : i32
    %c0_i32_1 = arith.constant 0 : i32
    return %c0_i32, %c0_i32_0 : i32, i32
  }
  func.func @transform_12(%arg0: i32) -> (i32, i32) {
    %c0_i32 = arith.constant 0 : i32
    %c0_i32_0 = arith.constant 0 : i32
    %c0_i32_1 = arith.constant 0 : i32
    return %c0_i32, %c0_i32_0 : i32, i32
  }
  func.func @transform_13(%arg0: i32) -> (i32, i32) {
    %c0_i32 = arith.constant 0 : i32
    %c0_i32_0 = arith.constant 0 : i32
    %c0_i32_1 = arith.constant 0 : i32
    return %c0_i32, %c0_i32_0 : i32, i32
  }
  func.func @transform_14(%arg0: i32) -> (i32, i32, i32) {
    %c0_i32 = arith.constant 0 : i32
    %c0_i32_0 = arith.constant 0 : i32
    %c0_i32_1 = arith.constant 0 : i32
    return %arg0, %c0_i32, %c0_i32_0 : i32, i32, i32
  }
}

module attributes {stable_mosaic.version = 11 : i64} {
  func.func @_down_kernel(%arg0: i32, %arg1: memref<1x64x72xbf16, #tpu.memory_space<vmem>>, %arg2: memref<72x8xbf16, #tpu.memory_space<vmem>>, %arg3: memref<1x8xf32, #tpu.memory_space<vmem>>, %arg4: memref<1x64x8xf32, #tpu.memory_space<vmem>>) attributes {dimension_semantics = [#tpu.dimension_semantics<parallel>], iteration_bounds = array<i64: 2>, scalar_prefetch = 0 : i64, scratch_operands = 0 : i64, tpu.core_type = #tpu.core_type<tc>, window_params = [{transform_indices = @transform_0, window_bounds = array<i64: 1, 64, 72>}, {pipeline_mode = #tpu.pipeline_mode<synchronous>, transform_indices = @transform_1, window_bounds = array<i64: 72, 8>}, {pipeline_mode = #tpu.pipeline_mode<synchronous>, transform_indices = @transform_2, window_bounds = array<i64: 1, 8>}, {transform_indices = @transform_3, window_bounds = array<i64: 1, 64, 8>}]} {
    %c0 = arith.constant 0 : index
    %c0_0 = arith.constant 0 : index
    %c0_1 = arith.constant 0 : index
    %0 = vector.load %arg1[%c0, %c0_0, %c0_1] : memref<1x64x72xbf16, #tpu.memory_space<vmem>>, vector<1x64x72xbf16>
    %1 = vector.shape_cast %0 : vector<1x64x72xbf16> to vector<64x72xbf16>
    %c0_2 = arith.constant 0 : index
    %c0_3 = arith.constant 0 : index
    %2 = vector.load %arg2[%c0_2, %c0_3] : memref<72x8xbf16, #tpu.memory_space<vmem>>, vector<72x8xbf16>
    %cst = arith.constant dense<0.000000e+00> : vector<64x8xf32>
    %3 = tpu.matmul %1, %2, %cst {dimension_numbers = #tpu.dot_dimension_numbers<[1], [0], [0], [1], [0, 0, 1, 1], [], []>} : vector<64x72xbf16>, vector<72x8xbf16>, vector<64x8xf32> -> vector<64x8xf32>
    %c0_4 = arith.constant 0 : index
    %c0_5 = arith.constant 0 : index
    %4 = vector.load %arg3[%c0_4, %c0_5] : memref<1x8xf32, #tpu.memory_space<vmem>>, vector<1x8xf32>
    %5 = vector.broadcast %4 : vector<1x8xf32> to vector<64x8xf32>
    %6 = arith.addf %3, %5 : vector<64x8xf32>
    %c0_6 = arith.constant 0 : index
    %c0_7 = arith.constant 0 : index
    %c0_8 = arith.constant 0 : index
    %7 = vector.load %arg4[%c0_6, %c0_7, %c0_8] : memref<1x64x8xf32, #tpu.memory_space<vmem>>, vector<1x64x8xf32>
    %8 = vector.shape_cast %7 : vector<1x64x8xf32> to vector<64x8xf32>
    %9 = vector.shape_cast %6 : vector<64x8xf32> to vector<1x64x8xf32>
    tpu.vector_store %arg4[%c0_6, %c0_7, %c0_8], %9 {strides = array<i32>} : memref<1x64x8xf32, #tpu.memory_space<vmem>>, vector<1x64x8xf32>,
    return
  }
  func.func @transform_0(%arg0: i32) -> (i32, i32, i32) {
    %c0_i32 = arith.constant 0 : i32
    %c0_i32_0 = arith.constant 0 : i32
    %c0_i32_1 = arith.constant 0 : i32
    return %arg0, %c0_i32, %c0_i32_0 : i32, i32, i32
  }
  func.func @transform_1(%arg0: i32) -> (i32, i32) {
    %c0_i32 = arith.constant 0 : i32
    %c0_i32_0 = arith.constant 0 : i32
    %c0_i32_1 = arith.constant 0 : i32
    return %c0_i32, %c0_i32_0 : i32, i32
  }
  func.func @transform_2(%arg0: i32) -> (i32, i32) {
    %c0_i32 = arith.constant 0 : i32
    %c0_i32_0 = arith.constant 0 : i32
    %c0_i32_1 = arith.constant 0 : i32
    return %c0_i32, %c0_i32_0 : i32, i32
  }
  func.func @transform_3(%arg0: i32) -> (i32, i32, i32) {
    %c0_i32 = arith.constant 0 : i32
    %c0_i32_0 = arith.constant 0 : i32
    %c0_i32_1 = arith.constant 0 : i32
    return %arg0, %c0_i32, %c0_i32_0 : i32, i32, i32
  }
}

</mosaic_0001>

<bundles_post_ra>
// kernel: down_block.3
= control target key start
LH: loop header
LB: loop body
LE: loop exit
PB: predicated region body
PF: predicated region fallthrough
CT: control target
= control target key end

     0   :  { %8 = vsyncpa [#allocation3], 0  ;;  %s1084_s0 = inlined_call_operand.hbm [shape: bf16[2,64,72], index: 0, kind: input, shape index: {}]   ;;  %s1085_s1 = inlined_call_operand.hbm [shape: bf16[72,8], index: 1, kind: input, shape index: {}]   ;;  %s1086_s2 = inlined_call_operand.hbm [shape: f32[1,8], index: 2, kind: input, shape index: {}]   ;;  %s1087_s3 = inlined_call_operand.hbm [shape: f32[2,64,8], index: 3, kind: output, shape index: {}]  }
   0x1   :  { %10 = vsyncpa [#allocation3 + $0x1], 0 }
   0x2   :  { %11 = vsyncpa [#allocation6], 0 }
   0x3   :  { %12 = vsyncpa [#allocation4], 0 }
   0x4   :  { %14 = vsyncpa [#allocation4 + $0x1], 0  ;;  %s824_s12 = smov 0   ;;  %s826_s13 = smov 0  }
   0x5   :  { %s828_s14 = smov 0   ;;  %s830_s15 = smov 0  }
   0x6 LB: > { %s845_s16 = sadd.s32 4294967295, %s794_s15   ;;  %s485_s17 = sadd.s32 4294967294, %s794_s15   ;;  %s794_s15 = sphi %s830_s15, %s1107_s15   ;;  %s790_s14 = sphi %s828_s14, %s1106_s14   ;;  %s786_s13 = sphi %s826_s13, %s1105_s13   ;;  %s782_s12 = sphi %s824_s12, %s1104_s12  }
   0x7   : > { %p40_p0 = scmp.ne.s32.totalorder %s786_s13, %s782_s12  ;;  %p1088_p1 = scmp.eq.s32.totalorder %s845_s16, 0 }
   0x8   : > { %p112_p3 = scmp.eq.s32.totalorder %s485_s17, 1  ;;  %p486_p5 = scmp.ge.s32.totalorder %s794_s15, 1 }
   0x9   : > { %p854_p4 = por %p1088_p1, %p40_p0  ;;  %p119_p7 = scmp.lt.s32.totalorder %s794_s15, 3 }
   0xa   : > { %p859_p6 = por %p112_p3, %p40_p0  ;;  %s796_s21 = smov [#allocation5]  }
   0xb   : > { %s1091_s18 = scalar_select %p854_p4, 1, 0 }
   0xc   : > { %s1092_s19 = scalar_select %p859_p6, 1, 0 }
   0xd   : > { %p864_p8 = pnand %p486_p5, %p119_p7  ;;  %s131_s22 = sshll.u32 %s796_s21, 4  ;;  %s868_s22 = int_to_ptr.vmem [resolvable:$true] %s131_s22 }
   0xe   : > { %s797_s24 = smov [#allocation7]   ;;  %s638_s28 = scalar_lea.hbm %s1085_s1, 576 }
   0xf   : > { %p570_p9 = pneg %p864_p8  ;;  %s145_s25 = sshll.u32 %s797_s24, 4  ;;  %s879_s25 = int_to_ptr.vmem [resolvable:$true] %s145_s25 }
  0x10   : > { %p639_p12 = scmp.ne.s32.totalorder %s1085_s1, %s638_s28  ;;  %p645_p5 = scmp.lt.u32.totalorder %s638_s28, %s1085_s1 }
  0x11   : > { %p875_p11 = pnand %p570_p9, %p1088_p1 }
  0x13   : > { %p640_p13 = pneg %p875_p11 }
  0x15   : > { %p641_p0 = pnand %p640_p13, %p639_p12 }
  0x17   : > { %p642_p3 = pneg %p641_p0 }
  0x19   : > { %p647_p7 = pnand %p645_p5, %p642_p3 }
  0x1b   : > { %650 = shalt.err (!%p647_p7)
}
  0x1c   : > { %s651_s6 = scalar_lea.vmem %s868_s22, 576  ;;  %p659_p2 = scmp.lt.s32.totalorder %s868_s22, %s868_s22 }
  0x1d   : > { %p652_p9 = scmp.ne.s32.totalorder %s868_s22, %s651_s6  ;;  %p660_p12 = scmp.lt.s32.totalorder %s651_s6, %s651_s6 }
  0x1f   : > { %p654_p10 = pnand %p652_p9, %p640_p13  ;;  %p661_p0 = por %p660_p12, %p659_p2 }
  0x21   : > { %p655_p1 = pneg %p654_p10 }
  0x23   : > { %p662_p6 = pnand %p661_p0, %p655_p1 }
  0x25   : > { %665 = shalt.err (!%p662_p6)
}
  0x26   : > { %s798_s7 = smov 64   ;;  %s799_s8 = smov 4  }
  0x27   : > { %573 = dma.hbm_to_vmem [thread:$0]  (!%p875_p11), %s1085_s1, 576, %s868_s22, [#allocation6], %s798_s7, %s798_s7, %s799_s8  }
  0x28   : > { %s666_s21 = scalar_lea.hbm %s1086_s2, 16 }
  0x29   : > { %p667_p1 = scmp.ne.s32.totalorder %s1086_s2, %s666_s21  ;;  %p673_p10 = scmp.lt.u32.totalorder %s666_s21, %s1086_s2 }
  0x2b   : > { %p669_p2 = pnand %p667_p1, %p640_p13 }
  0x2d   : > { %p670_p6 = pneg %p669_p2 }
  0x2f   : > { %p675_p3 = pnand %p673_p10, %p670_p6 }
  0x31   : > { %678 = shalt.err (!%p675_p3)
}
  0x32   : > { %s679_s22 = scalar_lea.vmem %s879_s25, 16  ;;  %s686_s29 = scalar_lea.vmem %s879_s25, 32 }
  0x33   : > { %p680_p5 = scmp.ne.s32.totalorder %s879_s25, %s679_s22  ;;  %p687_p12 = scmp.lt.s32.totalorder %s879_s25, %s879_s25 }
  0x34   : > { %p688_p0 = scmp.lt.s32.totalorder %s686_s29, %s679_s22 }
  0x35   : > { %p682_p7 = pnand %p680_p5, %p640_p13 }
  0x36   : > { %p689_p1 = por %p688_p0, %p687_p12 }
  0x37   : > { %p683_p9 = pneg %p682_p7 }
  0x39   : > { %p690_p2 = pnand %p689_p1, %p683_p9 }
  0x3b   : > { %693 = shalt.err (!%p690_p2)
}
  0x3c   : > { %576 = dma.hbm_to_vmem [thread:$0]  (!%p875_p11), %s1086_s2, 16, %s879_s25, [#allocation6]  }
  0x3d   : > { %s938_s5 = sadd.s32 1, %s794_s15   ;;  %s27_s23 = sadd.s32 1, %s790_s14 }
  0x3e   : > { %s24_s6 = ssub.s32 %s794_s15, %s938_s5  ;;  %p34_p13 = scmp.ne.s32.totalorder %s790_s14, %s786_s13 }
  0x3f   : > { %p25_p6 = scmp.eq.s32.totalorder %s24_s6, 0  ;;  %p35_p10 = scmp.eq.s32.totalorder %s794_s15, 0 }
  0x40   : > { %p1095_p3 = scmp.eq.s32.totalorder %s845_s16, 1  ;;  %p587_p7 = scmp.lt.s32.totalorder %s794_s15, 2 }
  0x41   : > { %s954_s10 = scalar_select %p25_p6, %s790_s14, %s27_s23  }
  0x42   : > { %p948_p5 = por %p1095_p3, %p34_p13  ;;  %p36_p9 = por %p35_p10, %p34_p13 }
  0x43   : > { %s156_s11 = sand.u32 1, %s790_s14   ;;  %s517_s25 = sshll.u32 %s794_s15, 9 }
  0x44   : > { %s1096_s9 = scalar_select %p948_p5, 1, 0 }
  0x45   : > { %s490_s17 = sshll.u32 %s156_s11, 5  ;;  %s961_s26 = scalar_lea.hbm %s1084_s0, %s517_s25 }
  0x46   : > { %s160_s27 = scalar_lea.vmem [#allocation2], %s490_s17  ;;  %p965_p11 = pnand %p587_p7, %p36_p9 }
  0x47   : > { %s167_s28 = sshll.u32 %s160_s27, 4  ;;  %s969_s29 = scalar_lea.sflag [#allocation3], %s156_s11  ;;  %s963_s28 = int_to_ptr.vmem [resolvable:$true] %s167_s28 }
  0x48   : > { %s694_s30 = scalar_lea.hbm %s961_s26, 512  ;;  %p696_p0 = pneg %p965_p11 }
  0x49   : > { %p695_p12 = scmp.ne.s32.totalorder %s961_s26, %s694_s30  ;;  %s699_s6 = scalar_lea.hbm %s1084_s0, 1024 }
  0x4a   : > { %p700_p13 = scmp.lt.u32.totalorder %s961_s26, %s1084_s0  ;;  %p701_p6 = scmp.lt.u32.totalorder %s699_s6, %s694_s30 }
  0x4b   : > { %p697_p1 = pnand %p696_p0, %p695_p12  ;;  %p703_p3 = scmp.lt.u32.totalorder %s694_s30, %s961_s26 }
  0x4c   : > { %p702_p10 = por %p701_p6, %p700_p13 }
  0x4d   : > { %p698_p2 = pneg %p697_p1 }
  0x4e   : > { %p704_p7 = por %p703_p3, %p702_p10 }
  0x50   : > { %p705_p9 = pnand %p704_p7, %p698_p2 }
  0x52   : > { %708 = shalt.err (!%p705_p9)
}
  0x53   : > { %s709_s11 = scalar_lea.vmem %s963_s28, 512  ;;  %s800_s21 = smov [#allocation2]  }
  0x54   : > { %p710_p12 = scmp.ne.s32.totalorder %s963_s28, %s709_s11  ;;  %s714_s24 = sshll.u32 %s800_s21, 4  ;;  %s715_s24 = int_to_ptr.vmem [resolvable:$false] %s714_s24 }
  0x55   : > { %s716_s27 = scalar_lea.vmem %s715_s24, 1024  ;;  %p717_p4 = scmp.lt.s32.totalorder %s963_s28, %s715_s24 }
  0x56   : > { %p712_p1 = pnand %p710_p12, %p696_p0  ;;  %p718_p13 = scmp.lt.s32.totalorder %s716_s27, %s709_s11 }
  0x58   : > { %p713_p5 = pneg %p712_p1  ;;  %p719_p6 = por %p718_p13, %p717_p4 }
  0x5a   : > { %p720_p10 = pnand %p719_p6, %p713_p5 }
  0x5c   : > { %723 = shalt.err (!%p720_p10)
}
  0x5d   : > { %580 = dma.hbm_to_vmem [thread:$0]  (!%p965_p11), %s961_s26, 512, %s963_s28, %s969_s29, %s798_s7, %s798_s7, %s799_s8  }
  0x5e   : > { %179 = sbr.rel (%p864_p8) target bundleno = 358 (0x166), region = 32  ;;  %s1003_s30 = sand.u32 (!%p864_p8), 1, %s786_s13  }
  0x5f   : > { %s494_s4 = sshll.u32 (!%p864_p8), %s1003_s30, 5  ;;  %s182_s23 = scalar_lea.sflag (!%p864_p8), [#allocation3], %s1003_s30 }
  0x60   : > { %s1007_s6 = scalar_lea.vmem (!%p864_p8), [#allocation2], %s494_s4  ;;  %p1098_p4 = scmp.ne.s32.totalorder (!%p864_p8), %s1091_s18, 0 }
  0x65   : > { %769 = dma.done.wait (%p1098_p4), %s182_s23, 512  }
  0x66   : > { %771 = vsyncadd (%p1098_p4), %s182_s23, 4294966784  ;;  %p1099_p5 = scmp.eq.s32.totalorder %s845_s16, 0 }
  0x68   : > { %773 = dma.done.wait (%p1099_p5), [#allocation6], 592   ;;  %p1100_p8 = pmov %p1099_p5 }
  0x69   : > { %v629_v0 = vld [vmem:[#allocation5] sm:$0xff]   ;;  %v630_v1 = vld [vmem:[#allocation5 + $0x8] sm:$0xff]   ;;  %v631_v2 = vld [vmem:[#allocation5 + $0x10] sm:$0xff]   ;;  %vm288_vm0 = vcmask 588800   ;;  %vm301_vm1 = vcmask 1043456   ;;  %s497_s18 = sshll.u32 %s1003_s30, 6 }
  0x6a   : > { %775 = vsyncadd (%p1100_p8), [#allocation6], 4294966704  ;;  %528 = vmatprep.subr.bf16.mxu0 %v629_v0  ;;  %546 = vmatprep.subr.bf16.mxu1 %v629_v0  ;;  %v634_v3 = vld [vmem:[%s1007_s6] sm:$0xff]   ;;  %v635_v4 = vld [vmem:[%s1007_s6 + $0x10] sm:$0xff]   ;;  %vm370_vm2 = vcmask 64512   ;;  %s518_s20 = sshll.u32 %s845_s16, 10 }
  0x6b   : > { %529 = vmatpush3.bf16.msra.mxu0 %v629_v0  ;;  %551 = vmatpush3.bf16.msra.mxu1 %v629_v0  ;;  %v632_v5 = vld [vmem:[#allocation5 + $0x18] sm:$0xff]   ;;  %v633_v6 = vld [vmem:[#allocation5 + $0x20] ss:$0 sps:$4 sm:$0xff]   ;;  %v636_v8 = vld [vmem:[%s1007_s6 + $0x8] sm:$0xff]   ;;  %s215_s7 = scalar_lea.vmem [#allocation8], %s497_s18  ;;  %s1032_s28 = scalar_lea.hbm %s1087_s3, %s518_s20 }
  0x6c   : > { %530 = vmatprep.subr.bf16.mxu0 %v630_v1  ;;  %547 = vmatprep.subr.bf16.mxu1 %v630_v1  ;;  %v303_v7 = vsel %vm301_vm1, %v633_v6, 0  ;;  %v637_v9 = vld [vmem:[%s1007_s6 + $0x18] sm:$0xff]   ;;  %v498_v10 = vld [vmem:[#allocation7] ss:$0 sm:$0xff]  ;;  %s393_s8 = sshll.u32 %s215_s7, 4  ;;  %s380_s22 = scalar_lea.sflag [#allocation4], %s1003_s30  ;;  %s1034_s8 = int_to_ptr.vmem [resolvable:$true] %s393_s8 }
  0x6d   : > { %538 = vmatprep.mubr.msk.bf16.mxu0 %vm288_vm0, %v634_v3  ;;  %542 = vmatprep.mubr.msk.bf16.mxu1 %vm288_vm0, %v635_v4  ;;  %s724_s29 = scalar_lea.vmem %s1034_s8, 1024  ;;  %p1101_p0 = scmp.ne.s32.totalorder %s1096_s9, 0 }
  0x6e   : > { %p725_p11 = scmp.ne.s32.totalorder %s1034_s8, %s724_s29  ;;  %s801_s17 = smov [#allocation8]  }
  0x6f   : > { %531 = vmatpush3.bf16.msra.mxu0 %v630_v1  ;;  %552 = vmatpush3.bf16.msra.mxu1 %v630_v1  ;;  %s728_s25 = sshll.u32 %s801_s17, 4  ;;  %s729_s25 = int_to_ptr.vmem [resolvable:$false] %s728_s25 }
  0x70   : > { %532 = vmatprep.subr.bf16.mxu0 %v631_v2  ;;  %548 = vmatprep.subr.bf16.mxu1 %v631_v2  ;;  %p726_p2 = pnand %p725_p11, %p1101_p0  ;;  %s730_s11 = scalar_lea.vmem %s729_s25, 2048 }
  0x71   : > { %p731_p7 = scmp.lt.s32.totalorder %s1034_s8, %s729_s25  ;;  %p732_p9 = scmp.lt.s32.totalorder %s730_s11, %s724_s29 }
  0x72   : > { %p727_p3 = pneg %p726_p2 }
  0x73   : > { %533 = vmatpush3.bf16.msra.mxu0 %v631_v2  ;;  %553 = vmatpush3.bf16.msra.mxu1 %v631_v2  ;;  %p733_p12 = por %p732_p9, %p731_p7 }
  0x74   : > { %534 = vmatprep.subr.bf16.mxu0 %v632_v5  ;;  %549 = vmatprep.subr.bf16.mxu1 %v632_v5 }
  0x75   : > { %p734_p1 = pnand %p733_p12, %p727_p3 }
  0x77   : > { %535 = vmatpush3.bf16.msra.mxu0 %v632_v5  ;;  %554 = vmatpush3.bf16.msra.mxu1 %v632_v5 }
  0x78   : > { %556 = vmatprep.subr.msk.bf16.mxu0 %vm301_vm1, %v633_v6  ;;  %557 = vmatprep.subr.msk.bf16.mxu1 %vm301_vm1, %v633_v6 }
  0x7b   : > { %537 = vmatpush3.bf16.msra.mxu0 %v303_v7  ;;  %555 = vmatpush3.bf16.msra.mxu1 %v303_v7 }
  0x7e   : > { %539 = vmatmul.mubr.msk.bf16.vlgmr.msra.gmra.mrb[0].mxu0 %vm288_vm0, %v636_v8  ;;  %543 = vmatmul.mubr.msk.bf16.vlgmr.msra.gmra.mrb[0].mxu1 %vm288_vm0, %v637_v9 }
 0x151   : > { %v540_v11 = vpop.f32.mrb[0].mxu0  ;;  %v544_v12 = vpop.f32.mrb[0].mxu1 }
 0x152   : > { %v348_v13 = vadd.f32 %v540_v11, %v498_v10  ;;  %v364_v14 = vadd.f32 %v544_v12, %v498_v10  ;;  %v339_v15 = vpop.f32.mrb[1].mxu0  ;;  %v355_v16 = vpop.f32.mrb[1].mxu1 }
 0x153   : > { %v340_v17 = vadd.f32 %v498_v10, %v339_v15  ;;  %v356_v18 = vadd.f32 %v498_v10, %v355_v16  ;;  %v541_v19 = vpop.f32.mrb[2].mxu0  ;;  %v545_v20 = vpop.f32.mrb[2].mxu1 }
 0x154   : > { %373 = vst.msk [vmem:[%s215_s7 + $0x10] sm:$0xff] %vm370_vm2, %v348_v13  ;;  %377 = vst.msk [vmem:[%s215_s7 + $0x30] sm:$0xff] %vm370_vm2, %v364_v14  ;;  %v351_v21 = vadd.f32 %v541_v19, %v498_v10  ;;  %v367_v22 = vadd.f32 %v545_v20, %v498_v10  ;;  %v342_v23 = vpop.f32.mrb[3].mxu0  ;;  %v358_v24 = vpop.f32.mrb[3].mxu1 }
 0x155   : > { %371 = vst.msk [vmem:[%s215_s7] sm:$0xff] %vm370_vm2, %v340_v17  ;;  %375 = vst.msk [vmem:[%s215_s7 + $0x20] sm:$0xff] %vm370_vm2, %v356_v18  ;;  %v343_v25 = vadd.f32 %v498_v10, %v342_v23  ;;  %v359_v26 = vadd.f32 %v498_v10, %v358_v24 }
 0x156   : > { %374 = vst.msk [vmem:[%s215_s7 + $0x18] sm:$0xff] %vm370_vm2, %v351_v21  ;;  %378 = vst.msk [vmem:[%s215_s7 + $0x38] sm:$0xff] %vm370_vm2, %v367_v22 }
 0x157   : > { %372 = vst.msk [vmem:[%s215_s7 + $0x8] sm:$0xff] %vm370_vm2, %v343_v25  ;;  %376 = vst.msk [vmem:[%s215_s7 + $0x28] sm:$0xff] %vm370_vm2, %v359_v26 }
 0x158   : > { %737 = shalt.err (!%p734_p1)
}
 0x159   : > { %s738_s21 = scalar_lea.hbm %s1032_s28, 1024  ;;  %s742_s4 = scalar_lea.hbm %s1087_s3, 2048 }
 0x15a   : > { %p739_p13 = scmp.ne.s32.totalorder %s1032_s28, %s738_s21  ;;  %p743_p4 = scmp.lt.u32.totalorder %s1032_s28, %s1087_s3 }
 0x15b   : > { %p744_p5 = scmp.lt.u32.totalorder %s742_s4, %s738_s21  ;;  %p746_p11 = scmp.lt.u32.totalorder %s738_s21, %s1032_s28 }
 0x15c   : > { %p740_p6 = pnand %p739_p13, %p1101_p0 }
 0x15d   : > { %p745_p8 = por %p744_p5, %p743_p4 }
 0x15e   : > { %p741_p10 = pneg %p740_p6 }
 0x15f   : > { %p747_p2 = por %p746_p11, %p745_p8 }
 0x161   : > { %p748_p3 = pnand %p747_p2, %p741_p10 }
 0x163   : > { %751 = shalt.err (!%p748_p3)
}
 0x164   : > { %s802_s18 = smov 128   ;;  %s803_s20 = smov 8  }
 0x165   : > { %568 = dma.vmem_to_hbm [thread:$0]  (%p1101_p0), %s1034_s8, 1024, %s1032_s28, %s380_s22, %s802_s18, %s802_s18, %s803_s20  }
 0x166 PF: > { %s408_s7 = sand.u32 1, %s782_s12   ;;  %p1102_p7 = scmp.ne.s32.totalorder %s1092_s19, 0 }
 0x167   : > { %p1103_p9 = scmp.ge.s32.totalorder %s794_s15, 2  ;;  %s409_s16 = scalar_lea.sflag [#allocation4], %s408_s7 }
 0x169   : > { %p582_p12 = pnand %p1103_p9, %p1102_p7 }
 0x16b   : > { %777 = dma.done.wait (!%p582_p12), %s409_s16, 1024  }
 0x16c   : > { %779 = vsyncadd (!%p582_p12), %s409_s16, 4294966272  ;;  %p17_p1 = scmp.ge.s32.totalorder %s938_s5, 4   ;;  %s1104_s12 = smov %s786_s13 }
 0x16d   : > { %s1105_s13 = smov %s790_s14  ;;  %s1106_s14 = smov %s954_s10 }
 0x16e   : > { %s1107_s15 = smov %s938_s5  ;;  %19 = sbr.rel (!%p17_p1) target bundleno = 6 (0x6), region = 85 }
 0x175   :  { %414 = vsyncpa [#allocation3], 1 }
 0x176   :  { %416 = vsyncpa [#allocation3 + $0x1], 1 }
 0x177   :  { %417 = vsyncpa [#allocation6], 1 }
 0x178   :  { %418 = vsyncpa [#allocation4], 1 }
 0x179   :  { %420 = vsyncpa [#allocation4 + $0x1], 1 }

// kernel: down_block.2
= control target key start
LH: loop header
LB: loop body
LE: loop exit
PB: predicated region body
PF: predicated region fallthrough
CT: control target
= control target key end

     0   :  { %s13426_s0 = inlined_call_operand.hbm [shape: bf16[2,18,18,4], index: 0, kind: input, shape index: {}]   ;;  %s13427_s1 = inlined_call_operand.hbm [shape: f32[2,1,8], index: 1, kind: input, shape index: {}]   ;;  %s13428_s2 = inlined_call_operand.hbm [shape: bf16[36,8], index: 2, kind: input, shape index: {}]   ;;  %s13429_s3 = inlined_call_operand.hbm [shape: f32[1,8], index: 3, kind: input, shape index: {}]   ;;  %s13430_s4 = inlined_call_operand.hbm [shape: bf16[72,8], index: 4, kind: input, shape index: {}]   ;;  %s13431_s5 = inlined_call_operand.hbm [shape: f32[1,8], index: 5, kind: input, shape index: {}]   ;;  %s13432_s6 = inlined_call_operand.hbm [shape: bf16[4,8], index: 6, kind: input, shape index: {}]   ;;  %s13433_s7 = inlined_call_operand.hbm [shape: f32[1,8], index: 7, kind: input, shape index: {}]   ;;  %s13434_s8 = inlined_call_operand.hbm [shape: f32[1,8], index: 8, kind: input, shape index: {}]   ;;  %s13435_s9 = inlined_call_operand.hbm [shape: f32[1,8], index: 9, kind: input, shape index: {}]   ;;  %s13436_s10 = inlined_call_operand.hbm [shape: f32[1,8], index: 10, kind: input, shape index: {}]   ;;  %s13437_s11 = inlined_call_operand.hbm [shape: f32[1,8], index: 11, kind: input, shape index: {}]   ;;  %s13438_s12 = inlined_call_operand.hbm [shape: f32[8,8], index: 12, kind: input, shape index: {}]   ;;  %s13439_s13 = inlined_call_operand.hbm [shape: f32[8,8], index: 13, kind: input, shape index: {}]   ;;  %s13440_s14 = inlined_call_operand.hbm [shape: bf16[2,256,8], index: 14, kind: output, shape index: {}]  }
   0x1   :  { %13513 = sst [smem:[#allocation83_spill]] %s13426_s0 }
   0x2   :  { %13514 = sst [smem:[#allocation84_spill]] %s13427_s1 }
   0x3   :  { %13515 = sst [smem:[#allocation85_spill]] %s13428_s2 }
   0x4   :  { %13516 = sst [smem:[#allocation86_spill]] %s13429_s3 }
   0x5   :  { %13517 = sst [smem:[#allocation87_spill]] %s13430_s4 }
   0x6   :  { %13518 = sst [smem:[#allocation88_spill]] %s13431_s5 }
   0x7   :  { %13519 = sst [smem:[#allocation89_spill]] %s13432_s6 }
   0x8   :  { %13520 = sst [smem:[#allocation90_spill]] %s13433_s7 }
   0x9   :  { %13521 = sst [smem:[#allocation91_spill]] %s13434_s8 }
   0xa   :  { %13522 = sst [smem:[#allocation92_spill]] %s13440_s14 }
   0xb   :  { %19 = vsyncpa [#allocation4], 0 }
   0xc   :  { %21 = vsyncpa [#allocation4 + $0x1], 0 }
   0xd   :  { %22 = vsyncpa [#allocation7], 0 }
   0xe   :  { %24 = vsyncpa [#allocation7 + $0x1], 0 }
   0xf   :  { %25 = vsyncpa [#allocation10], 0 }
  0x10   :  { %26 = vsyncpa [#allocation13], 0 }
  0x11   :  { %27 = vsyncpa [#allocation16], 0 }
  0x12   :  { %28 = vsyncpa [#allocation19], 0 }
  0x13   :  { %29 = vsyncpa [#allocation22], 0 }
  0x14   :  { %30 = vsyncpa [#allocation25], 0 }
  0x15   :  { %31 = vsyncpa [#allocation5], 0 }
  0x16   :  { %33 = vsyncpa [#allocation5 + $0x1], 0  ;;  %s9161_s29 = smov 0   ;;  %s9163_s30 = smov 0  }
  0x17   :  { %s9165_s15 = smov 0   ;;  %s9167_s16 = smov 0  }
  0x18 LB: > { %13523 = sst [smem:[#allocation37_spill]] %s9041_s29  ;;  %s9055_s17 = smov [#allocation8]   ;;  %s9053_s16 = sphi %s9167_s16, %s13708_s16   ;;  %s9049_s15 = sphi %s9165_s15, %s13707_s15   ;;  %s9045_s30 = sphi %s9163_s30, %s13706_s30   ;;  %s9041_s29 = sphi %s9161_s29, %s13705_s29  }
  0x19   : > { %s386_s18 = sshll.u32 %s9055_s17, 4  ;;  %s9182_s19 = sadd.s32 4294967295, %s9053_s16   ;;  %s9187_s18 = int_to_ptr.vmem [resolvable:$true] %s386_s18 }
  0x1a   : > { %13524 = sst [smem:[#allocation38_spill]] %s9182_s19  ;;  %p6332_p0 = scmp.ge.s32.totalorder %s9053_s16, 1 }
  0x1b   : > { %p13450_p1 = scmp.eq.s32.totalorder %s9182_s19, 0  ;;  %p374_p2 = scmp.lt.s32.totalorder %s9053_s16, 3 }
  0x1c   : > { %s9056_s21 = smov [#allocation9]   ;;  %s9057_s24 = smov [#allocation12]  }
  0x1d   : > { %p9189_p3 = pnand %p6332_p0, %p374_p2  ;;  %s400_s22 = sshll.u32 %s9056_s21, 4  ;;  %s9202_s22 = int_to_ptr.vmem [resolvable:$true] %s400_s22 }
  0x1e   : > { %s424_s25 = sshll.u32 %s9057_s24, 4  ;;  %s13528_s2 = sld [smem:[#allocation85_spill]]  ;;  %s9204_s25 = int_to_ptr.vmem [resolvable:$true] %s424_s25 }
  0x1f   : > { %s13525_s20 = scalar_select %p9189_p3, 1, 0 }
  0x20   : > { %p6842_p5 = pneg %p9189_p3 }
  0x21   : > { %13526 = sst [smem:[#allocation39_spill]] %s13525_s20 }
  0x22   : > { %p9198_p6 = pnand %p6842_p5, %p13450_p1 }
  0x24   : > { %s8559_s28 = scalar_lea.hbm %s13528_s2, 320  ;;  %p9214_p8 = pneg %p9198_p6 }
  0x25   : > { %p8560_p7 = scmp.ne.s32.totalorder %s13528_s2, %s8559_s28  ;;  %p8566_p11 = scmp.lt.u32.totalorder %s8559_s28, %s13528_s2 }
  0x27   : > { %p8562_p9 = pnand %p9214_p8, %p8560_p7 }
  0x29   : > { %p8563_p10 = pneg %p8562_p9 }
  0x2b   : > { %p8568_p12 = pnand %p8566_p11, %p8563_p10 }
  0x2d   : > { %8571 = shalt.err (!%p8568_p12)
}
  0x2e   : > { %s8572_s14 = scalar_lea.vmem %s9187_s18, 320  ;;  %p8580_p5 = scmp.lt.s32.totalorder %s9187_s18, %s9187_s18 }
  0x2f   : > { %p8573_p13 = scmp.ne.s32.totalorder %s9187_s18, %s8572_s14  ;;  %p8581_p4 = scmp.lt.s32.totalorder %s8572_s14, %s8572_s14 }
  0x31   : > { %p8575_p0 = pnand %p8573_p13, %p9214_p8  ;;  %p8582_p7 = por %p8581_p4, %p8580_p5 }
  0x33   : > { %p8576_p2 = pneg %p8575_p0 }
  0x35   : > { %p8583_p9 = pnand %p8582_p7, %p8576_p2 }
  0x37   : > { %8586 = shalt.err (!%p8583_p9)
}
  0x38   : > { %s13448_s26 = smov 64   ;;  %s13452_s20 = smov 4  }
  0x39   : > { %6845 = dma.hbm_to_vmem [thread:$0]  (!%p9198_p6), %s13528_s2, 320, %s9187_s18, [#allocation7], %s13448_s26, %s13448_s26, %s13452_s20  }
  0x3a   : > { %s13530_s3 = sld [smem:[#allocation86_spill]] }
  0x40   : > { %s8587_s14 = scalar_lea.hbm %s13530_s3, 16 }
  0x41   : > { %p8588_p4 = scmp.ne.s32.totalorder %s13530_s3, %s8587_s14  ;;  %p8594_p12 = scmp.lt.u32.totalorder %s8587_s14, %s13530_s3 }
  0x43   : > { %p8590_p10 = pnand %p8588_p4, %p9214_p8 }
  0x45   : > { %p8591_p11 = pneg %p8590_p10 }
  0x47   : > { %p8596_p13 = pnand %p8594_p12, %p8591_p11 }
  0x49   : > { %8599 = shalt.err (!%p8596_p13)
}
  0x4a   : > { %s8600_s18 = scalar_lea.vmem %s9202_s22, 16  ;;  %s8607_s0 = scalar_lea.vmem %s9202_s22, 32 }
  0x4b   : > { %p8601_p0 = scmp.ne.s32.totalorder %s9202_s22, %s8600_s18  ;;  %p8608_p7 = scmp.lt.s32.totalorder %s9202_s22, %s9202_s22 }
  0x4c   : > { %p8609_p9 = scmp.lt.s32.totalorder %s8607_s0, %s8600_s18 }
  0x4d   : > { %p8603_p2 = pnand %p8601_p0, %p9214_p8 }
  0x4e   : > { %p8610_p4 = por %p8609_p9, %p8608_p7 }
  0x4f   : > { %p8604_p5 = pneg %p8603_p2 }
  0x51   : > { %p8611_p10 = pnand %p8610_p4, %p8604_p5 }
  0x53   : > { %8614 = shalt.err (!%p8611_p10)
}
  0x54   : > { %6848 = dma.hbm_to_vmem [thread:$0]  (!%p9198_p6), %s13530_s3, 16, %s9202_s22, [#allocation10]  }
  0x55   : > { %s13531_s5 = sld [smem:[#allocation88_spill]] }
  0x5b   : > { %s8615_s28 = scalar_lea.hbm %s13531_s5, 16 }
  0x5c   : > { %p8616_p11 = scmp.ne.s32.totalorder %s13531_s5, %s8615_s28  ;;  %p8622_p0 = scmp.lt.u32.totalorder %s8615_s28, %s13531_s5 }
  0x5e   : > { %p8618_p12 = pnand %p8616_p11, %p9214_p8 }
  0x60   : > { %p8619_p13 = pneg %p8618_p12 }
  0x62   : > { %p8624_p2 = pnand %p8622_p0, %p8619_p13 }
  0x64   : > { %8627 = shalt.err (!%p8624_p2)
}
  0x65   : > { %s8628_s22 = scalar_lea.vmem %s9204_s25, 16  ;;  %s8635_s0 = scalar_lea.vmem %s9204_s25, 32 }
  0x66   : > { %p8629_p5 = scmp.ne.s32.totalorder %s9204_s25, %s8628_s22  ;;  %p8636_p4 = scmp.lt.s32.totalorder %s9204_s25, %s9204_s25 }
  0x67   : > { %p8637_p10 = scmp.lt.s32.totalorder %s8635_s0, %s8628_s22 }
  0x68   : > { %p8631_p7 = pnand %p8629_p5, %p9214_p8 }
  0x69   : > { %p8638_p11 = por %p8637_p10, %p8636_p4 }
  0x6a   : > { %p8632_p9 = pneg %p8631_p7 }
  0x6c   : > { %p8639_p12 = pnand %p8638_p11, %p8632_p9 }
  0x6e   : > { %8642 = shalt.err (!%p8639_p12)
}
  0x6f   : > { %6854 = dma.hbm_to_vmem [thread:$0]  (!%p9198_p6), %s13531_s5, 16, %s9204_s25, [#allocation13]  }
  0x70   : > { %s9060_s19 = smov [#allocation15]   ;;  %s9061_s28 = smov [#allocation18]  }
  0x71   : > { %s446_s27 = sshll.u32 %s9060_s19, 4  ;;  %s468_s17 = sshll.u32 %s9061_s28, 4  ;;  %s447_s27 = int_to_ptr.vmem [resolvable:$true] %s446_s27  ;;  %s469_s17 = int_to_ptr.vmem [resolvable:$true] %s468_s17 }
  0x72   : > { %s13532_s7 = sld [smem:[#allocation90_spill]] }
  0x78   : > { %s8643_s18 = scalar_lea.hbm %s13532_s7, 16 }
  0x79   : > { %p8644_p13 = scmp.ne.s32.totalorder %s13532_s7, %s8643_s18  ;;  %p8650_p5 = scmp.lt.u32.totalorder %s8643_s18, %s13532_s7 }
  0x7b   : > { %p8646_p0 = pnand %p8644_p13, %p9214_p8 }
  0x7d   : > { %p8647_p2 = pneg %p8646_p0 }
  0x7f   : > { %p8652_p7 = pnand %p8650_p5, %p8647_p2 }
  0x81   : > { %8655 = shalt.err (!%p8652_p7)
}
  0x82   : > { %s8656_s25 = scalar_lea.vmem %s447_s27, 16  ;;  %s8663_s29 = scalar_lea.vmem %s447_s27, 32 }
  0x83   : > { %p8657_p9 = scmp.ne.s32.totalorder %s447_s27, %s8656_s25  ;;  %p8664_p11 = scmp.lt.s32.totalorder %s447_s27, %s447_s27 }
  0x84   : > { %p8665_p12 = scmp.lt.s32.totalorder %s8663_s29, %s8656_s25 }
  0x85   : > { %p8659_p4 = pnand %p8657_p9, %p9214_p8 }
  0x86   : > { %p8666_p1 = por %p8665_p12, %p8664_p11 }
  0x87   : > { %p8660_p10 = pneg %p8659_p4 }
  0x89   : > { %p8667_p3 = pnand %p8666_p1, %p8660_p10 }
  0x8b   : > { %8670 = shalt.err (!%p8667_p3)
}
  0x8c   : > { %6860 = dma.hbm_to_vmem [thread:$0]  (!%p9198_p6), %s13532_s7, 16, %s447_s27, [#allocation16]  }
  0x8d   : > { %s8671_s14 = scalar_lea.hbm %s13435_s9, 16 }
  0x8e   : > { %p8672_p13 = scmp.ne.s32.totalorder %s13435_s9, %s8671_s14  ;;  %p8678_p3 = scmp.lt.u32.totalorder %s8671_s14, %s13435_s9 }
  0x90   : > { %p8674_p0 = pnand %p8672_p13, %p9214_p8 }
  0x92   : > { %p8675_p1 = pneg %p8674_p0 }
  0x94   : > { %p8680_p2 = pnand %p8678_p3, %p8675_p1 }
  0x96   : > { %8683 = shalt.err (!%p8680_p2)
}
  0x97   : > { %s8684_s25 = scalar_lea.vmem %s469_s17, 16  ;;  %s8691_s27 = scalar_lea.vmem %s469_s17, 32 }
  0x98   : > { %p8685_p5 = scmp.ne.s32.totalorder %s469_s17, %s8684_s25  ;;  %p8692_p4 = scmp.lt.s32.totalorder %s469_s17, %s469_s17 }
  0x99   : > { %p8693_p10 = scmp.lt.s32.totalorder %s8691_s27, %s8684_s25 }
  0x9a   : > { %p8687_p7 = pnand %p8685_p5, %p9214_p8 }
  0x9b   : > { %p8694_p11 = por %p8693_p10, %p8692_p4 }
  0x9c   : > { %p8688_p9 = pneg %p8687_p7 }
  0x9e   : > { %p8695_p12 = pnand %p8694_p11, %p8688_p9 }
  0xa0   : > { %8698 = shalt.err (!%p8695_p12)
}
  0xa1   : > { %6866 = dma.hbm_to_vmem [thread:$0]  (!%p9198_p6), %s13435_s9, 16, %s469_s17, [#allocation19]  }
  0xa2   : > { %s9062_s28 = smov [#allocation21]   ;;  %s9063_s24 = smov [#allocation11]  }
  0xa3   : > { %s490_s26 = sshll.u32 %s9062_s28, 4  ;;  %s410_s14 = sshll.u32 %s9063_s24, 4  ;;  %s491_s26 = int_to_ptr.vmem [resolvable:$true] %s490_s26  ;;  %s411_s14 = int_to_ptr.vmem [resolvable:$true] %s410_s14 }
  0xa4   : > { %s8699_s0 = scalar_lea.hbm %s13437_s11, 16 }
  0xa5   : > { %p8700_p13 = scmp.ne.s32.totalorder %s13437_s11, %s8699_s0  ;;  %p8706_p3 = scmp.lt.u32.totalorder %s8699_s0, %s13437_s11 }
  0xa7   : > { %p8702_p0 = pnand %p8700_p13, %p9214_p8 }
  0xa9   : > { %p8703_p1 = pneg %p8702_p0 }
  0xab   : > { %p8708_p2 = pnand %p8706_p3, %p8703_p1 }
  0xad   : > { %8711 = shalt.err (!%p8708_p2)
}
  0xae   : > { %s8712_s17 = scalar_lea.vmem %s491_s26, 16  ;;  %s8719_s19 = scalar_lea.vmem %s491_s26, 32 }
  0xaf   : > { %p8713_p5 = scmp.ne.s32.totalorder %s491_s26, %s8712_s17  ;;  %p8720_p4 = scmp.lt.s32.totalorder %s491_s26, %s491_s26 }
  0xb0   : > { %p8721_p10 = scmp.lt.s32.totalorder %s8719_s19, %s8712_s17 }
  0xb1   : > { %p8715_p7 = pnand %p8713_p5, %p9214_p8 }
  0xb2   : > { %p8722_p11 = por %p8721_p10, %p8720_p4 }
  0xb3   : > { %p8716_p9 = pneg %p8715_p7 }
  0xb5   : > { %p8723_p12 = pnand %p8722_p11, %p8716_p9 }
  0xb7   : > { %8726 = shalt.err (!%p8723_p12)
}
  0xb8   : > { %6872 = dma.hbm_to_vmem [thread:$0]  (!%p9198_p6), %s13437_s11, 16, %s491_s26, [#allocation22]  }
  0xb9   : > { %s13533_s4 = sld [smem:[#allocation87_spill]] }
  0xbf   : > { %s8727_s0 = scalar_lea.hbm %s13533_s4, 576 }
  0xc0   : > { %p8728_p13 = scmp.ne.s32.totalorder %s13533_s4, %s8727_s0  ;;  %p8734_p3 = scmp.lt.u32.totalorder %s8727_s0, %s13533_s4 }
  0xc2   : > { %p8730_p0 = pnand %p8728_p13, %p9214_p8 }
  0xc4   : > { %p8731_p1 = pneg %p8730_p0 }
  0xc6   : > { %p8736_p2 = pnand %p8734_p3, %p8731_p1 }
  0xc8   : > { %8739 = shalt.err (!%p8736_p2)
}
  0xc9   : > { %s8740_s17 = scalar_lea.vmem %s411_s14, 576  ;;  %p8748_p4 = scmp.lt.s32.totalorder %s411_s14, %s411_s14 }
  0xca   : > { %p8741_p5 = scmp.ne.s32.totalorder %s411_s14, %s8740_s17  ;;  %p8749_p10 = scmp.lt.s32.totalorder %s8740_s17, %s8740_s17 }
  0xcc   : > { %p8743_p7 = pnand %p8741_p5, %p9214_p8  ;;  %p8750_p11 = por %p8749_p10, %p8748_p4 }
  0xce   : > { %p8744_p9 = pneg %p8743_p7 }
  0xd0   : > { %p8751_p12 = pnand %p8750_p11, %p8744_p9 }
  0xd2   : > { %8754 = shalt.err (!%p8751_p12)
}
  0xd3   : > { %s13534_s26 = smov 64   ;;  %s9064_s24 = smov [#allocation14]  }
  0xd4   : > { %6851 = dma.hbm_to_vmem [thread:$0]  (!%p9198_p6), %s13533_s4, 576, %s411_s14, [#allocation10], %s13534_s26, %s13534_s26, %s13452_s20  }
  0xd5   : > { %s435_s18 = sshll.u32 %s9064_s24, 4  ;;  %s9065_s22 = smov [#allocation17]   ;;  %s436_s18 = int_to_ptr.vmem [resolvable:$true] %s435_s18 }
  0xd6   : > { %s457_s0 = sshll.u32 %s9065_s22, 4  ;;  %s13535_s6 = sld [smem:[#allocation89_spill]]  ;;  %s458_s0 = int_to_ptr.vmem [resolvable:$true] %s457_s0 }
  0xdc   : > { %s8755_s27 = scalar_lea.hbm %s13535_s6, 32 }
  0xdd   : > { %p8756_p13 = scmp.ne.s32.totalorder %s13535_s6, %s8755_s27  ;;  %p8762_p3 = scmp.lt.u32.totalorder %s8755_s27, %s13535_s6 }
  0xdf   : > { %p8758_p0 = pnand %p8756_p13, %p9214_p8 }
  0xe1   : > { %p8759_p1 = pneg %p8758_p0 }
  0xe3   : > { %p8764_p2 = pnand %p8762_p3, %p8759_p1 }
  0xe5   : > { %8767 = shalt.err (!%p8764_p2)
}
  0xe6   : > { %s8768_s14 = scalar_lea.vmem %s436_s18, 32  ;;  %p8776_p4 = scmp.lt.s32.totalorder %s436_s18, %s436_s18 }
  0xe7   : > { %p8769_p5 = scmp.ne.s32.totalorder %s436_s18, %s8768_s14  ;;  %p8777_p10 = scmp.lt.s32.totalorder %s8768_s14, %s8768_s14 }
  0xe9   : > { %p8771_p7 = pnand %p8769_p5, %p9214_p8  ;;  %p8778_p11 = por %p8777_p10, %p8776_p4 }
  0xeb   : > { %p8772_p9 = pneg %p8771_p7 }
  0xed   : > { %p8779_p12 = pnand %p8778_p11, %p8772_p9 }
  0xef   : > { %8782 = shalt.err (!%p8779_p12)
}
  0xf0   : > { %6857 = dma.hbm_to_vmem [thread:$0]  (!%p9198_p6), %s13535_s6, 32, %s436_s18, [#allocation13]  }
  0xf1   : > { %s13536_s8 = sld [smem:[#allocation91_spill]] }
  0xf7   : > { %s8783_s1 = scalar_lea.hbm %s13536_s8, 16 }
  0xf8   : > { %p8784_p13 = scmp.ne.s32.totalorder %s13536_s8, %s8783_s1  ;;  %p8790_p3 = scmp.lt.u32.totalorder %s8783_s1, %s13536_s8 }
  0xfa   : > { %p8786_p0 = pnand %p8784_p13, %p9214_p8 }
  0xfc   : > { %p8787_p1 = pneg %p8786_p0 }
  0xfe   : > { %p8792_p2 = pnand %p8790_p3, %p8787_p1 }
 0x100   : > { %8795 = shalt.err (!%p8792_p2)
}
 0x101   : > { %s8796_s19 = scalar_lea.vmem %s458_s0, 16  ;;  %s8803_s18 = scalar_lea.vmem %s458_s0, 32 }
 0x102   : > { %p8797_p5 = scmp.ne.s32.totalorder %s458_s0, %s8796_s19  ;;  %p8804_p4 = scmp.lt.s32.totalorder %s458_s0, %s458_s0 }
 0x103   : > { %p8805_p10 = scmp.lt.s32.totalorder %s8803_s18, %s8796_s19 }
 0x104   : > { %p8799_p7 = pnand %p8797_p5, %p9214_p8 }
 0x105   : > { %p8806_p11 = por %p8805_p10, %p8804_p4 }
 0x106   : > { %p8800_p9 = pneg %p8799_p7 }
 0x108   : > { %p8807_p12 = pnand %p8806_p11, %p8800_p9 }
 0x10a   : > { %8810 = shalt.err (!%p8807_p12)
}
 0x10b   : > { %6863 = dma.hbm_to_vmem [thread:$0]  (!%p9198_p6), %s13536_s8, 16, %s458_s0, [#allocation16]  }
 0x10c   : > { %s9066_s24 = smov [#allocation20]   ;;  %s9067_s22 = smov [#allocation23]  }
 0x10d   : > { %s479_s2 = sshll.u32 %s9066_s24, 4  ;;  %s501_s1 = sshll.u32 %s9067_s22, 4  ;;  %s480_s2 = int_to_ptr.vmem [resolvable:$true] %s479_s2  ;;  %s502_s1 = int_to_ptr.vmem [resolvable:$true] %s501_s1 }
 0x10e   : > { %s8811_s29 = scalar_lea.hbm %s13436_s10, 16 }
 0x10f   : > { %p8812_p13 = scmp.ne.s32.totalorder %s13436_s10, %s8811_s29  ;;  %p8818_p3 = scmp.lt.u32.totalorder %s8811_s29, %s13436_s10 }
 0x111   : > { %p8814_p0 = pnand %p8812_p13, %p9214_p8 }
 0x113   : > { %p8815_p1 = pneg %p8814_p0 }
 0x115   : > { %p8820_p2 = pnand %p8818_p3, %p8815_p1 }
 0x117   : > { %8823 = shalt.err (!%p8820_p2)
}
 0x118   : > { %s8824_s0 = scalar_lea.vmem %s480_s2, 16  ;;  %s8831_s28 = scalar_lea.vmem %s480_s2, 32 }
 0x119   : > { %p8825_p5 = scmp.ne.s32.totalorder %s480_s2, %s8824_s0  ;;  %p8832_p4 = scmp.lt.s32.totalorder %s480_s2, %s480_s2 }
 0x11a   : > { %p8833_p10 = scmp.lt.s32.totalorder %s8831_s28, %s8824_s0 }
 0x11b   : > { %p8827_p7 = pnand %p8825_p5, %p9214_p8 }
 0x11c   : > { %p8834_p11 = por %p8833_p10, %p8832_p4 }
 0x11d   : > { %p8828_p9 = pneg %p8827_p7 }
 0x11f   : > { %p8835_p12 = pnand %p8834_p11, %p8828_p9 }
 0x121   : > { %8838 = shalt.err (!%p8835_p12)
}
 0x122   : > { %6869 = dma.hbm_to_vmem [thread:$0]  (!%p9198_p6), %s13436_s10, 16, %s480_s2, [#allocation19]  }
 0x123   : > { %s8839_s29 = scalar_lea.hbm %s13438_s12, 128 }
 0x124   : > { %p8840_p13 = scmp.ne.s32.totalorder %s13438_s12, %s8839_s29  ;;  %p8846_p3 = scmp.lt.u32.totalorder %s8839_s29, %s13438_s12 }
 0x126   : > { %p8842_p0 = pnand %p8840_p13, %p9214_p8 }
 0x128   : > { %p8843_p1 = pneg %p8842_p0 }
 0x12a   : > { %p8848_p2 = pnand %p8846_p3, %p8843_p1 }
 0x12c   : > { %8851 = shalt.err (!%p8848_p2)
}
 0x12d   : > { %s8852_s0 = scalar_lea.vmem %s502_s1, 128  ;;  %p8860_p4 = scmp.lt.s32.totalorder %s502_s1, %s502_s1 }
 0x12e   : > { %p8853_p5 = scmp.ne.s32.totalorder %s502_s1, %s8852_s0  ;;  %p8861_p10 = scmp.lt.s32.totalorder %s8852_s0, %s8852_s0 }
 0x130   : > { %p8855_p7 = pnand %p8853_p5, %p9214_p8  ;;  %p8862_p11 = por %p8861_p10, %p8860_p4 }
 0x132   : > { %p8856_p9 = pneg %p8855_p7 }
 0x134   : > { %p8863_p12 = pnand %p8862_p11, %p8856_p9 }
 0x136   : > { %8866 = shalt.err (!%p8863_p12)
}
 0x137   : > { %6875 = dma.hbm_to_vmem [thread:$0]  (!%p9198_p6), %s13438_s12, 128, %s502_s1, [#allocation22]  }
 0x138   : > { %s9068_s24 = smov [#allocation24]   ;;  %s8867_s29 = scalar_lea.hbm %s13439_s13, 128 }
 0x139   : > { %s512_s22 = sshll.u32 %s9068_s24, 4  ;;  %p8868_p13 = scmp.ne.s32.totalorder %s13439_s13, %s8867_s29  ;;  %s513_s22 = int_to_ptr.vmem [resolvable:$true] %s512_s22 }
 0x13a   : > { %p8874_p3 = scmp.lt.u32.totalorder %s8867_s29, %s13439_s13 }
 0x13b   : > { %p8870_p0 = pnand %p8868_p13, %p9214_p8 }
 0x13d   : > { %p8871_p1 = pneg %p8870_p0 }
 0x13f   : > { %p8876_p2 = pnand %p8874_p3, %p8871_p1 }
 0x141   : > { %8879 = shalt.err (!%p8876_p2)
}
 0x142   : > { %s8880_s1 = scalar_lea.vmem %s513_s22, 128  ;;  %p8888_p4 = scmp.lt.s32.totalorder %s513_s22, %s513_s22 }
 0x143   : > { %p8881_p5 = scmp.ne.s32.totalorder %s513_s22, %s8880_s1  ;;  %p8889_p10 = scmp.lt.s32.totalorder %s8880_s1, %s8880_s1 }
 0x145   : > { %p8883_p7 = pnand %p8881_p5, %p9214_p8  ;;  %p8890_p11 = por %p8889_p10, %p8888_p4 }
 0x147   : > { %p8884_p9 = pneg %p8883_p7 }
 0x149   : > { %p8891_p12 = pnand %p8890_p11, %p8884_p9 }
 0x14b   : > { %8894 = shalt.err (!%p8891_p12)
}
 0x14c   : > { %s13537_s21 = sld [smem:[#allocation37_spill]]  ;;  %s13538_s28 = sld [smem:[#allocation38_spill]] }
 0x14d   : > { %6878 = dma.hbm_to_vmem [thread:$0]  (!%p9198_p6), %s13439_s13, 128, %s513_s22, [#allocation25]  }
 0x14e   : > { %s6331_s24 = sadd.s32 4294967294, %s9053_s16   ;;  %s9453_s23 = sadd.s32 1, %s9053_s16  }
 0x14f   : > { %s43_s25 = ssub.s32 %s9053_s16, %s9453_s23  ;;  %s46_s27 = sadd.s32 1, %s9049_s15 }
 0x150   : > { %p44_p8 = scmp.eq.s32.totalorder %s43_s25, 0  ;;  %p53_p13 = scmp.ne.s32.totalorder %s9049_s15, %s9045_s30 }
 0x151   : > { %p54_p0 = scmp.eq.s32.totalorder %s9053_s16, 0  ;;  %p367_p7 = scmp.eq.s32.totalorder %s6331_s24, 1 }
 0x152   : > { %p59_p1 = scmp.ne.s32.totalorder %s9045_s30, %s13537_s21  ;;  %p13539_p2 = scmp.eq.s32.totalorder %s13538_s28, 0 }
 0x153   : > { %s9464_s29 = scalar_select %p44_p8, %s9049_s15, %s46_s27  }
 0x154   : > { %p55_p3 = por %p54_p0, %p53_p13  ;;  %p9468_p5 = por %p13539_p2, %p59_p1 }
 0x155   : > { %p361_p6 = scmp.eq.s32.totalorder %s13538_s28, 1  ;;  %p6902_p9 = scmp.lt.s32.totalorder %s9053_s16, 2 }
 0x156   : > { %s13540_s17 = scalar_select %p9468_p5, 1, 0 }
 0x157   : > { %s9475_s22 = sand.u32 1, %s9049_s15   ;;  %p9477_p4 = por %p361_p6, %p53_p13 }
 0x158   : > { %p9481_p10 = por %p367_p7, %p59_p1  ;;  %s6785_s14 = smul.u32 216, %s9475_s22 }
 0x159   : > { %s13541_s19 = scalar_select %p9477_p4, 1, 0 }
 0x15a   : > { %s13542_s18 = scalar_select %p9481_p10, 1, 0 }
 0x15b   : > { %s6786_s1 = smul.u32 3456, %s9053_s16  ;;  %p9487_p11 = pnand %p6902_p9, %p55_p3 }
 0x15c   : > { %s13544_s24 = sld [smem:[#allocation83_spill]]  ;;  %s527_s27 = scalar_lea.vmem [#allocation3], %s6785_s14 }
 0x15d   : > { %s534_s20 = sshll.u32 %s527_s27, 4  ;;  %s524_s3 = scalar_lea.sflag [#allocation4], %s9475_s22  ;;  %s9497_s20 = int_to_ptr.vmem [resolvable:$true] %s534_s20 }
 0x15e   : > { %p8897_p8 = pneg %p9487_p11 }
 0x162   : > { %s9495_s25 = scalar_lea.hbm %s13544_s24, %s6786_s1  ;;  %s8900_s28 = scalar_lea.hbm %s13544_s24, 6912 }
 0x163   : > { %s8895_s4 = scalar_lea.hbm %s9495_s25, 3456  ;;  %p8901_p1 = scmp.lt.u32.totalorder %s9495_s25, %s13544_s24 }
 0x164   : > { %p8896_p12 = scmp.ne.s32.totalorder %s9495_s25, %s8895_s4  ;;  %p8902_p3 = scmp.lt.u32.totalorder %s8900_s28, %s8895_s4 }
 0x165   : > { %p8904_p6 = scmp.lt.u32.totalorder %s8895_s4, %s9495_s25 }
 0x166   : > { %p8898_p13 = pnand %p8897_p8, %p8896_p12  ;;  %p8903_p2 = por %p8902_p3, %p8901_p1 }
 0x168   : > { %p8899_p0 = pneg %p8898_p13  ;;  %p8905_p7 = por %p8904_p6, %p8903_p2 }
 0x16a   : > { %p8906_p9 = pnand %p8905_p7, %p8899_p0 }
 0x16c   : > { %8909 = shalt.err (!%p8906_p9)
}
 0x16d   : > { %s8910_s14 = scalar_lea.vmem %s9497_s20, 3456  ;;  %s9069_s27 = smov [#allocation3]  }
 0x16e   : > { %p8911_p12 = scmp.ne.s32.totalorder %s9497_s20, %s8910_s14  ;;  %s8915_s21 = sshll.u32 %s9069_s27, 4  ;;  %s8916_s21 = int_to_ptr.vmem [resolvable:$false] %s8915_s21 }
 0x16f   : > { %s8917_s5 = scalar_lea.vmem %s8916_s21, 6912  ;;  %p8918_p4 = scmp.lt.s32.totalorder %s9497_s20, %s8916_s21 }
 0x170   : > { %p8913_p13 = pnand %p8911_p12, %p8897_p8  ;;  %p8919_p1 = scmp.lt.s32.totalorder %s8917_s5, %s8910_s14 }
 0x172   : > { %p8914_p10 = pneg %p8913_p13  ;;  %p8920_p3 = por %p8919_p1, %p8918_p4 }
 0x174   : > { %p8921_p2 = pnand %p8920_p3, %p8914_p10 }
 0x176   : > { %8924 = shalt.err (!%p8921_p2)
}
 0x177   : > { %s13545_s4 = smov 4   ;;  %s6347_s2 = sshll.u32 %s9053_s16, 4 }
 0x178   : > { %6882 = dma.hbm_to_vmem [thread:$0]  (!%p9487_p11), %s9495_s25, 3456, %s9497_s20, %s524_s3, %s13534_s26, %s13534_s26, %s13545_s4  }
 0x179   : > { %s547_s1 = scalar_lea.vmem [#allocation6], %s9475_s22  ;;  %s13546_s21 = sld [smem:[#allocation84_spill]] }
 0x17a   : > { %s554_s28 = sshll.u32 %s547_s1, 4  ;;  %s13547_s6 = sand.u32 1, %s9053_s16   ;;  %s555_s28 = int_to_ptr.vmem [resolvable:$true] %s554_s28 }
 0x17b   : > { %s545_s7 = scalar_lea.sflag [#allocation7], %s13547_s6 }
 0x17f   : > { %s9535_s5 = scalar_lea.hbm %s13546_s21, %s6347_s2  ;;  %s8930_s26 = scalar_lea.hbm %s13546_s21, 32 }
 0x180   : > { %s8925_s8 = scalar_lea.hbm %s9535_s5, 16  ;;  %p8931_p6 = scmp.lt.u32.totalorder %s9535_s5, %s13546_s21 }
 0x181   : > { %p8926_p4 = scmp.ne.s32.totalorder %s9535_s5, %s8925_s8  ;;  %p8932_p7 = scmp.lt.u32.totalorder %s8930_s26, %s8925_s8 }
 0x182   : > { %p8934_p12 = scmp.lt.u32.totalorder %s8925_s8, %s9535_s5 }
 0x183   : > { %p8928_p10 = pnand %p8926_p4, %p8897_p8  ;;  %p8933_p9 = por %p8932_p7, %p8931_p6 }
 0x185   : > { %p8929_p0 = pneg %p8928_p10  ;;  %p8935_p13 = por %p8934_p12, %p8933_p9 }
 0x187   : > { %p8936_p1 = pnand %p8935_p13, %p8929_p0 }
 0x189   : > { %8939 = shalt.err (!%p8936_p1)
}
 0x18a   : > { %s8940_s6 = scalar_lea.vmem %s555_s28, 16  ;;  %s9070_s4 = smov [#allocation6]  }
 0x18b   : > { %p8941_p3 = scmp.ne.s32.totalorder %s555_s28, %s8940_s6  ;;  %s8945_s2 = sshll.u32 %s9070_s4, 4  ;;  %s8946_s2 = int_to_ptr.vmem [resolvable:$false] %s8945_s2 }
 0x18c   : > { %s8947_s1 = scalar_lea.vmem %s8946_s2, 32  ;;  %p8948_p10 = scmp.lt.s32.totalorder %s555_s28, %s8946_s2 }
 0x18d   : > { %p8943_p2 = pnand %p8941_p3, %p8897_p8  ;;  %p8949_p5 = scmp.lt.s32.totalorder %s8947_s1, %s8940_s6 }
 0x18f   : > { %p8944_p4 = pneg %p8943_p2  ;;  %p8950_p6 = por %p8949_p5, %p8948_p10 }
 0x191   : > { %p8951_p7 = pnand %p8950_p6, %p8944_p4 }
 0x193   : > { %8954 = shalt.err (!%p8951_p7)
}
 0x194   : > { %6885 = dma.hbm_to_vmem [thread:$0]  (!%p9487_p11), %s9535_s5, 16, %s555_s28, %s545_s7  }
 0x195   : > { %s13548_s8 = sld [smem:[#allocation39_spill]] }
 0x19b   : > { %p13549_p0 = scmp.ne.s32.totalorder %s13548_s8, 0 }
 0x19d   : > { %563 = sbr.rel (%p13549_p0) target bundleno = 2779 (0xadb), region = 76 }
 0x1a4   : > { %s9561_s14 = sand.u32 1, %s9045_s30   ;;  %p13550_p5 = scmp.ne.s32.totalorder %s13540_s17, 0 }
 0x1a5   : > { %s6787_s27 = smul.u32 216, %s9561_s14  ;;  %s566_s3 = scalar_lea.sflag [#allocation4], %s9561_s14 }
 0x1a7   : > { %s9565_s20 = scalar_lea.vmem [#allocation3], %s6787_s27 }
 0x1a8   : > { %9000 = dma.done.wait (%p13550_p5), %s566_s3, 3456  }
 0x1a9   : > { %9002 = vsyncadd (%p13550_p5), %s566_s3, 4294963840  ;;  %s13551_s0 = sld [smem:[#allocation38_spill]]  ;;  %s577_s5 = scalar_lea.vmem [#allocation6], %s9561_s14 }
 0x1af   : > { %s574_s7 = sand.u32 1, %s13551_s0  }
 0x1b0   : > { %s575_s28 = scalar_lea.sflag [#allocation7], %s574_s7 }
 0x1b1   : > { %9004 = dma.done.wait (%p13550_p5), %s575_s28, 16  }
 0x1b2   : > { %9006 = vsyncadd (%p13550_p5), %s575_s28, 4294967280  ;;  %p13552_p11 = scmp.eq.s32.totalorder %s13551_s0, 0 }
 0x1b4   : > { %9008 = dma.done.wait (%p13552_p11), [#allocation7], 320   ;;  %p13553_p8 = pmov %p13552_p11 }
 0x1b6   : > { %9010 = vsyncadd (%p13553_p8), [#allocation7], 4294966976  ;;  %p13554_p9 = pmov %p13553_p8 }
 0x1b7   : > { %p13555_p12 = pmov %p13553_p8 }
 0x1b8   : > { %9012 = dma.done.wait (%p13554_p9), [#allocation10], 592  }
 0x1b9   : > { %9014 = vsyncadd (%p13555_p12), [#allocation10], 4294966704  ;;  %p13556_p13 = pmov %p13553_p8 }
 0x1ba   : > { %p13557_p1 = pmov %p13553_p8 }
 0x1bb   : > { %9016 = dma.done.wait (%p13556_p13), [#allocation13], 48  }
 0x1bc   : > { %9018 = vsyncadd (%p13557_p1), [#allocation13], 4294967248  ;;  %p13558_p3 = pmov %p13557_p1 }
 0x1bd   : > { %p13559_p2 = pmov %p13557_p1 }
 0x1be   : > { %9020 = dma.done.wait (%p13558_p3), [#allocation16], 32  }
 0x1bf   : > { %9022 = vsyncadd (%p13559_p2), [#allocation16], 4294967264  ;;  %p13560_p4 = pmov %p13557_p1 }
 0x1c0   : > { %p13561_p10 = pmov %p13557_p1 }
 0x1c1   : > { %9024 = dma.done.wait (%p13560_p4), [#allocation19], 32  }
 0x1c2   : > { %9026 = vsyncadd (%p13561_p10), [#allocation19], 4294967264  ;;  %p13562_p6 = pmov %p13557_p1 }
 0x1c3   : > { %p13563_p7 = pmov %p13557_p1 }
 0x1c4   : > { %9028 = dma.done.wait (%p13562_p6), [#allocation22], 144  }
 0x1c5   : > { %9030 = vsyncadd (%p13563_p7), [#allocation22], 4294967152  ;;  %p13564_p0 = pmov %p13557_p1 }
 0x1c7   : > { %9032 = dma.done.wait (%p13564_p0), [#allocation25], 128   ;;  %p13565_p5 = pmov %p13564_p0 }
 0x1c8   : > { %v6540_v0 = vld [vmem:[%s9565_s20 + $0x18] sm:$0xff]   ;;  %v678_v1 = vld [vmem:[%s9565_s20 + $0xc] sm:$0xff]   ;;  %v6505_v2 = vld [vmem:[%s9565_s20] sm:$0xff]   ;;  %vm1008_vm0 = vcmask 1045504   ;;  %vm831_vm1 = vcmask 1046528   ;;  %s9071_s17 = smov 12  }
 0x1c9   : > { %9034 = vsyncadd (%p13565_p5), [#allocation25], 4294967168  ;;  %v9608_v3 = vunpack.c.l.bf16 %v6540_v0  ;;  %v9610_v4 = vunpack.c.h.bf16 %v6540_v0  ;;  %v9612_v5 = vunpack.c.l.bf16 %v678_v1  ;;  %v9614_v6 = vunpack.c.h.bf16 %v678_v1  ;;  %v677_v7 = vld [vmem:[%s9565_s20 + $0x8] sm:$0x1]  ;;  %v680_v8 = vld [vmem:[%s9565_s20 + $0x14] sm:$0x1] }
 0x1ca   : > { %v9618_v9 = vunpack.c.l.bf16 %v6505_v2  ;;  %v9620_v10 = vunpack.c.h.bf16 %v6505_v2  ;;  %v731_v11 = vunpack.c.l.bf16 %v677_v7  ;;  %v734_v12 = vunpack.c.l.bf16 %v680_v8  ;;  %v683_v29 = vld [vmem:[%s9565_s20 + $0x20] sm:$0x1]  ;;  %s9072_s26 = smov 8   ;;  %s9073_s22 = smov 4   ;;  %v684_v44 = vld [vmem:[%s9565_s20 + $0x24] sm:$0xff]  }
 0x1cb   : > { %v9624_v13 = vpack.i.bf16 %v9610_v4, %v9608_v3  ;;  %v6976_v14 = vpack.i.bf16 %v9614_v6, %v9612_v5  ;;  %v1014_v15 = vrot.slane %v9612_v5, 2  ;;  %v1015_v16 = vrot.slane %v9614_v6, 2  ;;  %v686_v45 = vld [vmem:[%s9565_s20 + $0x2c] sm:$0x1]  ;;  %v8256_v57 = vld [vmem:[#allocation8] sm:$0xff]   ;;  %s9074_s25 = smov 16  }
 0x1cc   : > { %v1009_v17 = vrot.slane %v9618_v9, 2  ;;  %v1010_v18 = vrot.slane %v9620_v10, 2  ;;  %v1012_v19 = vrot.slane %v731_v11, 2  ;;  %v832_v20 = vrot.slane %v9618_v9, 1  ;;  %6621 = vmatprep.subr.bf16.mxu0 %v8256_v57  ;;  %v8257_v62 = vld [vmem:[#allocation8 + $0x8] sm:$0xff]   ;;  %6775 = vmatprep.subr.bf16.mxu1 %v8256_v57  ;;  %s9075_s6 = smov 20  }
 0x1cd   : > { %6982 = vrot.lane.b32.xlu1 %v9624_v13, %s9071_s17  ;;  %6977 = vrot.lane.b32.xlu0 %v6976_v14, %s9071_s17  ;;  %v833_v21 = vrot.slane %v9620_v10, 1  ;;  %v835_v22 = vrot.slane %v731_v11, 1  ;;  %v1016_v23 = vsel %vm1008_vm0, %v1014_v15, %v1015_v16  ;;  %v1017_v24 = vrot.slane %v734_v12, 2  ;;  %s9076_s4 = smov 24   ;;  %s9077_s2 = smov 28   ;;  %v6541_v15 = vld [vmem:[%s9565_s20 + $0x30] sm:$0xff]  }
 0x1ce   : > { %v1011_v25 = vsel %vm1008_vm0, %v1009_v17, %v1010_v18  ;;  %v1013_v26 = vsel %vm1008_vm0, %v1010_v18, %v1012_v19  ;;  %v837_v27 = vrot.slane %v9612_v5, 1  ;;  %v838_v28 = vrot.slane %v9614_v6, 1  ;;  %6622 = vmatpush3.bf16.msra.mxu0 %v8256_v57  ;;  %6778 = vmatpush3.bf16.msra.mxu1 %v8256_v57  ;;  %s9078_s1 = smov 32   ;;  %s9081_s8 = smov 48  }
 0x1cf   : > { %v6996_v30 = vpack.i.bf16 %v1013_v26, %v1011_v25  ;;  %v834_v31 = vsel %vm831_vm1, %v832_v20, %v833_v21  ;;  %v836_v32 = vsel %vm831_vm1, %v833_v21, %v835_v22  ;;  %v1018_v33 = vsel %vm1008_vm0, %v1015_v16, %v1017_v24  ;;  %6623 = vmatprep.subr.bf16.mxu0 %v8257_v62  ;;  %v689_v16 = vld [vmem:[%s9565_s20 + $0x38] sm:$0x1]  ;;  %s9082_s27 = smov 56   ;;  %s9083_s3 = smov 40  }
 0x1d0   : > { %v6986_v34 = vpack.i.bf16 %v836_v32, %v834_v31  ;;  %v7001_v35 = vpack.i.bf16 %v1018_v33, %v1016_v23  ;;  %v9647_v36 = vsel %vm831_vm1, %v837_v27, %v838_v28  ;;  %v840_v37 = vrot.slane %v734_v12, 1  ;;  %6776 = vmatprep.subr.bf16.mxu1 %v8257_v62  ;;  %s6361_s7 = sshll.u32 %s9561_s14, 7  ;;  %p13700_p8 = scmp.ne.s32.totalorder %s13541_s19, 0 }
 0x1d1   : > { %13566 = vst [vmem:[#allocation40_spill] sm:$0xff] %v9647_v36  ;;  %6997 = vrot.lane.b32.xlu1 %v6996_v30, %s9072_s26  ;;  %v737_v38 = vunpack.c.l.bf16 %v683_v29  ;;  %v842_v39 = vrot.slane %v9608_v3, 1  ;;  %v843_v40 = vrot.slane %v9610_v4, 1  ;;  %v1019_v41 = vrot.slane %v9608_v3, 2  ;;  %v690_v29 = vld [vmem:[%s9565_s20 + $0x3c] sm:$0xff]   ;;  %s13129_s28 = scalar_lea.vmem [#allocation26], %s6361_s7 }
 0x1d2   : > { %6987 = vrot.lane.b32.xlu0 %v6986_v34, %s9073_s22  ;;  %v9655_v42 = vsel %vm831_vm1, %v838_v28, %v840_v37  ;;  %v1020_v43 = vrot.slane %v9610_v4, 2  ;;  %v9670_v52 = vunpack.c.l.bf16 %v684_v44  ;;  %v9676_v55 = vunpack.c.h.bf16 %v684_v44  ;;  %6624 = vmatpush3.bf16.msra.mxu0 %v8257_v62  ;;  %v692_v30 = vld [vmem:[%s9565_s20 + $0x44] sm:$0x1] }
 0x1d3   : > { %13567 = vst [vmem:[#allocation41_spill] sm:$0xff] %v9655_v42  ;;  %v6991_v46 = vpack.i.bf16 %v9655_v42, %v9647_v36  ;;  %v9663_v47 = vsel %vm831_vm1, %v842_v39, %v843_v40  ;;  %v845_v48 = vrot.slane %v737_v38, 1  ;;  %v1022_v49 = vrot.slane %v737_v38, 2  ;;  %6779 = vmatpush3.bf16.msra.mxu1 %v8257_v62 }
 0x1d4   : > { %13568 = vst [vmem:[#allocation42_spill] sm:$0xff] %v9663_v47  ;;  %v1021_v51 = vsel %vm1008_vm0, %v1019_v41, %v1020_v43  ;;  %v740_v56 = vunpack.c.l.bf16 %v686_v45  ;;  %v847_v59 = vrot.slane %v9670_v52, 1  ;;  %v848_v60 = vrot.slane %v9676_v55, 1 }
 0x1d5   : > { %7002 = vrot.lane.b32.xlu1 %v7001_v35, %s9072_s26  ;;  %v9667_v50 = vsel %vm831_vm1, %v843_v40, %v845_v48  ;;  %v1023_v54 = vsel %vm1008_vm0, %v1020_v43, %v1022_v49  ;;  %v7031_v63 = vpack.i.bf16 %v9676_v55, %v9670_v52  ;;  %v1024_v7 = vrot.slane %v9670_v52, 2  ;;  %v8258_v43 = vld [vmem:[#allocation8 + $0x10] ss:$0 sps:$4 sm:$0x33]  }
 0x1d6   : > { %13569 = vst [vmem:[#allocation43_spill] sm:$0xff] %v9667_v50  ;;  %6992 = vrot.lane.b32.xlu0 %v6991_v46, %s9073_s22  ;;  %v7011_v53 = vpack.i.bf16 %v9667_v50, %v9663_v47  ;;  %v7021_v58 = vpack.i.bf16 %v1023_v54, %v1021_v51  ;;  %v850_v61 = vrot.slane %v740_v56, 1  ;;  %v9687_v0 = vsel %vm831_vm1, %v847_v59, %v848_v60  ;;  %v695_v59 = vld [vmem:[%s9565_s20 + $0x50] sm:$0x1] }
 0x1d7   : > { %13570 = vst [vmem:[#allocation44_spill] sm:$0xff] %v9687_v0  ;;  %v1025_v8 = vrot.slane %v9676_v55, 2  ;;  %v1027_v11 = vrot.slane %v740_v56, 2  ;;  %v9707_v17 = vunpack.c.l.bf16 %v6541_v15  ;;  %v9709_v18 = vunpack.c.h.bf16 %v6541_v15 }
 0x1d8   : > { %v9690_v1 = vsel %vm831_vm1, %v848_v60, %v850_v61  ;;  %v743_v19 = vunpack.c.l.bf16 %v689_v16  ;;  %v9732_v32 = vunpack.c.l.bf16 %v690_v29  ;;  %v746_v37 = vunpack.c.l.bf16 %v692_v30 }
 0x1d9   : > { %7012 = vrot.lane.b32.xlu1 %v7011_v53, %s9074_s25  ;;  %13571 = vst [vmem:[#allocation45_spill] sm:$0xff] %v9690_v1  ;;  %v7041_v2 = vpack.i.bf16 %v9690_v1, %v9687_v0  ;;  %v1026_v12 = vsel %vm1008_vm0, %v1024_v7, %v1025_v8  ;;  %v1028_v14 = vsel %vm1008_vm0, %v1025_v8, %v1027_v11  ;;  %v852_v20 = vrot.slane %v9707_v17, 1 }
 0x1da   : > { %7007 = vrot.lane.b32.xlu0 %v6991_v46, %s9074_s25  ;;  %v853_v21 = vrot.slane %v9709_v18, 1  ;;  %v855_v22 = vrot.slane %v743_v19, 1  ;;  %v7081_v23 = vpack.i.bf16 %v9709_v18, %v9707_v17  ;;  %v1029_v24 = vrot.slane %v9707_v17, 2 }
 0x1db   : > { %v1030_v27 = vrot.slane %v9709_v18, 2  ;;  %v1032_v28 = vrot.slane %v743_v19, 2  ;;  %v857_v39 = vrot.slane %v9732_v32, 1  ;;  %v860_v41 = vrot.slane %v746_v37, 1  ;;  %v696_v19 = vld [vmem:[%s9565_s20 + $0x54] sm:$0xff]  }
 0x1dc   : > { %v9721_v25 = vsel %vm831_vm1, %v852_v20, %v853_v21  ;;  %v9724_v26 = vsel %vm831_vm1, %v853_v21, %v855_v22  ;;  %vm2143_vm2 = vcmask 1041408   ;;  %v1034_v51 = vrot.slane %v9732_v32, 2  ;;  %v698_v20 = vld [vmem:[%s9565_s20 + $0x5c] sm:$0x1] }
 0x1dd   : > { %7022 = vrot.lane.b32.xlu1 %v7021_v58, %s9075_s6  ;;  %13572 = vst [vmem:[#allocation46_spill] sm:$0xff] %v9721_v25  ;;  %13573 = vst [vmem:[#allocation47_spill] sm:$0xff] %v9724_v26  ;;  %v7091_v31 = vpack.i.bf16 %v9724_v26, %v9721_v25  ;;  %v1031_v33 = vsel %vm1008_vm0, %v1029_v24, %v1030_v27  ;;  %v1033_v34 = vsel %vm1008_vm0, %v1030_v27, %v1032_v28  ;;  %vm1787_vm3 = vcmask 31744  }
 0x1de   : > { %7017 = vrot.lane.b32.xlu0 %v7001_v35, %s9075_s6  ;;  %v9737_v35 = vunpack.c.h.bf16 %v690_v29  ;;  %v7101_v38 = vpack.i.bf16 %v1033_v34, %v1031_v33  ;;  %6781 = vmatprep.subr.msk.bf16.mxu0 %vm2143_vm2, %v8258_v43  ;;  %v2145_v49 = vsel %vm2143_vm2, %v8258_v43, 0  ;;  %v1037_v54 = vrot.slane %v746_v37, 2 }
 0x1df   : > { %6782 = vmatprep.subr.msk.bf16.mxu1 %vm2143_vm2, %v8258_v43  ;;  %6626 = vmatpush3.bf16.msra.mxu0 %v2145_v49  ;;  %v9795_v22 = vunpack.c.l.bf16 %v696_v19  ;;  %v9800_v27 = vunpack.c.h.bf16 %v696_v19  ;;  %v752_v28 = vunpack.c.l.bf16 %v698_v20  ;;  %vm1820_vm4 = vcmask 64512  }
 0x1e0   : > { %v858_v40 = vrot.slane %v9737_v35, 1  ;;  %v7111_v44 = vpack.i.bf16 %v9737_v35, %v9732_v32  ;;  %6780 = vmatpush3.bf16.msra.mxu1 %v2145_v49  ;;  %v6543_v49 = vld [vmem:[%s9565_s20 + $0x60] sm:$0xff]   ;;  %vm1853_vm5 = vcmask 97280   ;;  %vm1886_vm6 = vcmask 130048  }
 0x1e1   : > { %7032 = vrot.lane.b32.xlu1 %v7031_v63, %s9076_s4  ;;  %v867_v30 = vrot.slane %v9795_v22, 1  ;;  %v870_v33 = vrot.slane %v752_v28, 1  ;;  %v7191_v34 = vpack.i.bf16 %v9800_v27, %v9795_v22  ;;  %v1047_v43 = vrot.slane %v752_v28, 2 }
 0x1e2   : > { %7027 = vrot.lane.b32.xlu0 %v9624_v13, %s9076_s4  ;;  %v7056_v13 = vpack.i.bf16 %v1028_v14, %v1026_v12  ;;  %v9748_v45 = vsel %vm831_vm1, %v857_v39, %v858_v40  ;;  %v9751_v46 = vsel %vm831_vm1, %v858_v40, %v860_v41  ;;  %v1044_v40 = vrot.slane %v9795_v22, 2 }
 0x1e3   : > { %13574 = vst [vmem:[#allocation48_spill] sm:$0xff] %v9748_v45  ;;  %13575 = vst [vmem:[#allocation49_spill] sm:$0xff] %v9751_v46  ;;  %v7121_v48 = vpack.i.bf16 %v9751_v46, %v9748_v45  ;;  %v1045_v41 = vrot.slane %v9800_v27, 2  ;;  %vm1919_vm7 = vcmask 162816   ;;  %vm1952_vm8 = vcmask 195584  }
 0x1e4   : > { %vm1985_vm9 = vcmask 228352   ;;  %vm2018_vm10 = vcmask 261120   ;;  %vm2094_vm11 = vcmask 293888   ;;  %vm3162_vm12 = vcmask 58368  }
 0x1e5   : > { %7042 = vrot.lane.b32.xlu1 %v7041_v2, %s9077_s2  ;;  %vm9080_vm13 = vmmov 0   ;;  %vm4672_vm14 = vcmask 1043456   ;;  %vm4432_vm15 = vcmask 326656  }
 0x1e6   : > { %7037 = vrot.lane.b32.xlu0 %v7011_v53, %s9077_s2 }
 0x1e9   : > { %7052 = vrot.lane.b32.xlu1 %v7011_v53, %s9073_s22  ;;  %v1035_v53 = vrot.slane %v9737_v35, 2 }
 0x1ea   : > { %7047 = vrot.lane.b32.xlu0 %v7021_v58, %s9078_s1 }
 0x1eb   : > { %v1036_v56 = vsel %vm1008_vm0, %v1034_v51, %v1035_v53  ;;  %v1038_v57 = vsel %vm1008_vm0, %v1035_v53, %v1037_v54  ;;  %v701_v51 = vld [vmem:[%s9565_s20 + $0x68] sm:$0x1]  ;;  %v9830_v54 = vunpack.c.l.bf16 %v6543_v49 }
 0x1ec   : > { %v7136_v60 = vpack.i.bf16 %v1038_v57, %v1036_v56  ;;  %v9832_v56 = vunpack.c.h.bf16 %v6543_v49  ;;  %v755_v57 = vunpack.c.l.bf16 %v701_v51 }
 0x1ed   : > { %7062 = vrot.lane.b32.xlu1 %v7041_v2, %s9073_s22 }
 0x1ee   : > { %7057 = vrot.lane.b32.xlu0 %v7056_v13, %s9078_s1 }
 0x1f1   : > { %7072 = vrot.lane.b32.xlu1 %v7056_v13, %s9072_s26 }
 0x1f2   : > { %7067 = vrot.lane.b32.xlu0 %v7021_v58, %s9072_s26  ;;  %v6542_v58 = vld [vmem:[%s9565_s20 + $0x48] sm:$0xff]  }
 0x1f3   : > { %v9770_v61 = vunpack.c.l.bf16 %v6542_v58  ;;  %v9772_v62 = vunpack.c.h.bf16 %v6542_v58  ;;  %v872_v58 = vrot.slane %v9830_v54, 1 }
 0x1f5   : > { %7082 = vrot.lane.b32.xlu1 %v7081_v23, %s9071_s17  ;;  %v863_v7 = vrot.slane %v9772_v62, 1  ;;  %v7161_v11 = vpack.i.bf16 %v9772_v62, %v9770_v61  ;;  %v1039_v12 = vrot.slane %v9770_v61, 2  ;;  %v1040_v16 = vrot.slane %v9772_v62, 2 }
 0x1f6   : > { %7077 = vrot.lane.b32.xlu0 %v7031_v63, %s9071_s17  ;;  %v749_v63 = vunpack.c.l.bf16 %v695_v59  ;;  %v873_v59 = vrot.slane %v9832_v56, 1 }
 0x1f8   : > { %v865_v8 = vrot.slane %v749_v63, 1 }
 0x1f9   : > { %7092 = vrot.lane.b32.xlu1 %v7091_v31, %s9074_s25 }
 0x1fa   : > { %7087 = vrot.lane.b32.xlu0 %v7041_v2, %s9074_s25  ;;  %v862_v2 = vrot.slane %v9770_v61, 1  ;;  %v9787_v15 = vsel %vm831_vm1, %v863_v7, %v865_v8 }
 0x1fb   : > { %13577 = vst [vmem:[#allocation51_spill] sm:$0xff] %v9787_v15 }
 0x1fc   : > { %v9784_v14 = vsel %vm831_vm1, %v862_v2, %v863_v7  ;;  %v1049_v2 = vrot.slane %v9830_v54, 2  ;;  %v9844_v7 = vsel %vm831_vm1, %v872_v58, %v873_v59 }
 0x1fd   : > { %7102 = vrot.lane.b32.xlu1 %v7101_v38, %s9075_s6  ;;  %13576 = vst [vmem:[#allocation50_spill] sm:$0xff] %v9784_v14  ;;  %v7171_v21 = vpack.i.bf16 %v9787_v15, %v9784_v14  ;;  %13580 = vst [vmem:[#allocation54_spill] sm:$0xff] %v9844_v7 }
 0x1fe   : > { %7097 = vrot.lane.b32.xlu0 %v7056_v13, %s9075_s6  ;;  %v1042_v13 = vrot.slane %v749_v63, 2  ;;  %v7241_v63 = vpack.i.bf16 %v9832_v56, %v9830_v54 }
 0x200   : > { %v1043_v24 = vsel %vm1008_vm0, %v1040_v16, %v1042_v13  ;;  %v704_v13 = vld [vmem:[%s9565_s20 + $0x74] sm:$0x1] }
 0x201   : > { %7112 = vrot.lane.b32.xlu1 %v7111_v44, %s9076_s4  ;;  %v758_v28 = vunpack.c.l.bf16 %v704_v13 }
 0x202   : > { %7107 = vrot.lane.b32.xlu0 %v7081_v23, %s9076_s4  ;;  %v1041_v23 = vsel %vm1008_vm0, %v1039_v12, %v1040_v16  ;;  %v1052_v12 = vrot.slane %v755_v57, 2  ;;  %v702_v16 = vld [vmem:[%s9565_s20 + $0x6c] sm:$0xff]  }
 0x203   : > { %v7181_v29 = vpack.i.bf16 %v1043_v24, %v1041_v23  ;;  %v9855_v20 = vunpack.c.l.bf16 %v702_v16  ;;  %v9860_v24 = vunpack.c.h.bf16 %v702_v16 }
 0x205   : > { %7122 = vrot.lane.b32.xlu1 %v7121_v48, %s9077_s2  ;;  %v1054_v49 = vrot.slane %v9855_v20, 2  ;;  %v1055_v51 = vrot.slane %v9860_v24, 2 }
 0x206   : > { %7117 = vrot.lane.b32.xlu0 %v7091_v31, %s9077_s2 }
 0x209   : > { %7132 = vrot.lane.b32.xlu1 %v7091_v31, %s9073_s22  ;;  %v868_v31 = vrot.slane %v9800_v27, 1 }
 0x20a   : > { %7127 = vrot.lane.b32.xlu0 %v7101_v38, %s9078_s1 }
 0x20b   : > { %v9811_v37 = vsel %vm831_vm1, %v867_v30, %v868_v31  ;;  %v877_v30 = vrot.slane %v9855_v20, 1 }
 0x20c   : > { %13578 = vst [vmem:[#allocation52_spill] sm:$0xff] %v9811_v37 }
 0x20d   : > { %7142 = vrot.lane.b32.xlu1 %v7121_v48, %s9073_s22 }
 0x20e   : > { %7137 = vrot.lane.b32.xlu0 %v7136_v60, %s9078_s1 }
 0x211   : > { %7152 = vrot.lane.b32.xlu1 %v7136_v60, %s9072_s26 }
 0x212   : > { %7147 = vrot.lane.b32.xlu0 %v7101_v38, %s9072_s26  ;;  %v9814_v38 = vsel %vm831_vm1, %v868_v31, %v870_v33  ;;  %v878_v31 = vrot.slane %v9860_v24, 1  ;;  %v880_v33 = vrot.slane %v758_v28, 1 }
 0x213   : > { %13579 = vst [vmem:[#allocation53_spill] sm:$0xff] %v9814_v38  ;;  %v7201_v39 = vpack.i.bf16 %v9814_v38, %v9811_v37 }
 0x215   : > { %7162 = vrot.lane.b32.xlu1 %v7161_v11, %s9071_s17 }
 0x216   : > { %7157 = vrot.lane.b32.xlu0 %v7111_v44, %s9071_s17  ;;  %v1046_v44 = vsel %vm1008_vm0, %v1044_v40, %v1045_v41  ;;  %v9876_v40 = vsel %vm831_vm1, %v877_v30, %v878_v31  ;;  %v9917_v30 = vld [vmem:[%s9565_s20 + $0x8c] sm:$0x1] }
 0x217   : > { %13582 = vst [vmem:[#allocation56_spill] sm:$0xff] %v9876_v40 }
 0x219   : > { %7172 = vrot.lane.b32.xlu1 %v7171_v21, %s9074_s25 }
 0x21a   : > { %7167 = vrot.lane.b32.xlu0 %v7121_v48, %s9074_s25  ;;  %v1048_v48 = vsel %vm1008_vm0, %v1045_v41, %v1047_v43 }
 0x21b   : > { %v7216_v53 = vpack.i.bf16 %v1048_v48, %v1046_v44 }
 0x21d   : > { %7182 = vrot.lane.b32.xlu1 %v7181_v29, %s9075_s6 }
 0x21e   : > { %7177 = vrot.lane.b32.xlu0 %v7136_v60, %s9075_s6  ;;  %v875_v60 = vrot.slane %v755_v57, 1  ;;  %v6544_v57 = vld [vmem:[%s9565_s20 + $0x78] sm:$0xff]  }
 0x220   : > { %v9847_v8 = vsel %vm831_vm1, %v873_v59, %v875_v60  ;;  %v707_v59 = vld [vmem:[%s9565_s20 + $0x80] sm:$0x1]  ;;  %v9901_v60 = vunpack.c.l.bf16 %v6544_v57 }
 0x221   : > { %7192 = vrot.lane.b32.xlu1 %v7191_v34, %s9076_s4  ;;  %13581 = vst [vmem:[#allocation55_spill] sm:$0xff] %v9847_v8  ;;  %v7251_v19 = vpack.i.bf16 %v9847_v8, %v9844_v7  ;;  %v761_v16 = vunpack.c.l.bf16 %v707_v59 }
 0x222   : > { %7187 = vrot.lane.b32.xlu0 %v7161_v11, %s9076_s4  ;;  %v1050_v11 = vrot.slane %v9832_v56, 2 }
 0x224   : > { %v1053_v23 = vsel %vm1008_vm0, %v1050_v11, %v1052_v12  ;;  %v9907_v12 = vunpack.c.h.bf16 %v6544_v57  ;;  %v1062_v57 = vrot.slane %v761_v16, 2 }
 0x225   : > { %7202 = vrot.lane.b32.xlu1 %v7201_v39, %s9077_s2 }
 0x226   : > { %7197 = vrot.lane.b32.xlu0 %v7171_v21, %s9077_s2  ;;  %v9937_v8 = vpack.i.bf16 %v9907_v12, %v9901_v60 }
 0x229   : > { %7212 = vrot.lane.b32.xlu1 %v7171_v21, %s9073_s22  ;;  %v1051_v21 = vsel %vm1008_vm0, %v1049_v2, %v1050_v11  ;;  %v1056_v2 = vsel %vm1008_vm0, %v1054_v49, %v1055_v51  ;;  %v885_v49 = vrot.slane %v761_v16, 1 }
 0x22a   : > { %7207 = vrot.lane.b32.xlu0 %v7181_v29, %s9078_s1 }
 0x22d   : > { %7222 = vrot.lane.b32.xlu1 %v7201_v39, %s9073_s22 }
 0x22e   : > { %7217 = vrot.lane.b32.xlu0 %v7216_v53, %s9078_s1 }
 0x231   : > { %7232 = vrot.lane.b32.xlu1 %v7216_v53, %s9072_s26 }
 0x232   : > { %7227 = vrot.lane.b32.xlu0 %v7181_v29, %s9072_s26  ;;  %v9863_v29 = vpack.i.bf16 %v1053_v23, %v1051_v21  ;;  %v708_v21 = vld [vmem:[%s9565_s20 + $0x84] sm:$0xff]  }
 0x233   : > { %v9926_v59 = vunpack.c.l.bf16 %v708_v21 }
 0x235   : > { %7242 = vrot.lane.b32.xlu1 %v7241_v63, %s9071_s17  ;;  %v887_v14 = vrot.slane %v9926_v59, 1 }
 0x236   : > { %7237 = vrot.lane.b32.xlu0 %v7191_v34, %s9071_s17  ;;  %v9872_v34 = vpack.i.bf16 %v9860_v24, %v9855_v20 }
 0x239   : > { %7252 = vrot.lane.b32.xlu1 %v7251_v19, %s9074_s25 }
 0x23a   : > { %7247 = vrot.lane.b32.xlu0 %v7201_v39, %s9074_s25  ;;  %v9879_v39 = vsel %vm831_vm1, %v878_v31, %v880_v33  ;;  %v883_v33 = vrot.slane %v9907_v12, 1 }
 0x23b   : > { %13583 = vst [vmem:[#allocation57_spill] sm:$0xff] %v9879_v39  ;;  %v9889_v44 = vpack.i.bf16 %v9879_v39, %v9876_v40 }
 0x23c   : > { %v9945_v38 = vsel %vm831_vm1, %v883_v33, %v885_v49 }
 0x23d   : > { %7262 = vrot.lane.b32.xlu1 %v9863_v29, %s9075_s6  ;;  %13585 = vst [vmem:[#allocation59_spill] sm:$0xff] %v9945_v38 }
 0x23e   : > { %7257 = vrot.lane.b32.xlu0 %v7216_v53, %s9075_s6  ;;  %v1057_v53 = vrot.slane %v758_v28, 2  ;;  %v882_v28 = vrot.slane %v9901_v60, 1 }
 0x23f   : > { %v9881_v41 = vpop.permute.xlu1 %6982  ;;  %v9883_v43 = vpop.permute.xlu0 %6977 }
 0x240   : > { %v1058_v11 = vsel %vm1008_vm0, %v1055_v51, %v1057_v53  ;;  %v1059_v51 = vrot.slane %v9901_v60, 2  ;;  %v9942_v7 = vsel %vm831_vm1, %v882_v28, %v883_v33  ;;  %v13586_v33 = vunpack.c.l.bf16 %v9917_v30 }
 0x241   : > { %7272 = vrot.lane.b32.xlu1 %v9872_v34, %s9076_s4  ;;  %v9913_v23 = vpack.i.bf16 %v1058_v11, %v1056_v2  ;;  %v9930_v2 = vunpack.c.h.bf16 %v708_v21  ;;  %13584 = vst [vmem:[#allocation58_spill] sm:$0xff] %v9942_v7 }
 0x242   : > { %7267 = vrot.lane.b32.xlu0 %v7241_v63, %s9076_s4 }
 0x243   : > { %v9892_v48 = vpop.permute.xlu1 %6997  ;;  %v888_v28 = vrot.slane %v9930_v2, 1 }
 0x244   : > { %v6988_v58 = vpop.permute.xlu0 %6987  ;;  %v7000_v46 = vunpack.i.h.bf16 %v9892_v48  ;;  %v6999_v45 = vunpack.i.l.bf16 %v9892_v48  ;;  %v9967_v48 = vpack.i.bf16 %v9945_v38, %v9942_v7 }
 0x245   : > { %7282 = vrot.lane.b32.xlu1 %v9889_v44, %s9077_s2  ;;  %v6990_v39 = vunpack.i.h.bf16 %v6988_v58  ;;  %v6989_v40 = vunpack.i.l.bf16 %v6988_v58 }
 0x246   : > { %7277 = vrot.lane.b32.xlu0 %v7251_v19, %s9077_s2 }
 0x247   : > { %v9903_v63 = vpop.permute.xlu1 %7002  ;;  %v1789_v49 = vsel %vm1787_vm3, %v9620_v10, %v6990_v39 }
 0x248   : > { %v6993_v13 = vpop.permute.xlu0 %6992 }
 0x249   : > { %7292 = vrot.lane.b32.xlu1 %v7251_v19, %s9073_s22  ;;  %v1060_v19 = vrot.slane %v9907_v12, 2  ;;  %v6995_v11 = vunpack.i.h.bf16 %v6993_v13  ;;  %v6994_v37 = vunpack.i.l.bf16 %v6993_v13  ;;  %v890_v13 = vrot.slane %v13586_v33, 1 }
 0x24a   : > { %7287 = vrot.lane.b32.xlu0 %v9863_v29, %s9078_s1 }
 0x24b   : > { %v9919_v31 = vpop.permute.xlu1 %7012  ;;  %v1061_v21 = vsel %vm1008_vm0, %v1059_v51, %v1060_v19  ;;  %v1063_v15 = vsel %vm1008_vm0, %v1060_v19, %v1062_v57  ;;  %v1788_v51 = vsel %vm1787_vm3, %v9618_v9, %v6989_v40  ;;  %v7005_v19 = vunpack.i.h.bf16 %v9903_v63 }
 0x24c   : > { %v9924_v53 = vpop.permute.xlu0 %7007  ;;  %v7004_v57 = vunpack.i.l.bf16 %v9903_v63  ;;  %v9973_v33 = vpack.i.bf16 %v1063_v15, %v1061_v21  ;;  %v9977_v9 = vpack.i.bf16 %v9930_v2, %v9926_v59  ;;  %v1791_v10 = vsel %vm1787_vm3, %v9614_v6, %v6995_v11 }
 0x24d   : > { %7302 = vrot.lane.b32.xlu1 %v9889_v44, %s9073_s22  ;;  %v1822_v63 = vsel %vm1820_vm4, %v1789_v49, %v7000_v46  ;;  %v1821_v38 = vsel %vm1820_vm4, %v1788_v51, %v6999_v45  ;;  %v9989_v15 = vsel %vm831_vm1, %v887_v14, %v888_v28  ;;  %v9992_v21 = vsel %vm831_vm1, %v888_v28, %v890_v13 }
 0x24e   : > { %7297 = vrot.lane.b32.xlu0 %v9913_v23, %s9078_s1  ;;  %13587 = vst [vmem:[#allocation60_spill] sm:$0xff] %v9989_v15  ;;  %13588 = vst [vmem:[#allocation61_spill] sm:$0xff] %v9992_v21  ;;  %v6985_v6 = vunpack.i.h.bf16 %v9881_v41  ;;  %v6979_v11 = vunpack.i.l.bf16 %v9883_v43  ;;  %v1824_v45 = vsel %vm1820_vm4, %v1791_v10, %v7005_v19  ;;  %v7010_v14 = vunpack.i.h.bf16 %v9924_v53 }
 0x24f   : > { %v9939_v16 = vpop.permute.xlu1 %7022  ;;  %v7009_v28 = vunpack.i.l.bf16 %v9924_v53  ;;  %v7014_v19 = vunpack.i.l.bf16 %v9919_v31 }
 0x250   : > { %v9948_v58 = vpop.permute.xlu0 %7017  ;;  %v1854_v49 = vsel %vm1853_vm5, %v1821_v38, %v6979_v11  ;;  %v1857_v38 = vsel %vm1853_vm5, %v1824_v45, %v6985_v6 }
 0x251   : > { %7312 = vrot.lane.b32.xlu1 %v9913_v23, %s9072_s26  ;;  %v7020_v51 = vunpack.i.h.bf16 %v9948_v58 }
 0x252   : > { %7307 = vrot.lane.b32.xlu0 %v9863_v29, %s9072_s26  ;;  %v1790_v29 = vsel %vm1787_vm3, %v9612_v5, %v6994_v37  ;;  %v6984_v5 = vunpack.i.l.bf16 %v9881_v41  ;;  %v6980_v37 = vunpack.i.h.bf16 %v9883_v43  ;;  %v7019_v43 = vunpack.i.l.bf16 %v9948_v58 }
 0x253   : > { %v9971_v26 = vpop.permute.xlu1 %7032  ;;  %v1823_v46 = vsel %vm1820_vm4, %v1790_v29, %v7004_v57  ;;  %v1887_v58 = vsel %vm1886_vm6, %v1854_v49, %v7009_v28 }
 0x254   : > { %v7028_v40 = vpop.permute.xlu0 %7027  ;;  %v1855_v41 = vsel %vm1853_vm5, %v1822_v63, %v6980_v37  ;;  %v1856_v53 = vsel %vm1853_vm5, %v1823_v46, %v6984_v5  ;;  %v1920_v7 = vsel %vm1919_vm7, %v1887_v58, %v7019_v43  ;;  %v7035_v6 = vunpack.i.h.bf16 %v9971_v26 }
 0x255   : > { %7322 = vrot.lane.b32.xlu1 %v9937_v8, %s9071_s17  ;;  %v7030_v57 = vunpack.i.h.bf16 %v7028_v40  ;;  %v7029_v10 = vunpack.i.l.bf16 %v7028_v40  ;;  %v1888_v37 = vsel %vm1886_vm6, %v1855_v41, %v7010_v14  ;;  %v7024_v40 = vunpack.i.l.bf16 %v9939_v16 }
 0x256   : > { %7317 = vrot.lane.b32.xlu0 %v9872_v34, %s9071_s17  ;;  %v7015_v34 = vunpack.i.h.bf16 %v9919_v31  ;;  %v7025_v31 = vunpack.i.h.bf16 %v9939_v16  ;;  %v1921_v5 = vsel %vm1919_vm7, %v1888_v37, %v7020_v51  ;;  %v1889_v51 = vsel %vm1886_vm6, %v1856_v53, %v7014_v19  ;;  %v6545_v19 = vld [vmem:[%s9565_s20 + $0x90] sm:$0xff]  }
 0x257   : > { %v7043_v13 = vpop.permute.xlu1 %7042  ;;  %v1953_v14 = vsel %vm1952_vm8, %v1920_v7, %v7029_v10  ;;  %v1954_v16 = vsel %vm1952_vm8, %v1921_v5, %v7030_v57  ;;  %v713_v5 = vld [vmem:[%s9565_s20 + $0x98] sm:$0x1] }
 0x258   : > { %v7038_v39 = vpop.permute.xlu0 %7037  ;;  %v7045_v28 = vunpack.i.h.bf16 %v7043_v13  ;;  %v7044_v49 = vunpack.i.l.bf16 %v7043_v13  ;;  %v1890_v43 = vsel %vm1886_vm6, %v1857_v38, %v7015_v34  ;;  %v1922_v13 = vsel %vm1919_vm7, %v1889_v51, %v7024_v40 }
 0x259   : > { %7332 = vrot.lane.b32.xlu1 %v9967_v48, %s9074_s25  ;;  %v7040_v29 = vunpack.i.h.bf16 %v7038_v39  ;;  %v7039_v63 = vunpack.i.l.bf16 %v7038_v39  ;;  %v7034_v39 = vunpack.i.l.bf16 %v9971_v26  ;;  %v1923_v10 = vsel %vm1919_vm7, %v1890_v43, %v7025_v31 }
 0x25a   : > { %7327 = vrot.lane.b32.xlu0 %v9889_v44, %s9074_s25  ;;  %v1956_v34 = vsel %vm1952_vm8, %v1923_v10, %v7035_v6 }
 0x25b   : > { %v10020_v11 = vpop.permute.xlu1 %7052  ;;  %v1986_v41 = vsel %vm1985_vm9, %v1953_v14, %v7039_v63  ;;  %v1987_v26 = vsel %vm1985_vm9, %v1954_v16, %v7040_v29  ;;  %v10044_v29 = vpack.i.bf16 %v9992_v21, %v9989_v15  ;;  %v1955_v53 = vsel %vm1952_vm8, %v1922_v13, %v7034_v39 }
 0x25c   : > { %v7048_v45 = vpop.permute.xlu0 %7047  ;;  %v1988_v40 = vsel %vm1985_vm9, %v1955_v53, %v7044_v49  ;;  %v1989_v31 = vsel %vm1985_vm9, %v1956_v34, %v7045_v28  ;;  %v13589_v39 = vunpack.c.l.bf16 %v9917_v30  ;;  %v10064_v16 = vunpack.c.l.bf16 %v6545_v19  ;;  %v714_v53 = vld [vmem:[%s9565_s20 + $0x9c] sm:$0xff]   ;;  %v10091_v34 = vld [vmem:[%s9565_s20 + $0xa4] sm:$0x1] }
 0x25d   : > { %v7050_v44 = vunpack.i.h.bf16 %v7048_v45  ;;  %v7049_v46 = vunpack.i.l.bf16 %v7048_v45  ;;  %7342 = vrot.lane.b32.xlu1 %v9973_v33, %s9075_s6  ;;  %v1065_v45 = vrot.slane %v9930_v2, 2  ;;  %v10066_v49 = vunpack.c.h.bf16 %v6545_v19 }
 0x25e   : > { %7337 = vrot.lane.b32.xlu0 %v9913_v23, %s9075_s6  ;;  %v1067_v6 = vrot.slane %v13589_v39, 2  ;;  %v13468_v39 = vunpack.c.l.bf16 %v10091_v34 }
 0x25f   : > { %v10036_v58 = vpop.permute.xlu1 %7062  ;;  %v2019_v7 = vsel %vm2018_vm10, %v1986_v41, %v7049_v46  ;;  %v2020_v57 = vsel %vm2018_vm10, %v1987_v26, %v7050_v44  ;;  %v767_v41 = vunpack.c.l.bf16 %v713_v5  ;;  %v13590_v26 = vrot.slane %v9926_v59, 2 }
 0x260   : > { %v7058_v23 = vpop.permute.xlu0 %7057  ;;  %v2051_v37 = vpack.c.bf16 %v2020_v57, %v2019_v7  ;;  %v1068_v43 = vsel %vm1008_vm0, %v1065_v45, %v1067_v6  ;;  %v892_v7 = vrot.slane %v10064_v16, 1  ;;  %v893_v57 = vrot.slane %v10066_v49, 1 }
 0x261   : > { %v7060_v38 = vunpack.i.h.bf16 %v7058_v23  ;;  %v7059_v63 = vunpack.i.l.bf16 %v7058_v23  ;;  %7352 = vrot.lane.b32.xlu1 %v9977_v9, %s9076_s4  ;;  %v1066_v51 = vsel %vm1008_vm0, %v13590_v26, %v1065_v45  ;;  %v895_v10 = vrot.slane %v767_v41, 1 }
 0x262   : > { %7347 = vrot.lane.b32.xlu0 %v9937_v8, %s9076_s4  ;;  %6627 = vmatprep.mubr.msk.bf16.mxu0 %vm2094_vm11, %v2051_v37  ;;  %v1069_v23 = vrot.slane %v10064_v16, 2  ;;  %v1070_v37 = vrot.slane %v10066_v49, 2  ;;  %v1072_v19 = vrot.slane %v767_v41, 2  ;;  %v10100_v5 = vsel %vm831_vm1, %v892_v7, %v893_v57 }
 0x263   : > { %v2021_v44 = vsel %vm2018_vm10, %v1988_v40, %v7059_v63  ;;  %v2022_v46 = vsel %vm2018_vm10, %v1989_v31, %v7060_v38  ;;  %v10062_v14 = vpop.permute.xlu1 %7072  ;;  %v10095_v38 = vpack.i.bf16 %v1068_v43, %v1066_v51  ;;  %13591 = vst [vmem:[#allocation62_spill] sm:$0xff] %v10100_v5  ;;  %v10107_v31 = vunpack.c.l.bf16 %v714_v53 }
 0x264   : > { %v10068_v28 = vpop.permute.xlu0 %7067  ;;  %v2052_v8 = vpack.c.bf16 %v2022_v46, %v2021_v44  ;;  %v10109_v45 = vunpack.c.h.bf16 %v714_v53  ;;  %v1071_v6 = vsel %vm1008_vm0, %v1069_v23, %v1070_v37  ;;  %v1073_v44 = vsel %vm1008_vm0, %v1070_v37, %v1072_v19 }
 0x265   : > { %7362 = vrot.lane.b32.xlu1 %v10044_v29, %s9077_s2  ;;  %v10128_v51 = vpack.i.bf16 %v1073_v44, %v1071_v6  ;;  %v897_v43 = vrot.slane %v10107_v31, 1  ;;  %v7064_v23 = vunpack.i.l.bf16 %v10036_v58  ;;  %v7055_v19 = vunpack.i.h.bf16 %v10020_v11 }
 0x266   : > { %7357 = vrot.lane.b32.xlu0 %v9967_v48, %s9077_s2  ;;  %6628 = vmatmul.mubr.msk.bf16.vlgmr.msra.gmra.mrb[0].mxu0 %vm2094_vm11, %v2052_v8  ;;  %v10122_v8 = vpack.i.bf16 %v10066_v49, %v10064_v16  ;;  %v898_v7 = vrot.slane %v10109_v45, 1  ;;  %v10140_v37 = vpack.i.bf16 %v10109_v45, %v10107_v31  ;;  %v7054_v53 = vunpack.i.l.bf16 %v10020_v11 }
 0x267   : > { %v10075_v30 = vpop.permute.xlu1 %7082  ;;  %v7075_v6 = vunpack.i.h.bf16 %v10062_v14  ;;  %v7074_v44 = vunpack.i.l.bf16 %v10062_v14 }
 0x268   : > { %v10083_v13 = vpop.permute.xlu0 %7077  ;;  %v7085_v21 = vunpack.i.h.bf16 %v10075_v30  ;;  %v7084_v15 = vunpack.i.l.bf16 %v10075_v30  ;;  %v10156_v25 = vsel %vm831_vm1, %v897_v43, %v898_v7  ;;  %v1793_v30 = vsel %vm1787_vm3, %v9610_v4, %v7055_v19 }
 0x269   : > { %7372 = vrot.lane.b32.xlu1 %v9967_v48, %s9073_s22  ;;  %v10105_v48 = vsel %vm831_vm1, %v893_v57, %v895_v10  ;;  %v900_v57 = vrot.slane %v13468_v39, 1  ;;  %v7065_v10 = vunpack.i.h.bf16 %v10036_v58  ;;  %v7070_v58 = vunpack.i.h.bf16 %v10068_v28  ;;  %13593 = vst [vmem:[#allocation64_spill] sm:$0xff] %v10156_v25 }
 0x26a   : > { %7367 = vrot.lane.b32.xlu0 %v9973_v33, %s9078_s1  ;;  %13592 = vst [vmem:[#allocation63_spill] sm:$0xff] %v10105_v48  ;;  %v10126_v41 = vpack.i.bf16 %v10105_v48, %v10100_v5  ;;  %v7069_v39 = vunpack.i.l.bf16 %v10068_v28  ;;  %v1794_v28 = vsel %vm1787_vm3, %v9670_v52, %v7064_v23  ;;  %v7080_v1 = vunpack.i.h.bf16 %v10083_v13 }
 0x26b   : > { %v10097_v63 = vpop.permute.xlu1 %7092  ;;  %v10159_v14 = vsel %vm831_vm1, %v898_v7, %v900_v57  ;;  %v7079_v5 = vunpack.i.l.bf16 %v10083_v13  ;;  %v1792_v43 = vsel %vm1787_vm3, %v9608_v3, %v7054_v53  ;;  %v1827_v7 = vsel %vm1820_vm4, %v1794_v28, %v7074_v44 }
 0x26c   : > { %v10102_v40 = vpop.permute.xlu0 %7087  ;;  %13594 = vst [vmem:[#allocation65_spill] sm:$0xff] %v10159_v14  ;;  %v1826_v52 = vsel %vm1820_vm4, %v1793_v30, %v7070_v58  ;;  %v1825_v13 = vsel %vm1820_vm4, %v1792_v43, %v7069_v39  ;;  %v1860_v4 = vsel %vm1853_vm5, %v1827_v7, %v7084_v15  ;;  %v7095_v39 = vunpack.i.h.bf16 %v10097_v63 }
 0x26d   : > { %7382 = vrot.lane.b32.xlu1 %v10044_v29, %s9073_s22  ;;  %v7090_v57 = vunpack.i.h.bf16 %v10102_v40 }
 0x26e   : > { %7377 = vrot.lane.b32.xlu0 %v10095_v38, %s9078_s1 }
 0x26f   : > { %v10118_v46 = vpop.permute.xlu1 %7102 }
 0x270   : > { %v7098_v26 = vpop.permute.xlu0 %7097 }
 0x271   : > { %7392 = vrot.lane.b32.xlu1 %v10095_v38, %s9072_s26  ;;  %v7100_v19 = vunpack.i.h.bf16 %v7098_v26  ;;  %v7099_v53 = vunpack.i.l.bf16 %v7098_v26  ;;  %v7104_v26 = vunpack.i.l.bf16 %v10118_v46 }
 0x272   : > { %7387 = vrot.lane.b32.xlu0 %v9973_v33, %s9072_s26  ;;  %v1795_v33 = vsel %vm1787_vm3, %v9676_v55, %v7065_v10  ;;  %v7089_v10 = vunpack.i.l.bf16 %v10102_v40  ;;  %v7094_v40 = vunpack.i.l.bf16 %v10097_v63 }
 0x273   : > { %v10150_v48 = vpop.permute.xlu1 %7112  ;;  %v1828_v55 = vsel %vm1820_vm4, %v1795_v33, %v7075_v6  ;;  %v1858_v6 = vsel %vm1853_vm5, %v1825_v13, %v7079_v5 }
 0x274   : > { %v7108_v11 = vpop.permute.xlu0 %7107  ;;  %v1861_v3 = vsel %vm1853_vm5, %v1828_v55, %v7085_v21  ;;  %v1891_v21 = vsel %vm1886_vm6, %v1858_v6, %v7089_v10  ;;  %v7115_v63 = vunpack.i.h.bf16 %v10150_v48  ;;  %v7114_v7 = vunpack.i.l.bf16 %v10150_v48 }
 0x275   : > { %7402 = vrot.lane.b32.xlu1 %v10122_v8, %s9071_s17  ;;  %v7110_v33 = vunpack.i.h.bf16 %v7108_v11  ;;  %v7109_v58 = vunpack.i.l.bf16 %v7108_v11  ;;  %v1924_v30 = vsel %vm1919_vm7, %v1891_v21, %v7099_v53  ;;  %v1893_v48 = vsel %vm1886_vm6, %v1860_v4, %v7094_v40  ;;  %v6546_v4 = vld [vmem:[%s9565_s20 + $0xa8] sm:$0xff]  }
 0x276   : > { %7397 = vrot.lane.b32.xlu0 %v9977_v9, %s9071_s17  ;;  %v1859_v9 = vsel %vm1853_vm5, %v1826_v52, %v7080_v1  ;;  %v7105_v1 = vunpack.i.h.bf16 %v10118_v46 }
 0x277   : > { %v7123_v23 = vpop.permute.xlu1 %7122  ;;  %v1892_v5 = vsel %vm1886_vm6, %v1859_v9, %v7090_v57 }
 0x278   : > { %v7118_v44 = vpop.permute.xlu0 %7117  ;;  %v1925_v43 = vsel %vm1919_vm7, %v1892_v5, %v7100_v19  ;;  %v7125_v46 = vunpack.i.h.bf16 %v7123_v23  ;;  %v7124_v10 = vunpack.i.l.bf16 %v7123_v23  ;;  %v1926_v23 = vsel %vm1919_vm7, %v1893_v48, %v7104_v26  ;;  %v719_v5 = vld [vmem:[%s9565_s20 + $0xb0] sm:$0x1] }
 0x279   : > { %7412 = vrot.lane.b32.xlu1 %v10126_v41, %s9074_s25  ;;  %v7120_v28 = vunpack.i.h.bf16 %v7118_v44  ;;  %v7119_v15 = vunpack.i.l.bf16 %v7118_v44  ;;  %v1958_v52 = vsel %vm1952_vm8, %v1925_v43, %v7110_v33  ;;  %v1894_v44 = vsel %vm1886_vm6, %v1861_v3, %v7095_v39 }
 0x27a   : > { %7407 = vrot.lane.b32.xlu0 %v10044_v29, %s9074_s25  ;;  %v1957_v29 = vsel %vm1952_vm8, %v1924_v30, %v7109_v58  ;;  %v1927_v58 = vsel %vm1919_vm7, %v1894_v44, %v7105_v1  ;;  %v1959_v40 = vsel %vm1952_vm8, %v1926_v23, %v7114_v7  ;;  %v1075_v30 = vrot.slane %v10109_v45, 2 }
 0x27b   : > { %v10195_v11 = vpop.permute.xlu1 %7132  ;;  %v1990_v53 = vsel %vm1985_vm9, %v1957_v29, %v7119_v15  ;;  %v1991_v19 = vsel %vm1985_vm9, %v1958_v52, %v7120_v28  ;;  %v1960_v3 = vsel %vm1952_vm8, %v1927_v58, %v7115_v63  ;;  %v1992_v1 = vsel %vm1985_vm9, %v1959_v40, %v7124_v10  ;;  %v720_v10 = vld [vmem:[%s9565_s20 + $0xb4] sm:$0xff]  }
 0x27c   : > { %v7128_v55 = vpop.permute.xlu0 %7127  ;;  %v1993_v26 = vsel %vm1985_vm9, %v1960_v3, %v7125_v46  ;;  %v13595_v43 = vunpack.c.l.bf16 %v10091_v34  ;;  %v10239_v52 = vunpack.c.l.bf16 %v6546_v4  ;;  %v773_v46 = vunpack.c.l.bf16 %v719_v5  ;;  %v10249_v34 = vld [vmem:[%s9565_s20 + $0xbc] sm:$0x1] }
 0x27d   : > { %v7130_v13 = vunpack.i.h.bf16 %v7128_v55  ;;  %v7129_v57 = vunpack.i.l.bf16 %v7128_v55  ;;  %7422 = vrot.lane.b32.xlu1 %v10128_v51, %s9075_s6 }
 0x27e   : > { %7417 = vrot.lane.b32.xlu0 %v10095_v38, %s9075_s6  ;;  %v10219_v38 = vpack.i.bf16 %v10159_v14, %v10156_v25  ;;  %v1077_v63 = vrot.slane %v13595_v43, 2  ;;  %v905_v58 = vrot.slane %v773_v46, 1  ;;  %v1079_v40 = vrot.slane %v10239_v52, 2 }
 0x27f   : > { %v2023_v6 = vsel %vm2018_vm10, %v1990_v53, %v7129_v57  ;;  %v2024_v9 = vsel %vm2018_vm10, %v1991_v19, %v7130_v13  ;;  %v10213_v33 = vpop.permute.xlu1 %7142  ;;  %v10241_v13 = vunpack.c.h.bf16 %v6546_v4  ;;  %v13596_v19 = vrot.slane %v10107_v31, 2 }
 0x280   : > { %v7138_v15 = vpop.permute.xlu0 %7137  ;;  %v2053_v28 = vpack.c.bf16 %v2024_v9, %v2023_v6  ;;  %v1078_v44 = vsel %vm1008_vm0, %v1075_v30, %v1077_v63  ;;  %v902_v6 = vrot.slane %v10239_v52, 1  ;;  %v13475_v4 = vunpack.c.l.bf16 %v10249_v34 }
 0x281   : > { %v7140_v39 = vunpack.i.h.bf16 %v7138_v15  ;;  %v7139_v21 = vunpack.i.l.bf16 %v7138_v15  ;;  %7432 = vrot.lane.b32.xlu1 %v10140_v37, %s9076_s4  ;;  %v1076_v48 = vsel %vm1008_vm0, %v13596_v19, %v1075_v30  ;;  %v903_v9 = vrot.slane %v10241_v13, 1 }
 0x282   : > { %7427 = vrot.lane.b32.xlu0 %v10122_v8, %s9076_s4  ;;  %6631 = vmatprep.mubr.msk.bf16.mxu0 %vm2094_vm11, %v2053_v28  ;;  %v10264_v15 = vunpack.c.l.bf16 %v720_v10  ;;  %v10266_v28 = vunpack.c.h.bf16 %v720_v10  ;;  %v1080_v3 = vrot.slane %v10241_v13, 2  ;;  %v910_v63 = vrot.slane %v13475_v4, 1 }
 0x283   : > { %v2026_v7 = vsel %vm2018_vm10, %v1993_v26, %v7140_v39  ;;  %v2025_v55 = vsel %vm2018_vm10, %v1992_v1, %v7139_v21  ;;  %v10237_v29 = vpop.permute.xlu1 %7152  ;;  %v1082_v39 = vrot.slane %v773_v46, 2  ;;  %v10275_v21 = vpack.i.bf16 %v1078_v44, %v1076_v48 }
 0x284   : > { %v10243_v57 = vpop.permute.xlu0 %7147  ;;  %v2054_v8 = vpack.c.bf16 %v2026_v7, %v2025_v55  ;;  %v10280_v1 = vsel %vm831_vm1, %v902_v6, %v903_v9  ;;  %v10285_v30 = vsel %vm831_vm1, %v903_v9, %v905_v58  ;;  %v908_v43 = vrot.slane %v10266_v28, 1 }
 0x285   : > { %7442 = vrot.lane.b32.xlu1 %v10219_v38, %s9077_s2  ;;  %13597 = vst [vmem:[#allocation66_spill] sm:$0xff] %v10280_v1  ;;  %13598 = vst [vmem:[#allocation67_spill] sm:$0xff] %v10285_v30  ;;  %v1081_v7 = vsel %vm1008_vm0, %v1079_v40, %v1080_v3  ;;  %v1083_v55 = vsel %vm1008_vm0, %v1080_v3, %v1082_v39  ;;  %v10301_v46 = vpack.i.bf16 %v10241_v13, %v10239_v52 }
 0x286   : > { %7437 = vrot.lane.b32.xlu0 %v10126_v41, %s9077_s2  ;;  %6632 = vmatmul.mubr.msk.bf16.gmra.mrb[4].mxu0 %vm2094_vm11, %v2054_v8  ;;  %v10305_v10 = vpack.i.bf16 %v10285_v30, %v10280_v1  ;;  %v10307_v48 = vpack.i.bf16 %v1083_v55, %v1081_v7  ;;  %v10313_v6 = vsel %vm831_vm1, %v908_v43, %v910_v63  ;;  %v7145_v9 = vunpack.i.h.bf16 %v10213_v33 }
 0x287   : > { %v10254_v53 = vpop.permute.xlu1 %7162  ;;  %13600 = vst [vmem:[#allocation69_spill] sm:$0xff] %v10313_v6  ;;  %v7144_v58 = vunpack.i.l.bf16 %v10213_v33  ;;  %v10321_v40 = vpack.i.bf16 %v10266_v28, %v10264_v15  ;;  %v7135_v3 = vunpack.i.h.bf16 %v10195_v11  ;;  %v7134_v39 = vunpack.i.l.bf16 %v10195_v11 }
 0x288   : > { %v10262_v23 = vpop.permute.xlu0 %7157  ;;  %v7150_v33 = vunpack.i.h.bf16 %v10243_v57  ;;  %v7149_v63 = vunpack.i.l.bf16 %v10243_v57  ;;  %v7165_v4 = vunpack.i.h.bf16 %v10254_v53  ;;  %v7164_v11 = vunpack.i.l.bf16 %v10254_v53 }
 0x289   : > { %7452 = vrot.lane.b32.xlu1 %v10126_v41, %s9073_s22  ;;  %v907_v41 = vrot.slane %v10264_v15, 1  ;;  %v1798_v57 = vsel %vm1787_vm3, %v9732_v32, %v7144_v58  ;;  %v7160_v14 = vunpack.i.h.bf16 %v10262_v23  ;;  %v1797_v53 = vsel %vm1787_vm3, %v9709_v18, %v7135_v3 }
 0x28a   : > { %7447 = vrot.lane.b32.xlu0 %v10128_v51, %s9078_s1  ;;  %v1830_v32 = vsel %vm1820_vm4, %v1797_v53, %v7150_v33 }
 0x28b   : > { %v10277_v5 = vpop.permute.xlu1 %7172  ;;  %v10310_v44 = vsel %vm831_vm1, %v907_v41, %v908_v43  ;;  %v7155_v41 = vunpack.i.h.bf16 %v10237_v29  ;;  %v7154_v43 = vunpack.i.l.bf16 %v10237_v29  ;;  %v1796_v29 = vsel %vm1787_vm3, %v9707_v17, %v7134_v39 }
 0x28c   : > { %v10282_v26 = vpop.permute.xlu0 %7167  ;;  %13599 = vst [vmem:[#allocation68_spill] sm:$0xff] %v10310_v44  ;;  %v10335_v55 = vpack.i.bf16 %v10313_v6, %v10310_v44  ;;  %v7159_v6 = vunpack.i.l.bf16 %v10262_v23  ;;  %v1829_v23 = vsel %vm1820_vm4, %v1796_v29, %v7149_v63  ;;  %v7175_v63 = vunpack.i.h.bf16 %v10277_v5 }
 0x28d   : > { %7462 = vrot.lane.b32.xlu1 %v10219_v38, %s9073_s22  ;;  %v1831_v1 = vsel %vm1820_vm4, %v1798_v57, %v7154_v43  ;;  %v7169_v58 = vunpack.i.l.bf16 %v10282_v26 }
 0x28e   : > { %7457 = vrot.lane.b32.xlu0 %v10275_v21, %s9078_s1  ;;  %v1864_v18 = vsel %vm1853_vm5, %v1831_v1, %v7164_v11 }
 0x28f   : > { %v10297_v8 = vpop.permute.xlu1 %7182 }
 0x290   : > { %v7178_v19 = vpop.permute.xlu0 %7177 }
 0x291   : > { %7472 = vrot.lane.b32.xlu1 %v10275_v21, %s9072_s26  ;;  %v7180_v3 = vunpack.i.h.bf16 %v7178_v19  ;;  %v7179_v39 = vunpack.i.l.bf16 %v7178_v19 }
 0x292   : > { %7467 = vrot.lane.b32.xlu0 %v10128_v51, %s9072_s26  ;;  %v1799_v51 = vsel %vm1787_vm3, %v9737_v35, %v7145_v9  ;;  %v7170_v9 = vunpack.i.h.bf16 %v10282_v26  ;;  %v7174_v26 = vunpack.i.l.bf16 %v10277_v5 }
 0x293   : > { %v10331_v7 = vpop.permute.xlu1 %7192  ;;  %v1832_v35 = vsel %vm1820_vm4, %v1799_v51, %v7155_v41  ;;  %v1862_v41 = vsel %vm1853_vm5, %v1829_v23, %v7159_v6 }
 0x294   : > { %v7188_v30 = vpop.permute.xlu0 %7187  ;;  %v1865_v17 = vsel %vm1853_vm5, %v1832_v35, %v7165_v4  ;;  %v1895_v4 = vsel %vm1886_vm6, %v1862_v41, %v7169_v58  ;;  %v7195_v5 = vunpack.i.h.bf16 %v10331_v7  ;;  %v7194_v53 = vunpack.i.l.bf16 %v10331_v7 }
 0x295   : > { %7482 = vrot.lane.b32.xlu1 %v10301_v46, %s9071_s17  ;;  %v7190_v51 = vunpack.i.h.bf16 %v7188_v30  ;;  %v7189_v33 = vunpack.i.l.bf16 %v7188_v30  ;;  %v7184_v30 = vunpack.i.l.bf16 %v10297_v8  ;;  %v1928_v11 = vsel %vm1919_vm7, %v1895_v4, %v7179_v39 }
 0x296   : > { %7477 = vrot.lane.b32.xlu0 %v10140_v37, %s9071_s17  ;;  %v1863_v37 = vsel %vm1853_vm5, %v1830_v32, %v7160_v14  ;;  %v7185_v14 = vunpack.i.h.bf16 %v10297_v8  ;;  %v1897_v7 = vsel %vm1886_vm6, %v1864_v18, %v7174_v26 }
 0x297   : > { %v7203_v44 = vpop.permute.xlu1 %7202  ;;  %v1896_v19 = vsel %vm1886_vm6, %v1863_v37, %v7170_v9 }
 0x298   : > { %v7198_v43 = vpop.permute.xlu0 %7197  ;;  %v1929_v57 = vsel %vm1919_vm7, %v1896_v19, %v7180_v3  ;;  %v7205_v8 = vunpack.i.h.bf16 %v7203_v44  ;;  %v7204_v58 = vunpack.i.l.bf16 %v7203_v44  ;;  %v1930_v44 = vsel %vm1919_vm7, %v1897_v7, %v7184_v30 }
 0x299   : > { %7492 = vrot.lane.b32.xlu1 %v10305_v10, %s9074_s25  ;;  %v7200_v29 = vunpack.i.h.bf16 %v7198_v43  ;;  %v7199_v1 = vunpack.i.l.bf16 %v7198_v43  ;;  %v1962_v32 = vsel %vm1952_vm8, %v1929_v57, %v7190_v51  ;;  %v1898_v43 = vsel %vm1886_vm6, %v1865_v17, %v7175_v63 }
 0x29a   : > { %7487 = vrot.lane.b32.xlu0 %v10219_v38, %s9074_s25  ;;  %v1961_v38 = vsel %vm1952_vm8, %v1928_v11, %v7189_v33  ;;  %v6547_v33 = vld [vmem:[%s9565_s20 + $0xc0] sm:$0xff]   ;;  %v13601_v19 = vunpack.c.l.bf16 %v10249_v34  ;;  %v725_v11 = vld [vmem:[%s9565_s20 + $0xc8] sm:$0x1]  ;;  %v1963_v18 = vsel %vm1952_vm8, %v1930_v44, %v7194_v53 }
 0x29b   : > { %v10375_v6 = vpop.permute.xlu1 %7212  ;;  %v1994_v3 = vsel %vm1985_vm9, %v1961_v38, %v7199_v1  ;;  %v1995_v39 = vsel %vm1985_vm9, %v1962_v32, %v7200_v29  ;;  %v1931_v1 = vsel %vm1919_vm7, %v1898_v43, %v7185_v14  ;;  %v1996_v30 = vsel %vm1985_vm9, %v1963_v18, %v7204_v58  ;;  %v728_v58 = vld [vmem:[%s9565_s20 + $0xd4] sm:$0x1] }
 0x29c   : > { %v7208_v35 = vpop.permute.xlu0 %7207  ;;  %v1964_v17 = vsel %vm1952_vm8, %v1931_v1, %v7195_v5  ;;  %v6538_v34 = vunpack.c.l.bf16 %v6547_v33  ;;  %v6539_v57 = vunpack.c.h.bf16 %v6547_v33  ;;  %v779_v38 = vunpack.c.l.bf16 %v725_v11 }
 0x29d   : > { %v7210_v23 = vunpack.i.h.bf16 %v7208_v35  ;;  %v7209_v9 = vunpack.i.l.bf16 %v7208_v35  ;;  %7502 = vrot.lane.b32.xlu1 %v10307_v48, %s9075_s6  ;;  %v1997_v14 = vsel %vm1985_vm9, %v1964_v17, %v7205_v8  ;;  %v13603_v8 = vrot.slane %v10264_v15, 2 }
 0x29e   : > { %7497 = vrot.lane.b32.xlu0 %v10275_v21, %s9075_s6  ;;  %v1087_v21 = vrot.slane %v13601_v19, 2  ;;  %v1284_v43 = vrot.slane %v6538_v34, 1  ;;  %v1287_v33 = vrot.slane %v779_v38, 1  ;;  %v1385_v19 = vrot.slane %v6538_v34, 2 }
 0x29f   : > { %v2027_v41 = vsel %vm2018_vm10, %v1994_v3, %v7209_v9  ;;  %v2028_v37 = vsel %vm2018_vm10, %v1995_v39, %v7210_v23  ;;  %v10393_v51 = vpop.permute.xlu1 %7222  ;;  %v726_v9 = vld [vmem:[%s9565_s20 + $0xcc] sm:$0xff]   ;;  %v1386_v11 = vrot.slane %v6539_v57, 2  ;;  %v1388_v18 = vrot.slane %v779_v38, 2  ;;  %s9084_s20 = smov 64  }
 0x2a0   : > { %v7218_v4 = vpop.permute.xlu0 %7217  ;;  %v2055_v29 = vpack.c.bf16 %v2028_v37, %v2027_v41  ;;  %v1285_v41 = vrot.slane %v6539_v57, 1  ;;  %v10433_v44 = vunpack.c.l.bf16 %v726_v9  ;;  %v10435_v1 = vunpack.c.h.bf16 %v726_v9 }
 0x2a1   : > { %v7220_v63 = vunpack.i.h.bf16 %v7218_v4  ;;  %v7219_v26 = vunpack.i.l.bf16 %v7218_v4  ;;  %7512 = vrot.lane.b32.xlu1 %v10321_v40, %s9076_s4  ;;  %v782_v4 = vunpack.c.l.bf16 %v728_v58  ;;  %v1389_v38 = vsel %vm1008_vm0, %v1386_v11, %v1388_v18 }
 0x2a2   : > { %7507 = vrot.lane.b32.xlu0 %v10301_v46, %s9076_s4  ;;  %6635 = vmatprep.mubr.msk.bf16.mxu0 %vm2094_vm11, %v2055_v29  ;;  %v13602_v46 = vrot.slane %v10266_v28, 2  ;;  %v10446_v17 = vsel %vm831_vm1, %v1284_v43, %v1285_v41 }
 0x2a3   : > { %v2030_v5 = vsel %vm2018_vm10, %v1997_v14, %v7220_v63  ;;  %v2029_v53 = vsel %vm2018_vm10, %v1996_v30, %v7219_v26  ;;  %v10412_v35 = vpop.permute.xlu1 %7232  ;;  %13605 = vst [vmem:[#allocation70_spill] sm:$0xff] %v10446_v17  ;;  %v10451_v26 = vsel %vm831_vm1, %v1285_v41, %v1287_v33  ;;  %v1585_v30 = vrot.slane %v10433_v44, 1 }
 0x2a4   : > { %v10414_v32 = vpop.permute.xlu0 %7227  ;;  %v2056_v23 = vpack.c.bf16 %v2030_v5, %v2029_v53  ;;  %v1086_v3 = vsel %vm1008_vm0, %v13603_v8, %v13602_v46  ;;  %v13604_v39 = vmov %v13602_v46  ;;  %13606 = vst [vmem:[#allocation71_spill] sm:$0xff] %v10451_v26  ;;  %v1588_v14 = vrot.slane %v782_v4, 1 }
 0x2a5   : > { %7522 = vrot.lane.b32.xlu1 %v10335_v55, %s9077_s2  ;;  %v1088_v7 = vsel %vm1008_vm0, %v13604_v39, %v1087_v21  ;;  %v1387_v53 = vsel %vm1008_vm0, %v1385_v19, %v1386_v11  ;;  %v10467_v9 = vpack.i.bf16 %v10451_v26, %v10446_v17  ;;  %v13481_v39 = vrot.slane %v10435_v1, 2 }
 0x2a6   : > { %7517 = vrot.lane.b32.xlu0 %v10305_v10, %s9077_s2  ;;  %6636 = vmatmul.mubr.msk.bf16.gmra.mrb[8].mxu0 %vm2094_vm11, %v2056_v23  ;;  %v10443_v21 = vpack.i.bf16 %v1088_v7, %v1086_v3  ;;  %v10463_v23 = vpack.i.bf16 %v6539_v57, %v6538_v34  ;;  %v1686_v3 = vrot.slane %v10433_v44, 2  ;;  %v7215_v7 = vunpack.i.h.bf16 %v10375_v6 }
 0x2a7   : > { %v10431_v37 = vpop.permute.xlu1 %7242  ;;  %v7214_v34 = vunpack.i.l.bf16 %v10375_v6  ;;  %v10481_v43 = vpack.i.bf16 %v1389_v38, %v1387_v53  ;;  %v7225_v41 = vunpack.i.h.bf16 %v10393_v51  ;;  %v7224_v33 = vunpack.i.l.bf16 %v10393_v51 }
 0x2a8   : > { %v10437_v29 = vpop.permute.xlu0 %7237  ;;  %v7235_v11 = vunpack.i.h.bf16 %v10412_v35  ;;  %v7234_v18 = vunpack.i.l.bf16 %v10412_v35  ;;  %v7229_v51 = vunpack.i.l.bf16 %v10414_v32  ;;  %v10504_v53 = vrot.slane %v782_v4, 2 }
 0x2a9   : > { %7532 = vrot.lane.b32.xlu1 %v10305_v10, %s9073_s22  ;;  %v1586_v10 = vrot.slane %v10435_v1, 1  ;;  %v1801_v35 = vsel %vm1787_vm3, %v9772_v62, %v7215_v7  ;;  %v7245_v38 = vunpack.i.h.bf16 %v10431_v37  ;;  %v7244_v6 = vunpack.i.l.bf16 %v10431_v37 }
 0x2aa   : > { %7527 = vrot.lane.b32.xlu0 %v10307_v48, %s9078_s1  ;;  %v1803_v19 = vsel %vm1787_vm3, %v9800_v27, %v7225_v41  ;;  %v7240_v4 = vunpack.i.h.bf16 %v10437_v29 }
 0x2ab   : > { %v10448_v63 = vpop.permute.xlu1 %7252  ;;  %v10472_v46 = vsel %vm831_vm1, %v1585_v30, %v1586_v10  ;;  %v10475_v8 = vsel %vm831_vm1, %v1586_v10, %v1588_v14  ;;  %v7230_v30 = vunpack.i.h.bf16 %v10414_v32  ;;  %v10502_v14 = vsel %vm1008_vm0, %v1686_v3, %v13481_v39 }
 0x2ac   : > { %v10455_v5 = vpop.permute.xlu0 %7247  ;;  %v1802_v3 = vsel %vm1787_vm3, %v9795_v22, %v7224_v33  ;;  %v7239_v39 = vunpack.i.l.bf16 %v10437_v29  ;;  %v1836_v62 = vsel %vm1820_vm4, %v1803_v19, %v7235_v11  ;;  %v7254_v37 = vunpack.i.l.bf16 %v10448_v63 }
 0x2ad   : > { %7542 = vrot.lane.b32.xlu1 %v10335_v55, %s9073_s22  ;;  %v7249_v7 = vunpack.i.l.bf16 %v10455_v5  ;;  %v1834_v22 = vsel %vm1820_vm4, %v1801_v35, %v7230_v30  ;;  %v7250_v29 = vunpack.i.h.bf16 %v10455_v5  ;;  %v1869_v19 = vsel %vm1853_vm5, %v1836_v62, %v7245_v38 }
 0x2ae   : > { %7537 = vrot.lane.b32.xlu0 %v10443_v21, %s9078_s1  ;;  %v7255_v30 = vunpack.i.h.bf16 %v10448_v63 }
 0x2af   : > { %v10469_v58 = vpop.permute.xlu1 %7262 }
 0x2b0   : > { %v7258_v57 = vpop.permute.xlu0 %7257  ;;  %v7264_v63 = vunpack.i.l.bf16 %v10469_v58 }
 0x2b1   : > { %7552 = vrot.lane.b32.xlu1 %v10443_v21, %s9072_s26  ;;  %v7260_v11 = vunpack.i.h.bf16 %v7258_v57 }
 0x2b2   : > { %7547 = vrot.lane.b32.xlu0 %v10307_v48, %s9072_s26  ;;  %v1800_v48 = vsel %vm1787_vm3, %v9770_v61, %v7214_v34  ;;  %v1835_v61 = vsel %vm1820_vm4, %v1802_v3, %v7234_v18  ;;  %v7259_v34 = vunpack.i.l.bf16 %v7258_v57  ;;  %v7265_v57 = vunpack.i.h.bf16 %v10469_v58 }
 0x2b3   : > { %v10497_v10 = vpop.permute.xlu1 %7272  ;;  %v1833_v27 = vsel %vm1820_vm4, %v1800_v48, %v7229_v51  ;;  %v1868_v33 = vsel %vm1853_vm5, %v1835_v61, %v7244_v6 }
 0x2b4   : > { %v7268_v32 = vpop.permute.xlu0 %7267  ;;  %v1866_v26 = vsel %vm1853_vm5, %v1833_v27, %v7239_v39  ;;  %v10539_v5 = vsel %vm1886_vm6, %v1868_v33, %v7254_v37  ;;  %v7275_v61 = vunpack.i.h.bf16 %v10497_v10 }
 0x2b5   : > { %7562 = vrot.lane.b32.xlu1 %v10463_v23, %s9071_s17  ;;  %v7269_v18 = vunpack.i.l.bf16 %v7268_v32  ;;  %v7270_v35 = vunpack.i.h.bf16 %v7268_v32  ;;  %v1899_v6 = vsel %vm1886_vm6, %v1866_v26, %v7249_v7  ;;  %v7274_v26 = vunpack.i.l.bf16 %v10497_v10 }
 0x2b6   : > { %7557 = vrot.lane.b32.xlu0 %v10321_v40, %s9071_s17  ;;  %v1867_v40 = vsel %vm1853_vm5, %v1834_v22, %v7240_v4  ;;  %v1932_v38 = vsel %vm1919_vm7, %v1899_v6, %v7259_v34  ;;  %v13608_v10 = vrot.slane %v10435_v1, 2  ;;  %s6124_s17 = sshll.u32 %s13129_s28, 4  ;;  %s13377_s17 = int_to_ptr.vmem [resolvable:$true] %s6124_s17 }
 0x2b7   : > { %v10529_v41 = vpop.permute.xlu1 %7282  ;;  %v1900_v39 = vsel %vm1886_vm6, %v1867_v40, %v7250_v29  ;;  %v1965_v62 = vsel %vm1952_vm8, %v1932_v38, %v7269_v18 }
 0x2b8   : > { %v7278_v3 = vpop.permute.xlu0 %7277  ;;  %v1933_v4 = vsel %vm1919_vm7, %v1900_v39, %v7260_v11  ;;  %v7285_v7 = vunpack.i.h.bf16 %v10529_v41  ;;  %v7284_v29 = vunpack.i.l.bf16 %v10529_v41  ;;  %v1902_v11 = vsel %vm1886_vm6, %v1869_v19, %v7255_v30 }
 0x2b9   : > { %7572 = vrot.lane.b32.xlu1 %v10467_v9, %s9074_s25  ;;  %v7280_v51 = vunpack.i.h.bf16 %v7278_v3  ;;  %v7279_v48 = vunpack.i.l.bf16 %v7278_v3  ;;  %v1935_v19 = vsel %vm1919_vm7, %v1902_v11, %v7265_v57  ;;  %v1690_v57 = vsel %vm1008_vm0, %v13608_v10, %v10504_v53 }
 0x2ba   : > { %7567 = vrot.lane.b32.xlu0 %v10335_v55, %s9074_s25  ;;  %v1966_v55 = vsel %vm1952_vm8, %v1933_v4, %v7270_v35  ;;  %v13483_v35 = vmov 0.0   ;;  %v13609_v41 = vpack.i.bf16 %v10475_v8, %v10472_v46 }
 0x2bb   : > { %v10548_v32 = vpop.permute.xlu1 %7292  ;;  %v1998_v34 = vsel %vm1985_vm9, %v1965_v62, %v7279_v48  ;;  %v1999_v33 = vsel %vm1985_vm9, %v1966_v55, %v7280_v51  ;;  %3167 = vst.msk [vmem:[#allocation2 + $0x30] sm:$0xff] %vm1820_vm4, %v13483_v35  ;;  %3168 = vst.msk [vmem:[#allocation2 + $0x38] sm:$0xff] %vm1820_vm4, %v13483_v35  ;;  %6659 = vmatprep.subr.mxu1 %v13483_v35  ;;  %6721 = vmatprep.subr.mxu0 %v13483_v35 }
 0x2bc   : > { %v7288_v37 = vpop.permute.xlu0 %7287  ;;  %3160 = vst.msk [vmem:[#allocation2] sm:$0xff] %vm1820_vm4, %v13483_v35  ;;  %3161 = vst.msk [vmem:[#allocation2 + $0x8] sm:$0xff] %vm1820_vm4, %v13483_v35  ;;  %v1968_v48 = vsel %vm1952_vm8, %v1935_v19, %v7275_v61 }
 0x2bd   : > { %v7290_v22 = vunpack.i.h.bf16 %v7288_v37  ;;  %v7289_v27 = vunpack.i.l.bf16 %v7288_v37  ;;  %7582 = vrot.lane.b32.xlu1 %v10481_v43, %s9075_s6  ;;  %3164 = vst.msk [vmem:[#allocation2 + $0x18] sm:$0xff] %vm1820_vm4, %v13483_v35  ;;  %3165 = vst.msk [vmem:[#allocation2 + $0x20] sm:$0xff] %vm1820_vm4, %v13483_v35  ;;  %v2001_v58 = vsel %vm1985_vm9, %v1968_v48, %v7285_v7 }
 0x2be   : > { %7577 = vrot.lane.b32.xlu0 %v10443_v21, %s9075_s6  ;;  %3170 = vst.msk [vmem:[#allocation2 + $0x48] sm:$0xff] %vm1820_vm4, %v13483_v35  ;;  %3171 = vst.msk [vmem:[#allocation2 + $0x50] sm:$0xff] %vm1820_vm4, %v13483_v35  ;;  %v1934_v21 = vsel %vm1919_vm7, %v10539_v5, %v7264_v63  ;;  %v13607_v5 = vpack.i.bf16 %v10435_v1, %v10433_v44  ;;  %s13699_s6 = sld [smem:[#allocation92_spill]] }
 0x2bf   : > { %v10565_v18 = vsel %vm2018_vm10, %v1998_v34, %v7289_v27  ;;  %v10568_v3 = vsel %vm2018_vm10, %v1999_v33, %v7290_v22  ;;  %v10570_v40 = vpop.permute.xlu1 %7302  ;;  %3173 = vst.msk [vmem:[#allocation2 + $0x60] sm:$0xff] %vm1820_vm4, %v13483_v35  ;;  %3174 = vst.msk [vmem:[#allocation2 + $0x68] sm:$0xff] %vm1820_vm4, %v13483_v35  ;;  %v1967_v51 = vsel %vm1952_vm8, %v1934_v21, %v7274_v26  ;;  %v7294_v22 = vunpack.i.l.bf16 %v10548_v32 }
 0x2c0   : > { %3176 = vst.msk [vmem:[#allocation2 + $0x78] sm:$0xff] %vm1820_vm4, %v13483_v35  ;;  %3177 = vst.msk [vmem:[#allocation2 + $0x80] sm:$0xff] %vm1820_vm4, %v13483_v35  ;;  %v7298_v30 = vpop.permute.xlu0 %7297  ;;  %v2057_v6 = vpack.c.bf16 %v10568_v3, %v10565_v18  ;;  %v2000_v44 = vsel %vm1985_vm9, %v1967_v51, %v7284_v29  ;;  %v7305_v8 = vunpack.i.h.bf16 %v10570_v40 }
 0x2c1   : > { %3179 = vst.msk [vmem:[#allocation2 + $0x90] sm:$0xff] %vm1820_vm4, %v13483_v35  ;;  %3180 = vst.msk [vmem:[#allocation2 + $0x98] sm:$0xff] %vm1820_vm4, %v13483_v35  ;;  %v7300_v39 = vunpack.i.h.bf16 %v7298_v30  ;;  %v7299_v38 = vunpack.i.l.bf16 %v7298_v30  ;;  %7592 = vrot.lane.b32.xlu1 %v13607_v5, %s9076_s4 }
 0x2c2   : > { %3182 = vst.msk [vmem:[#allocation2 + $0xa8] sm:$0xff] %vm1820_vm4, %v13483_v35  ;;  %3183 = vst.msk [vmem:[#allocation2 + $0xb0] sm:$0xff] %vm1820_vm4, %v13483_v35  ;;  %7587 = vrot.lane.b32.xlu0 %v10463_v23, %s9076_s4  ;;  %6639 = vmatprep.mubr.msk.bf16.mxu0 %vm2094_vm11, %v2057_v6  ;;  %v7611_v23 = vpack.i.bf16 %v1690_v57, %v10502_v14  ;;  %v7304_v14 = vunpack.i.l.bf16 %v10570_v40  ;;  %v1807_v21 = vsel %vm1787_vm3, %v9860_v24, %v7305_v8 }
 0x2c3   : > { %3185 = vst.msk [vmem:[#allocation2 + $0xc0] sm:$0xff] %vm1820_vm4, %v13483_v35  ;;  %3186 = vst.msk [vmem:[#allocation2 + $0xc8] sm:$0xff] %vm1820_vm4, %v13483_v35  ;;  %v2034_v63 = vsel %vm2018_vm10, %v2001_v58, %v7300_v39  ;;  %v2033_v4 = vsel %vm2018_vm10, %v2000_v44, %v7299_v38  ;;  %v7313_v61 = vpop.permute.xlu1 %7312 }
 0x2c4   : > { %3188 = vst.msk [vmem:[#allocation2 + $0xd8] sm:$0xff] %vm1820_vm4, %v13483_v35  ;;  %3189 = vst.msk [vmem:[#allocation2 + $0xe0] sm:$0xff] %vm1820_vm4, %v13483_v35  ;;  %v7308_v26 = vpop.permute.xlu0 %7307  ;;  %v2058_v62 = vpack.c.bf16 %v2034_v63, %v2033_v4  ;;  %v7315_v27 = vunpack.i.h.bf16 %v7313_v61  ;;  %v7314_v29 = vunpack.i.l.bf16 %v7313_v61  ;;  %v1806_v19 = vsel %vm1787_vm3, %v9855_v20, %v7304_v14 }
 0x2c5   : > { %3191 = vst.msk [vmem:[#allocation2 + $0xf0] sm:$0xff] %vm1820_vm4, %v13483_v35  ;;  %3192 = vst.msk [vmem:[#allocation2 + $0xf8] sm:$0xff] %vm1820_vm4, %v13483_v35  ;;  %7602 = vrot.lane.b32.xlu1 %v13609_v41, %s9077_s2  ;;  %v7310_v34 = vunpack.i.h.bf16 %v7308_v26  ;;  %v7309_v33 = vunpack.i.l.bf16 %v7308_v26 }
 0x2c6   : > { %3194 = vst.msk [vmem:[#allocation2 + $0x108] sm:$0xff] %vm1820_vm4, %v13483_v35  ;;  %3195 = vst.msk [vmem:[#allocation2 + $0x110] sm:$0xff] %vm1820_vm4, %v13483_v35  ;;  %7597 = vrot.lane.b32.xlu0 %v10467_v9, %s9077_s2  ;;  %6640 = vmatmul.mubr.msk.bf16.gmra.mrb[12].mxu0 %vm2094_vm11, %v2058_v62  ;;  %v7295_v9 = vunpack.i.h.bf16 %v10548_v32  ;;  %v1804_v32 = vsel %vm1787_vm3, %v9830_v54, %v7294_v22  ;;  %v1839_v51 = vsel %vm1820_vm4, %v1806_v19, %v7314_v29  ;;  %s8955_s2 = scalar_lea.vmem %s13377_s17, 2048 }
 0x2c7   : > { %3197 = vst.msk [vmem:[#allocation2 + $0x120] sm:$0xff] %vm1820_vm4, %v13483_v35  ;;  %3198 = vst.msk [vmem:[#allocation2 + $0x128] sm:$0xff] %vm1820_vm4, %v13483_v35  ;;  %v7323_v1 = vpop.permute.xlu1 %7322  ;;  %v1840_v48 = vsel %vm1820_vm4, %v1807_v21, %v7315_v27  ;;  %v1837_v38 = vsel %vm1820_vm4, %v1804_v32, %v7309_v33  ;;  %p8956_p11 = scmp.ne.s32.totalorder %s13377_s17, %s8955_s2 }
 0x2c8   : > { %3200 = vst.msk [vmem:[#allocation2 + $0x138] sm:$0xff] %vm1820_vm4, %v13483_v35  ;;  %3201 = vst.msk [vmem:[#allocation2 + $0x140] sm:$0xff] %vm1820_vm4, %v13483_v35  ;;  %v7318_v53 = vpop.permute.xlu0 %7317  ;;  %v7324_v18 = vunpack.i.l.bf16 %v7323_v1  ;;  %v1805_v6 = vsel %vm1787_vm3, %v9832_v56, %v7295_v9 }
 0x2c9   : > { %3203 = vst.msk [vmem:[#allocation2 + $0x150] sm:$0xff] %vm1820_vm4, %v13483_v35  ;;  %3204 = vst.msk [vmem:[#allocation2 + $0x158] sm:$0xff] %vm1820_vm4, %v13483_v35  ;;  %7612 = vrot.lane.b32.xlu1 %v7611_v23, %s9078_s1  ;;  %v7320_v30 = vunpack.i.h.bf16 %v7318_v53  ;;  %v7319_v40 = vunpack.i.l.bf16 %v7318_v53  ;;  %v1838_v39 = vsel %vm1820_vm4, %v1805_v6, %v7310_v34  ;;  %p8957_p9 = pnand %p8956_p11, %p13700_p8 }
 0x2ca   : > { %3206 = vst.msk [vmem:[#allocation2 + $0x168] sm:$0xff] %vm1820_vm4, %v13483_v35  ;;  %3207 = vst.msk [vmem:[#allocation2 + $0x170] sm:$0xff] %vm1820_vm4, %v13483_v35  ;;  %7607 = vrot.lane.b32.xlu0 %v10481_v43, %s9078_s1  ;;  %v7325_v43 = vunpack.i.h.bf16 %v7323_v1  ;;  %v1872_v20 = vsel %vm1853_vm5, %v1839_v51, %v7324_v18 }
 0x2cb   : > { %3209 = vst.msk [vmem:[#allocation2 + $0x180] sm:$0xff] %vm1820_vm4, %v13483_v35  ;;  %3210 = vst.msk [vmem:[#allocation2 + $0x188] sm:$0xff] %vm1820_vm4, %v13483_v35  ;;  %v10723_v37 = vpop.permute.xlu1 %7332  ;;  %v1870_v54 = vsel %vm1853_vm5, %v1837_v38, %v7319_v40  ;;  %v1871_v63 = vsel %vm1853_vm5, %v1838_v39, %v7320_v30  ;;  %p8958_p12 = pneg %p8957_p9 }
 0x2cc   : > { %3212 = vst.msk [vmem:[#allocation2 + $0x198] sm:$0xff] %vm1820_vm4, %v13483_v35  ;;  %3213 = vst.msk [vmem:[#allocation2 + $0x1a0] sm:$0xff] %vm1820_vm4, %v13483_v35  ;;  %v7328_v55 = vpop.permute.xlu0 %7327  ;;  %v1873_v58 = vsel %vm1853_vm5, %v1840_v48, %v7325_v43  ;;  %v7335_v26 = vunpack.i.h.bf16 %v10723_v37  ;;  %v7334_v62 = vunpack.i.l.bf16 %v10723_v37 }
 0x2cd   : > { %3169 = vst.msk [vmem:[#allocation2 + $0x40] sm:$0x3] %vm3162_vm12, %v13483_v35  ;;  %3163 = vst.msk [vmem:[#allocation2 + $0x10] sm:$0x3] %vm3162_vm12, %v13483_v35  ;;  %v7330_v24 = vunpack.i.h.bf16 %v7328_v55  ;;  %v7329_v5 = vunpack.i.l.bf16 %v7328_v55 }
 0x2ce   : > { %3166 = vst.msk [vmem:[#allocation2 + $0x28] sm:$0x3] %vm3162_vm12, %v13483_v35  ;;  %3172 = vst.msk [vmem:[#allocation2 + $0x58] sm:$0x3] %vm3162_vm12, %v13483_v35  ;;  %v1905_v19 = vsel %vm1886_vm6, %v1872_v20, %v7334_v62  ;;  %v1906_v30 = vsel %vm1886_vm6, %v1873_v58, %v7335_v26 }
 0x2cf   : > { %3175 = vst.msk [vmem:[#allocation2 + $0x70] sm:$0x3] %vm3162_vm12, %v13483_v35  ;;  %3178 = vst.msk [vmem:[#allocation2 + $0x88] sm:$0x3] %vm3162_vm12, %v13483_v35  ;;  %v10725_v7 = vpop.permute.xlu1 %7342  ;;  %v1903_v1 = vsel %vm1886_vm6, %v1870_v54, %v7329_v5  ;;  %v1904_v53 = vsel %vm1886_vm6, %v1871_v63, %v7330_v24 }
 0x2d0   : > { %3181 = vst.msk [vmem:[#allocation2 + $0xa0] sm:$0x3] %vm3162_vm12, %v13483_v35  ;;  %3184 = vst.msk [vmem:[#allocation2 + $0xb8] sm:$0x3] %vm3162_vm12, %v13483_v35  ;;  %v7338_v46 = vpop.permute.xlu0 %7337  ;;  %v7345_v55 = vunpack.i.h.bf16 %v10725_v7 }
 0x2d1   : > { %3187 = vst.msk [vmem:[#allocation2 + $0xd0] sm:$0x3] %vm3162_vm12, %v13483_v35  ;;  %3190 = vst.msk [vmem:[#allocation2 + $0xe8] sm:$0x3] %vm3162_vm12, %v13483_v35  ;;  %v7340_v10 = vunpack.i.h.bf16 %v7338_v46  ;;  %v7339_v56 = vunpack.i.l.bf16 %v7338_v46  ;;  %v7344_v46 = vunpack.i.l.bf16 %v10725_v7 }
 0x2d2   : > { %3193 = vst.msk [vmem:[#allocation2 + $0x100] sm:$0x3] %vm3162_vm12, %v13483_v35  ;;  %3196 = vst.msk [vmem:[#allocation2 + $0x118] sm:$0x3] %vm3162_vm12, %v13483_v35  ;;  %v1939_v51 = vsel %vm1919_vm7, %v1906_v30, %v7345_v55 }
 0x2d3   : > { %3199 = vst.msk [vmem:[#allocation2 + $0x130] sm:$0x3] %vm3162_vm12, %v13483_v35  ;;  %3202 = vst.msk [vmem:[#allocation2 + $0x148] sm:$0x3] %vm3162_vm12, %v13483_v35  ;;  %v7353_v11 = vpop.permute.xlu1 %7352  ;;  %v1936_v14 = vsel %vm1919_vm7, %v1903_v1, %v7339_v56  ;;  %v1937_v9 = vsel %vm1919_vm7, %v1904_v53, %v7340_v10  ;;  %v1938_v32 = vsel %vm1919_vm7, %v1905_v19, %v7344_v46 }
 0x2d4   : > { %3205 = vst.msk [vmem:[#allocation2 + $0x160] sm:$0x3] %vm3162_vm12, %v13483_v35  ;;  %3208 = vst.msk [vmem:[#allocation2 + $0x178] sm:$0x3] %vm3162_vm12, %v13483_v35  ;;  %v7348_v3 = vpop.permute.xlu0 %7347  ;;  %v7355_v22 = vunpack.i.h.bf16 %v7353_v11  ;;  %v7354_v27 = vunpack.i.l.bf16 %v7353_v11 }
 0x2d5   : > { %3211 = vst.msk [vmem:[#allocation2 + $0x190] sm:$0x3] %vm3162_vm12, %v13483_v35  ;;  %3214 = vst.msk [vmem:[#allocation2 + $0x1a8] sm:$0x3] %vm3162_vm12, %v13483_v35  ;;  %v7350_v4 = vunpack.i.h.bf16 %v7348_v3  ;;  %v7349_v61 = vunpack.i.l.bf16 %v7348_v3 }
 0x2d6   : > { %v1971_v38 = vsel %vm1952_vm8, %v1938_v32, %v7354_v27  ;;  %v1972_v24 = vsel %vm1952_vm8, %v1939_v51, %v7355_v22 }
 0x2d7   : > { %v7363_v44 = vpop.permute.xlu1 %7362  ;;  %v1969_v37 = vsel %vm1952_vm8, %v1936_v14, %v7349_v61  ;;  %v1970_v34 = vsel %vm1952_vm8, %v1937_v9, %v7350_v4 }
 0x2d8   : > { %v7358_v57 = vpop.permute.xlu0 %7357  ;;  %v7365_v18 = vunpack.i.h.bf16 %v7363_v44  ;;  %v7364_v3 = vunpack.i.l.bf16 %v7363_v44 }
 0x2d9   : > { %v7360_v41 = vunpack.i.h.bf16 %v7358_v57  ;;  %v7359_v23 = vunpack.i.l.bf16 %v7358_v57 }
 0x2da   : > { %v2004_v20 = vsel %vm1985_vm9, %v1971_v38, %v7364_v3  ;;  %v2005_v58 = vsel %vm1985_vm9, %v1972_v24, %v7365_v18 }
 0x2db   : > { %v7373_v8 = vpop.permute.xlu1 %7372  ;;  %v2002_v21 = vsel %vm1985_vm9, %v1969_v37, %v7359_v23  ;;  %v2003_v7 = vsel %vm1985_vm9, %v1970_v34, %v7360_v41 }
 0x2dc   : > { %v7368_v29 = vpop.permute.xlu0 %7367  ;;  %v7375_v55 = vunpack.i.h.bf16 %v7373_v8  ;;  %v7374_v46 = vunpack.i.l.bf16 %v7373_v8 }
 0x2dd   : > { %v7370_v33 = vunpack.i.h.bf16 %v7368_v29  ;;  %v7369_v43 = vunpack.i.l.bf16 %v7368_v29 }
 0x2de   : > { %v1808_v8 = vsel %vm1787_vm3, %v9901_v60, %v7374_v46 }
 0x2df   : > { %v2035_v40 = vsel %vm2018_vm10, %v2002_v21, %v7369_v43  ;;  %v2036_v11 = vsel %vm2018_vm10, %v2003_v7, %v7370_v33  ;;  %v7383_v6 = vpop.permute.xlu1 %7382  ;;  %v1809_v7 = vsel %vm1787_vm3, %v9907_v12, %v7375_v55 }
 0x2e0   : > { %v7378_v48 = vpop.permute.xlu0 %7377  ;;  %v2059_v39 = vpack.c.bf16 %v2036_v11, %v2035_v40  ;;  %v7385_v1 = vunpack.i.h.bf16 %v7383_v6  ;;  %v7384_v53 = vunpack.i.l.bf16 %v7383_v6 }
 0x2e1   : > { %v7380_v5 = vunpack.i.h.bf16 %v7378_v48  ;;  %v7379_v44 = vunpack.i.l.bf16 %v7378_v48 }
 0x2e2   : > { %6643 = vmatprep.mubr.msk.bf16.mxu0 %vm2094_vm11, %v2059_v39  ;;  %v1811_v43 = vsel %vm1787_vm3, %v9930_v2, %v7385_v1  ;;  %v1810_v18 = vsel %vm1787_vm3, %v9926_v59, %v7384_v53 }
 0x2e3   : > { %v2038_v10 = vsel %vm2018_vm10, %v2005_v58, %v7380_v5  ;;  %v2037_v56 = vsel %vm2018_vm10, %v2004_v20, %v7379_v44  ;;  %v7393_v57 = vpop.permute.xlu1 %7392 }
 0x2e4   : > { %v7388_v54 = vpop.permute.xlu0 %7387  ;;  %v2060_v63 = vpack.c.bf16 %v2038_v10, %v2037_v56  ;;  %v7395_v14 = vunpack.i.h.bf16 %v7393_v57  ;;  %v7394_v9 = vunpack.i.l.bf16 %v7393_v57 }
 0x2e5   : > { %v7390_v22 = vunpack.i.h.bf16 %v7388_v54  ;;  %v7389_v27 = vunpack.i.l.bf16 %v7388_v54 }
 0x2e6   : > { %6644 = vmatmul.mubr.msk.bf16.gmra.mrb[16].mxu0 %vm2094_vm11, %v2060_v63  ;;  %v1843_v19 = vsel %vm1820_vm4, %v1810_v18, %v7394_v9  ;;  %v1844_v30 = vsel %vm1820_vm4, %v1811_v43, %v7395_v14 }
 0x2e7   : > { %v7403_v4 = vpop.permute.xlu1 %7402  ;;  %v1842_v40 = vsel %vm1820_vm4, %v1809_v7, %v7390_v22  ;;  %v1841_v11 = vsel %vm1820_vm4, %v1808_v8, %v7389_v27  ;;  %6723 = vmatprep.mubr.msk.f32.mxu0 %vm9080_vm13, %v13483_v35 }
 0x2e8   : > { %v7398_v61 = vpop.permute.xlu0 %7397  ;;  %v7405_v37 = vunpack.i.h.bf16 %v7403_v4  ;;  %v7404_v34 = vunpack.i.l.bf16 %v7403_v4 }
 0x2e9   : > { %v7400_v3 = vunpack.i.h.bf16 %v7398_v61  ;;  %v7399_v21 = vunpack.i.l.bf16 %v7398_v61 }
 0x2ea   : > { %v1876_v59 = vsel %vm1853_vm5, %v1843_v19, %v7404_v34  ;;  %v1877_v51 = vsel %vm1853_vm5, %v1844_v30, %v7405_v37 }
 0x2eb   : > { %v10773_v26 = vpop.permute.xlu1 %7412  ;;  %v1874_v60 = vsel %vm1853_vm5, %v1841_v11, %v7399_v21  ;;  %v1875_v38 = vsel %vm1853_vm5, %v1842_v40, %v7400_v3 }
 0x2ec   : > { %v7408_v62 = vpop.permute.xlu0 %7407  ;;  %v7415_v44 = vunpack.i.h.bf16 %v10773_v26  ;;  %v7414_v20 = vunpack.i.l.bf16 %v10773_v26 }
 0x2ed   : > { %v7410_v2 = vunpack.i.h.bf16 %v7408_v62  ;;  %v7409_v6 = vunpack.i.l.bf16 %v7408_v62 }
 0x2ee   : > { %v1909_v37 = vsel %vm1886_vm6, %v1876_v59, %v7414_v20  ;;  %v1910_v34 = vsel %vm1886_vm6, %v1877_v51, %v7415_v44 }
 0x2ef   : > { %v10775_v41 = vpop.permute.xlu1 %7422  ;;  %v1907_v56 = vsel %vm1886_vm6, %v1874_v60, %v7409_v6  ;;  %v1908_v57 = vsel %vm1886_vm6, %v1875_v38, %v7410_v2 }
 0x2f0   : > { %v7418_v23 = vpop.permute.xlu0 %7417  ;;  %v7425_v54 = vunpack.i.h.bf16 %v10775_v41  ;;  %v7424_v63 = vunpack.i.l.bf16 %v10775_v41 }
 0x2f1   : > { %v7420_v48 = vunpack.i.h.bf16 %v7418_v23  ;;  %v7419_v12 = vunpack.i.l.bf16 %v7418_v23 }
 0x2f2   : > { %v1942_v18 = vsel %vm1919_vm7, %v1909_v37, %v7424_v63  ;;  %v1943_v3 = vsel %vm1919_vm7, %v1910_v34, %v7425_v54 }
 0x2f3   : > { %v7433_v29 = vpop.permute.xlu1 %7432  ;;  %v1940_v61 = vsel %vm1919_vm7, %v1907_v56, %v7419_v12  ;;  %v1941_v62 = vsel %vm1919_vm7, %v1908_v57, %v7420_v48 }
 0x2f4   : > { %v7428_v33 = vpop.permute.xlu0 %7427  ;;  %v7435_v23 = vunpack.i.h.bf16 %v7433_v29  ;;  %v7434_v1 = vunpack.i.l.bf16 %v7433_v29 }
 0x2f5   : > { %v7430_v24 = vunpack.i.h.bf16 %v7428_v33  ;;  %v7429_v5 = vunpack.i.l.bf16 %v7428_v33 }
 0x2f6   : > { %v1975_v8 = vsel %vm1952_vm8, %v1942_v18, %v7434_v1  ;;  %v1976_v19 = vsel %vm1952_vm8, %v1943_v3, %v7435_v23 }
 0x2f7   : > { %v7443_v32 = vpop.permute.xlu1 %7442  ;;  %v1973_v46 = vsel %vm1952_vm8, %v1940_v61, %v7429_v5  ;;  %v1974_v14 = vsel %vm1952_vm8, %v1941_v62, %v7430_v24 }
 0x2f8   : > { %v7438_v39 = vpop.permute.xlu0 %7437  ;;  %v7445_v9 = vunpack.i.h.bf16 %v7443_v32  ;;  %v7444_v22 = vunpack.i.l.bf16 %v7443_v32 }
 0x2f9   : > { %v7440_v58 = vunpack.i.h.bf16 %v7438_v39  ;;  %v7439_v10 = vunpack.i.l.bf16 %v7438_v39 }
 0x2fa   : > { %v2008_v11 = vsel %vm1985_vm9, %v1975_v8, %v7444_v22  ;;  %v2009_v2 = vsel %vm1985_vm9, %v1976_v19, %v7445_v9 }
 0x2fb   : > { %v7453_v4 = vpop.permute.xlu1 %7452  ;;  %v2006_v27 = vsel %vm1985_vm9, %v1973_v46, %v7439_v10  ;;  %v2007_v41 = vsel %vm1985_vm9, %v1974_v14, %v7440_v58 }
 0x2fc   : > { %v7448_v53 = vpop.permute.xlu0 %7447  ;;  %v7455_v58 = vunpack.i.h.bf16 %v7453_v4  ;;  %v7454_v10 = vunpack.i.l.bf16 %v7453_v4 }
 0x2fd   : > { %v7450_v55 = vunpack.i.h.bf16 %v7448_v53  ;;  %v7449_v26 = vunpack.i.l.bf16 %v7448_v53 }
 0x2fe   : > { %v1813_v14 = vsel %vm1787_vm3, %v10066_v49, %v7455_v58  ;;  %v1812_v4 = vsel %vm1787_vm3, %v10064_v16, %v7454_v10 }
 0x2ff   : > { %v7463_v33 = vpop.permute.xlu1 %7462  ;;  %v2039_v29 = vsel %vm2018_vm10, %v2006_v27, %v7449_v26  ;;  %v2040_v43 = vsel %vm2018_vm10, %v2007_v41, %v7450_v55 }
 0x300   : > { %v7458_v21 = vpop.permute.xlu0 %7457  ;;  %v2061_v7 = vpack.c.bf16 %v2040_v43, %v2039_v29  ;;  %v7465_v44 = vunpack.i.h.bf16 %v7463_v33  ;;  %v7464_v20 = vunpack.i.l.bf16 %v7463_v33 }
 0x301   : > { %v7460_v30 = vunpack.i.h.bf16 %v7458_v21  ;;  %v7459_v40 = vunpack.i.l.bf16 %v7458_v21 }
 0x302   : > { %6647 = vmatprep.mubr.msk.bf16.mxu1 %vm2094_vm11, %v2061_v7  ;;  %v1815_v53 = vsel %vm1787_vm3, %v10109_v45, %v7465_v44  ;;  %v1814_v55 = vsel %vm1787_vm3, %v10107_v31, %v7464_v20 }
 0x303   : > { %v2042_v6 = vsel %vm2018_vm10, %v2009_v2, %v7460_v30  ;;  %v2041_v32 = vsel %vm2018_vm10, %v2008_v11, %v7459_v40  ;;  %v7473_v59 = vpop.permute.xlu1 %7472 }
 0x304   : > { %v7468_v51 = vpop.permute.xlu0 %7467  ;;  %v2062_v48 = vpack.c.bf16 %v2042_v6, %v2041_v32  ;;  %v7475_v56 = vunpack.i.h.bf16 %v7473_v59  ;;  %v7474_v57 = vunpack.i.l.bf16 %v7473_v59 }
 0x305   : > { %v7470_v54 = vunpack.i.h.bf16 %v7468_v51  ;;  %v7469_v63 = vunpack.i.l.bf16 %v7468_v51 }
 0x306   : > { %6648 = vmatmul.mubr.msk.bf16.vlgmr.msra.gmra.mrb[0].mxu1 %vm2094_vm11, %v2062_v48  ;;  %v1847_v9 = vsel %vm1820_vm4, %v1814_v55, %v7474_v57  ;;  %v1848_v22 = vsel %vm1820_vm4, %v1815_v53, %v7475_v56 }
 0x307   : > { %v7483_v12 = vpop.permute.xlu1 %7482  ;;  %v1846_v27 = vsel %vm1820_vm4, %v1813_v14, %v7470_v54  ;;  %v1845_v41 = vsel %vm1820_vm4, %v1812_v4, %v7469_v63 }
 0x308   : > { %v7478_v39 = vpop.permute.xlu0 %7477  ;;  %v7485_v62 = vunpack.i.h.bf16 %v7483_v12  ;;  %v7484_v23 = vunpack.i.l.bf16 %v7483_v12 }
 0x309   : > { %v7480_v26 = vunpack.i.h.bf16 %v7478_v39  ;;  %v7479_v46 = vunpack.i.l.bf16 %v7478_v39 }
 0x30a   : > { %v1880_v31 = vsel %vm1853_vm5, %v1847_v9, %v7484_v23  ;;  %v1881_v33 = vsel %vm1853_vm5, %v1848_v22, %v7485_v62 }
 0x30b   : > { %v10819_v60 = vpop.permute.xlu1 %7492  ;;  %v1878_v16 = vsel %vm1853_vm5, %v1845_v41, %v7479_v46  ;;  %v1879_v18 = vsel %vm1853_vm5, %v1846_v27, %v7480_v26 }
 0x30c   : > { %v7488_v38 = vpop.permute.xlu0 %7487  ;;  %v7495_v7 = vunpack.i.h.bf16 %v10819_v60  ;;  %v7494_v8 = vunpack.i.l.bf16 %v10819_v60 }
 0x30d   : > { %v7490_v45 = vunpack.i.h.bf16 %v7488_v38  ;;  %v7489_v37 = vunpack.i.l.bf16 %v7488_v38 }
 0x30e   : > { %v1913_v56 = vsel %vm1886_vm6, %v1880_v31, %v7494_v8  ;;  %v1914_v57 = vsel %vm1886_vm6, %v1881_v33, %v7495_v7 }
 0x30f   : > { %v10821_v24 = vpop.permute.xlu1 %7502  ;;  %v1911_v40 = vsel %vm1886_vm6, %v1878_v16, %v7489_v37  ;;  %v1912_v11 = vsel %vm1886_vm6, %v1879_v18, %v7490_v45 }
 0x310   : > { %v7498_v5 = vpop.permute.xlu0 %7497  ;;  %v7505_v2 = vunpack.i.h.bf16 %v10821_v24  ;;  %v7504_v6 = vunpack.i.l.bf16 %v10821_v24 }
 0x311   : > { %v7500_v29 = vunpack.i.h.bf16 %v7498_v5  ;;  %v7499_v49 = vunpack.i.l.bf16 %v7498_v5 }
 0x312   : > { %v1946_v62 = vsel %vm1919_vm7, %v1913_v56, %v7504_v6  ;;  %v1947_v23 = vsel %vm1919_vm7, %v1914_v57, %v7505_v2 }
 0x313   : > { %v7513_v61 = vpop.permute.xlu1 %7512  ;;  %v1944_v59 = vsel %vm1919_vm7, %v1911_v40, %v7499_v49  ;;  %v1945_v51 = vsel %vm1919_vm7, %v1912_v11, %v7500_v29 }
 0x314   : > { %v7508_v1 = vpop.permute.xlu0 %7507  ;;  %v7515_v48 = vunpack.i.h.bf16 %v7513_v61  ;;  %v7514_v12 = vunpack.i.l.bf16 %v7513_v61 }
 0x315   : > { %v7510_v3 = vunpack.i.h.bf16 %v7508_v1  ;;  %v7509_v21 = vunpack.i.l.bf16 %v7508_v1 }
 0x316   : > { %v1979_v55 = vsel %vm1952_vm8, %v1946_v62, %v7514_v12  ;;  %v1980_v26 = vsel %vm1952_vm8, %v1947_v23, %v7515_v48 }
 0x317   : > { %v7523_v34 = vpop.permute.xlu1 %7522  ;;  %v1977_v60 = vsel %vm1952_vm8, %v1944_v59, %v7509_v21  ;;  %v1978_v38 = vsel %vm1952_vm8, %v1945_v51, %v7510_v3 }
 0x318   : > { %v7518_v43 = vpop.permute.xlu0 %7517  ;;  %v7525_v20 = vunpack.i.h.bf16 %v7523_v34  ;;  %v7524_v58 = vunpack.i.l.bf16 %v7523_v34 }
 0x319   : > { %v7520_v19 = vunpack.i.h.bf16 %v7518_v43  ;;  %v7519_v30 = vunpack.i.l.bf16 %v7518_v43 }
 0x31a   : > { %v2012_v4 = vsel %vm1985_vm9, %v1979_v55, %v7524_v58  ;;  %v2013_v9 = vsel %vm1985_vm9, %v1980_v26, %v7525_v20 }
 0x31b   : > { %v7533_v32 = vpop.permute.xlu1 %7532  ;;  %v2010_v10 = vsel %vm1985_vm9, %v1977_v60, %v7519_v30  ;;  %v2011_v24 = vsel %vm1985_vm9, %v1978_v38, %v7520_v19 }
 0x31c   : > { %v7528_v39 = vpop.permute.xlu0 %7527  ;;  %v7535_v49 = vunpack.i.h.bf16 %v7533_v32  ;;  %v7534_v43 = vunpack.i.l.bf16 %v7533_v32 }
 0x31d   : > { %v7530_v5 = vunpack.i.h.bf16 %v7528_v39  ;;  %v7529_v44 = vunpack.i.l.bf16 %v7528_v39 }
 0x31e   : > { %v1817_v2 = vsel %vm1787_vm3, %v10241_v13, %v7535_v49  ;;  %v1816_v6 = vsel %vm1787_vm3, %v10239_v52, %v7534_v43 }
 0x31f   : > { %v2043_v54 = vsel %vm2018_vm10, %v2010_v10, %v7529_v44  ;;  %v2044_v63 = vsel %vm2018_vm10, %v2011_v24, %v7530_v5  ;;  %v7543_v61 = vpop.permute.xlu1 %7542 }
 0x320   : > { %v7538_v1 = vpop.permute.xlu0 %7537  ;;  %v2063_v53 = vpack.c.bf16 %v2044_v63, %v2043_v54  ;;  %v7544_v16 = vunpack.i.l.bf16 %v7543_v61  ;;  %v7545_v3 = vunpack.i.h.bf16 %v7543_v61 }
 0x321   : > { %v7540_v46 = vunpack.i.h.bf16 %v7538_v1  ;;  %v7539_v14 = vunpack.i.l.bf16 %v7538_v1 }
 0x322   : > { %6651 = vmatprep.mubr.msk.bf16.mxu1 %vm2094_vm11, %v2063_v53  ;;  %v1818_v59 = vsel %vm1787_vm3, %v10264_v15, %v7544_v16  ;;  %v1819_v48 = vsel %vm1787_vm3, %v10266_v28, %v7545_v3 }
 0x323   : > { %v2046_v22 = vsel %vm2018_vm10, %v2013_v9, %v7540_v46  ;;  %v2045_v27 = vsel %vm2018_vm10, %v2012_v4, %v7539_v14  ;;  %v7553_v41 = vpop.permute.xlu1 %7552 }
 0x324   : > { %v7548_v45 = vpop.permute.xlu0 %7547  ;;  %v2064_v37 = vpack.c.bf16 %v2046_v22, %v2045_v27  ;;  %v7554_v21 = vunpack.i.l.bf16 %v7553_v41  ;;  %v7555_v8 = vunpack.i.h.bf16 %v7553_v41 }
 0x325   : > { %v7550_v19 = vunpack.i.h.bf16 %v7548_v45  ;;  %v7549_v30 = vunpack.i.l.bf16 %v7548_v45 }
 0x326   : > { %6652 = vmatmul.mubr.msk.bf16.gmra.mrb[4].mxu1 %vm2094_vm11, %v2064_v37  ;;  %v1851_v12 = vsel %vm1820_vm4, %v1818_v59, %v7554_v21  ;;  %v1852_v5 = vsel %vm1820_vm4, %v1819_v48, %v7555_v8 }
 0x327   : > { %v7563_v34 = vpop.permute.xlu1 %7562  ;;  %v1850_v13 = vsel %vm1820_vm4, %v1817_v2, %v7550_v19  ;;  %v1849_v52 = vsel %vm1820_vm4, %v1816_v6, %v7549_v30 }
 0x328   : > { %v7558_v31 = vpop.permute.xlu0 %7557  ;;  %v7565_v40 = vunpack.i.h.bf16 %v7563_v34  ;;  %v7564_v11 = vunpack.i.l.bf16 %v7563_v34 }
 0x329   : > { %v7559_v32 = vunpack.i.l.bf16 %v7558_v31  ;;  %v7560_v39 = vunpack.i.h.bf16 %v7558_v31 }
 0x32a   : > { %v1884_v15 = vsel %vm1853_vm5, %v1851_v12, %v7564_v11  ;;  %v1885_v58 = vsel %vm1853_vm5, %v1852_v5, %v7565_v40 }
 0x32b   : > { %v7573_v33 = vpop.permute.xlu1 %7572  ;;  %v1882_v28 = vsel %vm1853_vm5, %v1849_v52, %v7559_v32  ;;  %v1883_v63 = vsel %vm1853_vm5, %v1850_v13, %v7560_v39  ;;  %vm4465_vm5 = vcmask 392192  }
 0x32c   : > { %v7568_v29 = vpop.permute.xlu0 %7567  ;;  %v7574_v60 = vunpack.i.l.bf16 %v7573_v33  ;;  %v7575_v44 = vunpack.i.h.bf16 %v7573_v33 }
 0x32d   : > { %v7569_v20 = vunpack.i.l.bf16 %v7568_v29  ;;  %v7570_v10 = vunpack.i.h.bf16 %v7568_v29 }
 0x32e   : > { %v1917_v61 = vsel %vm1886_vm6, %v1884_v15, %v7574_v60  ;;  %v1918_v53 = vsel %vm1886_vm6, %v1885_v58, %v7575_v44 }
 0x32f   : > { %v7583_v18 = vpop.permute.xlu1 %7582  ;;  %v1915_v55 = vsel %vm1886_vm6, %v1882_v28, %v7569_v20  ;;  %v1916_v4 = vsel %vm1886_vm6, %v1883_v63, %v7570_v10  ;;  %v10923_v63 = vld [vmem:[#allocation9] ss:$0 sm:$0xff] }
 0x330   : > { %v7578_v7 = vpop.permute.xlu0 %7577  ;;  %v7585_v24 = vunpack.i.h.bf16 %v7583_v18  ;;  %v7584_v56 = vunpack.i.l.bf16 %v7583_v18 }
 0x331   : > { %v7580_v57 = vunpack.i.h.bf16 %v7578_v7  ;;  %v7579_v9 = vunpack.i.l.bf16 %v7578_v7 }
 0x332   : > { %v1950_v45 = vsel %vm1919_vm7, %v1917_v61, %v7584_v56  ;;  %v1951_v37 = vsel %vm1919_vm7, %v1918_v53, %v7585_v24 }
 0x333   : > { %v7593_v51 = vpop.permute.xlu1 %7592  ;;  %v1949_v34 = vsel %vm1919_vm7, %v1916_v4, %v7580_v57  ;;  %v1948_v40 = vsel %vm1919_vm7, %v1915_v55, %v7579_v9  ;;  %vm4498_vm7 = vcmask 457728  }
 0x334   : > { %v7588_v38 = vpop.permute.xlu0 %7587  ;;  %v7595_v62 = vunpack.i.h.bf16 %v7593_v51  ;;  %v7594_v23 = vunpack.i.l.bf16 %v7593_v51 }
 0x335   : > { %v7590_v26 = vunpack.i.h.bf16 %v7588_v38  ;;  %v7589_v31 = vunpack.i.l.bf16 %v7588_v38 }
 0x336   : > { %v1983_v49 = vsel %vm1952_vm8, %v1950_v45, %v7594_v23  ;;  %v1984_v43 = vsel %vm1952_vm8, %v1951_v37, %v7595_v62 }
 0x337   : > { %v7603_v54 = vpop.permute.xlu1 %7602  ;;  %v1982_v7 = vsel %vm1952_vm8, %v1949_v34, %v7590_v26  ;;  %v1981_v59 = vsel %vm1952_vm8, %v1948_v40, %v7589_v31 }
 0x338   : > { %v7598_v1 = vpop.permute.xlu0 %7597  ;;  %v7605_v46 = vunpack.i.h.bf16 %v7603_v54  ;;  %v7604_v22 = vunpack.i.l.bf16 %v7603_v54  ;;  %v10915_v54 = vld [vmem:[#allocation23] sm:$0xff] }
 0x339   : > { %v6629_v14 = vpop.f32.mrb[0].mxu0  ;;  %v7600_v27 = vunpack.i.h.bf16 %v7598_v1  ;;  %v7599_v16 = vunpack.i.l.bf16 %v7598_v1  ;;  %6660 = vmatpush3.msra.mxu1 %v10915_v54 }
 0x33a   : > { %v2181_v41 = vpop.f32.mrb[1].mxu0  ;;  %v2017_v8 = vsel %vm1985_vm9, %v1984_v43, %v7605_v46  ;;  %v2016_v11 = vsel %vm1985_vm9, %v1983_v49, %v7604_v22  ;;  %6664 = vmatprep.subr.mxu1 %v13483_v35  ;;  %v10940_v26 = vadd.f32 %v6629_v14, %v10923_v63 }
 0x33b   : > { %v6630_v33 = vpop.f32.mrb[2].mxu0  ;;  %v7613_v29 = vpop.permute.xlu1 %7612  ;;  %v2015_v2 = vsel %vm1985_vm9, %v1982_v7, %v7600_v27  ;;  %v2014_v12 = vsel %vm1985_vm9, %v1981_v59, %v7599_v16  ;;  %v10929_v62 = vadd.f32 %v10923_v63, %v2181_v41  ;;  %vm4531_vm9 = vcmask 523264  }
 0x33c   : > { %v7615_v18 = vunpack.i.h.bf16 %v7613_v29  ;;  %v7608_v3 = vpop.permute.xlu0 %7607  ;;  %v2184_v21 = vpop.f32.mrb[3].mxu0  ;;  %v7614_v19 = vunpack.i.l.bf16 %v7613_v29  ;;  %v2383_v45 = vmul.f32 %v10940_v26, %v10940_v26  ;;  %v10955_v37 = vadd.f32 %v6630_v33, %v10923_v63 }
 0x33d   : > { %v7610_v30 = vunpack.i.h.bf16 %v7608_v3  ;;  %v7609_v51 = vunpack.i.l.bf16 %v7608_v3  ;;  %v10926_v61 = vadd.f32 %v10923_v63, %v2184_v21  ;;  %v2381_v46 = vmul.f32 %v10929_v62, %v10929_v62 }
 0x33e   : > { %v2050_v6 = vsel %vm2018_vm10, %v2017_v8, %v7615_v18  ;;  %v2049_v32 = vsel %vm2018_vm10, %v2016_v11, %v7614_v19  ;;  %v2312_v22 = vsel %vm1820_vm4, %v10929_v62, 0.0  ;;  %v2315_v29 = vsel %vm1820_vm4, %v10940_v26, 0.0 }
 0x33f   : > { %v2048_v48 = vsel %vm2018_vm10, %v2015_v2, %v7610_v30  ;;  %v2047_v39 = vsel %vm2018_vm10, %v2014_v12, %v7609_v51  ;;  %v2066_v60 = vpack.c.bf16 %v2050_v6, %v2049_v32  ;;  %v2382_v1 = vmul.f32 %v10926_v61, %v10926_v61 }
 0x340   : > { %v2065_v38 = vpack.c.bf16 %v2048_v48, %v2047_v39  ;;  %v2313_v4 = vsel %vm1820_vm4, %v10926_v61, 0.0  ;;  %v2413_v14 = vsel %vm1820_vm4, %v2381_v46, 0.0  ;;  %v2416_v43 = vsel %vm1820_vm4, %v2383_v45, 0.0 }
 0x341   : > { %v2414_v27 = vsel %vm1820_vm4, %v2382_v1, 0.0  ;;  %v2314_v41 = vadd.f32 %v2313_v4, %v2312_v22  ;;  %v2384_v16 = vmul.f32 %v10955_v37, %v10955_v37  ;;  %v2317_v21 = vsel %vm1820_vm4, %v10955_v37, 0.0 }
 0x342   : > { %6655 = vmatprep.mubr.msk.bf16.mxu1 %vm2094_vm11, %v2065_v38  ;;  %v2415_v31 = vadd.f32 %v2414_v27, %v2413_v14 }
 0x343   : > { %6656 = vmatmul.mubr.msk.bf16.gmra.mrb[8].mxu1 %vm2094_vm11, %v2066_v60  ;;  %v2316_v49 = vadd.f32 %v2315_v29, %v2314_v41  ;;  %v2418_v19 = vsel %vm1820_vm4, %v2384_v16, 0.0  ;;  %vm4623_vm11 = vcmask 588800  }
 0x344   : > { %6661 = vmatprep.mubr.msk.f32.mxu1 %vm9080_vm13, %v13483_v35  ;;  %v2417_v33 = vadd.f32 %v2416_v43, %v2415_v31 }
 0x345   : > { %v2318_v8 = vadd.f32 %v2317_v21, %v2316_v49 }
 0x346   : > { %v2419_v2 = vadd.f32 %v2418_v19, %v2417_v33 }
 0x359   : > { %v6633_v5 = vpop.f32.mrb[4].mxu0 }
 0x35a   : > { %v2197_v13 = vpop.f32.mrb[5].mxu0  ;;  %v10979_v6 = vadd.f32 %v6633_v5, %v10923_v63 }
 0x35b   : > { %v6634_v44 = vpop.f32.mrb[6].mxu0  ;;  %v10958_v34 = vadd.f32 %v10923_v63, %v2197_v13 }
 0x35c   : > { %v2200_v20 = vpop.f32.mrb[7].mxu0  ;;  %v2387_v12 = vmul.f32 %v10979_v6, %v10979_v6  ;;  %v10987_v39 = vadd.f32 %v6634_v44, %v10923_v63  ;;  %v2323_v5 = vsel %vm1820_vm4, %v10979_v6, 0.0 }
 0x35d   : > { %v2385_v18 = vmul.f32 %v10958_v34, %v10958_v34  ;;  %v10968_v3 = vadd.f32 %v10923_v63, %v2200_v20  ;;  %v2319_v7 = vsel %vm1820_vm4, %v10958_v34, 0.0 }
 0x35e   : > { %v2320_v11 = vadd.f32 %v2319_v7, %v2318_v8  ;;  %v2424_v20 = vsel %vm1820_vm4, %v2387_v12, 0.0  ;;  %v2388_v1 = vmul.f32 %v10987_v39, %v10987_v39 }
 0x35f   : > { %v2420_v30 = vsel %vm1820_vm4, %v2385_v18, 0.0  ;;  %v2386_v40 = vmul.f32 %v10968_v3, %v10968_v3  ;;  %v2321_v59 = vsel %vm1820_vm4, %v10968_v3, 0.0 }
 0x360   : > { %v2421_v32 = vadd.f32 %v2420_v30, %v2419_v2  ;;  %v2322_v48 = vadd.f32 %v2321_v59, %v2320_v11  ;;  %v2426_v41 = vsel %vm1820_vm4, %v2388_v1, 0.0 }
 0x361   : > { %v2422_v51 = vsel %vm1820_vm4, %v2386_v40, 0.0 }
 0x362   : > { %v2423_v38 = vadd.f32 %v2422_v51, %v2421_v32  ;;  %v2324_v13 = vadd.f32 %v2323_v5, %v2322_v48 }
 0x364   : > { %v2425_v44 = vadd.f32 %v2424_v20, %v2423_v38 }
 0x366   : > { %v2427_v29 = vadd.f32 %v2426_v41, %v2425_v44 }
 0x379   : > { %v10903_v52 = vpop.f32.mrb[8].mxu0 }
 0x37a   : > { %v2213_v15 = vpop.f32.mrb[9].mxu0 }
 0x37b   : > { %v10905_v58 = vpop.f32.mrb[10].mxu0  ;;  %v10990_v60 = vadd.f32 %v10923_v63, %v2213_v15  ;;  %v2325_v15 = vsel %vm1820_vm4, %v10987_v39, 0.0 }
 0x37c   : > { %v2216_v10 = vpop.f32.mrb[11].mxu0  ;;  %v2326_v27 = vadd.f32 %v2325_v15, %v2324_v13  ;;  %v11025_v19 = vadd.f32 %v10905_v58, %v10923_v63 }
 0x37d   : > { %v2389_v46 = vmul.f32 %v10990_v60, %v10990_v60  ;;  %v11000_v4 = vadd.f32 %v10923_v63, %v2216_v10  ;;  %v2327_v22 = vsel %vm1820_vm4, %v10990_v60, 0.0  ;;  %v11012_v10 = vadd.f32 %v10903_v52, %v10923_v63 }
 0x37e   : > { %v2328_v31 = vadd.f32 %v2327_v22, %v2326_v27  ;;  %v2392_v32 = vmul.f32 %v11025_v19, %v11025_v19  ;;  %v2333_v48 = vsel %vm1820_vm4, %v11025_v19, 0.0 }
 0x37f   : > { %v2428_v45 = vsel %vm1820_vm4, %v2389_v46, 0.0  ;;  %v2390_v14 = vmul.f32 %v11000_v4, %v11000_v4  ;;  %v2329_v49 = vsel %vm1820_vm4, %v11000_v4, 0.0  ;;  %v2391_v8 = vmul.f32 %v11012_v10, %v11012_v10 }
 0x380   : > { %v2429_v43 = vadd.f32 %v2428_v45, %v2427_v29  ;;  %v2330_v21 = vadd.f32 %v2329_v49, %v2328_v31  ;;  %v2331_v11 = vsel %vm1820_vm4, %v11012_v10, 0.0  ;;  %v2434_v5 = vsel %vm1820_vm4, %v2392_v32, 0.0 }
 0x381   : > { %v2430_v18 = vsel %vm1820_vm4, %v2390_v14, 0.0  ;;  %v2432_v59 = vsel %vm1820_vm4, %v2391_v8, 0.0 }
 0x382   : > { %v2431_v40 = vadd.f32 %v2430_v18, %v2429_v43  ;;  %v2332_v2 = vadd.f32 %v2331_v11, %v2330_v21 }
 0x384   : > { %v2334_v38 = vadd.f32 %v2333_v48, %v2332_v2 }
 0x399   : > { %v10907_v28 = vpop.f32.mrb[12].mxu0 }
 0x39a   : > { %v10909_v24 = vpop.f32.mrb[13].mxu0 }
 0x39b   : > { %v10911_v56 = vpop.f32.mrb[14].mxu0  ;;  %v11029_v52 = vadd.f32 %v10923_v63, %v10909_v24  ;;  %v2433_v24 = vadd.f32 %v2432_v59, %v2431_v40 }
 0x39c   : > { %v10913_v57 = vpop.f32.mrb[15].mxu0  ;;  %v11061_v45 = vadd.f32 %v10911_v56, %v10923_v63 }
 0x39d   : > { %v2393_v51 = vmul.f32 %v11029_v52, %v11029_v52  ;;  %v11040_v58 = vadd.f32 %v10923_v63, %v10913_v57  ;;  %v2335_v12 = vsel %vm1820_vm4, %v11029_v52, 0.0  ;;  %v2435_v46 = vadd.f32 %v2434_v5, %v2433_v24 }
 0x39e   : > { %v2336_v1 = vadd.f32 %v2335_v12, %v2334_v38  ;;  %v11052_v57 = vadd.f32 %v10907_v28, %v10923_v63  ;;  %v2396_v43 = vmul.f32 %v11061_v45, %v11061_v45 }
 0x39f   : > { %v2436_v13 = vsel %vm1820_vm4, %v2393_v51, 0.0  ;;  %v2394_v20 = vmul.f32 %v11040_v58, %v11040_v58  ;;  %v2337_v44 = vsel %vm1820_vm4, %v11040_v58, 0.0 }
 0x3a0   : > { %v2437_v15 = vadd.f32 %v2436_v13, %v2435_v46  ;;  %v2338_v27 = vadd.f32 %v2337_v44, %v2336_v1  ;;  %v2395_v41 = vmul.f32 %v11052_v57, %v11052_v57  ;;  %v2339_v31 = vsel %vm1820_vm4, %v11052_v57, 0.0 }
 0x3a1   : > { %v2438_v22 = vsel %vm1820_vm4, %v2394_v20, 0.0  ;;  %v2442_v11 = vsel %vm1820_vm4, %v2396_v43, 0.0 }
 0x3a2   : > { %v2439_v28 = vadd.f32 %v2438_v22, %v2437_v15  ;;  %v2340_v29 = vadd.f32 %v2339_v31, %v2338_v27  ;;  %v2440_v49 = vsel %vm1820_vm4, %v2395_v41, 0.0 }
 0x3a4   : > { %v2441_v21 = vadd.f32 %v2440_v49, %v2439_v28 }
 0x3a6   : > { %v2443_v51 = vadd.f32 %v2442_v11, %v2441_v21 }
 0x3b9   : > { %v10931_v23 = vpop.f32.mrb[16].mxu0 }
 0x3ba   : > { %v10935_v53 = vpop.f32.mrb[17].mxu0 }
 0x3bb   : > { %v10937_v55 = vpop.f32.mrb[18].mxu0  ;;  %v11065_v14 = vadd.f32 %v10923_v63, %v10935_v53  ;;  %v2341_v53 = vsel %vm1820_vm4, %v11061_v45, 0.0 }
 0x3bc   : > { %v10946_v9 = vpop.f32.mrb[19].mxu0  ;;  %v2342_v40 = vadd.f32 %v2341_v53, %v2340_v29  ;;  %v11097_v13 = vadd.f32 %v10937_v55, %v10923_v63 }
 0x3bd   : > { %v2397_v18 = vmul.f32 %v11065_v14, %v11065_v14  ;;  %v11076_v56 = vadd.f32 %v10923_v63, %v10946_v9  ;;  %v2343_v8 = vsel %vm1820_vm4, %v11065_v14, 0.0  ;;  %v11088_v9 = vadd.f32 %v10931_v23, %v10923_v63 }
 0x3be   : > { %v2344_v32 = vadd.f32 %v2343_v8, %v2342_v40  ;;  %v2400_v41 = vmul.f32 %v11097_v13, %v11097_v13  ;;  %v2349_v29 = vsel %vm1820_vm4, %v11097_v13, 0.0 }
 0x3bf   : > { %v2444_v2 = vsel %vm1820_vm4, %v2397_v18, 0.0  ;;  %v2398_v59 = vmul.f32 %v11076_v56, %v11076_v56  ;;  %v2345_v24 = vsel %vm1820_vm4, %v11076_v56, 0.0  ;;  %v2399_v5 = vmul.f32 %v11088_v9, %v11088_v9 }
 0x3c0   : > { %v2445_v48 = vadd.f32 %v2444_v2, %v2443_v51  ;;  %v2346_v38 = vadd.f32 %v2345_v24, %v2344_v32  ;;  %v2347_v46 = vsel %vm1820_vm4, %v11088_v9, 0.0  ;;  %v2450_v18 = vsel %vm1820_vm4, %v2400_v41, 0.0 }
 0x3c1   : > { %v2446_v12 = vsel %vm1820_vm4, %v2398_v59, 0.0  ;;  %v2448_v27 = vsel %vm1820_vm4, %v2399_v5, 0.0 }
 0x3c2   : > { %v2447_v1 = vadd.f32 %v2446_v12, %v2445_v48  ;;  %v2348_v15 = vadd.f32 %v2347_v46, %v2346_v38 }
 0x3c4   : > { %v2449_v31 = vadd.f32 %v2448_v27, %v2447_v1  ;;  %v2350_v43 = vadd.f32 %v2349_v29, %v2348_v15 }
 0x3c6   : > { %v2451_v40 = vadd.f32 %v2450_v18, %v2449_v31 }
 0x3d9   : > { %v11016_v16 = vpop.f32.mrb[0].mxu1 }
 0x3da   : > { %v2261_v33 = vpop.f32.mrb[1].mxu1 }
 0x3db   : > { %v11019_v7 = vpop.f32.mrb[2].mxu1  ;;  %v11100_v20 = vadd.f32 %v10923_v63, %v2261_v33 }
 0x3dc   : > { %v2264_v30 = vpop.f32.mrb[3].mxu1  ;;  %v11131_v24 = vadd.f32 %v11019_v7, %v10923_v63 }
 0x3dd   : > { %v2401_v55 = vmul.f32 %v11100_v20, %v11100_v20  ;;  %v11110_v28 = vadd.f32 %v10923_v63, %v2264_v30  ;;  %v2351_v49 = vsel %vm1820_vm4, %v11100_v20, 0.0  ;;  %v11122_v30 = vadd.f32 %v11016_v16, %v10923_v63 }
 0x3de   : > { %v2352_v8 = vadd.f32 %v2351_v49, %v2350_v43  ;;  %v2404_v1 = vmul.f32 %v11131_v24, %v11131_v24 }
 0x3df   : > { %v2452_v21 = vsel %vm1820_vm4, %v2401_v55, 0.0  ;;  %v2402_v53 = vmul.f32 %v11110_v28, %v11110_v28  ;;  %v2353_v11 = vsel %vm1820_vm4, %v11110_v28, 0.0  ;;  %v2403_v51 = vmul.f32 %v11122_v30, %v11122_v30 }
 0x3e0   : > { %v2453_v2 = vadd.f32 %v2452_v21, %v2451_v40  ;;  %v2354_v32 = vadd.f32 %v2353_v11, %v2352_v8  ;;  %v2355_v16 = vsel %vm1820_vm4, %v11122_v30, 0.0  ;;  %v2458_v55 = vsel %vm1820_vm4, %v2404_v1, 0.0 }
 0x3e1   : > { %v2454_v59 = vsel %vm1820_vm4, %v2402_v53, 0.0  ;;  %v2456_v5 = vsel %vm1820_vm4, %v2403_v51, 0.0 }
 0x3e2   : > { %v2455_v12 = vadd.f32 %v2454_v59, %v2453_v2  ;;  %v2356_v38 = vadd.f32 %v2355_v16, %v2354_v32 }
 0x3e4   : > { %v2457_v7 = vadd.f32 %v2456_v5, %v2455_v12 }
 0x3e6   : > { %v2459_v43 = vadd.f32 %v2458_v55, %v2457_v7 }
 0x3f9   : > { %v6653_v23 = vpop.f32.mrb[4].mxu1 }
 0x3fa   : > { %v2277_v44 = vpop.f32.mrb[5].mxu1 }
 0x3fb   : > { %v6654_v22 = vpop.f32.mrb[6].mxu1  ;;  %v11134_v48 = vadd.f32 %v10923_v63, %v2277_v44  ;;  %v2357_v44 = vsel %vm1820_vm4, %v11131_v24, 0.0 }
 0x3fc   : > { %v2280_v33 = vpop.f32.mrb[7].mxu1  ;;  %v2358_v41 = vadd.f32 %v2357_v44, %v2356_v38  ;;  %v11161_v8 = vadd.f32 %v6654_v22, %v10923_v63 }
 0x3fd   : > { %v2405_v46 = vmul.f32 %v11134_v48, %v11134_v48  ;;  %v11144_v15 = vadd.f32 %v10923_v63, %v2280_v33  ;;  %v2359_v27 = vsel %vm1820_vm4, %v11134_v48, 0.0  ;;  %v11155_v33 = vadd.f32 %v6653_v23, %v10923_v63 }
 0x3fe   : > { %v2360_v49 = vadd.f32 %v2359_v27, %v2358_v41  ;;  %v2408_v23 = vmul.f32 %v11161_v8, %v11161_v8  ;;  %v2365_v22 = vsel %vm1820_vm4, %v11161_v8, 0.0 }
 0x3ff   : > { %v2460_v31 = vsel %vm1820_vm4, %v2405_v46, 0.0  ;;  %v2406_v29 = vmul.f32 %v11144_v15, %v11144_v15  ;;  %v2361_v18 = vsel %vm1820_vm4, %v11144_v15, 0.0  ;;  %v2407_v11 = vmul.f32 %v11155_v33, %v11155_v33 }
 0x400   : > { %v2461_v21 = vadd.f32 %v2460_v31, %v2459_v43  ;;  %v2362_v40 = vadd.f32 %v2361_v18, %v2360_v49  ;;  %v2363_v59 = vsel %vm1820_vm4, %v11155_v33, 0.0  ;;  %v2466_v7 = vsel %vm1820_vm4, %v2408_v23, 0.0 }
 0x401   : > { %v2462_v53 = vsel %vm1820_vm4, %v2406_v29, 0.0  ;;  %v2464_v51 = vsel %vm1820_vm4, %v2407_v11, 0.0 }
 0x402   : > { %v2463_v2 = vadd.f32 %v2462_v53, %v2461_v21  ;;  %v2364_v32 = vadd.f32 %v2363_v59, %v2362_v40 }
 0x404   : > { %v2465_v16 = vadd.f32 %v2464_v51, %v2463_v2  ;;  %v2366_v44 = vadd.f32 %v2365_v22, %v2364_v32 }
 0x406   : > { %v2467_v43 = vadd.f32 %v2466_v7, %v2465_v16 }
 0x416   : > { %v6657_v12 = vpop.f32.mrb[8].mxu1 }
 0x417   : > { %v2293_v38 = vpop.f32.mrb[9].mxu1  ;;  %v11173_v5 = vadd.f32 %v6657_v12, %v10923_v63 }
 0x418   : > { %v11176_v1 = vadd.f32 %v10923_v63, %v2293_v38  ;;  %v6658_v46 = vpop.f32.mrb[10].mxu1 }
 0x419   : > { %v2296_v27 = vpop.f32.mrb[11].mxu1  ;;  %v11184_v31 = vadd.f32 %v6658_v46, %v10923_v63  ;;  %v2411_v18 = vmul.f32 %v11173_v5, %v11173_v5  ;;  %v2371_v59 = vsel %vm1820_vm4, %v11173_v5, 0.0 }
 0x41a   : > { %v2367_v41 = vsel %vm1820_vm4, %v11176_v1, 0.0  ;;  %v2409_v55 = vmul.f32 %v11176_v1, %v11176_v1  ;;  %v11187_v29 = vadd.f32 %v10923_v63, %v2296_v27 }
 0x41b   : > { %v2368_v49 = vadd.f32 %v2367_v41, %v2366_v44  ;;  %v2412_v63 = vmul.f32 %v11184_v31, %v11184_v31  ;;  %v2472_v12 = vsel %vm1820_vm4, %v2411_v18, 0.0  ;;  %v2373_v16 = vsel %vm1820_vm4, %v11184_v31, 0.0 }
 0x41c   : > { %v2468_v21 = vsel %vm1820_vm4, %v2409_v55, 0.0  ;;  %v2369_v53 = vsel %vm1820_vm4, %v11187_v29, 0.0  ;;  %v2410_v40 = vmul.f32 %v11187_v29, %v11187_v29 }
 0x41d   : > { %v2469_v11 = vadd.f32 %v2468_v21, %v2467_v43  ;;  %v2370_v2 = vadd.f32 %v2369_v53, %v2368_v49  ;;  %v2474_v46 = vsel %vm1820_vm4, %v2412_v63, 0.0 }
 0x41e   : > { %v2470_v23 = vsel %vm1820_vm4, %v2410_v40, 0.0 }
 0x41f   : > { %v2372_v32 = vadd.f32 %v2371_v59, %v2370_v2  ;;  %v2471_v51 = vadd.f32 %v2470_v23, %v2469_v11  ;;  %v2311_v59 = vld [vmem:[#allocation24] sm:$0xff] }
 0x421   : > { %v2374_v38 = vadd.f32 %v2373_v16, %v2372_v32  ;;  %v2473_v22 = vadd.f32 %v2472_v12, %v2471_v51 }
 0x423   : > { %v2375_v7 = vrot.slane %v2374_v38, 4  ;;  %v2475_v44 = vadd.f32 %v2474_v46, %v2473_v22 }
 0x425   : > { %v2376_v27 = vadd.f32 %v2375_v7, %v2374_v38  ;;  %v2476_v41 = vrot.slane %v2475_v44, 4  ;;  %v3248_v7 = vld [vmem:[#allocation2] sm:$0xff] }
 0x427   : > { %v2377_v55 = vrot.slane %v2376_v27, 2  ;;  %v2477_v49 = vadd.f32 %v2476_v41, %v2475_v44  ;;  %v3249_v44 = vld [vmem:[#allocation2 + $0x8] sm:$0xff]  ;;  %v3350_v41 = vrot.slane %v3248_v7, 1 }
 0x429   : > { %v2378_v43 = vadd.f32 %v2377_v55, %v2376_v27  ;;  %v2478_v21 = vrot.slane %v2477_v49, 2  ;;  %v3250_v27 = vld [vmem:[#allocation2 + $0x10] sm:$0x3]  ;;  %v3351_v55 = vrot.slane %v3249_v44, 1 }
 0x42b   : > { %v2379_v53 = vrot.slane %v2378_v43, 1  ;;  %v2479_v40 = vadd.f32 %v2478_v21, %v2477_v49  ;;  %v3353_v49 = vrot.slane %v3250_v27, 1 }
 0x42d   : > { %v2380_v11 = vadd.f32 %v2379_v53, %v2378_v43  ;;  %v2480_v2 = vrot.slane %v2479_v40, 1  ;;  %v3352_v43 = vsel %vm831_vm1, %v3350_v41, %v3351_v55  ;;  %v3354_v21 = vsel %vm831_vm1, %v3351_v55, %v3353_v49 }
 0x42e   : > { %v7616_v53 = vpack.i.bf16 %v3354_v21, %v3352_v43 }
 0x42f   : > { %6662 = vmatmul.mubr.msk.f32.vlgmr.msra.gmra.mrb[12].mxu1 %vm1820_vm4, %v2380_v11  ;;  %v2481_v18 = vadd.f32 %v2480_v2, %v2479_v40  ;;  %v3299_v40 = vld [vmem:[#allocation2 + $0x198] sm:$0xff]  ;;  %v3300_v11 = vld [vmem:[#allocation2 + $0x1a0] sm:$0xff] }
 0x430   : > { %6665 = vmatpush3.msra.mxu1 %v10915_v54  ;;  %6666 = vmatprep.mubr.msk.f32.mxu1 %vm9080_vm13, %v13483_v35  ;;  %v7626_v2 = vpack.i.bf16 %v3300_v11, %v3299_v40 }
 0x431   : > { %6669 = vmatprep.subr.mxu1 %v13483_v35  ;;  %7617 = vrot.lane.b32.xlu0 %v7616_v53, %s9072_s26 }
 0x432   : > { %7627 = vrot.lane.b32.xlu1 %v7626_v2, %s9081_s8 }
 0x433   : > { %6667 = vmatmul.mubr.msk.f32.vlgmr.msra.gmra.mrb[14].mxu1 %vm1820_vm4, %v2481_v18  ;;  %v3526_v18 = vrot.slane %v3248_v7, 2  ;;  %v2781_v7 = vlaneseq }
 0x434   : > { %6671 = vmatprep.mubr.msk.f32.mxu1 %vm9080_vm13, %v13483_v35  ;;  %6670 = vmatpush3.msra.mxu1 %v2311_v59 }
 0x435   : > { %6674 = vmatprep.subr.mxu1 %v13483_v35 }
 0x502   : > { %v2551_v63 = vpop.f32.mrb[12].mxu1 }
 0x503   : > { %v2629_v23 = vmul.f32 0.00390625, %v2551_v63  ;;  %v6663_v32 = vpop.f32.mrb[13].mxu1  ;;  %v3529_v63 = vrot.slane %v3250_v27, 2  ;;  %v2782_v27 = vshrl.u32 %v2781_v7, 7 }
 0x505   : > { %6672 = vmatmul.mubr.msk.f32.vlgmr.msra.gmra.mrb[16].mxu1 %vm1820_vm4, %v2629_v23  ;;  %v2631_v51 = vmul.f32 %v2629_v23, %v2629_v23  ;;  %v11228_v49 = vsub.s32 0, %v2782_v27 }
 0x506   : > { %v2624_v54 = vpop.f32.mrb[14].mxu1  ;;  %6675 = vmatpush3.msra.mxu1 %v2311_v59  ;;  %6676 = vmatprep.mubr.msk.f32.mxu1 %vm9080_vm13, %v13483_v35  ;;  %v3527_v59 = vrot.slane %v3249_v44, 2 }
 0x507   : > { %v2630_v12 = vmul.f32 0.00390625, %v2624_v54  ;;  %v6668_v16 = vpop.f32.mrb[15].mxu1  ;;  %13610 = vst [vmem:[#allocation72_spill] sm:$0xff] %v11228_v49 }
 0x508   : > { %v3528_v23 = vsel %vm1008_vm0, %v3526_v18, %v3527_v59  ;;  %v3530_v32 = vsel %vm1008_vm0, %v3527_v59, %v3529_v63  ;;  %v3301_v16 = vld [vmem:[#allocation2 + $0x1a8] sm:$0x3] }
 0x509   : > { %v2632_v38 = vsub.f32 %v2630_v12, %v2631_v51  ;;  %v7621_v54 = vpack.i.bf16 %v3530_v32, %v3528_v23  ;;  %v4103_v51 = vrot.slane %v3300_v11, 1  ;;  %v4102_v12 = vrot.slane %v3299_v40, 1 }
 0x50b   : > { %v2633_v22 = vadd.f32 1e-05, %v2632_v38  ;;  %7622 = vrot.lane.b32.xlu0 %v7621_v54, %s9074_s25  ;;  %v4104_v38 = vsel %vm831_vm1, %v4102_v12, %v4103_v51 }
 0x50d   : > { %8264 = vrsqrt.f32 %v2633_v22  ;;  %v4105_v22 = vrot.slane %v3301_v16, 1 }
 0x517   : > { %v8265_v46 = vpop.eup %8264 }
 0x518   : > { %6677 = vmatmul.mubr.msk.f32.vlgmr.msra.gmra.mrb[18].mxu1 %vm1820_vm4, %v8265_v46  ;;  %v4106_v46 = vsel %vm831_vm1, %v4103_v51, %v4105_v22 }
 0x519   : > { %v7631_v41 = vpack.i.bf16 %v4106_v46, %v4104_v38 }
 0x51b   : > { %7632 = vrot.lane.b32.xlu1 %v7631_v41, %s9082_s27 }
 0x5d8   : > { %v2704_v44 = vpop.f32.mrb[16].mxu1 }
 0x5d9   : > { %v6673_v55 = vpop.f32.mrb[17].mxu1  ;;  %v11231_v43 = vrot.slane %v2704_v44, %v11228_v49 }
 0x5db   : > { %v2785_v21 = vsub.f32 %v10929_v62, %v11231_v43  ;;  %v2786_v53 = vsub.f32 %v10926_v61, %v11231_v43  ;;  %v2787_v40 = vsub.f32 %v10940_v26, %v11231_v43  ;;  %v2788_v11 = vsub.f32 %v10955_v37, %v11231_v43 }
 0x5dc   : > { %v2789_v2 = vsub.f32 %v10958_v34, %v11231_v43  ;;  %v2790_v18 = vsub.f32 %v10968_v3, %v11231_v43  ;;  %v2791_v59 = vsub.f32 %v10979_v6, %v11231_v43  ;;  %v2792_v62 = vsub.f32 %v10987_v39, %v11231_v43 }
 0x5dd   : > { %v2793_v61 = vsub.f32 %v10990_v60, %v11231_v43  ;;  %v2794_v26 = vsub.f32 %v11000_v4, %v11231_v43  ;;  %v2795_v37 = vsub.f32 %v11012_v10, %v11231_v43  ;;  %v2796_v34 = vsub.f32 %v11025_v19, %v11231_v43 }
 0x5de   : > { %v2797_v3 = vsub.f32 %v11029_v52, %v11231_v43  ;;  %v2798_v6 = vsub.f32 %v11040_v58, %v11231_v43  ;;  %v2799_v39 = vsub.f32 %v11052_v57, %v11231_v43  ;;  %v2800_v60 = vsub.f32 %v11061_v45, %v11231_v43 }
 0x5df   : > { %v2801_v4 = vsub.f32 %v11065_v14, %v11231_v43  ;;  %v2802_v10 = vsub.f32 %v11076_v56, %v11231_v43  ;;  %v2803_v19 = vsub.f32 %v11088_v9, %v11231_v43  ;;  %v2804_v52 = vsub.f32 %v11097_v13, %v11231_v43 }
 0x5e0   : > { %v2805_v58 = vsub.f32 %v11100_v20, %v11231_v43  ;;  %v2806_v57 = vsub.f32 %v11110_v28, %v11231_v43  ;;  %v2807_v45 = vsub.f32 %v11122_v30, %v11231_v43  ;;  %v2808_v14 = vsub.f32 %v11131_v24, %v11231_v43 }
 0x5e1   : > { %v2809_v56 = vsub.f32 %v11134_v48, %v11231_v43  ;;  %v2810_v9 = vsub.f32 %v11144_v15, %v11231_v43  ;;  %v2811_v13 = vsub.f32 %v11155_v33, %v11231_v43  ;;  %v2812_v20 = vsub.f32 %v11161_v8, %v11231_v43 }
 0x5e2   : > { %v2813_v30 = vsub.f32 %v11176_v1, %v11231_v43  ;;  %v2814_v24 = vsub.f32 %v11187_v29, %v11231_v43  ;;  %v2815_v48 = vsub.f32 %v11173_v5, %v11231_v43  ;;  %v2816_v15 = vsub.f32 %v11184_v31, %v11231_v43 }
 0x5eb   : > { %v2777_v63 = vpop.f32.mrb[18].mxu1 }
 0x5ec   : > { %v2820_v28 = vrot.slane %v2777_v63, %v11228_v49  ;;  %v6678_v23 = vpop.f32.mrb[19].mxu1 }
 0x5ee   : > { %v2821_v32 = vmul.f32 %v2820_v28, %v2785_v21  ;;  %v2822_v33 = vmul.f32 %v2820_v28, %v2786_v53  ;;  %v2823_v54 = vmul.f32 %v2820_v28, %v2787_v40  ;;  %v2824_v51 = vmul.f32 %v2820_v28, %v2788_v11 }
 0x5ef   : > { %v2825_v8 = vmul.f32 %v2820_v28, %v2789_v2  ;;  %v2826_v12 = vmul.f32 %v2820_v28, %v2790_v18  ;;  %v2827_v16 = vmul.f32 %v2820_v28, %v2791_v59  ;;  %v2828_v38 = vmul.f32 %v2820_v28, %v2792_v62 }
 0x5f0   : > { %v2829_v22 = vmul.f32 %v2820_v28, %v2793_v61  ;;  %v2830_v46 = vmul.f32 %v2820_v28, %v2794_v26  ;;  %v2831_v1 = vmul.f32 %v2820_v28, %v2795_v37  ;;  %v2832_v41 = vmul.f32 %v2820_v28, %v2796_v34  ;;  %v6386_v34 = vld [vmem:[#allocation17] ss:$0 sm:$0xff] }
 0x5f1   : > { %v2833_v7 = vmul.f32 %v2820_v28, %v2797_v3  ;;  %v2834_v29 = vmul.f32 %v2820_v28, %v2798_v6  ;;  %v2835_v44 = vmul.f32 %v2820_v28, %v2799_v39  ;;  %v2836_v27 = vmul.f32 %v2820_v28, %v2800_v60 }
 0x5f2   : > { %v2837_v5 = vmul.f32 %v2820_v28, %v2801_v4  ;;  %v2838_v55 = vmul.f32 %v2820_v28, %v2802_v10  ;;  %v2839_v63 = vmul.f32 %v2820_v28, %v2803_v19  ;;  %v2840_v31 = vmul.f32 %v2820_v28, %v2804_v52  ;;  %v11298_v4 = vld [vmem:[#allocation18] ss:$0 sm:$0xff] }
 0x5f3   : > { %v2841_v43 = vmul.f32 %v2820_v28, %v2805_v58  ;;  %v2842_v21 = vmul.f32 %v2820_v28, %v2806_v57  ;;  %v2843_v53 = vmul.f32 %v2820_v28, %v2807_v45  ;;  %v2844_v40 = vmul.f32 %v2820_v28, %v2808_v14 }
 0x5f4   : > { %v2845_v11 = vmul.f32 %v2820_v28, %v2809_v56  ;;  %v2846_v2 = vmul.f32 %v2820_v28, %v2810_v9  ;;  %v2847_v18 = vmul.f32 %v2820_v28, %v2811_v13  ;;  %v2848_v59 = vmul.f32 %v2820_v28, %v2812_v20 }
 0x5f5   : > { %v2849_v62 = vmul.f32 %v2820_v28, %v2813_v30  ;;  %v2850_v61 = vmul.f32 %v2820_v28, %v2814_v24  ;;  %v2851_v26 = vmul.f32 %v2820_v28, %v2815_v48  ;;  %v2852_v37 = vmul.f32 %v2820_v28, %v2816_v15 }
 0x5f6   : > { %v2859_v3 = vmul.f32 %v6386_v34, %v2821_v32  ;;  %v2860_v6 = vmul.f32 %v6386_v34, %v2822_v33  ;;  %v2861_v39 = vmul.f32 %v6386_v34, %v2823_v54  ;;  %v2862_v60 = vmul.f32 %v6386_v34, %v2824_v51 }
 0x5f7   : > { %v2863_v10 = vmul.f32 %v6386_v34, %v2825_v8  ;;  %v2864_v19 = vmul.f32 %v6386_v34, %v2826_v12  ;;  %v2865_v52 = vmul.f32 %v6386_v34, %v2827_v16  ;;  %v2866_v58 = vmul.f32 %v6386_v34, %v2828_v38 }
 0x5f8   : > { %v2867_v57 = vmul.f32 %v6386_v34, %v2829_v22  ;;  %v2868_v45 = vmul.f32 %v6386_v34, %v2830_v46  ;;  %v2869_v14 = vmul.f32 %v6386_v34, %v2831_v1  ;;  %v2870_v56 = vmul.f32 %v6386_v34, %v2832_v41 }
 0x5f9   : > { %v2871_v9 = vmul.f32 %v6386_v34, %v2833_v7  ;;  %v2872_v13 = vmul.f32 %v6386_v34, %v2834_v29  ;;  %v2873_v20 = vmul.f32 %v6386_v34, %v2835_v44  ;;  %v2874_v23 = vmul.f32 %v6386_v34, %v2836_v27 }
 0x5fa   : > { %v2875_v28 = vmul.f32 %v6386_v34, %v2837_v5  ;;  %v11301_v30 = vadd.f32 %v11298_v4, %v2859_v3  ;;  %v11304_v24 = vadd.f32 %v11298_v4, %v2860_v6  ;;  %v11307_v48 = vadd.f32 %v11298_v4, %v2861_v39 }
 0x5fb   : > { %v2876_v15 = vmul.f32 %v6386_v34, %v2838_v55  ;;  %v2877_v32 = vmul.f32 %v6386_v34, %v2839_v63  ;;  %v2878_v33 = vmul.f32 %v6386_v34, %v2840_v31  ;;  %v11310_v54 = vadd.f32 %v11298_v4, %v2862_v60 }
 0x5fc   : > { %v11312_v51 = vmul.f32 %v6386_v34, %v2841_v43  ;;  %v11314_v8 = vmul.f32 %v6386_v34, %v2842_v21  ;;  %v11316_v12 = vmul.f32 %v6386_v34, %v2843_v53  ;;  %v11319_v16 = vadd.f32 %v11298_v4, %v2863_v10 }
 0x5fd   : > { %v11321_v38 = vmul.f32 %v6386_v34, %v2844_v40  ;;  %v11323_v22 = vmul.f32 %v6386_v34, %v2845_v11  ;;  %v11326_v46 = vadd.f32 %v11298_v4, %v2864_v19  ;;  %v11329_v1 = vadd.f32 %v11298_v4, %v2865_v52 }
 0x5fe   : > { %v11331_v41 = vmul.f32 %v6386_v34, %v2846_v2  ;;  %v2929_v7 = vsub.f32 0.0, %v11301_v30  ;;  %v2930_v29 = vsub.f32 0.0, %v11304_v24  ;;  %v2931_v44 = vsub.f32 0.0, %v11307_v48 }
 0x5ff   : > { %v11336_v27 = vmul.f32 %v6386_v34, %v2847_v18  ;;  %v11338_v5 = vmul.f32 %v6386_v34, %v2848_v59  ;;  %v11341_v55 = vadd.f32 %v11298_v4, %v2866_v58  ;;  %v2932_v63 = vsub.f32 0.0, %v11310_v54 }
 0x600   : > { %v11344_v31 = vmul.f32 %v6386_v34, %v2849_v62  ;;  %v11346_v43 = vmul.f32 %v6386_v34, %v2850_v61  ;;  %v11349_v21 = vadd.f32 %v11298_v4, %v2867_v57  ;;  %v2933_v53 = vsub.f32 0.0, %v11319_v16 }
 0x601   : > { %v11352_v40 = vmul.f32 %v6386_v34, %v2851_v26  ;;  %v11355_v11 = vadd.f32 %v11298_v4, %v2868_v45  ;;  %v2934_v2 = vsub.f32 0.0, %v11326_v46  ;;  %v2935_v18 = vsub.f32 0.0, %v11329_v1 }
 0x602   : > { %v11360_v59 = vadd.f32 %v11298_v4, %v2869_v14  ;;  %v2961_v62 = vmul.f32 1.442695, %v2929_v7  ;;  %v2963_v61 = vmul.f32 1.442695, %v2930_v29  ;;  %v2965_v3 = vmul.f32 1.442695, %v2931_v44 }
 0x603   : > { %v11362_v6 = vmul.f32 %v6386_v34, %v2852_v37  ;;  %v11365_v39 = vadd.f32 %v11298_v4, %v2870_v56  ;;  %v2936_v26 = vsub.f32 0.0, %v11341_v55  ;;  %v2967_v60 = vmul.f32 1.442695, %v2932_v63 }
 0x604   : > { %v11369_v10 = vadd.f32 %v11298_v4, %v2871_v9  ;;  %v2937_v19 = vsub.f32 0.0, %v11349_v21  ;;  %v2969_v52 = vmul.f32 1.442695, %v2933_v53  ;;  %8266 = vpow2.f32 %v2961_v62 }
 0x605   : > { %v11373_v58 = vadd.f32 %v11298_v4, %v2872_v13  ;;  %v2938_v57 = vsub.f32 0.0, %v11355_v11  ;;  %v2971_v37 = vmul.f32 1.442695, %v2934_v2  ;;  %8268 = vpow2.f32 %v2963_v61 }
 0x606   : > { %v11377_v34 = vadd.f32 %v11298_v4, %v2873_v20  ;;  %v2939_v45 = vsub.f32 0.0, %v11360_v59  ;;  %v2973_v14 = vmul.f32 1.442695, %v2935_v18  ;;  %8270 = vpow2.f32 %v2965_v3 }
 0x607   : > { %v11381_v56 = vadd.f32 %v11298_v4, %v2874_v23  ;;  %v2940_v9 = vsub.f32 0.0, %v11365_v39  ;;  %v2975_v7 = vmul.f32 1.442695, %v2936_v26  ;;  %8272 = vpow2.f32 %v2967_v60 }
 0x608   : > { %v11385_v13 = vadd.f32 %v11298_v4, %v2875_v28  ;;  %v2941_v29 = vsub.f32 0.0, %v11369_v10  ;;  %v2977_v44 = vmul.f32 1.442695, %v2937_v19  ;;  %8274 = vpow2.f32 %v2969_v52 }
 0x609   : > { %v11389_v20 = vadd.f32 %v11298_v4, %v2876_v15  ;;  %v2942_v63 = vsub.f32 0.0, %v11373_v58  ;;  %v2979_v53 = vmul.f32 1.442695, %v2938_v57  ;;  %8276 = vpow2.f32 %v2971_v37 }
 0x60a   : > { %v11393_v23 = vadd.f32 %v11298_v4, %v2877_v32  ;;  %v2943_v2 = vsub.f32 0.0, %v11377_v34  ;;  %v2981_v18 = vmul.f32 1.442695, %v2939_v45  ;;  %8278 = vpow2.f32 %v2973_v14 }
 0x60b   : > { %v11397_v28 = vadd.f32 %v11298_v4, %v2878_v33  ;;  %v2944_v62 = vsub.f32 0.0, %v11381_v56  ;;  %v2983_v61 = vmul.f32 1.442695, %v2940_v9  ;;  %8280 = vpow2.f32 %v2975_v7 }
 0x60c   : > { %v11402_v15 = vadd.f32 %v11298_v4, %v11312_v51  ;;  %v2945_v3 = vsub.f32 0.0, %v11385_v13  ;;  %v2985_v26 = vmul.f32 1.442695, %v2941_v29  ;;  %8282 = vpow2.f32 %v2977_v44 }
 0x60d   : > { %v11407_v32 = vadd.f32 %v11298_v4, %v11314_v8  ;;  %v2946_v60 = vsub.f32 0.0, %v11389_v20  ;;  %v2987_v33 = vmul.f32 1.442695, %v2942_v63  ;;  %8284 = vpow2.f32 %v2979_v53 }
 0x60e   : > { %v11410_v19 = vpop.eup %8266  ;;  %v11414_v52 = vadd.f32 %v11298_v4, %v11316_v12  ;;  %v2947_v51 = vsub.f32 0.0, %v11393_v23  ;;  %v2989_v57 = vmul.f32 1.442695, %v2943_v2  ;;  %8286 = vpow2.f32 %v2981_v18 }
 0x60f   : > { %v11417_v37 = vpop.eup %8268  ;;  %v11421_v8 = vadd.f32 %v11298_v4, %v11321_v38  ;;  %v2948_v45 = vsub.f32 0.0, %v11397_v28  ;;  %v2991_v14 = vmul.f32 1.442695, %v2944_v62  ;;  %8288 = vpow2.f32 %v2983_v61 }
 0x610   : > { %v11424_v9 = vpop.eup %8270  ;;  %v11428_v12 = vadd.f32 %v11298_v4, %v11323_v22  ;;  %v2949_v7 = vsub.f32 0.0, %v11402_v15  ;;  %v2993_v29 = vmul.f32 1.442695, %v2945_v3  ;;  %8290 = vpow2.f32 %v2985_v26 }
 0x611   : > { %v11431_v44 = vpop.eup %8272  ;;  %v11435_v38 = vadd.f32 %v11298_v4, %v11331_v41  ;;  %v2950_v63 = vsub.f32 0.0, %v11407_v32  ;;  %v2995_v53 = vmul.f32 1.442695, %v2946_v60  ;;  %8292 = vpow2.f32 %v2987_v33 }
 0x612   : > { %v11438_v2 = vpop.eup %8274  ;;  %v11442_v22 = vadd.f32 %v11298_v4, %v11336_v27  ;;  %v2951_v18 = vsub.f32 0.0, %v11414_v52  ;;  %v2997_v62 = vmul.f32 1.442695, %v2947_v51  ;;  %8294 = vpow2.f32 %v2989_v57 }
 0x613   : > { %v11445_v61 = vpop.eup %8276  ;;  %v11449_v41 = vadd.f32 %v11298_v4, %v11338_v5  ;;  %v2952_v3 = vsub.f32 0.0, %v11421_v8  ;;  %v2999_v26 = vmul.f32 1.442695, %v2948_v45  ;;  %8296 = vpow2.f32 %v2991_v14 }
 0x614   : > { %v11452_v60 = vpop.eup %8278  ;;  %v11456_v27 = vadd.f32 %v11298_v4, %v11344_v31  ;;  %v2953_v33 = vsub.f32 0.0, %v11428_v12  ;;  %v3001_v51 = vmul.f32 1.442695, %v2949_v7  ;;  %8298 = vpow2.f32 %v2993_v29 }
 0x615   : > { %13611 = vst [vmem:[#allocation73_spill] sm:$0xff] %v11449_v41  ;;  %v11459_v57 = vpop.eup %8280  ;;  %v11463_v5 = vadd.f32 %v11298_v4, %v11346_v43  ;;  %v2954_v35 = vsub.f32 0.0, %v11435_v38  ;;  %v3003_v45 = vmul.f32 1.442695, %v2950_v63  ;;  %8300 = vpow2.f32 %v2995_v53 }
 0x616   : > { %13612 = vst [vmem:[#allocation74_spill] sm:$0xff] %v11456_v27  ;;  %v8283_v14 = vpop.eup %8282  ;;  %v11468_v49 = vadd.f32 %v11298_v4, %v11352_v40  ;;  %v2955_v31 = vsub.f32 0.0, %v11442_v22  ;;  %v3005_v17 = vmul.f32 1.442695, %v2951_v18  ;;  %8302 = vpow2.f32 %v2997_v62 }
 0x617   : > { %13613 = vst [vmem:[#allocation75_spill] sm:$0xff] %v11463_v5  ;;  %v8285_v7 = vpop.eup %8284  ;;  %v11473_v29 = vadd.f32 %v11298_v4, %v11362_v6  ;;  %v2956_v43 = vsub.f32 0.0, %v11449_v41  ;;  %v3007_v25 = vmul.f32 1.442695, %v2952_v3  ;;  %8304 = vpow2.f32 %v2999_v26 }
 0x618   : > { %13614 = vst [vmem:[#allocation76_spill] sm:$0xff] %v11468_v49  ;;  %v8287_v63 = vpop.eup %8286  ;;  %v2957_v53 = vsub.f32 0.0, %v11456_v27  ;;  %v3009_v0 = vmul.f32 1.442695, %v2953_v33  ;;  %8306 = vpow2.f32 %v3001_v51  ;;  %v2958_v50 = vsub.f32 0.0, %v11463_v5 }
 0x619   : > { %13615 = vst [vmem:[#allocation77_spill] sm:$0xff] %v11473_v29  ;;  %v8289_v40 = vpop.eup %8288  ;;  %v3011_v47 = vmul.f32 1.442695, %v2954_v35  ;;  %8308 = vpow2.f32 %v3003_v45  ;;  %v2959_v62 = vsub.f32 0.0, %v11468_v49  ;;  %v3013_v42 = vmul.f32 1.442695, %v2955_v31 }
 0x61a   : > { %v8291_v18 = vpop.eup %8290  ;;  %8310 = vpow2.f32 %v3005_v17  ;;  %v2960_v6 = vsub.f32 0.0, %v11473_v29  ;;  %v3015_v3 = vmul.f32 1.442695, %v2956_v43  ;;  %v3017_v36 = vmul.f32 1.442695, %v2957_v53 }
 0x61b   : > { %v8293_v4 = vpop.eup %8292  ;;  %8312 = vpow2.f32 %v3007_v25  ;;  %v3019_v51 = vmul.f32 1.442695, %v2958_v50  ;;  %v3021_v5 = vmul.f32 1.442695, %v2959_v62  ;;  %v3027_v17 = vadd.f32 1.0, %v11424_v9 }
 0x61c   : > { %v8295_v26 = vpop.eup %8294  ;;  %8314 = vpow2.f32 %v3009_v0  ;;  %v3023_v45 = vmul.f32 1.442695, %v2960_v6  ;;  %v3028_v25 = vadd.f32 1.0, %v11431_v44  ;;  %v3025_v0 = vadd.f32 1.0, %v11410_v19 }
 0x61d   : > { %v8297_v33 = vpop.eup %8296  ;;  %8316 = vpow2.f32 %v3011_v47  ;;  %v3026_v47 = vadd.f32 1.0, %v11417_v37  ;;  %v3029_v53 = vadd.f32 1.0, %v11438_v2  ;;  %v3031_v44 = vadd.f32 1.0, %v11452_v60 }
 0x61e   : > { %v8299_v27 = vpop.eup %8298  ;;  %8318 = vpow2.f32 %v3013_v42  ;;  %v3032_v19 = vadd.f32 1.0, %v11459_v57  ;;  %v3033_v6 = vadd.f32 1.0, %v8283_v14  ;;  %v3037_v57 = vadd.f32 1.0, %v8291_v18 }
 0x61f   : > { %v8301_v35 = vpop.eup %8300  ;;  %8320 = vpow2.f32 %v3015_v3  ;;  %v3034_v3 = vadd.f32 1.0, %v8285_v7  ;;  %v3038_v14 = vadd.f32 1.0, %v8293_v4  ;;  %v11508_v7 = vld [vmem:[%s577_s5] ss:$0 sm:$0xff]  ;;  %s6503_s5 = sshll.u32 %s13551_s0, 11  ;;  %s6111_s0 = scalar_lea.sflag [#allocation5], %s9561_s14 }
 0x620   : > { %v8303_v49 = vpop.eup %8302  ;;  %8322 = vpow2.f32 %v3017_v36  ;;  %v3030_v36 = vadd.f32 1.0, %v11445_v61 }
 0x621   : > { %v8305_v31 = vpop.eup %8304  ;;  %8324 = vpow2.f32 %v3019_v51  ;;  %v3035_v51 = vadd.f32 1.0, %v8287_v63 }
 0x622   : > { %v8307_v43 = vpop.eup %8306  ;;  %8326 = vpow2.f32 %v3021_v5  ;;  %v3044_v29 = vadd.f32 1.0, %v8305_v31 }
 0x623   : > { %v8309_v50 = vpop.eup %8308  ;;  %8328 = vpow2.f32 %v3023_v45  ;;  %v3036_v45 = vadd.f32 1.0, %v8289_v40  ;;  %v3041_v40 = vadd.f32 1.0, %v8299_v27 }
 0x624   : > { %v8311_v42 = vpop.eup %8310  ;;  %8330 = vrcp.f32 %v3027_v17 }
 0x625   : > { %v11485_v62 = vpop.eup %8312  ;;  %8332 = vrcp.f32 %v3028_v25 }
 0x626   : > { %v11488_v9 = vpop.eup %8314  ;;  %8334 = vrcp.f32 %v3025_v0 }
 0x627   : > { %v11491_v5 = vpop.eup %8316  ;;  %8336 = vrcp.f32 %v3026_v47  ;;  %v3039_v47 = vadd.f32 1.0, %v8295_v26 }
 0x628   : > { %v11494_v37 = vpop.eup %8318  ;;  %8338 = vrcp.f32 %v3029_v53 }
 0x629   : > { %v11496_v2 = vpop.eup %8320  ;;  %8340 = vrcp.f32 %v3030_v36  ;;  %v3040_v36 = vadd.f32 1.0, %v8297_v33 }
 0x62a   : > { %v11498_v61 = vpop.eup %8322  ;;  %8342 = vrcp.f32 %v3031_v44 }
 0x62b   : > { %v11500_v60 = vpop.eup %8324  ;;  %8344 = vrcp.f32 %v3032_v19  ;;  %v3042_v19 = vadd.f32 1.0, %v8301_v35 }
 0x62c   : > { %v11502_v17 = vpop.eup %8326  ;;  %8346 = vrcp.f32 %v3033_v6  ;;  %v3043_v6 = vadd.f32 1.0, %v8303_v49 }
 0x62d   : > { %v11504_v25 = vpop.eup %8328  ;;  %8348 = vrcp.f32 %v3034_v3 }
 0x62e   : > { %v8331_v0 = vpop.eup %8330  ;;  %8350 = vrcp.f32 %v3035_v51 }
 0x62f   : > { %v8333_v63 = vpop.eup %8332  ;;  %v3091_v53 = vmul.f32 %v8331_v0, %v11307_v48  ;;  %8352 = vrcp.f32 %v3036_v45  ;;  %v3045_v48 = vadd.f32 1.0, %v8307_v43 }
 0x630   : > { %v8335_v44 = vpop.eup %8334  ;;  %v3092_v18 = vmul.f32 %v8333_v63, %v11310_v54  ;;  %8354 = vrcp.f32 %v3037_v57  ;;  %v3046_v54 = vadd.f32 1.0, %v8309_v50  ;;  %v3048_v57 = vadd.f32 1.0, %v11485_v62 }
 0x631   : > { %v8337_v4 = vpop.eup %8336  ;;  %v3130_v3 = vadd.f32 %v11508_v7, %v3091_v53  ;;  %v3089_v41 = vmul.f32 %v8335_v44, %v11301_v30  ;;  %8356 = vrcp.f32 %v3038_v14  ;;  %v3047_v30 = vadd.f32 1.0, %v8311_v42 }
 0x632   : > { %v8339_v26 = vpop.eup %8338  ;;  %v3131_v51 = vadd.f32 %v11508_v7, %v3092_v18  ;;  %v3090_v27 = vmul.f32 %v8337_v4, %v11304_v24  ;;  %8358 = vrcp.f32 %v3039_v47  ;;  %v3049_v14 = vadd.f32 1.0, %v11488_v9 }
 0x633   : > { %v8341_v33 = vpop.eup %8340  ;;  %3218 = vst.msk [vmem:[#allocation2 + $0x31] sm:$0xff] %vm1820_vm4, %v3130_v3  ;;  %v3128_v49 = vadd.f32 %v11508_v7, %v3089_v41  ;;  %8360 = vrcp.f32 %v3040_v36  ;;  %v3093_v35 = vmul.f32 %v8339_v26, %v11319_v16  ;;  %v3050_v62 = vadd.f32 1.0, %v11491_v5 }
 0x634   : > { %v8343_v31 = vpop.eup %8342  ;;  %3219 = vst.msk [vmem:[#allocation2 + $0x39] sm:$0xff] %vm1820_vm4, %v3131_v51  ;;  %v3129_v45 = vadd.f32 %v11508_v7, %v3090_v27  ;;  %8362 = vrcp.f32 %v3041_v40  ;;  %v3094_v43 = vmul.f32 %v8341_v33, %v11326_v46  ;;  %v3051_v9 = vadd.f32 1.0, %v11494_v37 }
 0x635   : > { %v8345_v24 = vpop.eup %8344  ;;  %3216 = vst.msk [vmem:[#allocation2 + $0x19] sm:$0xff] %vm1820_vm4, %v3128_v49  ;;  %8364 = vrcp.f32 %v3042_v19  ;;  %v3132_v41 = vadd.f32 %v11508_v7, %v3093_v35  ;;  %v3095_v50 = vmul.f32 %v8343_v31, %v11329_v1  ;;  %v3052_v5 = vadd.f32 1.0, %v11496_v2 }
 0x636   : > { %v8347_v16 = vpop.eup %8346  ;;  %3217 = vst.msk [vmem:[#allocation2 + $0x21] sm:$0xff] %vm1820_vm4, %v3129_v45  ;;  %8366 = vrcp.f32 %v3043_v6  ;;  %v3133_v42 = vadd.f32 %v11508_v7, %v3094_v43  ;;  %v3096_v46 = vmul.f32 %v8345_v24, %v11341_v55  ;;  %v3053_v37 = vadd.f32 1.0, %v11498_v61 }
 0x637   : > { %v8349_v0 = vpop.eup %8348  ;;  %8368 = vrcp.f32 %v3044_v29  ;;  %3220 = vst.msk [vmem:[#allocation2 + $0x49] sm:$0xff] %vm1820_vm4, %v3132_v41  ;;  %v3097_v47 = vmul.f32 %v8347_v16, %v11349_v21  ;;  %v3134_v1 = vadd.f32 %v11508_v7, %v3095_v50  ;;  %v3055_v3 = vadd.f32 1.0, %v11502_v17 }
 0x638   : > { %v8351_v63 = vpop.eup %8350  ;;  %8370 = vrcp.f32 %v3045_v48  ;;  %3221 = vst.msk [vmem:[#allocation2 + $0x51] sm:$0xff] %vm1820_vm4, %v3133_v42  ;;  %v3098_v53 = vmul.f32 %v8349_v0, %v11355_v11  ;;  %v3135_v55 = vadd.f32 %v11508_v7, %v3096_v46  ;;  %v3056_v31 = vadd.f32 1.0, %v11504_v25 }
 0x639   : > { %v8353_v36 = vpop.eup %8352  ;;  %8372 = vrcp.f32 %v3046_v54  ;;  %v3099_v29 = vmul.f32 %v8351_v63, %v11360_v59  ;;  %v3136_v21 = vadd.f32 %v11508_v7, %v3097_v47  ;;  %3222 = vst.msk [vmem:[#allocation2 + $0x61] sm:$0xff] %vm1820_vm4, %v3134_v1  ;;  %v3054_v59 = vadd.f32 1.0, %v11500_v60 }
 0x63a   : > { %v8355_v40 = vpop.eup %8354  ;;  %v11542_v44 = vld [vmem:[#allocation2 + $0x30] sm:$0xff]  ;;  %8374 = vrcp.f32 %v3047_v30  ;;  %v3100_v11 = vmul.f32 %v8353_v36, %v11365_v39  ;;  %v3137_v18 = vadd.f32 %v11508_v7, %v3098_v53  ;;  %3223 = vst.msk [vmem:[#allocation2 + $0x69] sm:$0xff] %vm1820_vm4, %v3135_v55 }
 0x63b   : > { %v8357_v2 = vpop.eup %8356  ;;  %v11548_v19 = vld [vmem:[#allocation2 + $0x38] sm:$0xff]  ;;  %8376 = vrcp.f32 %v3048_v57  ;;  %v3101_v6 = vmul.f32 %v8355_v40, %v11369_v10  ;;  %v3138_v4 = vadd.f32 %v11508_v7, %v3099_v29  ;;  %3224 = vst.msk [vmem:[#allocation2 + $0x79] sm:$0xff] %vm1820_vm4, %v3136_v21 }
 0x63c   : > { %v8359_v61 = vpop.eup %8358  ;;  %v7641_v39 = vpack.i.bf16 %v11548_v19, %v11542_v44  ;;  %v11557_v26 = vld [vmem:[#allocation2 + $0x18] sm:$0xff]  ;;  %8378 = vrcp.f32 %v3049_v14  ;;  %v3102_v51 = vmul.f32 %v8357_v2, %v11373_v58  ;;  %3225 = vst.msk [vmem:[#allocation2 + $0x81] sm:$0xff] %vm1820_vm4, %v3137_v18  ;;  %v3139_v27 = vadd.f32 %v11508_v7, %v3100_v11 }
 0x63d   : > { %v8361_v60 = vpop.eup %8360  ;;  %v11561_v48 = vld [vmem:[#allocation2 + $0x20] sm:$0xff]  ;;  %8380 = vrcp.f32 %v3050_v62  ;;  %v3103_v10 = vmul.f32 %v8359_v61, %v11377_v34  ;;  %v3140_v33 = vadd.f32 %v11508_v7, %v3101_v6  ;;  %3226 = vst.msk [vmem:[#allocation2 + $0x91] sm:$0xff] %vm1820_vm4, %v3138_v4 }
 0x63e   : > { %v8363_v17 = vpop.eup %8362  ;;  %7642 = vrot.lane.b32.xlu1 %v7641_v39, %s9076_s4  ;;  %v7636_v58 = vpack.i.bf16 %v11561_v48, %v11557_v26  ;;  %8382 = vrcp.f32 %v3051_v9  ;;  %v11570_v54 = vld [vmem:[#allocation2 + $0x48] sm:$0xff]  ;;  %v3104_v49 = vmul.f32 %v8361_v60, %v11381_v56  ;;  %v3141_v35 = vadd.f32 %v11508_v7, %v3102_v51  ;;  %3227 = vst.msk [vmem:[#allocation2 + $0x99] sm:$0xff] %vm1820_vm4, %v3139_v27 }
 0x63f   : > { %v8365_v34 = vpop.eup %8364  ;;  %8384 = vrcp.f32 %v3052_v5  ;;  %v11575_v30 = vld [vmem:[#allocation2 + $0x50] sm:$0xff]  ;;  %v3105_v45 = vmul.f32 %v8363_v17, %v11385_v13  ;;  %v3142_v43 = vadd.f32 %v11508_v7, %v3103_v10  ;;  %3228 = vst.msk [vmem:[#allocation2 + $0xa9] sm:$0xff] %vm1820_vm4, %v3140_v33  ;;  %v13616_v61 = vld [vmem:[#allocation73_spill] sm:$0xff] }
 0x640   : > { %v8367_v24 = vpop.eup %8366  ;;  %7637 = vrot.lane.b32.xlu0 %v7636_v58, %s9076_s4  ;;  %8386 = vrcp.f32 %v3053_v37  ;;  %v7651_v56 = vpack.i.bf16 %v11575_v30, %v11570_v54  ;;  %v3106_v25 = vmul.f32 %v8365_v34, %v11389_v20  ;;  %v3143_v57 = vadd.f32 %v11508_v7, %v3104_v49  ;;  %3229 = vst.msk [vmem:[#allocation2 + $0xb1] sm:$0xff] %vm1820_vm4, %v3141_v35  ;;  %v11589_v16 = vld [vmem:[#allocation2 + $0x60] sm:$0xff]  ;;  %v13617_v60 = vld [vmem:[#allocation74_spill] sm:$0xff]  ;;  %v13618_v33 = vld [vmem:[#allocation75_spill] sm:$0xff] }
 0x641   : > { %v8369_v13 = vpop.eup %8368  ;;  %8388 = vrcp.f32 %v3054_v59  ;;  %v3107_v41 = vmul.f32 %v8367_v24, %v11393_v23  ;;  %v3144_v50 = vadd.f32 %v11508_v7, %v3105_v45  ;;  %v11591_v14 = vld [vmem:[#allocation2 + $0x68] sm:$0xff]  ;;  %3230 = vst.msk [vmem:[#allocation2 + $0xc1] sm:$0xff] %vm1820_vm4, %v3142_v43  ;;  %v13619_v34 = vld [vmem:[#allocation76_spill] sm:$0xff] }
 0x642   : > { %v8371_v42 = vpop.eup %8370  ;;  %8390 = vrcp.f32 %v3055_v3  ;;  %7652 = vrot.lane.b32.xlu1 %v7651_v56, %s9081_s8  ;;  %v3108_v20 = vmul.f32 %v8369_v13, %v11397_v28  ;;  %v3145_v46 = vadd.f32 %v11508_v7, %v3106_v25  ;;  %3231 = vst.msk [vmem:[#allocation2 + $0xc9] sm:$0xff] %vm1820_vm4, %v3143_v57  ;;  %v7661_v28 = vpack.i.bf16 %v11591_v14, %v11589_v16  ;;  %v11610_v55 = vld [vmem:[#allocation2 + $0x78] sm:$0xff] }
 0x643   : > { %v8373_v0 = vpop.eup %8372  ;;  %8392 = vrcp.f32 %v3056_v31  ;;  %v3109_v23 = vmul.f32 %v8371_v42, %v11402_v15  ;;  %v3146_v62 = vadd.f32 %v11508_v7, %v3107_v41  ;;  %3232 = vst.msk [vmem:[#allocation2 + $0xd9] sm:$0xff] %vm1820_vm4, %v3144_v50  ;;  %v11612_v36 = vld [vmem:[#allocation2 + $0x80] sm:$0xff] }
 0x644   : > { %v8375_v47 = vpop.eup %8374  ;;  %v3110_v1 = vmul.f32 %v8373_v0, %v11407_v32  ;;  %7647 = vrot.lane.b32.xlu0 %v7641_v39, %s9081_s8  ;;  %v3147_v63 = vadd.f32 %v11508_v7, %v3108_v20  ;;  %3233 = vst.msk [vmem:[#allocation2 + $0xe1] sm:$0xff] %vm1820_vm4, %v3145_v46  ;;  %v11630_v6 = vld [vmem:[#allocation2 + $0x90] sm:$0xff] }
 0x645   : > { %v8377_v9 = vpop.eup %8376  ;;  %v3111_v53 = vmul.f32 %v8375_v47, %v11414_v52  ;;  %v3148_v15 = vadd.f32 %v11508_v7, %v3109_v23  ;;  %3234 = vst.msk [vmem:[#allocation2 + $0xf1] sm:$0xff] %vm1820_vm4, %v3146_v62  ;;  %v11632_v4 = vld [vmem:[#allocation2 + $0x98] sm:$0xff] }
 0x646   : > { %v8379_v32 = vpop.eup %8378  ;;  %v3112_v5 = vmul.f32 %v8377_v9, %v11421_v8  ;;  %v3149_v29 = vadd.f32 %v11508_v7, %v3110_v1  ;;  %7662 = vrot.lane.b32.xlu1 %v7661_v28, %s9076_s4  ;;  %3235 = vst.msk [vmem:[#allocation2 + $0xf9] sm:$0xff] %vm1820_vm4, %v3147_v63  ;;  %v7671_v8 = vpack.i.bf16 %v11612_v36, %v11610_v55  ;;  %v11650_v43 = vld [vmem:[#allocation2 + $0xa8] sm:$0xff] }
 0x647   : > { %v8381_v21 = vpop.eup %8380  ;;  %v3113_v52 = vmul.f32 %v8379_v32, %v11428_v12  ;;  %v3150_v40 = vadd.f32 %v11508_v7, %v3111_v53  ;;  %3236 = vst.msk [vmem:[#allocation2 + $0x109] sm:$0xff] %vm1820_vm4, %v3148_v15  ;;  %v7681_v49 = vpack.i.bf16 %v11632_v4, %v11630_v6  ;;  %v11652_v24 = vld [vmem:[#allocation2 + $0xb0] sm:$0xff] }
 0x648   : > { %v8383_v37 = vpop.eup %8382  ;;  %v3114_v11 = vmul.f32 %v8381_v21, %v11435_v38  ;;  %v3151_v18 = vadd.f32 %v11508_v7, %v3112_v5  ;;  %3237 = vst.msk [vmem:[#allocation2 + $0x111] sm:$0xff] %vm1820_vm4, %v3149_v29  ;;  %7657 = vrot.lane.b32.xlu0 %v7651_v56, %s9076_s4  ;;  %v13620_v56 = vld [vmem:[#allocation77_spill] sm:$0xff]  ;;  %v7691_v50 = vpack.i.bf16 %v11652_v24, %v11650_v43 }
 0x649   : > { %v8385_v2 = vpop.eup %8384  ;;  %v3115_v59 = vmul.f32 %v8383_v37, %v11442_v22  ;;  %v3152_v12 = vadd.f32 %v11508_v7, %v3113_v52  ;;  %3238 = vst.msk [vmem:[#allocation2 + $0x121] sm:$0xff] %vm1820_vm4, %v3150_v40  ;;  %v11666_v42 = vld [vmem:[#allocation2 + $0xc0] sm:$0xff]  ;;  %v11668_v20 = vld [vmem:[#allocation2 + $0xc8] sm:$0xff] }
 0x64a   : > { %v8387_v38 = vpop.eup %8386  ;;  %v3116_v39 = vmul.f32 %v8385_v2, %v13616_v61  ;;  %v3153_v3 = vadd.f32 %v11508_v7, %v3114_v11  ;;  %3239 = vst.msk [vmem:[#allocation2 + $0x129] sm:$0xff] %vm1820_vm4, %v3151_v18  ;;  %7672 = vrot.lane.b32.xlu1 %v7671_v8, %s9081_s8  ;;  %v11675_v46 = vld [vmem:[#allocation2 + $0xd8] sm:$0xff]  ;;  %v3356_v61 = vrot.slane %v11561_v48, 1 }
 0x64b   : > { %v8389_v51 = vpop.eup %8388  ;;  %v3117_v22 = vmul.f32 %v8387_v38, %v13617_v60  ;;  %v3154_v10 = vadd.f32 %v11508_v7, %v3115_v59  ;;  %3240 = vst.msk [vmem:[#allocation2 + $0x139] sm:$0xff] %vm1820_vm4, %v3152_v12  ;;  %v11677_v0 = vld [vmem:[#allocation2 + $0xe0] sm:$0xff]  ;;  %v3355_v38 = vrot.slane %v11557_v26, 1 }
 0x64c   : > { %v8391_v27 = vpop.eup %8390  ;;  %v3118_v17 = vmul.f32 %v8389_v51, %v13618_v33  ;;  %v3155_v58 = vadd.f32 %v11508_v7, %v3116_v39  ;;  %3241 = vst.msk [vmem:[#allocation2 + $0x141] sm:$0xff] %vm1820_vm4, %v3153_v3  ;;  %7667 = vrot.lane.b32.xlu0 %v7661_v28, %s9081_s8  ;;  %v7711_v23 = vpack.i.bf16 %v11677_v0, %v11675_v46  ;;  %v11683_v62 = vld [vmem:[#allocation2 + $0xf0] sm:$0xff]  ;;  %v3531_v51 = vrot.slane %v11557_v26, 2  ;;  %v8259_v33 = vld [vmem:[#allocation11] sm:$0xff]  }
 0x64d   : > { %v8393_v35 = vpop.eup %8392  ;;  %v3119_v31 = vmul.f32 %v8391_v27, %v13619_v34  ;;  %v3156_v45 = vadd.f32 %v11508_v7, %v3117_v22  ;;  %3242 = vst.msk [vmem:[#allocation2 + $0x151] sm:$0xff] %vm1820_vm4, %v3154_v10  ;;  %v11685_v47 = vld [vmem:[#allocation2 + $0xf8] sm:$0xff]  ;;  %v3357_v60 = vsel %vm831_vm1, %v3355_v38, %v3356_v61  ;;  %v3532_v10 = vrot.slane %v11561_v48, 2  ;;  %6679 = vmatprep.subr.bf16.mxu1 %v8259_v33  ;;  %v8260_v48 = vld [vmem:[#allocation11 + $0x8] sm:$0xff]  }
 0x64e   : > { %v3120_v25 = vmul.f32 %v8393_v35, %v13620_v56  ;;  %v3157_v57 = vadd.f32 %v11508_v7, %v3118_v17  ;;  %3243 = vst.msk [vmem:[#allocation2 + $0x159] sm:$0xff] %vm1820_vm4, %v3155_v58  ;;  %7682 = vrot.lane.b32.xlu1 %v7681_v49, %s9076_s4  ;;  %v7721_v1 = vpack.i.bf16 %v11685_v47, %v11683_v62  ;;  %v11691_v63 = vld [vmem:[#allocation2 + $0x108] sm:$0xff]  ;;  %v3256_v17 = vld [vmem:[#allocation2 + $0x40] sm:$0x3]  ;;  %v3361_v35 = vrot.slane %v11548_v19, 1 }
 0x64f   : > { %v3158_v13 = vadd.f32 %v11508_v7, %v3119_v31  ;;  %3244 = vst.msk [vmem:[#allocation2 + $0x169] sm:$0xff] %vm1820_vm4, %v3156_v45  ;;  %v11693_v28 = vld [vmem:[#allocation2 + $0x110] sm:$0xff]  ;;  %6680 = vmatpush3.bf16.msra.mxu1 %v8259_v33  ;;  %v3533_v26 = vsel %vm1008_vm0, %v3531_v51, %v3532_v10  ;;  %v3363_v31 = vrot.slane %v3256_v17, 1  ;;  %v8263_v38 = vld [vmem:[#allocation11 + $0x20] ss:$0 sps:$4 sm:$0xff]  }
 0x650   : > { %v3159_v41 = vadd.f32 %v11508_v7, %v3120_v25  ;;  %3245 = vst.msk [vmem:[#allocation2 + $0x171] sm:$0xff] %vm1820_vm4, %v3157_v57  ;;  %7677 = vrot.lane.b32.xlu0 %v7671_v8, %s9076_s4  ;;  %v7701_v7 = vpack.i.bf16 %v11668_v20, %v11666_v42  ;;  %v7731_v9 = vpack.i.bf16 %v11693_v28, %v11691_v63  ;;  %v11699_v53 = vld [vmem:[#allocation2 + $0x120] sm:$0xff]  ;;  %v3253_v8 = vld [vmem:[#allocation2 + $0x28] sm:$0x3]  ;;  %v3536_v57 = vrot.slane %v11542_v44, 2 }
 0x651   : > { %3246 = vst.msk [vmem:[#allocation2 + $0x181] sm:$0xff] %vm1820_vm4, %v3158_v13  ;;  %v11701_v15 = vld [vmem:[#allocation2 + $0x128] sm:$0xff]  ;;  %v3358_v39 = vrot.slane %v3253_v8, 1  ;;  %v3534_v27 = vrot.slane %v3253_v8, 2  ;;  %6681 = vmatprep.subr.bf16.mxu1 %v8260_v48  ;;  %v3364_v25 = vsel %vm831_vm1, %v3361_v35, %v3363_v31  ;;  %v3537_v13 = vrot.slane %v11548_v19, 2  ;;  %v8262_v19 = vld [vmem:[#allocation11 + $0x18] sm:$0xff]  }
 0x652   : > { %3247 = vst.msk [vmem:[#allocation2 + $0x189] sm:$0xff] %vm1820_vm4, %v3159_v41  ;;  %7692 = vrot.lane.b32.xlu1 %v7691_v50, %s9081_s8  ;;  %v7741_v32 = vpack.i.bf16 %v11701_v15, %v11699_v53  ;;  %v11707_v5 = vld [vmem:[#allocation2 + $0x138] sm:$0xff]  ;;  %v3539_v41 = vrot.slane %v3256_v17, 2 }
 0x653   : > { %v11709_v29 = vld [vmem:[#allocation2 + $0x140] sm:$0xff]  ;;  %v3359_v22 = vsel %vm831_vm1, %v3356_v61, %v3358_v39  ;;  %v3535_v34 = vsel %vm1008_vm0, %v3532_v10, %v3534_v27  ;;  %6682 = vmatpush3.bf16.msra.mxu1 %v8260_v48  ;;  %v3541_v61 = vrot.slane %v11570_v54, 2  ;;  %v3542_v39 = vrot.slane %v11575_v30, 2 }
 0x654   : > { %7687 = vrot.lane.b32.xlu0 %v7681_v49, %s9081_s8  ;;  %v7751_v21 = vpack.i.bf16 %v11709_v29, %v11707_v5  ;;  %v11715_v52 = vld [vmem:[#allocation2 + $0x150] sm:$0xff]  ;;  %v7791_v58 = vpack.i.bf16 %v3359_v22, %v3357_v60  ;;  %v3360_v49 = vrot.slane %v11542_v44, 1  ;;  %v7796_v45 = vpack.i.bf16 %v3535_v34, %v3533_v26 }
 0x655   : > { %v11717_v40 = vld [vmem:[#allocation2 + $0x158] sm:$0xff]  ;;  %v3366_v44 = vrot.slane %v11575_v30, 1  ;;  %v4674_v60 = vsel %vm4672_vm14, %v8263_v38, 0  ;;  %v3543_v10 = vsel %vm1008_vm0, %v3541_v61, %v3542_v39 }
 0x656   : > { %7702 = vrot.lane.b32.xlu1 %v7701_v7, %s9076_s4  ;;  %v7761_v37 = vpack.i.bf16 %v11717_v40, %v11715_v52  ;;  %v11723_v11 = vld [vmem:[#allocation2 + $0x168] sm:$0xff]  ;;  %v3362_v56 = vsel %vm831_vm1, %v3360_v49, %v3361_v35  ;;  %v3262_v35 = vld [vmem:[#allocation2 + $0x70] sm:$0x3] }
 0x657   : > { %v11725_v18 = vld [vmem:[#allocation2 + $0x170] sm:$0xff] }
 0x658   : > { %7697 = vrot.lane.b32.xlu0 %v7691_v50, %s9076_s4  ;;  %v7771_v2 = vpack.i.bf16 %v11725_v18, %v11723_v11  ;;  %v11731_v59 = vld [vmem:[#allocation2 + $0x180] sm:$0xff]  ;;  %v8261_v50 = vld [vmem:[#allocation11 + $0x10] sm:$0xff]  }
 0x659   : > { %v11733_v12 = vld [vmem:[#allocation2 + $0x188] sm:$0xff]  ;;  %6683 = vmatprep.subr.bf16.mxu1 %v8261_v50  ;;  %v3298_v22 = vld [vmem:[#allocation2 + $0x190] sm:$0x3]  ;;  %v3801_v33 = vrot.slane %v11731_v59, 1  ;;  %v3902_v17 = vrot.slane %v11731_v59, 2 }
 0x65a   : > { %7712 = vrot.lane.b32.xlu1 %v7711_v23, %s9081_s8  ;;  %v7781_v3 = vpack.i.bf16 %v11733_v12, %v11731_v59  ;;  %6684 = vmatpush3.bf16.msra.mxu1 %v8261_v50  ;;  %v3804_v30 = vrot.slane %v3298_v22, 1  ;;  %v3905_v26 = vrot.slane %v3298_v22, 2 }
 0x65b   : > { %6685 = vmatprep.subr.bf16.mxu1 %v8262_v19 }
 0x65c   : > { %7707 = vrot.lane.b32.xlu0 %v7701_v7, %s9081_s8  ;;  %v3259_v7 = vld [vmem:[#allocation2 + $0x58] sm:$0x3] }
 0x65e   : > { %7722 = vrot.lane.b32.xlu1 %v7721_v1, %s9076_s4  ;;  %6686 = vmatpush3.bf16.msra.mxu1 %v8262_v19 }
 0x65f   : > { %6783 = vmatprep.subr.msk.bf16.mxu1 %vm4672_vm14, %v8263_v38  ;;  %v3552_v38 = vrot.slane %v11612_v36, 2 }
 0x660   : > { %7717 = vrot.lane.b32.xlu0 %v7711_v23, %s9076_s4  ;;  %v7806_v23 = vpack.i.bf16 %v3364_v25, %v3362_v56  ;;  %v3373_v25 = vrot.slane %v3262_v35, 1 }
 0x662   : > { %7732 = vrot.lane.b32.xlu1 %v7731_v9, %s9081_s8  ;;  %6688 = vmatpush3.bf16.msra.mxu1 %v4674_v60  ;;  %v11815_v60 = vpop.permute.xlu1 %7627 }
 0x663   : > { %13621 = vst [vmem:[#allocation73_spill] sm:$0xff] %v11815_v60 }
 0x664   : > { %7727 = vrot.lane.b32.xlu0 %v7721_v1, %s9081_s8  ;;  %v3365_v1 = vrot.slane %v11570_v54, 1  ;;  %v3802_v54 = vrot.slane %v11733_v12, 1 }
 0x666   : > { %7742 = vrot.lane.b32.xlu1 %v7741_v32, %s9076_s4  ;;  %v3367_v8 = vsel %vm831_vm1, %v3365_v1, %v3366_v44  ;;  %v3803_v34 = vsel %vm831_vm1, %v3801_v33, %v3802_v54  ;;  %v3805_v31 = vsel %vm831_vm1, %v3802_v54, %v3804_v30  ;;  %v3265_v1 = vld [vmem:[#allocation2 + $0x88] sm:$0x3]  ;;  %v11824_v54 = vpop.permute.xlu1 %7632  ;;  %v3556_v30 = vrot.slane %v11630_v6, 2 }
 0x667   : > { %v11785_v56 = vpack.i.bf16 %v3805_v31, %v3803_v34  ;;  %v3378_v19 = vrot.slane %v3265_v1, 1  ;;  %v3554_v61 = vrot.slane %v3265_v1, 2  ;;  %13622 = vst [vmem:[#allocation74_spill] sm:$0xff] %v11824_v54  ;;  %v3271_v34 = vld [vmem:[#allocation2 + $0xb8] sm:$0x3] }
 0x668   : > { %7737 = vrot.lane.b32.xlu0 %v7731_v9, %s9076_s4  ;;  %v3538_v9 = vsel %vm1008_vm0, %v3536_v57, %v3537_v13 }
 0x66a   : > { %7752 = vrot.lane.b32.xlu1 %v7751_v21, %s9081_s8 }
 0x66c   : > { %7747 = vrot.lane.b32.xlu0 %v7741_v32, %s9081_s8  ;;  %v3540_v32 = vsel %vm1008_vm0, %v3537_v13, %v3539_v41  ;;  %v3546_v13 = vrot.slane %v11589_v16, 2 }
 0x66e   : > { %7762 = vrot.lane.b32.xlu1 %v7761_v37, %s9076_s4 }
 0x670   : > { %7757 = vrot.lane.b32.xlu0 %v7751_v21, %s9076_s4  ;;  %v3368_v21 = vrot.slane %v3259_v7, 1 }
 0x672   : > { %7772 = vrot.lane.b32.xlu1 %v7771_v2, %s9081_s8 }
 0x674   : > { %7767 = vrot.lane.b32.xlu0 %v7761_v37, %s9081_s8  ;;  %v7816_v37 = vpack.i.bf16 %v3540_v32, %v3538_v9  ;;  %v3375_v32 = vrot.slane %v11610_v55, 1 }
 0x676   : > { %7782 = vrot.lane.b32.xlu1 %v7781_v3, %s9076_s4 }
 0x678   : > { %7777 = vrot.lane.b32.xlu0 %v7771_v2, %s9076_s4  ;;  %v3369_v2 = vsel %vm831_vm1, %v3366_v44, %v3368_v21  ;;  %s13375_s4 = scalar_lea.hbm %s13699_s6, %s6503_s5 }
 0x679   : > { %v7826_v51 = vpack.i.bf16 %v3369_v2, %v3367_v8  ;;  %v3551_v2 = vrot.slane %v11610_v55, 2  ;;  %v3268_v55 = vld [vmem:[#allocation2 + $0xa0] sm:$0x3] }
 0x67a   : > { %7792 = vrot.lane.b32.xlu1 %v7791_v58, %s9072_s26  ;;  %v3383_v33 = vrot.slane %v3268_v55, 1 }
 0x67c   : > { %7787 = vrot.lane.b32.xlu0 %v7781_v3, %s9081_s8  ;;  %v3544_v3 = vrot.slane %v3259_v7, 2  ;;  %v3547_v7 = vrot.slane %v11591_v14, 2 }
 0x67e   : > { %7797 = vrot.lane.b32.xlu1 %v7796_v45, %s9074_s25  ;;  %v3545_v27 = vsel %vm1008_vm0, %v3542_v39, %v3544_v3  ;;  %v3548_v44 = vsel %vm1008_vm0, %v3546_v13, %v3547_v7  ;;  %v3553_v3 = vsel %vm1008_vm0, %v3551_v2, %v3552_v38 }
 0x67f   : > { %v7841_v49 = vpack.i.bf16 %v3545_v27, %v3543_v10  ;;  %v11818_v10 = vpop.permute.xlu0 %7617  ;;  %v3381_v27 = vrot.slane %v11632_v4, 1 }
 0x680   : > { %7802 = vrot.lane.b32.xlu0 %v7791_v58, %s9078_s1  ;;  %v3903_v58 = vrot.slane %v11733_v12, 2  ;;  %v3371_v12 = vrot.slane %v11591_v14, 1 }
 0x682   : > { %7807 = vrot.lane.b32.xlu1 %v7806_v23, %s9078_s1  ;;  %v3904_v48 = vsel %vm1008_vm0, %v3902_v17, %v3903_v58  ;;  %v3906_v59 = vsel %vm1008_vm0, %v3903_v58, %v3905_v26  ;;  %v3374_v50 = vsel %vm831_vm1, %v3371_v12, %v3373_v25  ;;  %v3384_v58 = vsel %vm831_vm1, %v3381_v27, %v3383_v33  ;;  %v8524_v25 = vld [vmem:[#allocation2 + $0x1a0] sm:$0xff] }
 0x683   : > { %v11789_v57 = vpack.i.bf16 %v3906_v59, %v3904_v48  ;;  %v11831_v26 = vpop.permute.xlu0 %7622  ;;  %v4204_v13 = vrot.slane %v8524_v25, 2  ;;  %v3390_v33 = vrot.slane %v11666_v42, 1 }
 0x684   : > { %7812 = vrot.lane.b32.xlu0 %v7796_v45, %s9083_s3  ;;  %v3370_v45 = vrot.slane %v11589_v16, 1  ;;  %v3376_v16 = vrot.slane %v11612_v36, 1  ;;  %v3380_v36 = vrot.slane %v11630_v6, 1 }
 0x686   : > { %7817 = vrot.lane.b32.xlu1 %v7816_v37, %s9083_s3  ;;  %v3372_v41 = vsel %vm831_vm1, %v3370_v45, %v3371_v12  ;;  %v3379_v8 = vsel %vm831_vm1, %v3376_v16, %v3378_v19  ;;  %v3382_v17 = vsel %vm831_vm1, %v3380_v36, %v3381_v27  ;;  %v3385_v45 = vrot.slane %v11650_v43, 1  ;;  %v3274_v36 = vld [vmem:[#allocation2 + $0xd0] sm:$0x3] }
 0x687   : > { %v7866_v9 = vpack.i.bf16 %v3374_v50, %v3372_v41  ;;  %v7926_v48 = vpack.i.bf16 %v3384_v58, %v3382_v17  ;;  %v3386_v12 = vrot.slane %v11652_v24, 1  ;;  %v8525_v41 = vld [vmem:[#allocation2 + $0x198] sm:$0xff]  ;;  %v3393_v17 = vrot.slane %v3274_v36, 1 }
 0x688   : > { %7822 = vrot.lane.b32.xlu0 %v7806_v23, %s9082_s27  ;;  %v4203_v50 = vrot.slane %v8525_v41, 2 }
 0x68a   : > { %7827 = vrot.lane.b32.xlu1 %v7826_v51, %s9082_s27 }
 0x68c   : > { %7832 = vrot.lane.b32.xlu0 %v7816_v37, %s9084_s20 }
 0x68e   : > { %7837 = vrot.lane.b32.xlu1 %v7806_v23, %s9072_s26  ;;  %v3549_v23 = vrot.slane %v3262_v35, 2  ;;  %v3559_v35 = vrot.slane %v3268_v55, 2 }
 0x690   : > { %7842 = vrot.lane.b32.xlu0 %v7841_v49, %s9084_s20  ;;  %v3550_v21 = vsel %vm1008_vm0, %v3547_v7, %v3549_v23 }
 0x691   : > { %v7876_v14 = vpack.i.bf16 %v3550_v21, %v3548_v44  ;;  %v11853_v21 = vsel %vm1008_vm0, %v4203_v50, %v4204_v13  ;;  %v3396_v50 = vrot.slane %v11677_v0, 1 }
 0x692   : > { %7847 = vrot.lane.b32.xlu1 %v7826_v51, %s9072_s26 }
 0x694   : > { %7852 = vrot.lane.b32.xlu0 %v7816_v37, %s9074_s25  ;;  %v3377_v37 = vsel %vm831_vm1, %v3375_v32, %v3376_v16  ;;  %v8526_v16 = vld [vmem:[#allocation2 + $0x1a8] sm:$0x3] }
 0x695   : > { %v7886_v39 = vpack.i.bf16 %v3379_v8, %v3377_v37  ;;  %v4206_v19 = vrot.slane %v8526_v16, 2  ;;  %v3562_v37 = vrot.slane %v11652_v24, 2  ;;  %v3564_v8 = vrot.slane %v3271_v34, 2 }
 0x696   : > { %7857 = vrot.lane.b32.xlu1 %v7841_v49, %s9074_s25 }
 0x697   : > { %v3565_v24 = vsel %vm1008_vm0, %v3562_v37, %v3564_v8  ;;  %v3572_v8 = vrot.slane %v11677_v0, 2 }
 0x698   : > { %7862 = vrot.lane.b32.xlu0 %v7826_v51, %s9078_s1  ;;  %v3555_v51 = vsel %vm1008_vm0, %v3552_v38, %v3554_v61  ;;  %v11861_v61 = vsel %vm1008_vm0, %v4204_v13, %v4206_v19  ;;  %v3395_v13 = vrot.slane %v11675_v46, 1 }
 0x699   : > { %v7901_v22 = vpack.i.bf16 %v3555_v51, %v3553_v3 }
 0x69a   : > { %7867 = vrot.lane.b32.xlu1 %v7866_v9, %s9078_s1  ;;  %v3397_v16 = vsel %vm831_vm1, %v3395_v13, %v3396_v50 }
 0x69c   : > { %7872 = vrot.lane.b32.xlu0 %v7841_v49, %s9083_s3  ;;  %v3557_v49 = vrot.slane %v11632_v4, 2  ;;  %v3388_v4 = vrot.slane %v3271_v34, 1 }
 0x69e   : > { %7877 = vrot.lane.b32.xlu1 %v7876_v14, %s9083_s3  ;;  %v3558_v6 = vsel %vm1008_vm0, %v3556_v30, %v3557_v49  ;;  %v3560_v59 = vsel %vm1008_vm0, %v3557_v49, %v3559_v35  ;;  %v3389_v32 = vsel %vm831_vm1, %v3386_v12, %v3388_v4  ;;  %v3391_v30 = vrot.slane %v11668_v20, 1 }
 0x69f   : > { %v7936_v1 = vpack.i.bf16 %v3560_v59, %v3558_v6  ;;  %v3566_v35 = vrot.slane %v11666_v42, 2  ;;  %v3569_v6 = vrot.slane %v3274_v36, 2 }
 0x6a0   : > { %7882 = vrot.lane.b32.xlu0 %v7866_v9, %s9082_s27  ;;  %v3392_v34 = vsel %vm831_vm1, %v3390_v33, %v3391_v30 }
 0x6a2   : > { %7887 = vrot.lane.b32.xlu1 %v7886_v39, %s9082_s27 }
 0x6a4   : > { %7892 = vrot.lane.b32.xlu0 %v7876_v14, %s9084_s20 }
 0x6a6   : > { %7897 = vrot.lane.b32.xlu1 %v7866_v9, %s9072_s26  ;;  %v3387_v9 = vsel %vm831_vm1, %v3385_v45, %v3386_v12  ;;  %v3567_v45 = vrot.slane %v11668_v20, 2  ;;  %v3277_v12 = vld [vmem:[#allocation2 + $0xe8] sm:$0x3] }
 0x6a7   : > { %v7946_v38 = vpack.i.bf16 %v3389_v32, %v3387_v9  ;;  %v3398_v20 = vrot.slane %v3277_v12, 1 }
 0x6a8   : > { %7902 = vrot.lane.b32.xlu0 %v7901_v22, %s9084_s20  ;;  %v3568_v42 = vsel %vm1008_vm0, %v3566_v35, %v3567_v45  ;;  %v3570_v41 = vsel %vm1008_vm0, %v3567_v45, %v3569_v6 }
 0x6a9   : > { %v7996_v32 = vpack.i.bf16 %v3570_v41, %v3568_v42  ;;  %v3399_v19 = vsel %vm831_vm1, %v3396_v50, %v3398_v20  ;;  %v3577_v41 = vrot.slane %v11685_v47, 2 }
 0x6aa   : > { %7907 = vrot.lane.b32.xlu1 %v7886_v39, %s9072_s26 }
 0x6ac   : > { %7912 = vrot.lane.b32.xlu0 %v7876_v14, %s9074_s25  ;;  %v3561_v14 = vrot.slane %v11650_v43, 2 }
 0x6ae   : > { %7917 = vrot.lane.b32.xlu1 %v7901_v22, %s9074_s25  ;;  %v3563_v43 = vsel %vm1008_vm0, %v3561_v14, %v3562_v37  ;;  %v3571_v37 = vrot.slane %v11675_v46, 2 }
 0x6af   : > { %v7961_v55 = vpack.i.bf16 %v3565_v24, %v3563_v43  ;;  %v8006_v24 = vpack.i.bf16 %v3399_v19, %v3397_v16  ;;  %v3283_v16 = vld [vmem:[#allocation2 + $0x118] sm:$0x3] }
 0x6b0   : > { %7922 = vrot.lane.b32.xlu0 %v7886_v39, %s9078_s1  ;;  %v11835_v31 = vpop.permute.xlu1 %7642  ;;  %v3573_v36 = vsel %vm1008_vm0, %v3571_v37, %v3572_v8  ;;  %v3405_v37 = vrot.slane %v11691_v63, 1  ;;  %v3587_v39 = vrot.slane %v11701_v15, 2 }
 0x6b2   : > { %v11841_v7 = vpop.permute.xlu0 %7637  ;;  %7927 = vrot.lane.b32.xlu1 %v7926_v48, %s9078_s1 }
 0x6b4   : > { %7932 = vrot.lane.b32.xlu0 %v7901_v22, %s9083_s3  ;;  %v11845_v23 = vpop.permute.xlu1 %7652 }
 0x6b6   : > { %v11849_v44 = vpop.permute.xlu0 %7647  ;;  %7937 = vrot.lane.b32.xlu1 %v7936_v1, %s9083_s3 }
 0x6b8   : > { %7942 = vrot.lane.b32.xlu0 %v7926_v48, %s9082_s27  ;;  %v11858_v2 = vpop.permute.xlu1 %7662 }
 0x6ba   : > { %v11865_v3 = vpop.permute.xlu0 %7657  ;;  %7947 = vrot.lane.b32.xlu1 %v7946_v38, %s9082_s27 }
 0x6bc   : > { %7952 = vrot.lane.b32.xlu0 %v7936_v1, %s9084_s20  ;;  %v11871_v51 = vpop.permute.xlu1 %7672 }
 0x6be   : > { %v11873_v22 = vpop.permute.xlu0 %7667  ;;  %7957 = vrot.lane.b32.xlu1 %v7926_v48, %s9072_s26  ;;  %v3394_v48 = vsel %vm831_vm1, %v3391_v30, %v3393_v17  ;;  %v3280_v17 = vld [vmem:[#allocation2 + $0x100] sm:$0x3] }
 0x6bf   : > { %v7986_v25 = vpack.i.bf16 %v3394_v48, %v3392_v34  ;;  %v3400_v34 = vrot.slane %v11683_v62, 1  ;;  %v3401_v48 = vrot.slane %v11685_v47, 1  ;;  %v3403_v45 = vrot.slane %v3280_v17, 1 }
 0x6c0   : > { %7962 = vrot.lane.b32.xlu0 %v7961_v55, %s9084_s20  ;;  %v11877_v27 = vpop.permute.xlu1 %7682  ;;  %v3579_v50 = vrot.slane %v3280_v17, 2  ;;  %v3408_v47 = vrot.slane %v3283_v16, 1  ;;  %v7619_v17 = vunpack.i.l.bf16 %v11818_v10 }
 0x6c1   : > { %v3402_v13 = vsel %vm831_vm1, %v3400_v34, %v3401_v48  ;;  %v3404_v42 = vsel %vm831_vm1, %v3401_v48, %v3403_v45 }
 0x6c2   : > { %v11881_v58 = vpop.permute.xlu0 %7677  ;;  %7967 = vrot.lane.b32.xlu1 %v7946_v38, %s9072_s26 }
 0x6c4   : > { %7972 = vrot.lane.b32.xlu0 %v7936_v1, %s9074_s25  ;;  %v11885_v49 = vpop.permute.xlu1 %7692 }
 0x6c6   : > { %v11891_v59 = vpop.permute.xlu0 %7687  ;;  %7977 = vrot.lane.b32.xlu1 %v7961_v55, %s9074_s25 }
 0x6c8   : > { %7982 = vrot.lane.b32.xlu0 %v7946_v38, %s9078_s1  ;;  %v11895_v4 = vpop.permute.xlu1 %7702  ;;  %v3574_v38 = vrot.slane %v3277_v12, 2 }
 0x6ca   : > { %v11901_v1 = vpop.permute.xlu0 %7697  ;;  %7987 = vrot.lane.b32.xlu1 %v7986_v25, %s9078_s1  ;;  %v3575_v33 = vsel %vm1008_vm0, %v3572_v8, %v3574_v38  ;;  %v3580_v8 = vsel %vm1008_vm0, %v3577_v41, %v3579_v50  ;;  %v3406_v38 = vrot.slane %v11693_v28, 1  ;;  %v3286_v50 = vld [vmem:[#allocation2 + $0x130] sm:$0x3] }
 0x6cb   : > { %v8021_v0 = vpack.i.bf16 %v3575_v33, %v3573_v36  ;;  %v3589_v54 = vrot.slane %v3286_v50, 2 }
 0x6cc   : > { %7992 = vrot.lane.b32.xlu0 %v7961_v55, %s9083_s3  ;;  %v11905_v9 = vpop.permute.xlu1 %7712  ;;  %v3407_v34 = vsel %vm831_vm1, %v3405_v37, %v3406_v38  ;;  %v3409_v48 = vsel %vm831_vm1, %v3406_v38, %v3408_v47  ;;  %v7620_v37 = vunpack.i.h.bf16 %v11818_v10  ;;  %v7625_v38 = vunpack.i.h.bf16 %v11831_v26 }
 0x6cd   : > { %v7624_v47 = vunpack.i.l.bf16 %v11831_v26  ;;  %v3410_v10 = vrot.slane %v11699_v53, 1  ;;  %v3586_v26 = vrot.slane %v11699_v53, 2 }
 0x6ce   : > { %v11909_v14 = vpop.permute.xlu0 %7707  ;;  %7997 = vrot.lane.b32.xlu1 %v7996_v32, %s9083_s3 }
 0x6d0   : > { %8002 = vrot.lane.b32.xlu0 %v7986_v25, %s9082_s27  ;;  %v11915_v43 = vpop.permute.xlu1 %7722 }
 0x6d2   : > { %v11917_v55 = vpop.permute.xlu0 %7717  ;;  %8007 = vrot.lane.b32.xlu1 %v8006_v24, %s9082_s27 }
 0x6d4   : > { %8012 = vrot.lane.b32.xlu0 %v7996_v32, %s9084_s20  ;;  %v11923_v30 = vpop.permute.xlu1 %7732 }
 0x6d6   : > { %v11925_v46 = vpop.permute.xlu0 %7727  ;;  %8017 = vrot.lane.b32.xlu1 %v7986_v25, %s9072_s26  ;;  %v3576_v25 = vrot.slane %v11683_v62, 2 }
 0x6d8   : > { %8022 = vrot.lane.b32.xlu0 %v8021_v0, %s9084_s20  ;;  %v11929_v35 = vpop.permute.xlu1 %7742  ;;  %v3578_v62 = vsel %vm1008_vm0, %v3576_v25, %v3577_v41  ;;  %v3581_v25 = vrot.slane %v11691_v63, 2  ;;  %v11970_v41 = vpack.i.bf16 %v3409_v48, %v3407_v34  ;;  %v3411_v48 = vrot.slane %v11701_v15, 1 }
 0x6da   : > { %v11933_v6 = vpop.permute.xlu0 %7737  ;;  %8027 = vrot.lane.b32.xlu1 %v8006_v24, %s9072_s26  ;;  %v3412_v15 = vsel %vm831_vm1, %v3410_v10, %v3411_v48  ;;  %v3592_v10 = vrot.slane %v11709_v29, 2 }
 0x6dc   : > { %8032 = vrot.lane.b32.xlu0 %v7996_v32, %s9074_s25  ;;  %v11937_v12 = vpop.permute.xlu1 %7752  ;;  %v8046_v32 = vpack.i.bf16 %v3404_v42, %v3402_v13  ;;  %v3582_v13 = vrot.slane %v11693_v28, 2  ;;  %v3584_v42 = vrot.slane %v3283_v16, 2  ;;  %v11981_v16 = vld [vmem:[#allocation2 + $0x148] sm:$0x3] }
 0x6dd   : > { %13623 = vst [vmem:[#allocation75_spill] sm:$0xff] %v11937_v12 }
 0x6de   : > { %v11943_v20 = vpop.permute.xlu0 %7747  ;;  %8037 = vrot.lane.b32.xlu1 %v8021_v0, %s9074_s25  ;;  %v3583_v28 = vsel %vm1008_vm0, %v3581_v25, %v3582_v13  ;;  %v3585_v34 = vsel %vm1008_vm0, %v3582_v13, %v3584_v42  ;;  %v3416_v13 = vrot.slane %v11709_v29, 1  ;;  %v3418_v42 = vrot.slane %v11981_v16, 1 }
 0x6e0   : > { %8042 = vrot.lane.b32.xlu0 %v8006_v24, %s9078_s1  ;;  %v11947_v19 = vpop.permute.xlu1 %7762  ;;  %v8056_v24 = vpack.i.bf16 %v3580_v8, %v3578_v62  ;;  %v8527_v62 = vld [vmem:[#allocation2] sm:$0xff] }
 0x6e1   : > { %13624 = vst [vmem:[#allocation76_spill] sm:$0xff] %v11947_v19  ;;  %v4304_v8 = vsel %vm1820_vm4, %v8527_v62, %v7619_v17  ;;  %v3413_v17 = vrot.slane %v3286_v50, 1 }
 0x6e2   : > { %v11953_v36 = vpop.permute.xlu0 %7757  ;;  %8047 = vrot.lane.b32.xlu1 %v8046_v32, %s9078_s1  ;;  %v4336_v53 = vsel %vm1886_vm6, %v4304_v8, %v7624_v47 }
 0x6e3   : > { %13625 = vst [vmem:[#allocation77_spill] sm:$0xff] %v11953_v36  ;;  %v3414_v50 = vsel %vm831_vm1, %v3411_v48, %v3413_v17  ;;  %v7640_v17 = vunpack.i.h.bf16 %v11841_v7 }
 0x6e4   : > { %8052 = vrot.lane.b32.xlu0 %v8021_v0, %s9083_s3  ;;  %v11957_v33 = vpop.permute.xlu1 %7772  ;;  %v12010_v47 = vpack.i.bf16 %v3414_v50, %v3412_v15  ;;  %v7644_v50 = vunpack.i.l.bf16 %v11835_v31 }
 0x6e5   : > { %13626 = vst [vmem:[#allocation78_spill] sm:$0xff] %v11957_v33  ;;  %v11995_v33 = vpack.i.bf16 %v3585_v34, %v3583_v28  ;;  %v3591_v34 = vrot.slane %v11707_v5, 2 }
 0x6e6   : > { %v11962_v45 = vpop.permute.xlu0 %7767  ;;  %8057 = vrot.lane.b32.xlu1 %v8056_v24, %s9083_s3 }
 0x6e7   : > { %13627 = vst [vmem:[#allocation79_spill] sm:$0xff] %v11962_v45  ;;  %v3588_v45 = vsel %vm1008_vm0, %v3586_v26, %v3587_v39  ;;  %v7639_v26 = vunpack.i.l.bf16 %v11841_v7  ;;  %v7645_v7 = vunpack.i.h.bf16 %v11835_v31 }
 0x6e8   : > { %8062 = vrot.lane.b32.xlu0 %v8046_v32, %s9082_s27  ;;  %v11968_v0 = vpop.permute.xlu1 %7782 }
 0x6e9   : > { %13628 = vst [vmem:[#allocation80_spill] sm:$0xff] %v11968_v0  ;;  %v3415_v0 = vrot.slane %v11707_v5, 1  ;;  %v3594_v5 = vrot.slane %v11981_v16, 2 }
 0x6ea   : > { %v11976_v63 = vpop.permute.xlu0 %7777  ;;  %8067 = vrot.lane.b32.xlu1 %v11970_v41, %s9082_s27 }
 0x6eb   : > { %13629 = vst [vmem:[#allocation81_spill] sm:$0xff] %v11976_v63  ;;  %v8528_v63 = vld [vmem:[#allocation2 + $0x8] sm:$0xff]  ;;  %v3417_v28 = vsel %vm831_vm1, %v3415_v0, %v3416_v13 }
 0x6ec   : > { %8072 = vrot.lane.b32.xlu0 %v8056_v24, %s9084_s20  ;;  %v7793_v62 = vpop.permute.xlu1 %7792  ;;  %v4305_v25 = vsel %vm1820_vm4, %v8528_v63, %v7620_v37 }
 0x6ed   : > { %v4337_v37 = vsel %vm1886_vm6, %v4305_v25, %v7625_v38  ;;  %v7795_v48 = vunpack.i.h.bf16 %v7793_v62 }
 0x6ee   : > { %v11993_v60 = vpop.permute.xlu0 %7787  ;;  %8077 = vrot.lane.b32.xlu1 %v8046_v32, %s9072_s26  ;;  %v3419_v32 = vsel %vm831_vm1, %v3416_v13, %v3418_v42 }
 0x6ef   : > { %13630 = vst [vmem:[#allocation82_spill] sm:$0xff] %v11993_v60  ;;  %v3590_v60 = vsel %vm1008_vm0, %v3587_v39, %v3589_v54  ;;  %v7794_v54 = vunpack.i.l.bf16 %v7793_v62  ;;  %v12017_v0 = vpack.i.bf16 %v3419_v32, %v3417_v28  ;;  %v12025_v62 = vsel %vm1008_vm0, %v3591_v34, %v3592_v10  ;;  %v8530_v32 = vld [vmem:[#allocation2 + $0x18] sm:$0xff] }
 0x6f0   : > { %8082 = vrot.lane.b32.xlu0 %v11995_v33, %s9084_s20  ;;  %v7798_v63 = vpop.permute.xlu1 %7797  ;;  %v12012_v38 = vpack.i.bf16 %v3590_v60, %v3588_v45  ;;  %v4368_v34 = vsel %vm1952_vm8, %v4336_v53, %v7639_v26  ;;  %v7649_v26 = vunpack.i.l.bf16 %v11849_v44 }
 0x6f1   : > { %v7800_v25 = vunpack.i.h.bf16 %v7798_v63  ;;  %v7799_v13 = vunpack.i.l.bf16 %v7798_v63  ;;  %v8529_v63 = vld [vmem:[#allocation2 + $0x20] sm:$0xff] }
 0x6f2   : > { %v7803_v8 = vpop.permute.xlu0 %7802  ;;  %8087 = vrot.lane.b32.xlu1 %v11970_v41, %s9072_s26  ;;  %v4307_v28 = vsel %vm1820_vm4, %v8529_v63, %v7795_v48 }
 0x6f3   : > { %v7805_v60 = vunpack.i.h.bf16 %v7803_v8  ;;  %v7804_v45 = vunpack.i.l.bf16 %v7803_v8  ;;  %v4306_v8 = vsel %vm1820_vm4, %v8530_v32, %v7794_v54  ;;  %v4339_v19 = vsel %vm1886_vm6, %v4307_v28, %v7800_v25 }
 0x6f4   : > { %8092 = vrot.lane.b32.xlu0 %v8056_v24, %s9074_s25  ;;  %v7808_v39 = vpop.permute.xlu1 %7807  ;;  %v4338_v15 = vsel %vm1886_vm6, %v4306_v8, %v7799_v13 }
 0x6f5   : > { %v4400_v36 = vsel %vm2018_vm10, %v4368_v34, %v7804_v45  ;;  %v7810_v48 = vunpack.i.h.bf16 %v7808_v39  ;;  %v7809_v63 = vunpack.i.l.bf16 %v7808_v39  ;;  %v4371_v45 = vsel %vm1952_vm8, %v4339_v19, %v7645_v7 }
 0x6f6   : > { %v7813_v42 = vpop.permute.xlu0 %7812  ;;  %8097 = vrot.lane.b32.xlu1 %v11995_v33, %s9074_s25  ;;  %v7654_v34 = vunpack.i.l.bf16 %v11845_v23 }
 0x6f7   : > { %v7815_v29 = vunpack.i.h.bf16 %v7813_v42  ;;  %v7814_v24 = vunpack.i.l.bf16 %v7813_v42  ;;  %v4369_v42 = vsel %vm1952_vm8, %v4337_v37, %v7640_v17  ;;  %v7650_v17 = vunpack.i.h.bf16 %v11849_v44 }
 0x6f8   : > { %8102 = vrot.lane.b32.xlu0 %v11970_v41, %s9078_s1  ;;  %v7818_v16 = vpop.permute.xlu1 %7817  ;;  %v4401_v31 = vsel %vm2018_vm10, %v4369_v42, %v7805_v60  ;;  %v4370_v60 = vsel %vm1952_vm8, %v4338_v15, %v7644_v50  ;;  %v3292_v50 = vld [vmem:[#allocation2 + $0x160] sm:$0x3]  ;;  %v7655_v42 = vunpack.i.h.bf16 %v11845_v23 }
 0x6f9   : > { %v4433_v41 = vsel %vm4432_vm15, %v4400_v36, %v7814_v24  ;;  %v4434_v37 = vsel %vm4432_vm15, %v4401_v31, %v7815_v29  ;;  %v7820_v54 = vunpack.i.h.bf16 %v7818_v16  ;;  %v7819_v53 = vunpack.i.l.bf16 %v7818_v16 }
 0x6fa   : > { %v7823_v12 = vpop.permute.xlu0 %7822  ;;  %8107 = vrot.lane.b32.xlu1 %v12010_v47, %s9078_s1  ;;  %v3595_v36 = vsel %vm1008_vm0, %v3592_v10, %v3594_v5  ;;  %v4402_v29 = vsel %vm2018_vm10, %v4370_v60, %v7809_v63  ;;  %v4403_v24 = vsel %vm2018_vm10, %v4371_v45, %v7810_v48  ;;  %v4466_v28 = vsel %vm4465_vm5, %v4433_v41, %v7649_v26 }
 0x6fb   : > { %v7825_v25 = vunpack.i.h.bf16 %v7823_v12  ;;  %v7824_v13 = vunpack.i.l.bf16 %v7823_v12  ;;  %v4467_v44 = vsel %vm4465_vm5, %v4434_v37, %v7650_v17  ;;  %v4436_v15 = vsel %vm4432_vm15, %v4403_v24, %v7820_v54 }
 0x6fc   : > { %8112 = vrot.lane.b32.xlu0 %v11995_v33, %s9083_s3  ;;  %v7828_v39 = vpop.permute.xlu1 %7827  ;;  %v4435_v33 = vsel %vm4432_vm15, %v4402_v29, %v7819_v53  ;;  %v3421_v37 = vrot.slane %v11717_v40, 1  ;;  %v3423_v54 = vrot.slane %v3292_v50, 1  ;;  %v3596_v53 = vrot.slane %v11715_v52, 2 }
 0x6fd   : > { %v4499_v10 = vsel %vm4498_vm7, %v4466_v28, %v7824_v13  ;;  %v4500_v5 = vsel %vm4498_vm7, %v4467_v44, %v7825_v25  ;;  %v7830_v32 = vunpack.i.h.bf16 %v7828_v39  ;;  %v7829_v8 = vunpack.i.l.bf16 %v7828_v39  ;;  %v12081_v44 = vld [vmem:[#allocation2 + $0x178] sm:$0x3] }
 0x6fe   : > { %v7833_v12 = vpop.permute.xlu0 %7832  ;;  %8117 = vrot.lane.b32.xlu1 %v12012_v38, %s9083_s3  ;;  %v4468_v17 = vsel %vm4465_vm5, %v4435_v33, %v7654_v34  ;;  %v4469_v26 = vsel %vm4465_vm5, %v4436_v15, %v7655_v42  ;;  %v3597_v45 = vrot.slane %v11717_v40, 2  ;;  %v3599_v29 = vrot.slane %v3292_v50, 2 }
 0x6ff   : > { %v7835_v19 = vunpack.i.h.bf16 %v7833_v12  ;;  %v7834_v7 = vunpack.i.l.bf16 %v7833_v12  ;;  %v4501_v13 = vsel %vm4498_vm7, %v4468_v17, %v7829_v8  ;;  %v4502_v39 = vsel %vm4498_vm7, %v4469_v26, %v7830_v32  ;;  %v8531_v26 = vld [vmem:[#allocation2 + $0x38] sm:$0xff] }
 0x700   : > { %8122 = vrot.lane.b32.xlu0 %v12010_v47, %s9082_s27  ;;  %v7838_v16 = vpop.permute.xlu1 %7837  ;;  %v12084_v15 = vpack.i.bf16 %v3595_v36, %v12025_v62  ;;  %v3424_v40 = vsel %vm831_vm1, %v3421_v37, %v3423_v54  ;;  %v3425_v50 = vrot.slane %v11723_v11, 1  ;;  %v3598_v36 = vsel %vm1008_vm0, %v3596_v53, %v3597_v45 }
 0x701   : > { %v4532_v31 = vsel %vm4531_vm9, %v4499_v10, %v7834_v7  ;;  %v4533_v48 = vsel %vm4531_vm9, %v4500_v5, %v7835_v19  ;;  %v13631_v19 = vrot.slane %v11715_v52, 1  ;;  %v3426_v10 = vrot.slane %v11725_v18, 1 }
 0x702   : > { %v4564_v63 = vpack.c.bf16 %v4533_v48, %v4532_v31  ;;  %v7843_v41 = vpop.permute.xlu0 %7842  ;;  %8127 = vrot.lane.b32.xlu1 %v12017_v0, %s9082_s27  ;;  %v3428_v52 = vrot.slane %v12081_v44, 1  ;;  %v7840_v5 = vunpack.i.h.bf16 %v7838_v16  ;;  %v7839_v32 = vunpack.i.l.bf16 %v7838_v16 }
 0x703   : > { %v7845_v25 = vunpack.i.h.bf16 %v7843_v41  ;;  %v7844_v23 = vunpack.i.l.bf16 %v7843_v41  ;;  %v3422_v7 = vsel %vm831_vm1, %v13631_v19, %v3421_v37  ;;  %v3601_v41 = vrot.slane %v11723_v11, 2 }
 0x704   : > { %8132 = vrot.lane.b32.xlu0 %v12012_v38, %s9084_s20  ;;  %6689 = vmatprep.mubr.msk.bf16.mxu1 %vm4623_vm11, %v4564_v63  ;;  %v7848_v60 = vpop.permute.xlu1 %7847  ;;  %v12102_v31 = vpack.i.bf16 %v3424_v40, %v3422_v7  ;;  %v3427_v63 = vsel %vm831_vm1, %v3425_v50, %v3426_v10  ;;  %v3429_v53 = vsel %vm831_vm1, %v3426_v10, %v3428_v52  ;;  %v3602_v17 = vrot.slane %v11725_v18, 2  ;;  %v8533_v10 = vld [vmem:[#allocation2 + $0x50] sm:$0xff] }
 0x705   : > { %v4534_v24 = vsel %vm4531_vm9, %v4501_v13, %v7844_v23  ;;  %v4535_v28 = vsel %vm4531_vm9, %v4502_v39, %v7845_v25  ;;  %v7850_v37 = vunpack.i.h.bf16 %v7848_v60  ;;  %v7849_v54 = vunpack.i.l.bf16 %v7848_v60  ;;  %v8532_v23 = vld [vmem:[#allocation2 + $0x30] sm:$0xff] }
 0x706   : > { %v4565_v12 = vpack.c.bf16 %v4535_v28, %v4534_v24  ;;  %v7853_v33 = vpop.permute.xlu0 %7852  ;;  %8137 = vrot.lane.b32.xlu1 %v12010_v47, %s9072_s26  ;;  %v3600_v47 = vsel %vm1008_vm0, %v3597_v45, %v3599_v29  ;;  %v4309_v25 = vsel %vm1820_vm4, %v8531_v26, %v7840_v5  ;;  %v4308_v13 = vsel %vm1820_vm4, %v8532_v23, %v7839_v32 }
 0x707   : > { %v7855_v8 = vunpack.i.h.bf16 %v7853_v33  ;;  %v7854_v42 = vunpack.i.l.bf16 %v7853_v33  ;;  %v12104_v48 = vpack.i.bf16 %v3600_v47, %v3598_v36  ;;  %v7659_v33 = vunpack.i.l.bf16 %v11865_v3  ;;  %v8534_v36 = vld [vmem:[#allocation2 + $0x48] sm:$0xff] }
 0x708   : > { %8142 = vrot.lane.b32.xlu0 %v12084_v15, %s9084_s20  ;;  %6690 = vmatmul.mubr.msk.bf16.vlgmr.msra.gmra.mrb[20].mxu1 %vm4623_vm11, %v4565_v12  ;;  %v7858_v62 = vpop.permute.xlu1 %7857  ;;  %v7660_v12 = vunpack.i.h.bf16 %v11865_v3  ;;  %v7665_v40 = vunpack.i.h.bf16 %v11858_v2  ;;  %v7664_v50 = vunpack.i.l.bf16 %v11858_v2  ;;  %v4310_v47 = vsel %vm1820_vm4, %v8534_v36, %v7849_v54 }
 0x709   : > { %v7860_v39 = vunpack.i.h.bf16 %v7858_v62  ;;  %v7859_v45 = vunpack.i.l.bf16 %v7858_v62  ;;  %v4340_v29 = vsel %vm1886_vm6, %v4308_v13, %v7854_v42  ;;  %v4341_v60 = vsel %vm1886_vm6, %v4309_v25, %v7855_v8 }
 0x70a   : > { %v7863_v34 = vpop.permute.xlu0 %7862  ;;  %8147 = vrot.lane.b32.xlu1 %v12017_v0, %s9072_s26  ;;  %v4311_v62 = vsel %vm1820_vm4, %v8533_v10, %v7850_v37  ;;  %v4372_v5 = vsel %vm1952_vm8, %v4340_v29, %v7659_v33  ;;  %v4373_v3 = vsel %vm1952_vm8, %v4341_v60, %v7660_v12  ;;  %v7670_v13 = vunpack.i.h.bf16 %v11873_v22 }
 0x70b   : > { %v7865_v24 = vunpack.i.h.bf16 %v7863_v34  ;;  %v7864_v28 = vunpack.i.l.bf16 %v7863_v34  ;;  %v4342_v32 = vsel %vm1886_vm6, %v4310_v47, %v7859_v45  ;;  %v4343_v8 = vsel %vm1886_vm6, %v4311_v62, %v7860_v39 }
 0x70c   : > { %8152 = vrot.lane.b32.xlu0 %v12012_v38, %s9074_s25  ;;  %v7868_v16 = vpop.permute.xlu1 %7867  ;;  %v7669_v39 = vunpack.i.l.bf16 %v11873_v22  ;;  %v4374_v60 = vsel %vm1952_vm8, %v4342_v32, %v7664_v50  ;;  %v7675_v47 = vunpack.i.h.bf16 %v11871_v51 }
 0x70d   : > { %v4404_v2 = vsel %vm2018_vm10, %v4372_v5, %v7864_v28  ;;  %v4405_v42 = vsel %vm2018_vm10, %v4373_v3, %v7865_v24  ;;  %v7870_v34 = vunpack.i.h.bf16 %v7868_v16  ;;  %v7869_v37 = vunpack.i.l.bf16 %v7868_v16 }
 0x70e   : > { %v7873_v38 = vpop.permute.xlu0 %7872  ;;  %8157 = vrot.lane.b32.xlu1 %v12084_v15, %s9074_s25  ;;  %v4375_v24 = vsel %vm1952_vm8, %v4343_v8, %v7665_v40  ;;  %v12142_v28 = vpack.i.bf16 %v3429_v53, %v3427_v63 }
 0x70f   : > { %v7875_v19 = vunpack.i.h.bf16 %v7873_v38  ;;  %v7874_v7 = vunpack.i.l.bf16 %v7873_v38  ;;  %v3604_v38 = vrot.slane %v12081_v44, 2  ;;  %v4406_v12 = vsel %vm2018_vm10, %v4374_v60, %v7869_v37 }
 0x710   : > { %8162 = vrot.lane.b32.xlu0 %v12017_v0, %s9078_s1  ;;  %v7878_v52 = vpop.permute.xlu1 %7877  ;;  %v4407_v33 = vsel %vm2018_vm10, %v4375_v24, %v7870_v34 }
 0x711   : > { %v4437_v0 = vsel %vm4432_vm15, %v4404_v2, %v7874_v7  ;;  %v4438_v54 = vsel %vm4432_vm15, %v4405_v42, %v7875_v19  ;;  %v7880_v25 = vunpack.i.h.bf16 %v7878_v52  ;;  %v7879_v23 = vunpack.i.l.bf16 %v7878_v52 }
 0x712   : > { %v7883_v26 = vpop.permute.xlu0 %7882  ;;  %8167 = vrot.lane.b32.xlu1 %v12102_v31, %s9078_s1  ;;  %v4470_v22 = vsel %vm4465_vm5, %v4437_v0, %v7669_v39  ;;  %v4471_v19 = vsel %vm4465_vm5, %v4438_v54, %v7670_v13  ;;  %v7674_v52 = vunpack.i.l.bf16 %v11871_v51  ;;  %v3603_v2 = vsel %vm1008_vm0, %v3601_v41, %v3602_v17 }
 0x713   : > { %v7885_v45 = vunpack.i.h.bf16 %v7883_v26  ;;  %v7884_v29 = vunpack.i.l.bf16 %v7883_v26  ;;  %v4440_v40 = vsel %vm4432_vm15, %v4407_v33, %v7880_v25  ;;  %v3605_v42 = vsel %vm1008_vm0, %v3602_v17, %v3604_v38 }
 0x714   : > { %8172 = vrot.lane.b32.xlu0 %v12084_v15, %s9083_s3  ;;  %v7888_v16 = vpop.permute.xlu1 %7887  ;;  %v4439_v15 = vsel %vm4432_vm15, %v4406_v12, %v7879_v23  ;;  %v4473_v34 = vsel %vm4465_vm5, %v4440_v40, %v7675_v47  ;;  %v8201_v23 = vpack.i.bf16 %v3605_v42, %v3603_v2  ;;  %v7685_v47 = vunpack.i.h.bf16 %v11877_v27 }
 0x715   : > { %v4503_v44 = vsel %vm4498_vm7, %v4470_v22, %v7884_v29  ;;  %v4504_v50 = vsel %vm4498_vm7, %v4471_v19, %v7885_v45  ;;  %v7890_v10 = vunpack.i.h.bf16 %v7888_v16  ;;  %v7889_v62 = vunpack.i.l.bf16 %v7888_v16  ;;  %v8536_v22 = vld [vmem:[#allocation2 + $0x60] sm:$0xff] }
 0x716   : > { %v7893_v7 = vpop.permute.xlu0 %7892  ;;  %8177 = vrot.lane.b32.xlu1 %v12104_v48, %s9083_s3  ;;  %v4472_v51 = vsel %vm4465_vm5, %v4439_v15, %v7674_v52  ;;  %v7684_v52 = vunpack.i.l.bf16 %v11877_v27  ;;  %vm6077_vm0 = vcmask 60416  }
 0x717   : > { %v7895_v63 = vunpack.i.h.bf16 %v7893_v7  ;;  %v7894_v53 = vunpack.i.l.bf16 %v7893_v7  ;;  %v4505_v0 = vsel %vm4498_vm7, %v4472_v51, %v7889_v62  ;;  %v4506_v54 = vsel %vm4498_vm7, %v4473_v34, %v7890_v10 }
 0x718   : > { %8182 = vrot.lane.b32.xlu0 %v12102_v31, %s9082_s27  ;;  %v7898_v36 = vpop.permute.xlu1 %7897  ;;  %v7679_v10 = vunpack.i.l.bf16 %v11881_v58 }
 0x719   : > { %v4536_v5 = vsel %vm4531_vm9, %v4503_v44, %v7894_v53  ;;  %v4537_v3 = vsel %vm4531_vm9, %v4504_v50, %v7895_v63  ;;  %v7900_v39 = vunpack.i.h.bf16 %v7898_v36  ;;  %v7899_v45 = vunpack.i.l.bf16 %v7898_v36 }
 0x71a   : > { %v4566_v32 = vpack.c.bf16 %v4537_v3, %v4536_v5  ;;  %v7903_v8 = vpop.permute.xlu0 %7902  ;;  %8187 = vrot.lane.b32.xlu1 %v12142_v28, %s9082_s27  ;;  %v8537_v5 = vld [vmem:[#allocation2 + $0x80] sm:$0xff] }
 0x71b   : > { %v7905_v37 = vunpack.i.h.bf16 %v7903_v8  ;;  %v7904_v26 = vunpack.i.l.bf16 %v7903_v8  ;;  %v4312_v19 = vsel %vm1820_vm4, %v8536_v22, %v7899_v45 }
 0x71c   : > { %8192 = vrot.lane.b32.xlu0 %v12104_v48, %s9084_s20  ;;  %6693 = vmatprep.mubr.msk.bf16.mxu1 %vm4623_vm11, %v4566_v32  ;;  %v7908_v11 = vpop.permute.xlu1 %7907  ;;  %v8538_v32 = vld [vmem:[#allocation2 + $0x78] sm:$0xff] }
 0x71d   : > { %v4538_v18 = vsel %vm4531_vm9, %v4505_v0, %v7904_v26  ;;  %v4539_v41 = vsel %vm4531_vm9, %v4506_v54, %v7905_v37  ;;  %v7910_v24 = vunpack.i.h.bf16 %v7908_v11  ;;  %v7909_v38 = vunpack.i.l.bf16 %v7908_v11 }
 0x71e   : > { %v4567_v17 = vpack.c.bf16 %v4539_v41, %v4538_v18  ;;  %v7913_v25 = vpop.permute.xlu0 %7912  ;;  %8197 = vrot.lane.b32.xlu1 %v12102_v31, %s9072_s26  ;;  %v8535_v31 = vld [vmem:[#allocation2 + $0x68] sm:$0xff] }
 0x71f   : > { %v7915_v29 = vunpack.i.h.bf16 %v7913_v25  ;;  %v7914_v16 = vunpack.i.l.bf16 %v7913_v25  ;;  %v4313_v33 = vsel %vm1820_vm4, %v8535_v31, %v7900_v39  ;;  %v4315_v3 = vsel %vm1820_vm4, %v8537_v5, %v7910_v24 }
 0x720   : > { %8202 = vrot.lane.b32.xlu0 %v8201_v23, %s9084_s20  ;;  %6694 = vmatmul.mubr.msk.bf16.gmra.mrb[24].mxu1 %vm4623_vm11, %v4567_v17  ;;  %v7918_v13 = vpop.permute.xlu1 %7917  ;;  %v4314_v8 = vsel %vm1820_vm4, %v8538_v32, %v7909_v38  ;;  %v7690_v17 = vunpack.i.h.bf16 %v11891_v59  ;;  %v7689_v25 = vunpack.i.l.bf16 %v11891_v59 }
 0x721   : > { %v7920_v7 = vunpack.i.h.bf16 %v7918_v13  ;;  %v7919_v15 = vunpack.i.l.bf16 %v7918_v13  ;;  %v4344_v40 = vsel %vm1886_vm6, %v4312_v19, %v7914_v16  ;;  %v4345_v63 = vsel %vm1886_vm6, %v4313_v33, %v7915_v29 }
 0x722   : > { %v7923_v60 = vpop.permute.xlu0 %7922  ;;  %8207 = vrot.lane.b32.xlu1 %v12142_v28, %s9072_s26  ;;  %v4376_v42 = vsel %vm1952_vm8, %v4344_v40, %v7679_v10 }
 0x723   : > { %v7925_v53 = vunpack.i.h.bf16 %v7923_v60  ;;  %v7924_v44 = vunpack.i.l.bf16 %v7923_v60  ;;  %v4346_v51 = vsel %vm1886_vm6, %v4314_v8, %v7919_v15  ;;  %v4347_v34 = vsel %vm1886_vm6, %v4315_v3, %v7920_v7 }
 0x724   : > { %8212 = vrot.lane.b32.xlu0 %v12104_v48, %s9074_s25  ;;  %v7928_v12 = vpop.permute.xlu1 %7927  ;;  %v7680_v48 = vunpack.i.h.bf16 %v11881_v58  ;;  %v4378_v29 = vsel %vm1952_vm8, %v4346_v51, %v7684_v52  ;;  %v4379_v16 = vsel %vm1952_vm8, %v4347_v34, %v7685_v47 }
 0x725   : > { %v4408_v27 = vsel %vm2018_vm10, %v4376_v42, %v7924_v44  ;;  %v7930_v26 = vunpack.i.h.bf16 %v7928_v12  ;;  %v7929_v0 = vunpack.i.l.bf16 %v7928_v12  ;;  %v7694_v44 = vunpack.i.l.bf16 %v11885_v49 }
 0x726   : > { %v7933_v50 = vpop.permute.xlu0 %7932  ;;  %8217 = vrot.lane.b32.xlu1 %v8201_v23, %s9074_s25  ;;  %v4377_v58 = vsel %vm1952_vm8, %v4345_v63, %v7680_v48 }
 0x727   : > { %v7935_v62 = vunpack.i.h.bf16 %v7933_v50  ;;  %v7934_v36 = vunpack.i.l.bf16 %v7933_v50  ;;  %v4409_v37 = vsel %vm2018_vm10, %v4377_v58, %v7925_v53  ;;  %v4410_v60 = vsel %vm2018_vm10, %v4378_v29, %v7929_v0 }
 0x728   : > { %8222 = vrot.lane.b32.xlu0 %v12142_v28, %s9078_s1  ;;  %v7938_v2 = vpop.permute.xlu1 %7937  ;;  %v4411_v24 = vsel %vm2018_vm10, %v4379_v16, %v7930_v26  ;;  %v7695_v53 = vunpack.i.h.bf16 %v11885_v49  ;;  %v7700_v16 = vunpack.i.h.bf16 %v11901_v1 }
 0x729   : > { %v4441_v28 = vsel %vm4432_vm15, %v4408_v27, %v7934_v36  ;;  %v4442_v11 = vsel %vm4432_vm15, %v4409_v37, %v7935_v62  ;;  %v7940_v18 = vunpack.i.h.bf16 %v7938_v2  ;;  %v7939_v41 = vunpack.i.l.bf16 %v7938_v2 }
 0x72a   : > { %v7943_v54 = vpop.permute.xlu0 %7942  ;;  %8227 = vrot.lane.b32.xlu1 %v11785_v56, %s9078_s1  ;;  %v4474_v38 = vsel %vm4465_vm5, %v4441_v28, %v7689_v25  ;;  %v4475_v12 = vsel %vm4465_vm5, %v4442_v11, %v7690_v17  ;;  %v13632_v36 = vpack.i.bf16 %v11861_v61, %v11853_v21  ;;  %v8540_v11 = vld [vmem:[#allocation2 + $0x90] sm:$0xff]  ;;  %s9085_s1 = smov [#allocation26]  }
 0x72b   : > { %v7945_v13 = vunpack.i.h.bf16 %v7943_v54  ;;  %v7944_v39 = vunpack.i.l.bf16 %v7943_v54  ;;  %v4443_v59 = vsel %vm4432_vm15, %v4410_v60, %v7939_v41  ;;  %v8539_v54 = vld [vmem:[#allocation2 + $0x98] sm:$0xff]  ;;  %v7699_v60 = vunpack.i.l.bf16 %v11901_v1  ;;  %s8959_s8 = sshll.u32 %s9085_s1, 4  ;;  %s8960_s8 = int_to_ptr.vmem [resolvable:$false] %s8959_s8 }
 0x72c   : > { %8232 = vrot.lane.b32.xlu0 %v8201_v23, %s9083_s3  ;;  %v7948_v45 = vpop.permute.xlu1 %7947  ;;  %v4444_v23 = vsel %vm4432_vm15, %v4411_v24, %v7940_v18  ;;  %v4476_v47 = vsel %vm4465_vm5, %v4443_v59, %v7694_v44  ;;  %v8541_v59 = vld [vmem:[#allocation2 + $0xb0] sm:$0xff]  ;;  %p8962_p13 = scmp.lt.s32.totalorder %s13377_s17, %s8960_s8 }
 0x72d   : > { %v4507_v19 = vsel %vm4498_vm7, %v4474_v38, %v7944_v39  ;;  %v4508_v7 = vsel %vm4498_vm7, %v4475_v12, %v7945_v13  ;;  %v7950_v15 = vunpack.i.h.bf16 %v7948_v45  ;;  %v7949_v40 = vunpack.i.l.bf16 %v7948_v45 }
 0x72e   : > { %v7953_v31 = vpop.permute.xlu0 %7952  ;;  %8237 = vrot.lane.b32.xlu1 %v11789_v57, %s9083_s3  ;;  %v7705_v12 = vunpack.i.h.bf16 %v11895_v4 }
 0x72f   : > { %v7955_v33 = vunpack.i.h.bf16 %v7953_v31  ;;  %v7954_v22 = vunpack.i.l.bf16 %v7953_v31  ;;  %v4509_v3 = vsel %vm4498_vm7, %v4476_v47, %v7949_v40  ;;  %v7704_v31 = vunpack.i.l.bf16 %v11895_v4 }
 0x730   : > { %8242 = vrot.lane.b32.xlu0 %v11785_v56, %s9082_s27  ;;  %v7958_v63 = vpop.permute.xlu1 %7957  ;;  %v4477_v56 = vsel %vm4465_vm5, %v4444_v23, %v7695_v53  ;;  %v7710_v47 = vunpack.i.h.bf16 %v11909_v14  ;;  %s8961_s27 = scalar_lea.vmem %s8960_s8, 4096 }
 0x731   : > { %v4540_v50 = vsel %vm4531_vm9, %v4507_v19, %v7954_v22  ;;  %v4541_v48 = vsel %vm4531_vm9, %v4508_v7, %v7955_v33  ;;  %v4510_v49 = vsel %vm4498_vm7, %v4477_v56, %v7950_v15  ;;  %v7960_v58 = vunpack.i.h.bf16 %v7958_v63  ;;  %v8542_v33 = vld [vmem:[#allocation2 + $0xa8] sm:$0xff]  ;;  %p8963_p1 = scmp.lt.s32.totalorder %s8961_s27, %s8955_s2 }
 0x732   : > { %v4568_v10 = vpack.c.bf16 %v4541_v48, %v4540_v50  ;;  %v7963_v62 = vpop.permute.xlu0 %7962  ;;  %8252 = vrot.lane.b32.xlu1 %v13632_v36, %s9084_s20  ;;  %v7959_v51 = vunpack.i.l.bf16 %v7958_v63  ;;  %v7709_v56 = vunpack.i.l.bf16 %v11909_v14 }
 0x733   : > { %v7965_v52 = vunpack.i.h.bf16 %v7963_v62  ;;  %v7964_v5 = vunpack.i.l.bf16 %v7963_v62  ;;  %v4317_v28 = vsel %vm1820_vm4, %v8539_v54, %v7960_v58  ;;  %v7715_v54 = vunpack.i.h.bf16 %v11905_v9  ;;  %p8964_p3 = por %p8963_p1, %p8962_p13 }
 0x734   : > { %8247 = vrot.lane.b32.xlu0 %v11789_v57, %s9084_s20  ;;  %6697 = vmatprep.mubr.msk.bf16.mxu1 %vm4623_vm11, %v4568_v10  ;;  %v7968_v32 = vpop.permute.xlu1 %7967  ;;  %v4316_v18 = vsel %vm1820_vm4, %v8540_v11, %v7959_v51 }
 0x735   : > { %v4542_v8 = vsel %vm4531_vm9, %v4509_v3, %v7964_v5  ;;  %v4543_v21 = vsel %vm4531_vm9, %v4510_v49, %v7965_v52  ;;  %v7970_v26 = vunpack.i.h.bf16 %v7968_v32  ;;  %v7969_v0 = vunpack.i.l.bf16 %v7968_v32  ;;  %p8965_p2 = pnand %p8964_p3, %p8958_p12 }
 0x736   : > { %v4569_v61 = vpack.c.bf16 %v4543_v21, %v4542_v8  ;;  %v7973_v2 = vpop.permute.xlu0 %7972 }
 0x737   : > { %v7975_v34 = vunpack.i.h.bf16 %v7973_v2  ;;  %v7974_v27 = vunpack.i.l.bf16 %v7973_v2  ;;  %v4319_v23 = vsel %vm1820_vm4, %v8541_v59, %v7970_v26  ;;  %v4318_v22 = vsel %vm1820_vm4, %v8542_v33, %v7969_v0 }
 0x738   : > { %6698 = vmatmul.mubr.msk.bf16.gmra.mrb[28].mxu1 %vm4623_vm11, %v4569_v61  ;;  %v7978_v42 = vpop.permute.xlu1 %7977 }
 0x739   : > { %v7980_v41 = vunpack.i.h.bf16 %v7978_v42  ;;  %v7979_v17 = vunpack.i.l.bf16 %v7978_v42  ;;  %v4348_v25 = vsel %vm1886_vm6, %v4316_v18, %v7974_v27  ;;  %v4349_v13 = vsel %vm1886_vm6, %v4317_v28, %v7975_v34 }
 0x73a   : > { %v7983_v37 = vpop.permute.xlu0 %7982  ;;  %v4380_v7 = vsel %vm1952_vm8, %v4348_v25, %v7699_v60  ;;  %v4381_v15 = vsel %vm1952_vm8, %v4349_v13, %v7700_v16  ;;  %v7714_v28 = vunpack.i.l.bf16 %v11905_v9 }
 0x73b   : > { %v7985_v39 = vunpack.i.h.bf16 %v7983_v37  ;;  %v7984_v45 = vunpack.i.l.bf16 %v7983_v37  ;;  %v4350_v40 = vsel %vm1886_vm6, %v4318_v22, %v7979_v17  ;;  %v4351_v1 = vsel %vm1886_vm6, %v4319_v23, %v7980_v41 }
 0x73c   : > { %v7988_v57 = vpop.permute.xlu1 %7987  ;;  %v4382_v49 = vsel %vm1952_vm8, %v4350_v40, %v7704_v31  ;;  %v4383_v32 = vsel %vm1952_vm8, %v4351_v1, %v7705_v12  ;;  %v8543_v1 = vld [vmem:[#allocation2 + $0xc8] sm:$0xff] }
 0x73d   : > { %v4412_v63 = vsel %vm2018_vm10, %v4380_v7, %v7984_v45  ;;  %v4413_v53 = vsel %vm2018_vm10, %v4381_v15, %v7985_v39  ;;  %v7990_v4 = vunpack.i.h.bf16 %v7988_v57  ;;  %v7989_v44 = vunpack.i.l.bf16 %v7988_v57 }
 0x73e   : > { %v7993_v29 = vpop.permute.xlu0 %7992 }
 0x73f   : > { %v7995_v24 = vunpack.i.h.bf16 %v7993_v29  ;;  %v7994_v38 = vunpack.i.l.bf16 %v7993_v29  ;;  %v4414_v8 = vsel %vm2018_vm10, %v4382_v49, %v7989_v44  ;;  %v4415_v21 = vsel %vm2018_vm10, %v4383_v32, %v7990_v4 }
 0x740   : > { %v7998_v19 = vpop.permute.xlu1 %7997  ;;  %v7725_v49 = vunpack.i.h.bf16 %v11915_v43  ;;  %v7724_v32 = vunpack.i.l.bf16 %v11915_v43 }
 0x741   : > { %v4445_v48 = vsel %vm4432_vm15, %v4412_v63, %v7994_v38  ;;  %v4446_v10 = vsel %vm4432_vm15, %v4413_v53, %v7995_v24  ;;  %v8000_v62 = vunpack.i.h.bf16 %v7998_v19  ;;  %v7999_v36 = vunpack.i.l.bf16 %v7998_v19  ;;  %v8544_v53 = vld [vmem:[#allocation2 + $0xc0] sm:$0xff] }
 0x742   : > { %v8003_v50 = vpop.permute.xlu0 %8002  ;;  %v4478_v61 = vsel %vm4465_vm5, %v4445_v48, %v7709_v56  ;;  %v4479_v2 = vsel %vm4465_vm5, %v4446_v10, %v7710_v47  ;;  %v7720_v56 = vunpack.i.h.bf16 %v11917_v55 }
 0x743   : > { %v8005_v52 = vunpack.i.h.bf16 %v8003_v50  ;;  %v8004_v5 = vunpack.i.l.bf16 %v8003_v50  ;;  %v4447_v58 = vsel %vm4432_vm15, %v4414_v8, %v7999_v36  ;;  %v4448_v14 = vsel %vm4432_vm15, %v4415_v21, %v8000_v62  ;;  %v8545_v8 = vld [vmem:[#allocation2 + $0xe0] sm:$0xff] }
 0x744   : > { %v8008_v3 = vpop.permute.xlu1 %8007  ;;  %v4480_v25 = vsel %vm4465_vm5, %v4447_v58, %v7714_v28  ;;  %v4481_v13 = vsel %vm4465_vm5, %v4448_v14, %v7715_v54 }
 0x745   : > { %v4511_v27 = vsel %vm4498_vm7, %v4478_v61, %v8004_v5  ;;  %v4512_v37 = vsel %vm4498_vm7, %v4479_v2, %v8005_v52  ;;  %v8010_v26 = vunpack.i.h.bf16 %v8008_v3  ;;  %v8009_v0 = vunpack.i.l.bf16 %v8008_v3  ;;  %v8546_v61 = vld [vmem:[#allocation2 + $0xd8] sm:$0xff] }
 0x746   : > { %v8013_v42 = vpop.permute.xlu0 %8012  ;;  %v7719_v52 = vunpack.i.l.bf16 %v11917_v55 }
 0x747   : > { %v8015_v51 = vunpack.i.h.bf16 %v8013_v42  ;;  %v8014_v34 = vunpack.i.l.bf16 %v8013_v42  ;;  %v4513_v29 = vsel %vm4498_vm7, %v4480_v25, %v8009_v0  ;;  %v4514_v16 = vsel %vm4498_vm7, %v4481_v13, %v8010_v26 }
 0x748   : > { %v8018_v57 = vpop.permute.xlu1 %8017 }
 0x749   : > { %v4544_v11 = vsel %vm4531_vm9, %v4511_v27, %v8014_v34  ;;  %v4545_v18 = vsel %vm4531_vm9, %v4512_v37, %v8015_v51  ;;  %v8020_v59 = vunpack.i.h.bf16 %v8018_v57  ;;  %v8019_v23 = vunpack.i.l.bf16 %v8018_v57 }
 0x74a   : > { %v4570_v41 = vpack.c.bf16 %v4545_v18, %v4544_v11  ;;  %v8023_v17 = vpop.permute.xlu0 %8022  ;;  %v7730_v11 = vunpack.i.h.bf16 %v11925_v46  ;;  %v7729_v18 = vunpack.i.l.bf16 %v11925_v46 }
 0x74b   : > { %v8025_v39 = vunpack.i.h.bf16 %v8023_v17  ;;  %v8024_v45 = vunpack.i.l.bf16 %v8023_v17  ;;  %v4321_v63 = vsel %vm1820_vm4, %v8543_v1, %v8020_v59  ;;  %v4320_v4 = vsel %vm1820_vm4, %v8544_v53, %v8019_v23 }
 0x74c   : > { %6701 = vmatprep.mubr.msk.bf16.mxu1 %vm4623_vm11, %v4570_v41  ;;  %v8028_v60 = vpop.permute.xlu1 %8027 }
 0x74d   : > { %v4546_v9 = vsel %vm4531_vm9, %v4513_v29, %v8024_v45  ;;  %v4547_v24 = vsel %vm4531_vm9, %v4514_v16, %v8025_v39  ;;  %v8030_v7 = vunpack.i.h.bf16 %v8028_v60  ;;  %v8029_v15 = vunpack.i.l.bf16 %v8028_v60 }
 0x74e   : > { %v4571_v38 = vpack.c.bf16 %v4547_v24, %v4546_v9  ;;  %v8033_v12 = vpop.permute.xlu0 %8032 }
 0x74f   : > { %v8035_v33 = vunpack.i.h.bf16 %v8033_v12  ;;  %v8034_v22 = vunpack.i.l.bf16 %v8033_v12  ;;  %v4323_v21 = vsel %vm1820_vm4, %v8545_v8, %v8030_v7  ;;  %v4322_v2 = vsel %vm1820_vm4, %v8546_v61, %v8029_v15 }
 0x750   : > { %6702 = vmatmul.mubr.msk.bf16.gmra.mrb[32].mxu1 %vm4623_vm11, %v4571_v38  ;;  %v8038_v31 = vpop.permute.xlu1 %8037  ;;  %v7734_v7 = vunpack.i.l.bf16 %v11923_v30 }
 0x751   : > { %v8040_v44 = vunpack.i.h.bf16 %v8038_v31  ;;  %v8039_v50 = vunpack.i.l.bf16 %v8038_v31  ;;  %v4352_v48 = vsel %vm1886_vm6, %v4320_v4, %v8034_v22  ;;  %v4353_v10 = vsel %vm1886_vm6, %v4321_v63, %v8035_v33 }
 0x752   : > { %v8043_v19 = vpop.permute.xlu0 %8042  ;;  %v4384_v58 = vsel %vm1952_vm8, %v4352_v48, %v7719_v52  ;;  %v4385_v14 = vsel %vm1952_vm8, %v4353_v10, %v7720_v56 }
 0x753   : > { %v8045_v62 = vunpack.i.h.bf16 %v8043_v19  ;;  %v8044_v36 = vunpack.i.l.bf16 %v8043_v19  ;;  %v4354_v51 = vsel %vm1886_vm6, %v4322_v2, %v8039_v50  ;;  %v4355_v55 = vsel %vm1886_vm6, %v4323_v21, %v8040_v44 }
 0x754   : > { %v8048_v40 = vpop.permute.xlu1 %8047  ;;  %v4386_v13 = vsel %vm1952_vm8, %v4354_v51, %v7724_v32  ;;  %v4387_v39 = vsel %vm1952_vm8, %v4355_v55, %v7725_v49  ;;  %v7735_v19 = vunpack.i.h.bf16 %v11923_v30 }
 0x755   : > { %v4416_v34 = vsel %vm2018_vm10, %v4384_v58, %v8044_v36  ;;  %v4417_v27 = vsel %vm2018_vm10, %v4385_v14, %v8045_v62  ;;  %v8050_v43 = vunpack.i.h.bf16 %v8048_v40  ;;  %v8049_v37 = vunpack.i.l.bf16 %v8048_v40  ;;  %v8548_v14 = vld [vmem:[#allocation2 + $0xf0] sm:$0xff] }
 0x756   : > { %v8053_v47 = vpop.permute.xlu0 %8052 }
 0x757   : > { %v8055_v5 = vunpack.i.h.bf16 %v8053_v47  ;;  %v8054_v3 = vunpack.i.l.bf16 %v8053_v47  ;;  %v4418_v45 = vsel %vm2018_vm10, %v4386_v13, %v8049_v37  ;;  %v4419_v29 = vsel %vm2018_vm10, %v4387_v39, %v8050_v43  ;;  %v8550_v13 = vld [vmem:[#allocation2 + $0x108] sm:$0xff] }
 0x758   : > { %v8058_v42 = vpop.permute.xlu1 %8057 }
 0x759   : > { %v4449_v0 = vsel %vm4432_vm15, %v4416_v34, %v8054_v3  ;;  %v4450_v57 = vsel %vm4432_vm15, %v4417_v27, %v8055_v5  ;;  %v8060_v54 = vunpack.i.h.bf16 %v8058_v42  ;;  %v8059_v28 = vunpack.i.l.bf16 %v8058_v42  ;;  %v8547_v42 = vld [vmem:[#allocation2 + $0xf8] sm:$0xff] }
 0x75a   : > { %v8063_v26 = vpop.permute.xlu0 %8062  ;;  %v4482_v16 = vsel %vm4465_vm5, %v4449_v0, %v7729_v18  ;;  %v4483_v60 = vsel %vm4465_vm5, %v4450_v57, %v7730_v11  ;;  %v7740_v57 = vunpack.i.h.bf16 %v11933_v6  ;;  %v7745_v18 = vunpack.i.h.bf16 %v11929_v35 }
 0x75b   : > { %v8065_v41 = vunpack.i.h.bf16 %v8063_v26  ;;  %v8064_v17 = vunpack.i.l.bf16 %v8063_v26  ;;  %v4451_v24 = vsel %vm4432_vm15, %v4418_v45, %v8059_v28  ;;  %v4452_v46 = vsel %vm4432_vm15, %v4419_v29, %v8060_v54 }
 0x75c   : > { %v8068_v25 = vpop.permute.xlu1 %8067  ;;  %v4484_v53 = vsel %vm4465_vm5, %v4451_v24, %v7734_v7  ;;  %v4485_v4 = vsel %vm4465_vm5, %v4452_v46, %v7735_v19  ;;  %v7739_v54 = vunpack.i.l.bf16 %v11933_v6 }
 0x75d   : > { %v4515_v31 = vsel %vm4498_vm7, %v4482_v16, %v8064_v17  ;;  %v4516_v59 = vsel %vm4498_vm7, %v4483_v60, %v8065_v41  ;;  %v8070_v23 = vunpack.i.h.bf16 %v8068_v25  ;;  %v8069_v33 = vunpack.i.l.bf16 %v8068_v25  ;;  %v8549_v17 = vld [vmem:[#allocation2 + $0x110] sm:$0xff] }
 0x75e   : > { %v8073_v9 = vpop.permute.xlu0 %8072  ;;  %v7744_v41 = vunpack.i.l.bf16 %v11929_v35 }
 0x75f   : > { %v8075_v38 = vunpack.i.h.bf16 %v8073_v9  ;;  %v8074_v12 = vunpack.i.l.bf16 %v8073_v9  ;;  %v4517_v48 = vsel %vm4498_vm7, %v4484_v53, %v8069_v33  ;;  %v4518_v10 = vsel %vm4498_vm7, %v4485_v4, %v8070_v23 }
 0x760   : > { %v8078_v22 = vpop.permute.xlu1 %8077  ;;  %v7750_v33 = vunpack.i.h.bf16 %v11943_v20 }
 0x761   : > { %v4548_v15 = vsel %vm4531_vm9, %v4515_v31, %v8074_v12  ;;  %v4549_v40 = vsel %vm4531_vm9, %v4516_v59, %v8075_v38  ;;  %v8080_v5 = vunpack.i.h.bf16 %v8078_v22  ;;  %v8079_v3 = vunpack.i.l.bf16 %v8078_v22 }
 0x762   : > { %v4572_v1 = vpack.c.bf16 %v4549_v40, %v4548_v15  ;;  %v8083_v63 = vpop.permute.xlu0 %8082  ;;  %v7749_v22 = vunpack.i.l.bf16 %v11943_v20 }
 0x763   : > { %v8085_v44 = vunpack.i.h.bf16 %v8083_v63  ;;  %v8084_v50 = vunpack.i.l.bf16 %v8083_v63  ;;  %v4325_v58 = vsel %vm1820_vm4, %v8547_v42, %v8080_v5  ;;  %v4324_v51 = vsel %vm1820_vm4, %v8548_v14, %v8079_v3  ;;  %v13633_v5 = vld [vmem:[#allocation75_spill] sm:$0xff] }
 0x764   : > { %6705 = vmatprep.mubr.msk.bf16.mxu1 %vm4623_vm11, %v4572_v1  ;;  %v8088_v62 = vpop.permute.xlu1 %8087  ;;  %v7755_v3 = vunpack.i.h.bf16 %v13633_v5 }
 0x765   : > { %v4550_v30 = vsel %vm4531_vm9, %v4517_v48, %v8084_v50  ;;  %v4551_v36 = vsel %vm4531_vm9, %v4518_v10, %v8085_v44  ;;  %v8090_v21 = vunpack.i.h.bf16 %v8088_v62  ;;  %v8089_v61 = vunpack.i.l.bf16 %v8088_v62 }
 0x766   : > { %v4573_v47 = vpack.c.bf16 %v4551_v36, %v4550_v30  ;;  %v8093_v56 = vpop.permute.xlu0 %8092 }
 0x767   : > { %v8095_v49 = vunpack.i.h.bf16 %v8093_v56  ;;  %v8094_v32 = vunpack.i.l.bf16 %v8093_v56  ;;  %v4327_v25 = vsel %vm1820_vm4, %v8549_v17, %v8090_v21  ;;  %v4326_v39 = vsel %vm1820_vm4, %v8550_v13, %v8089_v61  ;;  %v8551_v13 = vld [vmem:[#allocation2 + $0x128] sm:$0xff] }
 0x768   : > { %6706 = vmatmul.mubr.msk.bf16.gmra.mrb[36].mxu1 %vm4623_vm11, %v4573_v47  ;;  %v8098_v52 = vpop.permute.xlu1 %8097 }
 0x769   : > { %v8100_v55 = vunpack.i.h.bf16 %v8098_v52  ;;  %v8099_v34 = vunpack.i.l.bf16 %v8098_v52  ;;  %v4356_v27 = vsel %vm1886_vm6, %v4324_v51, %v8094_v32  ;;  %v4357_v43 = vsel %vm1886_vm6, %v4325_v58, %v8095_v49 }
 0x76a   : > { %v8103_v8 = vpop.permute.xlu0 %8102  ;;  %v4388_v29 = vsel %vm1952_vm8, %v4356_v27, %v7739_v54  ;;  %v4389_v16 = vsel %vm1952_vm8, %v4357_v43, %v7740_v57  ;;  %v7754_v49 = vunpack.i.l.bf16 %v13633_v5  ;;  %v13636_v5 = vld [vmem:[#allocation79_spill] sm:$0xff] }
 0x76b   : > { %v8105_v37 = vunpack.i.h.bf16 %v8103_v8  ;;  %v8104_v26 = vunpack.i.l.bf16 %v8103_v8  ;;  %v4358_v60 = vsel %vm1886_vm6, %v4326_v39, %v8099_v34  ;;  %v4359_v6 = vsel %vm1886_vm6, %v4327_v25, %v8100_v55 }
 0x76c   : > { %v8108_v2 = vpop.permute.xlu1 %8107  ;;  %v4390_v40 = vsel %vm1952_vm8, %v4358_v60, %v7744_v41  ;;  %v4391_v1 = vsel %vm1952_vm8, %v4359_v6, %v7745_v18 }
 0x76d   : > { %v4420_v9 = vsel %vm2018_vm10, %v4388_v29, %v8104_v26  ;;  %v4421_v24 = vsel %vm2018_vm10, %v4389_v16, %v8105_v37  ;;  %v8110_v35 = vunpack.i.h.bf16 %v8108_v2  ;;  %v8109_v46 = vunpack.i.l.bf16 %v8108_v2 }
 0x76e   : > { %v8113_v0 = vpop.permute.xlu0 %8112 }
 0x76f   : > { %v8115_v28 = vunpack.i.h.bf16 %v8113_v0  ;;  %v8114_v11 = vunpack.i.l.bf16 %v8113_v0  ;;  %v4422_v63 = vsel %vm2018_vm10, %v4390_v40, %v8109_v46  ;;  %v4423_v53 = vsel %vm2018_vm10, %v4391_v1, %v8110_v35  ;;  %v8554_v40 = vld [vmem:[#allocation2 + $0x138] sm:$0xff] }
 0x770   : > { %v8118_v45 = vpop.permute.xlu1 %8117 }
 0x771   : > { %v4453_v12 = vsel %vm4432_vm15, %v4420_v9, %v8114_v11  ;;  %v4454_v31 = vsel %vm4432_vm15, %v4421_v24, %v8115_v28  ;;  %v8120_v59 = vunpack.i.h.bf16 %v8118_v45  ;;  %v8119_v23 = vunpack.i.l.bf16 %v8118_v45  ;;  %v8552_v45 = vld [vmem:[#allocation2 + $0x120] sm:$0xff] }
 0x772   : > { %v8123_v38 = vpop.permute.xlu0 %8122  ;;  %v4486_v4 = vsel %vm4465_vm5, %v4453_v12, %v7749_v22  ;;  %v4487_v44 = vsel %vm4465_vm5, %v4454_v31, %v7750_v33  ;;  %v13635_v33 = vld [vmem:[#allocation76_spill] sm:$0xff] }
 0x773   : > { %v8125_v19 = vunpack.i.h.bf16 %v8123_v38  ;;  %v8124_v7 = vunpack.i.l.bf16 %v8123_v38  ;;  %v4455_v48 = vsel %vm4432_vm15, %v4422_v63, %v8119_v23  ;;  %v4456_v20 = vsel %vm4432_vm15, %v4423_v53, %v8120_v59  ;;  %v13634_v38 = vld [vmem:[#allocation77_spill] sm:$0xff] }
 0x774   : > { %v8128_v15 = vpop.permute.xlu1 %8127  ;;  %v4488_v2 = vsel %vm4465_vm5, %v4455_v48, %v7754_v49  ;;  %v4489_v42 = vsel %vm4465_vm5, %v4456_v20, %v7755_v3  ;;  %v7760_v12 = vunpack.i.h.bf16 %v13634_v38  ;;  %v7759_v31 = vunpack.i.l.bf16 %v13634_v38 }
 0x775   : > { %v4519_v30 = vsel %vm4498_vm7, %v4486_v4, %v8124_v7  ;;  %v4520_v36 = vsel %vm4498_vm7, %v4487_v44, %v8125_v19  ;;  %v8130_v47 = vunpack.i.h.bf16 %v8128_v15  ;;  %v8129_v56 = vunpack.i.l.bf16 %v8128_v15  ;;  %v8553_v7 = vld [vmem:[#allocation2 + $0x140] sm:$0xff] }
 0x776   : > { %v8133_v50 = vpop.permute.xlu0 %8132  ;;  %v7765_v22 = vunpack.i.h.bf16 %v13635_v33  ;;  %v7764_v19 = vunpack.i.l.bf16 %v13635_v33  ;;  %v7770_v3 = vunpack.i.h.bf16 %v13636_v5  ;;  %v7769_v49 = vunpack.i.l.bf16 %v13636_v5 }
 0x777   : > { %v8135_v10 = vunpack.i.h.bf16 %v8133_v50  ;;  %v8134_v62 = vunpack.i.l.bf16 %v8133_v50  ;;  %v4521_v51 = vsel %vm4498_vm7, %v4488_v2, %v8129_v56  ;;  %v4522_v55 = vsel %vm4498_vm7, %v4489_v42, %v8130_v47 }
 0x778   : > { %v8138_v52 = vpop.permute.xlu1 %8137 }
 0x779   : > { %v4552_v32 = vsel %vm4531_vm9, %v4519_v30, %v8134_v62  ;;  %v4553_v8 = vsel %vm4531_vm9, %v4520_v36, %v8135_v10  ;;  %v8140_v57 = vunpack.i.h.bf16 %v8138_v52  ;;  %v8139_v54 = vunpack.i.l.bf16 %v8138_v52 }
 0x77a   : > { %v4574_v21 = vpack.c.bf16 %v4553_v8, %v4552_v32  ;;  %v8143_v61 = vpop.permute.xlu0 %8142 }
 0x77b   : > { %v8145_v58 = vunpack.i.h.bf16 %v8143_v61  ;;  %v8144_v14 = vunpack.i.l.bf16 %v8143_v61  ;;  %v4329_v39 = vsel %vm1820_vm4, %v8551_v13, %v8140_v57  ;;  %v4328_v29 = vsel %vm1820_vm4, %v8552_v45, %v8139_v54 }
 0x77c   : > { %6709 = vmatprep.mubr.msk.bf16.mxu1 %vm4623_vm11, %v4574_v21  ;;  %v8148_v34 = vpop.permute.xlu1 %8147 }
 0x77d   : > { %v4554_v27 = vsel %vm4531_vm9, %v4521_v51, %v8144_v14  ;;  %v4555_v43 = vsel %vm4531_vm9, %v4522_v55, %v8145_v58  ;;  %v8150_v41 = vunpack.i.h.bf16 %v8148_v34  ;;  %v8149_v17 = vunpack.i.l.bf16 %v8148_v34 }
 0x77e   : > { %v4575_v37 = vpack.c.bf16 %v4555_v43, %v4554_v27  ;;  %v8153_v26 = vpop.permute.xlu0 %8152 }
 0x77f   : > { %v8155_v28 = vunpack.i.h.bf16 %v8153_v26  ;;  %v8154_v11 = vunpack.i.l.bf16 %v8153_v26  ;;  %v4331_v15 = vsel %vm1820_vm4, %v8553_v7, %v8150_v41  ;;  %v4330_v1 = vsel %vm1820_vm4, %v8554_v40, %v8149_v17 }
 0x780   : > { %6710 = vmatmul.mubr.msk.bf16.gmra.mrb[40].mxu1 %vm4623_vm11, %v4575_v37  ;;  %v8158_v0 = vpop.permute.xlu1 %8157 }
 0x781   : > { %v8160_v16 = vunpack.i.h.bf16 %v8158_v0  ;;  %v8159_v60 = vunpack.i.l.bf16 %v8158_v0  ;;  %v4360_v6 = vsel %vm1886_vm6, %v4328_v29, %v8154_v11  ;;  %v4361_v9 = vsel %vm1886_vm6, %v4329_v39, %v8155_v28  ;;  %v13637_v11 = vld [vmem:[#allocation78_spill] sm:$0xff] }
 0x782   : > { %v8163_v18 = vpop.permute.xlu0 %8162  ;;  %v4392_v53 = vsel %vm1952_vm8, %v4360_v6, %v7759_v31  ;;  %v4393_v4 = vsel %vm1952_vm8, %v4361_v9, %v7760_v12  ;;  %v7774_v41 = vunpack.i.l.bf16 %v13637_v11 }
 0x783   : > { %v8165_v24 = vunpack.i.h.bf16 %v8163_v18  ;;  %v8164_v35 = vunpack.i.l.bf16 %v8163_v18  ;;  %v4362_v44 = vsel %vm1886_vm6, %v4330_v1, %v8159_v60  ;;  %v4363_v50 = vsel %vm1886_vm6, %v4331_v15, %v8160_v16  ;;  %v13638_v1 = vld [vmem:[#allocation73_spill] sm:$0xff] }
 0x784   : > { %v8168_v25 = vpop.permute.xlu1 %8167  ;;  %v4394_v61 = vsel %vm1952_vm8, %v4362_v44, %v7764_v19  ;;  %v4395_v2 = vsel %vm1952_vm8, %v4363_v50, %v7765_v22  ;;  %v7775_v18 = vunpack.i.h.bf16 %v13637_v11 }
 0x785   : > { %v4424_v48 = vsel %vm2018_vm10, %v4392_v53, %v8164_v35  ;;  %v4425_v20 = vsel %vm2018_vm10, %v4393_v4, %v8165_v24  ;;  %v8170_v10 = vunpack.i.h.bf16 %v8168_v25  ;;  %v8169_v62 = vunpack.i.l.bf16 %v8168_v25  ;;  %v13639_v4 = vld [vmem:[#allocation80_spill] sm:$0xff] }
 0x786   : > { %v8173_v46 = vpop.permute.xlu0 %8172  ;;  %v7629_v53 = vunpack.i.l.bf16 %v13638_v1  ;;  %v7785_v44 = vunpack.i.h.bf16 %v13639_v4  ;;  %v7784_v50 = vunpack.i.l.bf16 %v13639_v4 }
 0x787   : > { %v8175_v59 = vunpack.i.h.bf16 %v8173_v46  ;;  %v8174_v23 = vunpack.i.l.bf16 %v8173_v46  ;;  %v4426_v42 = vsel %vm2018_vm10, %v4394_v61, %v8169_v62  ;;  %v4427_v58 = vsel %vm2018_vm10, %v4395_v2, %v8170_v10  ;;  %v8556_v62 = vld [vmem:[#allocation2 + $0x150] sm:$0xff] }
 0x788   : > { %v8178_v63 = vpop.permute.xlu1 %8177 }
 0x789   : > { %v4457_v36 = vsel %vm4432_vm15, %v4424_v48, %v8174_v23  ;;  %v4458_v47 = vsel %vm4432_vm15, %v4425_v20, %v8175_v59  ;;  %v8180_v56 = vunpack.i.h.bf16 %v8178_v63  ;;  %v8179_v52 = vunpack.i.l.bf16 %v8178_v63  ;;  %v8555_v20 = vld [vmem:[#allocation2 + $0x158] sm:$0xff] }
 0x78a   : > { %v8183_v30 = vpop.permute.xlu0 %8182  ;;  %v4490_v14 = vsel %vm4465_vm5, %v4457_v36, %v7769_v49  ;;  %v4491_v51 = vsel %vm4465_vm5, %v4458_v47, %v7770_v3  ;;  %v7630_v63 = vunpack.i.h.bf16 %v13638_v1  ;;  %v8557_v36 = vld [vmem:[#allocation2 + $0x170] sm:$0xff] }
 0x78b   : > { %v8185_v32 = vunpack.i.h.bf16 %v8183_v30  ;;  %v8184_v8 = vunpack.i.l.bf16 %v8183_v30  ;;  %v4459_v34 = vsel %vm4432_vm15, %v4426_v42, %v8179_v52  ;;  %v4460_v27 = vsel %vm4432_vm15, %v4427_v58, %v8180_v56  ;;  %v8558_v56 = vld [vmem:[#allocation2 + $0x168] sm:$0xff] }
 0x78c   : > { %v8188_v21 = vpop.permute.xlu1 %8187  ;;  %v4492_v45 = vsel %vm4465_vm5, %v4459_v34, %v7774_v41  ;;  %v4493_v29 = vsel %vm4465_vm5, %v4460_v27, %v7775_v18 }
 0x78d   : > { %v4523_v26 = vsel %vm4498_vm7, %v4490_v14, %v8184_v8  ;;  %v4524_v0 = vsel %vm4498_vm7, %v4491_v51, %v8185_v32  ;;  %v8190_v57 = vunpack.i.h.bf16 %v8188_v21  ;;  %v8189_v54 = vunpack.i.l.bf16 %v8188_v21  ;;  %v13640_v21 = vld [vmem:[#allocation81_spill] sm:$0xff]  ;;  %v13641_v14 = vld [vmem:[#allocation82_spill] sm:$0xff] }
 0x78e   : > { %v8193_v55 = vpop.permute.xlu0 %8192  ;;  %v7780_v61 = vunpack.i.h.bf16 %v13640_v21  ;;  %v7779_v2 = vunpack.i.l.bf16 %v13640_v21  ;;  %v7790_v51 = vunpack.i.h.bf16 %v13641_v14 }
 0x78f   : > { %v8195_v43 = vunpack.i.h.bf16 %v8193_v55  ;;  %v8194_v37 = vunpack.i.l.bf16 %v8193_v55  ;;  %v4525_v6 = vsel %vm4498_vm7, %v4492_v45, %v8189_v54  ;;  %v4526_v9 = vsel %vm4498_vm7, %v4493_v29, %v8190_v57 }
 0x790   : > { %v8198_v28 = vpop.permute.xlu1 %8197  ;;  %v7789_v55 = vunpack.i.l.bf16 %v13641_v14 }
 0x791   : > { %v4556_v17 = vsel %vm4531_vm9, %v4523_v26, %v8194_v37  ;;  %v4557_v25 = vsel %vm4531_vm9, %v4524_v0, %v8195_v43  ;;  %v8200_v31 = vunpack.i.h.bf16 %v8198_v28  ;;  %v8199_v59 = vunpack.i.l.bf16 %v8198_v28 }
 0x792   : > { %v4576_v13 = vpack.c.bf16 %v4557_v25, %v4556_v17  ;;  %v8203_v39 = vpop.permute.xlu0 %8202 }
 0x793   : > { %v8205_v16 = vunpack.i.h.bf16 %v8203_v39  ;;  %v8204_v60 = vunpack.i.l.bf16 %v8203_v39  ;;  %v4333_v10 = vsel %vm1820_vm4, %v8555_v20, %v8200_v31  ;;  %v4332_v30 = vsel %vm1820_vm4, %v8556_v62, %v8199_v59 }
 0x794   : > { %6713 = vmatprep.mubr.msk.bf16.mxu1 %vm4623_vm11, %v4576_v13  ;;  %v8208_v24 = vpop.permute.xlu1 %8207 }
 0x795   : > { %v4558_v35 = vsel %vm4531_vm9, %v4525_v6, %v8204_v60  ;;  %v4559_v46 = vsel %vm4531_vm9, %v4526_v9, %v8205_v16  ;;  %v8210_v23 = vunpack.i.h.bf16 %v8208_v24  ;;  %v8209_v33 = vunpack.i.l.bf16 %v8208_v24  ;;  %v13642_v9 = vld [vmem:[#allocation74_spill] sm:$0xff] }
 0x796   : > { %v4577_v38 = vpack.c.bf16 %v4559_v46, %v4558_v35  ;;  %v8213_v12 = vpop.permute.xlu0 %8212  ;;  %v7635_v24 = vunpack.i.h.bf16 %v13642_v9  ;;  %v7634_v35 = vunpack.i.l.bf16 %v13642_v9 }
 0x797   : > { %v8215_v22 = vunpack.i.h.bf16 %v8213_v12  ;;  %v8214_v19 = vunpack.i.l.bf16 %v8213_v12  ;;  %v4335_v47 = vsel %vm1820_vm4, %v8557_v36, %v8210_v23  ;;  %v4334_v52 = vsel %vm1820_vm4, %v8558_v56, %v8209_v33 }
 0x798   : > { %6714 = vmatmul.mubr.msk.bf16.gmra.mrb[44].mxu1 %vm4623_vm11, %v4577_v38  ;;  %v8218_v7 = vpop.permute.xlu1 %8217 }
 0x799   : > { %v8220_v15 = vunpack.i.h.bf16 %v8218_v7  ;;  %v8219_v40 = vunpack.i.l.bf16 %v8218_v7  ;;  %v4364_v5 = vsel %vm1886_vm6, %v4332_v30, %v8214_v19  ;;  %v4365_v3 = vsel %vm1886_vm6, %v4333_v10, %v8215_v22 }
 0x79a   : > { %v8223_v48 = vpop.permute.xlu0 %8222  ;;  %v4396_v37 = vsel %vm1952_vm8, %v4364_v5, %v7779_v2  ;;  %v4397_v26 = vsel %vm1952_vm8, %v4365_v3, %v7780_v61 }
 0x79b   : > { %v8225_v49 = vunpack.i.h.bf16 %v8223_v48  ;;  %v8224_v32 = vunpack.i.l.bf16 %v8223_v48  ;;  %v4366_v42 = vsel %vm1886_vm6, %v4334_v52, %v8219_v40  ;;  %v4367_v58 = vsel %vm1886_vm6, %v4335_v47, %v8220_v15 }
 0x79c   : > { %v8228_v8 = vpop.permute.xlu1 %8227  ;;  %v4398_v11 = vsel %vm1952_vm8, %v4366_v42, %v7784_v50  ;;  %v4399_v18 = vsel %vm1952_vm8, %v4367_v58, %v7785_v44  ;;  %v12466_v58 = vld [vmem:[#allocation12] ss:$0 sm:$0xff] }
 0x79d   : > { %v8230_v27 = vunpack.i.h.bf16 %v8228_v8  ;;  %v8229_v43 = vunpack.i.l.bf16 %v8228_v8  ;;  %v4428_v54 = vsel %vm2018_vm10, %v4396_v37, %v8224_v32  ;;  %v4429_v28 = vsel %vm2018_vm10, %v4397_v26, %v8225_v49  ;;  %v12458_v32 = vld [vmem:[#allocation23] sm:$0xff] }
 0x79e   : > { %v8233_v34 = vpop.permute.xlu0 %8232  ;;  %6722 = vmatpush3.msra.mxu0 %v12458_v32  ;;  %v13643_v8 = vmov 0.0  }
 0x79f   : > { %v8235_v0 = vunpack.i.h.bf16 %v8233_v34  ;;  %v8234_v57 = vunpack.i.l.bf16 %v8233_v34  ;;  %v4430_v45 = vsel %vm2018_vm10, %v4398_v11, %v8229_v43  ;;  %v4431_v29 = vsel %vm2018_vm10, %v4399_v18, %v8230_v27  ;;  %6726 = vmatprep.subr.mxu0 %v13643_v8 }
 0x7a0   : > { %v8238_v41 = vpop.permute.xlu1 %8237 }
 0x7a1   : > { %v4461_v17 = vsel %vm4432_vm15, %v4428_v54, %v8234_v57  ;;  %v4462_v25 = vsel %vm4432_vm15, %v4429_v28, %v8235_v0  ;;  %v8240_v13 = vunpack.i.h.bf16 %v8238_v41  ;;  %v8239_v39 = vunpack.i.l.bf16 %v8238_v41 }
 0x7a2   : > { %v8243_v16 = vpop.permute.xlu0 %8242  ;;  %v4494_v60 = vsel %vm4465_vm5, %v4461_v17, %v7789_v55  ;;  %v4495_v6 = vsel %vm4465_vm5, %v4462_v25, %v7790_v51 }
 0x7a3   : > { %v4463_v46 = vsel %vm4432_vm15, %v4430_v45, %v8239_v39  ;;  %v4464_v38 = vsel %vm4432_vm15, %v4431_v29, %v8240_v13  ;;  %v8245_v12 = vunpack.i.h.bf16 %v8243_v16  ;;  %v8244_v31 = vunpack.i.l.bf16 %v8243_v16 }
 0x7a4   : > { %v4496_v59 = vsel %vm4465_vm5, %v4463_v46, %v7629_v53  ;;  %v4497_v23 = vsel %vm4465_vm5, %v4464_v38, %v7630_v63  ;;  %v8253_v33 = vpop.permute.xlu1 %8252 }
 0x7a5   : > { %v8255_v22 = vunpack.i.h.bf16 %v8253_v33  ;;  %v8254_v19 = vunpack.i.l.bf16 %v8253_v33  ;;  %v4529_v15 = vsel %vm4498_vm7, %v4496_v59, %v7634_v35  ;;  %v4530_v40 = vsel %vm4498_vm7, %v4497_v23, %v7635_v24 }
 0x7a6   : > { %v8248_v7 = vpop.permute.xlu0 %8247  ;;  %v4527_v48 = vsel %vm4498_vm7, %v4494_v60, %v8244_v31  ;;  %v4528_v53 = vsel %vm4498_vm7, %v4495_v6, %v8245_v12 }
 0x7a7   : > { %v8250_v1 = vunpack.i.h.bf16 %v8248_v7  ;;  %v8249_v4 = vunpack.i.l.bf16 %v8248_v7  ;;  %v4562_v44 = vsel %vm4531_vm9, %v4529_v15, %v8254_v19  ;;  %v4563_v50 = vsel %vm4531_vm9, %v4530_v40, %v8255_v22 }
 0x7a8   : > { %v4579_v10 = vpack.c.bf16 %v4563_v50, %v4562_v44 }
 0x7a9   : > { %v4560_v63 = vsel %vm4531_vm9, %v4527_v48, %v8249_v4  ;;  %v4561_v20 = vsel %vm4531_vm9, %v4528_v53, %v8250_v1 }
 0x7aa   : > { %v4578_v62 = vpack.c.bf16 %v4561_v20, %v4560_v63 }
 0x7ac   : > { %6717 = vmatprep.mubr.msk.bf16.mxu1 %vm4623_vm11, %v4578_v62 }
 0x7ad   : > { %6718 = vmatmul.mubr.msk.bf16.gmra.mrb[48].mxu1 %vm4623_vm11, %v4579_v10 }
 0x7db   : > { %v6691_v30 = vpop.f32.mrb[20].mxu1 }
 0x7dc   : > { %v4710_v36 = vpop.f32.mrb[21].mxu1  ;;  %v12479_v27 = vadd.f32 %v6691_v30, %v12466_v58 }
 0x7dd   : > { %v6692_v47 = vpop.f32.mrb[22].mxu1  ;;  %v12472_v51 = vadd.f32 %v12466_v58, %v4710_v36 }
 0x7de   : > { %v4713_v56 = vpop.f32.mrb[23].mxu1  ;;  %v4912_v18 = vmul.f32 %v12479_v27, %v12479_v27  ;;  %v12496_v17 = vadd.f32 %v6692_v47, %v12466_v58  ;;  %v4844_v39 = vsel %vm1820_vm4, %v12479_v27, 0.0 }
 0x7df   : > { %v12469_v14 = vadd.f32 %v12466_v58, %v4713_v56  ;;  %v4910_v43 = vmul.f32 %v12472_v51, %v12472_v51  ;;  %v4841_v57 = vsel %vm1820_vm4, %v12472_v51, 0.0 }
 0x7e0   : > { %v4945_v29 = vsel %vm1820_vm4, %v4912_v18, 0.0  ;;  %v4913_v16 = vmul.f32 %v12496_v17, %v12496_v17  ;;  %v4846_v24 = vsel %vm1820_vm4, %v12496_v17, 0.0 }
 0x7e1   : > { %v4911_v55 = vmul.f32 %v12469_v14, %v12469_v14  ;;  %v4842_v37 = vsel %vm1820_vm4, %v12469_v14, 0.0  ;;  %v4942_v41 = vsel %vm1820_vm4, %v4910_v43, 0.0 }
 0x7e2   : > { %v4843_v11 = vadd.f32 %v4842_v37, %v4841_v57  ;;  %v4947_v38 = vsel %vm1820_vm4, %v4913_v16, 0.0 }
 0x7e3   : > { %v4943_v54 = vsel %vm1820_vm4, %v4911_v55, 0.0 }
 0x7e4   : > { %v4944_v13 = vadd.f32 %v4943_v54, %v4942_v41  ;;  %v4845_v45 = vadd.f32 %v4844_v39, %v4843_v11 }
 0x7e6   : > { %v4946_v9 = vadd.f32 %v4945_v29, %v4944_v13  ;;  %v4847_v46 = vadd.f32 %v4846_v24, %v4845_v45 }
 0x7e8   : > { %v4948_v23 = vadd.f32 %v4947_v38, %v4946_v9 }
 0x7f3   : > { %v6695_v52 = vpop.f32.mrb[24].mxu1 }
 0x7f4   : > { %v4726_v5 = vpop.f32.mrb[25].mxu1  ;;  %v12520_v33 = vadd.f32 %v6695_v52, %v12466_v58 }
 0x7f5   : > { %v6696_v3 = vpop.f32.mrb[26].mxu1  ;;  %v12499_v25 = vadd.f32 %v12466_v58, %v4726_v5 }
 0x7f6   : > { %v4729_v49 = vpop.f32.mrb[27].mxu1  ;;  %v4916_v40 = vmul.f32 %v12520_v33, %v12520_v33  ;;  %v12528_v1 = vadd.f32 %v6696_v3, %v12466_v58  ;;  %v4852_v50 = vsel %vm1820_vm4, %v12520_v33, 0.0 }
 0x7f7   : > { %v4914_v60 = vmul.f32 %v12499_v25, %v12499_v25  ;;  %v12509_v6 = vadd.f32 %v12466_v58, %v4729_v49  ;;  %v4848_v35 = vsel %vm1820_vm4, %v12499_v25, 0.0 }
 0x7f8   : > { %v4849_v59 = vadd.f32 %v4848_v35, %v4847_v46  ;;  %v4953_v53 = vsel %vm1820_vm4, %v4916_v40, 0.0  ;;  %v4917_v63 = vmul.f32 %v12528_v1, %v12528_v1  ;;  %v4854_v36 = vsel %vm1820_vm4, %v12528_v1, 0.0 }
 0x7f9   : > { %v4949_v12 = vsel %vm1820_vm4, %v4914_v60, 0.0  ;;  %v4915_v31 = vmul.f32 %v12509_v6, %v12509_v6  ;;  %v4850_v22 = vsel %vm1820_vm4, %v12509_v6, 0.0 }
 0x7fa   : > { %v4950_v19 = vadd.f32 %v4949_v12, %v4948_v23  ;;  %v4851_v15 = vadd.f32 %v4850_v22, %v4849_v59  ;;  %v4955_v3 = vsel %vm1820_vm4, %v4917_v63, 0.0 }
 0x7fb   : > { %v4951_v7 = vsel %vm1820_vm4, %v4915_v31, 0.0 }
 0x7fc   : > { %v4952_v44 = vadd.f32 %v4951_v7, %v4950_v19  ;;  %v4853_v48 = vadd.f32 %v4852_v50, %v4851_v15 }
 0x7fe   : > { %v4954_v62 = vadd.f32 %v4953_v53, %v4952_v44  ;;  %v4855_v52 = vadd.f32 %v4854_v36, %v4853_v48 }
 0x800   : > { %v4956_v43 = vadd.f32 %v4955_v3, %v4954_v62 }
 0x80b   : > { %v12462_v21 = vpop.f32.mrb[28].mxu1 }
 0x80c   : > { %v4742_v61 = vpop.f32.mrb[29].mxu1  ;;  %v12557_v37 = vadd.f32 %v12462_v21, %v12466_v58 }
 0x80d   : > { %v12464_v2 = vpop.f32.mrb[30].mxu1  ;;  %v12531_v4 = vadd.f32 %v12466_v58, %v4742_v61 }
 0x80e   : > { %v4745_v42 = vpop.f32.mrb[31].mxu1  ;;  %v4920_v41 = vmul.f32 %v12557_v37, %v12557_v37  ;;  %v12566_v13 = vadd.f32 %v12464_v2, %v12466_v58  ;;  %v4860_v21 = vsel %vm1820_vm4, %v12557_v37, 0.0 }
 0x80f   : > { %v4918_v20 = vmul.f32 %v12531_v4, %v12531_v4  ;;  %v12541_v10 = vadd.f32 %v12466_v58, %v4745_v42  ;;  %v4856_v47 = vsel %vm1820_vm4, %v12531_v4, 0.0 }
 0x810   : > { %v4857_v55 = vadd.f32 %v4856_v47, %v4855_v52  ;;  %v4961_v16 = vsel %vm1820_vm4, %v4920_v41, 0.0  ;;  %v4921_v60 = vmul.f32 %v12566_v13, %v12566_v13 }
 0x811   : > { %v4957_v49 = vsel %vm1820_vm4, %v4918_v20, 0.0  ;;  %v4919_v61 = vmul.f32 %v12541_v10, %v12541_v10  ;;  %v4858_v57 = vsel %vm1820_vm4, %v12541_v10, 0.0 }
 0x812   : > { %v4958_v54 = vadd.f32 %v4957_v49, %v4956_v43  ;;  %v4859_v18 = vadd.f32 %v4858_v57, %v4857_v55  ;;  %v4963_v38 = vsel %vm1820_vm4, %v4921_v60, 0.0 }
 0x813   : > { %v4959_v11 = vsel %vm1820_vm4, %v4919_v61, 0.0 }
 0x814   : > { %v4960_v45 = vadd.f32 %v4959_v11, %v4958_v54  ;;  %v4861_v29 = vadd.f32 %v4860_v21, %v4859_v18 }
 0x816   : > { %v4962_v24 = vadd.f32 %v4961_v16, %v4960_v45 }
 0x818   : > { %v4964_v23 = vadd.f32 %v4963_v38, %v4962_v24 }
 0x823   : > { %v12476_v34 = vpop.f32.mrb[32].mxu1 }
 0x824   : > { %v4758_v26 = vpop.f32.mrb[33].mxu1 }
 0x825   : > { %v12485_v0 = vpop.f32.mrb[34].mxu1  ;;  %v12569_v39 = vadd.f32 %v12466_v58, %v4758_v26  ;;  %v4862_v26 = vsel %vm1820_vm4, %v12566_v13, 0.0 }
 0x826   : > { %v12490_v28 = vpop.f32.mrb[35].mxu1  ;;  %v4863_v46 = vadd.f32 %v4862_v26, %v4861_v29  ;;  %v12601_v44 = vadd.f32 %v12485_v0, %v12466_v58 }
 0x827   : > { %v4922_v9 = vmul.f32 %v12569_v39, %v12569_v39  ;;  %v12580_v2 = vadd.f32 %v12466_v58, %v12490_v28  ;;  %v4864_v35 = vsel %vm1820_vm4, %v12569_v39, 0.0  ;;  %v12592_v28 = vadd.f32 %v12476_v34, %v12466_v58 }
 0x828   : > { %v4865_v59 = vadd.f32 %v4864_v35, %v4863_v46  ;;  %v4925_v47 = vmul.f32 %v12601_v44, %v12601_v44  ;;  %v4870_v49 = vsel %vm1820_vm4, %v12601_v44, 0.0 }
 0x829   : > { %v4965_v12 = vsel %vm1820_vm4, %v4922_v9, 0.0  ;;  %v4923_v31 = vmul.f32 %v12580_v2, %v12580_v2  ;;  %v4866_v22 = vsel %vm1820_vm4, %v12580_v2, 0.0  ;;  %v4924_v40 = vmul.f32 %v12592_v28, %v12592_v28 }
 0x82a   : > { %v4966_v19 = vadd.f32 %v4965_v12, %v4964_v23  ;;  %v4867_v15 = vadd.f32 %v4866_v22, %v4865_v59  ;;  %v4868_v53 = vsel %vm1820_vm4, %v12592_v28, 0.0  ;;  %v4971_v43 = vsel %vm1820_vm4, %v4925_v47, 0.0 }
 0x82b   : > { %v4967_v7 = vsel %vm1820_vm4, %v4923_v31, 0.0  ;;  %v4969_v36 = vsel %vm1820_vm4, %v4924_v40, 0.0 }
 0x82c   : > { %v4968_v48 = vadd.f32 %v4967_v7, %v4966_v19  ;;  %v4869_v20 = vadd.f32 %v4868_v53, %v4867_v15 }
 0x82e   : > { %v4970_v3 = vadd.f32 %v4969_v36, %v4968_v48  ;;  %v4871_v55 = vadd.f32 %v4870_v49, %v4869_v20 }
 0x830   : > { %v4972_v18 = vadd.f32 %v4971_v43, %v4970_v3 }
 0x83b   : > { %v12543_v30 = vpop.f32.mrb[36].mxu1 }
 0x83c   : > { %v4774_v56 = vpop.f32.mrb[37].mxu1 }
 0x83d   : > { %v12549_v5 = vpop.f32.mrb[38].mxu1  ;;  %v12604_v50 = vadd.f32 %v12466_v58, %v4774_v56 }
 0x83e   : > { %v4777_v42 = vpop.f32.mrb[39].mxu1  ;;  %v12635_v60 = vadd.f32 %v12549_v5, %v12466_v58 }
 0x83f   : > { %v4926_v0 = vmul.f32 %v12604_v50, %v12604_v50  ;;  %v12614_v52 = vadd.f32 %v12466_v58, %v4777_v42  ;;  %v4872_v61 = vsel %vm1820_vm4, %v12604_v50, 0.0  ;;  %v12626_v42 = vadd.f32 %v12543_v30, %v12466_v58 }
 0x840   : > { %v4873_v11 = vadd.f32 %v4872_v61, %v4871_v55  ;;  %v4929_v46 = vmul.f32 %v12635_v60, %v12635_v60  ;;  %v4878_v31 = vsel %vm1820_vm4, %v12635_v60, 0.0 }
 0x841   : > { %v4973_v57 = vsel %vm1820_vm4, %v4926_v0, 0.0  ;;  %v4927_v54 = vmul.f32 %v12614_v52, %v12614_v52  ;;  %v4874_v41 = vsel %vm1820_vm4, %v12614_v52, 0.0  ;;  %v4928_v16 = vmul.f32 %v12626_v42, %v12626_v42 }
 0x842   : > { %v4974_v45 = vadd.f32 %v4973_v57, %v4972_v18  ;;  %v4875_v29 = vadd.f32 %v4874_v41, %v4873_v11  ;;  %v4876_v30 = vsel %vm1820_vm4, %v12626_v42, 0.0  ;;  %v4979_v22 = vsel %vm1820_vm4, %v4929_v46, 0.0 }
 0x843   : > { %v4975_v21 = vsel %vm1820_vm4, %v4927_v54, 0.0  ;;  %v4977_v35 = vsel %vm1820_vm4, %v4928_v16, 0.0 }
 0x844   : > { %v4976_v24 = vadd.f32 %v4975_v21, %v4974_v45  ;;  %v4877_v26 = vadd.f32 %v4876_v30, %v4875_v29 }
 0x846   : > { %v4978_v5 = vadd.f32 %v4977_v35, %v4976_v24  ;;  %v4879_v23 = vadd.f32 %v4878_v31, %v4877_v26 }
 0x848   : > { %v4980_v40 = vadd.f32 %v4979_v22, %v4978_v5 }
 0x853   : > { %v6711_v34 = vpop.f32.mrb[40].mxu1 }
 0x854   : > { %v4790_v63 = vpop.f32.mrb[41].mxu1  ;;  %v12659_v48 = vadd.f32 %v6711_v34, %v12466_v58 }
 0x855   : > { %v6712_v62 = vpop.f32.mrb[42].mxu1  ;;  %v12638_v9 = vadd.f32 %v12466_v58, %v4790_v63 }
 0x856   : > { %v4793_v56 = vpop.f32.mrb[43].mxu1  ;;  %v4932_v3 = vmul.f32 %v12659_v48, %v12659_v48  ;;  %v12667_v49 = vadd.f32 %v6712_v62, %v12466_v58  ;;  %v4884_v43 = vsel %vm1820_vm4, %v12659_v48, 0.0 }
 0x857   : > { %v4930_v38 = vmul.f32 %v12638_v9, %v12638_v9  ;;  %v12648_v12 = vadd.f32 %v12466_v58, %v4793_v56  ;;  %v4880_v59 = vsel %vm1820_vm4, %v12638_v9, 0.0 }
 0x858   : > { %v4881_v15 = vadd.f32 %v4880_v59, %v4879_v23  ;;  %v4985_v54 = vsel %vm1820_vm4, %v4932_v3, 0.0  ;;  %v4933_v11 = vmul.f32 %v12667_v49, %v12667_v49  ;;  %v4886_v45 = vsel %vm1820_vm4, %v12667_v49, 0.0 }
 0x859   : > { %v4981_v19 = vsel %vm1820_vm4, %v4930_v38, 0.0  ;;  %v4931_v7 = vmul.f32 %v12648_v12, %v12648_v12  ;;  %v4882_v53 = vsel %vm1820_vm4, %v12648_v12, 0.0 }
 0x85a   : > { %v4982_v63 = vadd.f32 %v4981_v19, %v4980_v40  ;;  %v4883_v0 = vadd.f32 %v4882_v53, %v4881_v15  ;;  %v4987_v16 = vsel %vm1820_vm4, %v4933_v11, 0.0 }
 0x85b   : > { %v4983_v36 = vsel %vm1820_vm4, %v4931_v7, 0.0 }
 0x85c   : > { %v4984_v55 = vadd.f32 %v4983_v36, %v4982_v63  ;;  %v4885_v57 = vadd.f32 %v4884_v43, %v4883_v0 }
 0x85e   : > { %v4986_v41 = vadd.f32 %v4985_v54, %v4984_v55  ;;  %v4887_v29 = vadd.f32 %v4886_v45, %v4885_v57 }
 0x860   : > { %v4988_v35 = vadd.f32 %v4987_v16, %v4986_v41 }
 0x86b   : > { %v6715_v20 = vpop.f32.mrb[44].mxu1 }
 0x86c   : > { %v4806_v47 = vpop.f32.mrb[45].mxu1  ;;  %v12691_v46 = vadd.f32 %v6715_v20, %v12466_v58 }
 0x86d   : > { %v6716_v56 = vpop.f32.mrb[46].mxu1  ;;  %v12670_v61 = vadd.f32 %v12466_v58, %v4806_v47 }
 0x86e   : > { %v4809_v34 = vpop.f32.mrb[47].mxu1  ;;  %v12697_v59 = vadd.f32 %v6716_v56, %v12466_v58  ;;  %v4936_v22 = vmul.f32 %v12691_v46, %v12691_v46  ;;  %v4892_v7 = vsel %vm1820_vm4, %v12691_v46, 0.0 }
 0x86f   : > { %v4934_v18 = vmul.f32 %v12670_v61, %v12670_v61  ;;  %v12680_v62 = vadd.f32 %v12466_v58, %v4809_v34  ;;  %v4888_v21 = vsel %vm1820_vm4, %v12670_v61, 0.0 }
 0x870   : > { %v4889_v26 = vadd.f32 %v4888_v21, %v4887_v29  ;;  %v4937_v15 = vmul.f32 %v12697_v59, %v12697_v59  ;;  %v4993_v53 = vsel %vm1820_vm4, %v4936_v22, 0.0  ;;  %v4894_v47 = vsel %vm1820_vm4, %v12697_v59, 0.0 }
 0x871   : > { %v4989_v24 = vsel %vm1820_vm4, %v4934_v18, 0.0  ;;  %v4935_v30 = vmul.f32 %v12680_v62, %v12680_v62  ;;  %v4890_v38 = vsel %vm1820_vm4, %v12680_v62, 0.0 }
 0x872   : > { %v4990_v5 = vadd.f32 %v4989_v24, %v4988_v35  ;;  %v4891_v23 = vadd.f32 %v4890_v38, %v4889_v26  ;;  %v4995_v34 = vsel %vm1820_vm4, %v4937_v15, 0.0 }
 0x873   : > { %v4991_v31 = vsel %vm1820_vm4, %v4935_v30, 0.0 }
 0x874   : > { %v4992_v19 = vadd.f32 %v4991_v31, %v4990_v5  ;;  %v4893_v40 = vadd.f32 %v4892_v7, %v4891_v23 }
 0x876   : > { %v4994_v20 = vadd.f32 %v4993_v53, %v4992_v19  ;;  %v4895_v55 = vadd.f32 %v4894_v47, %v4893_v40 }
 0x878   : > { %v4996_v45 = vadd.f32 %v4995_v34, %v4994_v20 }
 0x880   : > { %v6719_v63 = vpop.f32.mrb[48].mxu1 }
 0x881   : > { %v4822_v36 = vpop.f32.mrb[49].mxu1  ;;  %v12709_v0 = vadd.f32 %v6719_v63, %v12466_v58 }
 0x882   : > { %v12712_v56 = vadd.f32 %v12466_v58, %v4822_v36  ;;  %v6720_v3 = vpop.f32.mrb[50].mxu1 }
 0x883   : > { %v4825_v43 = vpop.f32.mrb[51].mxu1  ;;  %v12720_v11 = vadd.f32 %v6720_v3, %v12466_v58  ;;  %v4940_v21 = vmul.f32 %v12709_v0, %v12709_v0  ;;  %v4900_v35 = vsel %vm1820_vm4, %v12709_v0, 0.0 }
 0x884   : > { %v4896_v57 = vsel %vm1820_vm4, %v12712_v56, 0.0  ;;  %v4938_v54 = vmul.f32 %v12712_v56, %v12712_v56  ;;  %v12723_v18 = vadd.f32 %v12466_v58, %v4825_v43 }
 0x885   : > { %v4897_v41 = vadd.f32 %v4896_v57, %v4895_v55  ;;  %v4941_v58 = vmul.f32 %v12720_v11, %v12720_v11  ;;  %v5001_v23 = vsel %vm1820_vm4, %v4940_v21, 0.0  ;;  %v4902_v22 = vsel %vm1820_vm4, %v12720_v11, 0.0 }
 0x886   : > { %v4997_v29 = vsel %vm1820_vm4, %v4938_v54, 0.0  ;;  %v4898_v16 = vsel %vm1820_vm4, %v12723_v18, 0.0  ;;  %v4939_v24 = vmul.f32 %v12723_v18, %v12723_v18 }
 0x887   : > { %v4998_v30 = vadd.f32 %v4997_v29, %v4996_v45  ;;  %v4899_v26 = vadd.f32 %v4898_v16, %v4897_v41  ;;  %v5003_v15 = vsel %vm1820_vm4, %v4941_v58, 0.0  ;;  %v4840_v45 = vld [vmem:[#allocation24] sm:$0xff] }
 0x888   : > { %v4999_v38 = vsel %vm1820_vm4, %v4939_v24, 0.0  ;;  %v5697_v24 = vld [vmem:[#allocation14] sm:$0x3] }
 0x889   : > { %v4901_v5 = vadd.f32 %v4900_v35, %v4899_v26  ;;  %v5000_v31 = vadd.f32 %v4999_v38, %v4998_v30 }
 0x88b   : > { %v4903_v19 = vadd.f32 %v4902_v22, %v4901_v5  ;;  %v5002_v7 = vadd.f32 %v5001_v23, %v5000_v31  ;;  %v13644_v5 = vld [vmem:[#allocation40_spill] sm:$0xff]  ;;  %v13645_v31 = vld [vmem:[#allocation41_spill] sm:$0xff]  ;;  %v5754_v22 = vsel %vm2143_vm2, %v5697_v24, 0 }
 0x88c   : > { %v5681_v23 = vpack.c.bf16 %v13645_v31, %v13644_v5  ;;  %v13664_v5 = vld [vmem:[#allocation60_spill] sm:$0xff]  ;;  %v13665_v31 = vld [vmem:[#allocation61_spill] sm:$0xff] }
 0x88d   : > { %v4904_v40 = vrot.slane %v4903_v19, 4  ;;  %v5004_v53 = vadd.f32 %v5003_v15, %v5002_v7  ;;  %v13646_v7 = vld [vmem:[#allocation42_spill] sm:$0xff]  ;;  %v13647_v15 = vld [vmem:[#allocation43_spill] sm:$0xff] }
 0x88f   : > { %v4905_v63 = vadd.f32 %v4904_v40, %v4903_v19  ;;  %v5005_v20 = vrot.slane %v5004_v53, 4  ;;  %v5682_v40 = vpack.c.bf16 %v13647_v15, %v13646_v7  ;;  %v13668_v15 = vld [vmem:[#allocation64_spill] sm:$0xff] }
 0x891   : > { %v4906_v36 = vrot.slane %v4905_v63, 2  ;;  %v5006_v47 = vadd.f32 %v5005_v20, %v5004_v53  ;;  %v13649_v53 = vld [vmem:[#allocation45_spill] sm:$0xff]  ;;  %v13650_v20 = vld [vmem:[#allocation46_spill] sm:$0xff] }
 0x893   : > { %v4907_v3 = vadd.f32 %v4906_v36, %v4905_v63  ;;  %v5007_v34 = vrot.slane %v5006_v47, 2  ;;  %v13651_v36 = vld [vmem:[#allocation47_spill] sm:$0xff] }
 0x895   : > { %v4908_v55 = vrot.slane %v4907_v3, 1  ;;  %v5008_v43 = vadd.f32 %v5007_v34, %v5006_v47  ;;  %v5684_v47 = vpack.c.bf16 %v13651_v36, %v13650_v20  ;;  %v13653_v34 = vld [vmem:[#allocation49_spill] sm:$0xff]  ;;  %v13672_v36 = vld [vmem:[#allocation68_spill] sm:$0xff] }
 0x897   : > { %v4909_v57 = vadd.f32 %v4908_v55, %v4907_v3  ;;  %v5009_v54 = vrot.slane %v5008_v43, 1  ;;  %v13652_v3 = vld [vmem:[#allocation48_spill] sm:$0xff] }
 0x898   : > { %v5685_v55 = vpack.c.bf16 %v13653_v34, %v13652_v3  ;;  %v13674_v34 = vld [vmem:[#allocation70_spill] sm:$0xff] }
 0x899   : > { %6724 = vmatmul.mubr.msk.f32.vlgmr.msra.gmra.mrb[20].mxu0 %vm1820_vm4, %v4909_v57  ;;  %v5010_v41 = vadd.f32 %v5009_v54, %v5008_v43  ;;  %v13654_v43 = vld [vmem:[#allocation50_spill] sm:$0xff]  ;;  %v13655_v57 = vld [vmem:[#allocation51_spill] sm:$0xff] }
 0x89a   : > { %6727 = vmatpush3.msra.mxu0 %v12458_v32  ;;  %6728 = vmatprep.mubr.msk.f32.mxu0 %vm9080_vm13, %v13643_v8  ;;  %v5686_v54 = vpack.c.bf16 %v13655_v57, %v13654_v43 }
 0x89b   : > { %6731 = vmatprep.subr.mxu0 %v13643_v8 }
 0x89d   : > { %6729 = vmatmul.mubr.msk.f32.vlgmr.msra.gmra.mrb[22].mxu0 %vm1820_vm4, %v5010_v41  ;;  %v13656_v41 = vld [vmem:[#allocation52_spill] sm:$0xff] }
 0x89e   : > { %6733 = vmatprep.mubr.msk.f32.mxu0 %vm9080_vm13, %v13643_v8  ;;  %6732 = vmatpush3.msra.mxu0 %v4840_v45 }
 0x89f   : > { %6736 = vmatprep.subr.mxu0 %v13643_v8 }
 0x96c   : > { %v5080_v21 = vpop.f32.mrb[20].mxu0 }
 0x96d   : > { %v5157_v29 = vmul.f32 0.00390625, %v5080_v21  ;;  %v6725_v16 = vpop.f32.mrb[21].mxu0 }
 0x96e   : > { %v13659_v16 = vld [vmem:[#allocation55_spill] sm:$0xff] }
 0x96f   : > { %6734 = vmatmul.mubr.msk.f32.vlgmr.msra.gmra.mrb[24].mxu0 %vm1820_vm4, %v5157_v29  ;;  %v5159_v30 = vmul.f32 %v5157_v29, %v5157_v29  ;;  %v13658_v29 = vld [vmem:[#allocation54_spill] sm:$0xff] }
 0x970   : > { %v5153_v32 = vpop.f32.mrb[22].mxu0  ;;  %6737 = vmatpush3.msra.mxu0 %v4840_v45  ;;  %6738 = vmatprep.mubr.msk.f32.mxu0 %vm9080_vm13, %v13643_v8  ;;  %v13648_v8 = vld [vmem:[#allocation44_spill] sm:$0xff]  ;;  %v13657_v45 = vld [vmem:[#allocation53_spill] sm:$0xff] }
 0x971   : > { %v5158_v26 = vmul.f32 0.00390625, %v5153_v32  ;;  %v6730_v35 = vpop.f32.mrb[23].mxu0  ;;  %6784 = vmatprep.subr.msk.bf16.mxu0 %vm2143_vm2, %v5697_v24  ;;  %v5683_v63 = vpack.c.bf16 %v13649_v53, %v13648_v8  ;;  %v5687_v21 = vpack.c.bf16 %v13657_v45, %v13656_v41  ;;  %v5688_v24 = vpack.c.bf16 %v13659_v16, %v13658_v29  ;;  %v13660_v32 = vld [vmem:[#allocation56_spill] sm:$0xff]  ;;  %v13670_v53 = vld [vmem:[#allocation66_spill] sm:$0xff] }
 0x972   : > { %v13662_v35 = vld [vmem:[#allocation58_spill] sm:$0xff]  ;;  %v13676_v41 = vld [vmem:[#allocation72_spill] sm:$0xff] }
 0x973   : > { %v5160_v58 = vsub.f32 %v5158_v26, %v5159_v30  ;;  %v13661_v30 = vld [vmem:[#allocation57_spill] sm:$0xff] }
 0x974   : > { %v5689_v26 = vpack.c.bf16 %v13661_v30, %v13660_v32 }
 0x975   : > { %v5161_v38 = vadd.f32 1e-05, %v5160_v58  ;;  %v13663_v58 = vld [vmem:[#allocation59_spill] sm:$0xff] }
 0x977   : > { %8394 = vrsqrt.f32 %v5161_v38  ;;  %v5690_v38 = vpack.c.bf16 %v13663_v58, %v13662_v35 }
 0x981   : > { %v8395_v19 = vpop.eup %8394 }
 0x982   : > { %6739 = vmatmul.mubr.msk.f32.vlgmr.msra.gmra.mrb[26].mxu0 %vm1820_vm4, %v8395_v19  ;;  %v13667_v19 = vld [vmem:[#allocation63_spill] sm:$0xff] }
 0x983   : > { %6742 = vmatpush3.bf16.msra.mxu0 %v5754_v22  ;;  %6743 = vmatprep.mubr.msk.bf16.mxu0 %vm1787_vm3, %v5681_v23  ;;  %v5691_v23 = vpack.c.bf16 %v13665_v31, %v13664_v5  ;;  %v13666_v22 = vld [vmem:[#allocation62_spill] sm:$0xff] }
 0x984   : > { %v5692_v7 = vpack.c.bf16 %v13667_v19, %v13666_v22 }
 0x986   : > { %6744 = vmatmul.mubr.msk.bf16.vlgmr.msra.gmra.mrb[28].mxu0 %vm1787_vm3, %v5682_v40  ;;  %v13669_v40 = vld [vmem:[#allocation65_spill] sm:$0xff] }
 0x987   : > { %6747 = vmatprep.mubr.msk.bf16.mxu0 %vm1787_vm3, %v5683_v63  ;;  %v5693_v8 = vpack.c.bf16 %v13669_v40, %v13668_v15  ;;  %v13671_v63 = vld [vmem:[#allocation67_spill] sm:$0xff] }
 0x988   : > { %v5694_v20 = vpack.c.bf16 %v13671_v63, %v13670_v53 }
 0x98e   : > { %6748 = vmatmul.mubr.msk.bf16.gmra.mrb[32].mxu0 %vm1787_vm3, %v5684_v47  ;;  %v13673_v47 = vld [vmem:[#allocation69_spill] sm:$0xff] }
 0x98f   : > { %6751 = vmatprep.mubr.msk.bf16.mxu0 %vm1787_vm3, %v5685_v55  ;;  %v5695_v3 = vpack.c.bf16 %v13673_v47, %v13672_v36  ;;  %v13675_v55 = vld [vmem:[#allocation71_spill] sm:$0xff] }
 0x990   : > { %v5696_v43 = vpack.c.bf16 %v13675_v55, %v13674_v34 }
 0x996   : > { %6752 = vmatmul.mubr.msk.bf16.gmra.mrb[36].mxu0 %vm1787_vm3, %v5686_v54 }
 0x997   : > { %6755 = vmatprep.mubr.msk.bf16.mxu0 %vm1787_vm3, %v5687_v21 }
 0x99e   : > { %6756 = vmatmul.mubr.msk.bf16.gmra.mrb[40].mxu0 %vm1787_vm3, %v5688_v24 }
 0x99f   : > { %6759 = vmatprep.mubr.msk.bf16.mxu0 %vm1787_vm3, %v5689_v26 }
 0x9a6   : > { %6760 = vmatmul.mubr.msk.bf16.gmra.mrb[44].mxu0 %vm1787_vm3, %v5690_v38 }
 0x9a7   : > { %6763 = vmatprep.mubr.msk.bf16.mxu0 %vm1787_vm3, %v5691_v23 }
 0x9ae   : > { %6764 = vmatmul.mubr.msk.bf16.gmra.mrb[48].mxu0 %vm1787_vm3, %v5692_v7 }
 0x9af   : > { %6767 = vmatprep.mubr.msk.bf16.mxu0 %vm1787_vm3, %v5693_v8 }
 0x9b6   : > { %6768 = vmatmul.mubr.msk.bf16.gmra.mrb[52].mxu0 %vm1787_vm3, %v5694_v20 }
 0x9b7   : > { %6771 = vmatprep.mubr.msk.bf16.mxu0 %vm1787_vm3, %v5695_v3 }
 0x9be   : > { %6772 = vmatmul.mubr.msk.bf16.gmra.mrb[56].mxu0 %vm1787_vm3, %v5696_v43 }
 0xa42   : > { %v5232_v57 = vpop.f32.mrb[24].mxu0 }
 0xa43   : > { %v6735_v54 = vpop.f32.mrb[25].mxu0  ;;  %v12805_v45 = vrot.slane %v5232_v57, %v13676_v41 }
 0xa45   : > { %v5313_v21 = vsub.f32 %v12472_v51, %v12805_v45  ;;  %v5314_v29 = vsub.f32 %v12469_v14, %v12805_v45  ;;  %v5315_v16 = vsub.f32 %v12479_v27, %v12805_v45  ;;  %v5316_v24 = vsub.f32 %v12496_v17, %v12805_v45 }
 0xa46   : > { %v5317_v32 = vsub.f32 %v12499_v25, %v12805_v45  ;;  %v5318_v30 = vsub.f32 %v12509_v6, %v12805_v45  ;;  %v5319_v26 = vsub.f32 %v12520_v33, %v12805_v45  ;;  %v5320_v51 = vsub.f32 %v12528_v1, %v12805_v45 }
 0xa47   : > { %v5321_v14 = vsub.f32 %v12531_v4, %v12805_v45  ;;  %v5322_v27 = vsub.f32 %v12541_v10, %v12805_v45  ;;  %v5323_v17 = vsub.f32 %v12557_v37, %v12805_v45  ;;  %v5324_v25 = vsub.f32 %v12566_v13, %v12805_v45 }
 0xa48   : > { %v5325_v6 = vsub.f32 %v12569_v39, %v12805_v45  ;;  %v5326_v33 = vsub.f32 %v12580_v2, %v12805_v45  ;;  %v5327_v1 = vsub.f32 %v12592_v28, %v12805_v45  ;;  %v5328_v4 = vsub.f32 %v12601_v44, %v12805_v45 }
 0xa49   : > { %v5329_v10 = vsub.f32 %v12604_v50, %v12805_v45  ;;  %v5330_v37 = vsub.f32 %v12614_v52, %v12805_v45  ;;  %v5331_v13 = vsub.f32 %v12626_v42, %v12805_v45  ;;  %v5332_v39 = vsub.f32 %v12635_v60, %v12805_v45 }
 0xa4a   : > { %v5333_v2 = vsub.f32 %v12638_v9, %v12805_v45  ;;  %v5334_v28 = vsub.f32 %v12648_v12, %v12805_v45  ;;  %v5335_v44 = vsub.f32 %v12659_v48, %v12805_v45  ;;  %v5336_v50 = vsub.f32 %v12667_v49, %v12805_v45 }
 0xa4b   : > { %v5337_v52 = vsub.f32 %v12670_v61, %v12805_v45  ;;  %v5338_v42 = vsub.f32 %v12680_v62, %v12805_v45  ;;  %v5339_v60 = vsub.f32 %v12691_v46, %v12805_v45  ;;  %v5340_v9 = vsub.f32 %v12697_v59, %v12805_v45 }
 0xa4c   : > { %v5341_v48 = vsub.f32 %v12712_v56, %v12805_v45  ;;  %v5342_v49 = vsub.f32 %v12723_v18, %v12805_v45  ;;  %v5343_v61 = vsub.f32 %v12709_v0, %v12805_v45  ;;  %v5344_v62 = vsub.f32 %v12720_v11, %v12805_v45  ;;  %v12912_v45 = vld [vmem:[#allocation20] ss:$0 sm:$0xff] }
 0xa55   : > { %v5305_v35 = vpop.f32.mrb[26].mxu0 }
 0xa56   : > { %v5348_v12 = vrot.slane %v5305_v35, %v13676_v41  ;;  %v6740_v58 = vpop.f32.mrb[27].mxu0 }
 0xa58   : > { %v5349_v38 = vmul.f32 %v5348_v12, %v5313_v21  ;;  %v5350_v46 = vmul.f32 %v5348_v12, %v5314_v29  ;;  %v5351_v5 = vmul.f32 %v5348_v12, %v5315_v16  ;;  %v5352_v31 = vmul.f32 %v5348_v12, %v5316_v24 }
 0xa59   : > { %v5353_v59 = vmul.f32 %v5348_v12, %v5317_v32  ;;  %v5354_v23 = vmul.f32 %v5348_v12, %v5318_v30  ;;  %v5355_v22 = vmul.f32 %v5348_v12, %v5319_v26  ;;  %v5356_v19 = vmul.f32 %v5348_v12, %v5320_v51  ;;  %v12872_v7 = vpop.f32.mrb[28].mxu0 }
 0xa5a   : > { %v12874_v56 = vmul.f32 %v5348_v12, %v5321_v14  ;;  %v12876_v15 = vmul.f32 %v5348_v12, %v5322_v27  ;;  %v12878_v18 = vmul.f32 %v5348_v12, %v5323_v17  ;;  %v12880_v0 = vmul.f32 %v5348_v12, %v5324_v25  ;;  %v12882_v40 = vpop.f32.mrb[29].mxu0  ;;  %v12930_v14 = vld [vmem:[#allocation21] ss:$0 sm:$0xff] }
 0xa5b   : > { %v12884_v11 = vmul.f32 %v5348_v12, %v5325_v6  ;;  %v12886_v8 = vmul.f32 %v5348_v12, %v5326_v33  ;;  %v12888_v53 = vmul.f32 %v5348_v12, %v5327_v1  ;;  %v12890_v63 = vmul.f32 %v5348_v12, %v5328_v4  ;;  %v12892_v20 = vpop.f32.mrb[30].mxu0 }
 0xa5c   : > { %v12894_v36 = vmul.f32 %v5348_v12, %v5329_v10  ;;  %v12896_v47 = vmul.f32 %v5348_v12, %v5330_v37  ;;  %v12898_v3 = vmul.f32 %v5348_v12, %v5331_v13  ;;  %v12900_v34 = vmul.f32 %v5348_v12, %v5332_v39  ;;  %v12902_v55 = vpop.f32.mrb[31].mxu0 }
 0xa5d   : > { %v12904_v43 = vmul.f32 %v5348_v12, %v5333_v2  ;;  %v12906_v57 = vmul.f32 %v5348_v12, %v5334_v28  ;;  %v12908_v54 = vmul.f32 %v5348_v12, %v5335_v44  ;;  %v12910_v41 = vmul.f32 %v5348_v12, %v5336_v50 }
 0xa5e   : > { %v12914_v21 = vmul.f32 %v5348_v12, %v5337_v52  ;;  %v12916_v29 = vmul.f32 %v5348_v12, %v5338_v42  ;;  %v12918_v16 = vmul.f32 %v5348_v12, %v5339_v60  ;;  %v12920_v24 = vmul.f32 %v5348_v12, %v5340_v9  ;;  %v12956_v60 = vld [vmem:[#allocation15] ss:$0 sm:$0xff] }
 0xa5f   : > { %v12922_v32 = vmul.f32 %v5348_v12, %v5341_v48  ;;  %v12924_v30 = vmul.f32 %v5348_v12, %v5342_v49  ;;  %v12926_v26 = vmul.f32 %v5348_v12, %v5343_v61  ;;  %v12928_v51 = vmul.f32 %v5348_v12, %v5344_v62 }
 0xa60   : > { %13677 = vst [vmem:[#allocation75_spill] sm:$0xff] %v12916_v29  ;;  %v5389_v27 = vmul.f32 %v12912_v45, %v5351_v5  ;;  %v5387_v17 = vmul.f32 %v12912_v45, %v5349_v38  ;;  %v5390_v25 = vmul.f32 %v12912_v45, %v5352_v31  ;;  %v5388_v6 = vmul.f32 %v12912_v45, %v5350_v46 }
 0xa61   : > { %13678 = vst [vmem:[#allocation77_spill] sm:$0xff] %v12922_v32  ;;  %13679 = vst [vmem:[#allocation76_spill] sm:$0xff] %v12924_v30  ;;  %v6749_v33 = vpop.f32.mrb[32].mxu0  ;;  %v5393_v10 = vmul.f32 %v12912_v45, %v5355_v22  ;;  %v5391_v2 = vmul.f32 %v12912_v45, %v5353_v59  ;;  %v5394_v35 = vmul.f32 %v12912_v45, %v5356_v19 }
 0xa62   : > { %13680 = vst [vmem:[#allocation79_spill] sm:$0xff] %v12926_v26  ;;  %13681 = vst [vmem:[#allocation78_spill] sm:$0xff] %v12928_v51  ;;  %v12937_v1 = vadd.f32 %v12930_v14, %v5389_v27  ;;  %v12940_v4 = vadd.f32 %v12930_v14, %v5387_v17  ;;  %v5806_v37 = vpop.f32.mrb[33].mxu0  ;;  %v12944_v13 = vadd.f32 %v12930_v14, %v5390_v25 }
 0xa63   : > { %v12947_v39 = vadd.f32 %v12930_v14, %v5388_v6  ;;  %v6750_v28 = vpop.f32.mrb[34].mxu0  ;;  %v12953_v52 = vadd.f32 %v12930_v14, %v5393_v10  ;;  %v12961_v58 = vadd.f32 %v12930_v14, %v5391_v2  ;;  %v12965_v62 = vadd.f32 %v12930_v14, %v5394_v35 }
 0xa64   : > { %v5459_v44 = vsub.f32 0.0, %v12937_v1  ;;  %v5457_v50 = vsub.f32 0.0, %v12940_v4  ;;  %v5809_v42 = vpop.f32.mrb[35].mxu0  ;;  %v5460_v9 = vsub.f32 0.0, %v12944_v13  ;;  %v5392_v31 = vmul.f32 %v12912_v45, %v5354_v23 }
 0xa65   : > { %v5458_v12 = vsub.f32 0.0, %v12947_v39  ;;  %v5463_v61 = vsub.f32 0.0, %v12953_v52  ;;  %v5461_v5 = vsub.f32 0.0, %v12961_v58  ;;  %v5464_v22 = vsub.f32 0.0, %v12965_v62 }
 0xa66   : > { %v5493_v48 = vmul.f32 1.442695, %v5459_v44  ;;  %v5489_v49 = vmul.f32 1.442695, %v5457_v50  ;;  %v5495_v38 = vmul.f32 1.442695, %v5460_v9  ;;  %v12971_v27 = vadd.f32 %v12930_v14, %v5392_v31 }
 0xa67   : > { %v5491_v46 = vmul.f32 1.442695, %v5458_v12  ;;  %v5501_v59 = vmul.f32 1.442695, %v5463_v61  ;;  %v5497_v19 = vmul.f32 1.442695, %v5461_v5  ;;  %v5397_v17 = vmul.f32 %v12912_v45, %v12878_v18 }
 0xa68   : > { %8396 = vpow2.f32 %v5493_v48  ;;  %v12977_v6 = vadd.f32 %v12872_v7, %v12956_v60  ;;  %v5503_v10 = vmul.f32 1.442695, %v5464_v22  ;;  %v5395_v23 = vmul.f32 %v12912_v45, %v12874_v56 }
 0xa69   : > { %8398 = vpow2.f32 %v5489_v49  ;;  %v6753_v25 = vpop.f32.mrb[36].mxu0  ;;  %v12983_v44 = vadd.f32 %v12956_v60, %v12882_v40  ;;  %v5462_v50 = vsub.f32 0.0, %v12971_v27  ;;  %v12987_v18 = vadd.f32 %v12930_v14, %v5397_v17 }
 0xa6a   : > { %8400 = vpow2.f32 %v5495_v38  ;;  %v5822_v2 = vpop.f32.mrb[37].mxu0  ;;  %v12991_v7 = vadd.f32 %v12892_v20, %v12956_v60  ;;  %v12994_v9 = vadd.f32 %v12930_v14, %v5395_v23  ;;  %v5398_v56 = vmul.f32 %v12912_v45, %v12880_v0 }
 0xa6b   : > { %8402 = vpow2.f32 %v5491_v46  ;;  %v6754_v35 = vpop.f32.mrb[38].mxu0  ;;  %v5499_v12 = vmul.f32 1.442695, %v5462_v50  ;;  %v5467_v48 = vsub.f32 0.0, %v12987_v18  ;;  %v5396_v49 = vmul.f32 %v12912_v45, %v12876_v15 }
 0xa6c   : > { %8404 = vpow2.f32 %v5501_v59  ;;  %v5825_v40 = vpop.f32.mrb[39].mxu0  ;;  %v13003_v61 = vadd.f32 %v12956_v60, %v12902_v55  ;;  %v5465_v20 = vsub.f32 0.0, %v12994_v9  ;;  %v13007_v38 = vadd.f32 %v12930_v14, %v5398_v56 }
 0xa6d   : > { %8406 = vpow2.f32 %v5497_v19  ;;  %v13010_v0 = vadd.f32 %v6749_v33, %v12956_v60  ;;  %v5509_v46 = vmul.f32 1.442695, %v5467_v48  ;;  %v5401_v5 = vmul.f32 %v12912_v45, %v12888_v53 }
 0xa6e   : > { %8408 = vpow2.f32 %v5503_v10  ;;  %v5505_v31 = vmul.f32 1.442695, %v5465_v20  ;;  %v5468_v15 = vsub.f32 0.0, %v13007_v38  ;;  %v13016_v55 = vadd.f32 %v12930_v14, %v5396_v49 }
 0xa6f   : > { %8410 = vpow2.f32 %v5499_v12  ;;  %v5399_v59 = vmul.f32 %v12912_v45, %v12884_v11  ;;  %v13021_v22 = vadd.f32 %v12956_v60, %v5806_v37  ;;  %v13024_v33 = vadd.f32 %v6750_v28, %v12956_v60 }
 0xa70   : > { %8412 = vpow2.f32 %v5509_v46  ;;  %v5402_v53 = vmul.f32 %v12912_v45, %v12890_v63  ;;  %v13031_v10 = vadd.f32 %v12956_v60, %v5809_v42  ;;  %v5511_v23 = vmul.f32 1.442695, %v5468_v15 }
 0xa71   : > { %v13026_v19 = vpop.f32.mrb[40].mxu0  ;;  %8414 = vpow2.f32 %v5505_v31  ;;  %v13034_v11 = vadd.f32 %v12930_v14, %v5401_v5  ;;  %v13039_v56 = vadd.f32 %v6753_v25, %v12956_v60  ;;  %v13042_v12 = vadd.f32 %v12930_v14, %v5399_v59 }
 0xa72   : > { %v8397_v17 = vpop.eup %8396  ;;  %v13036_v37 = vpop.f32.mrb[41].mxu0  ;;  %v5400_v42 = vmul.f32 %v12912_v45, %v12886_v8  ;;  %v13049_v20 = vadd.f32 %v12956_v60, %v5822_v2  ;;  %8416 = vpow2.f32 %v5511_v23  ;;  %v5466_v46 = vsub.f32 0.0, %v13016_v55 }
 0xa73   : > { %v8399_v50 = vpop.eup %8398  ;;  %v5555_v28 = vadd.f32 1.0, %v8397_v17  ;;  %13682 = vst [vmem:[#allocation73_spill] sm:$0xff] %v13042_v12  ;;  %v13044_v63 = vpop.f32.mrb[42].mxu0  ;;  %v13055_v15 = vadd.f32 %v6754_v35, %v12956_v60  ;;  %v13058_v59 = vadd.f32 %v12930_v14, %v5402_v53  ;;  %v13061_v2 = vadd.f32 %v12956_v60, %v5825_v40 }
 0xa74   : > { %v8401_v48 = vpop.eup %8400  ;;  %v5553_v49 = vadd.f32 1.0, %v8399_v50  ;;  %v13052_v5 = vpop.f32.mrb[43].mxu0  ;;  %v5471_v23 = vsub.f32 0.0, %v13034_v11  ;;  %v5507_v51 = vmul.f32 1.442695, %v5466_v46 }
 0xa75   : > { %v8403_v25 = vpop.eup %8402  ;;  %8418 = vrcp.f32 %v5555_v28  ;;  %v5556_v31 = vadd.f32 1.0, %v8401_v48  ;;  %13683 = vst [vmem:[#allocation80_spill] sm:$0xff] %v13058_v59  ;;  %v5469_v28 = vsub.f32 0.0, %v13042_v12  ;;  %v13066_v48 = vadd.f32 %v12930_v14, %v5400_v42 }
 0xa76   : > { %v8405_v8 = vpop.eup %8404  ;;  %8420 = vrcp.f32 %v5553_v49  ;;  %v5554_v17 = vadd.f32 1.0, %v8403_v25  ;;  %v5405_v49 = vmul.f32 %v12912_v45, %v12898_v3  ;;  %v5472_v32 = vsub.f32 0.0, %v13058_v59 }
 0xa77   : > { %v8407_v50 = vpop.eup %8406  ;;  %8422 = vrcp.f32 %v5556_v31  ;;  %v5559_v30 = vadd.f32 1.0, %v8405_v8  ;;  %13684 = vst [vmem:[#allocation81_spill] sm:$0xff] %v13066_v48  ;;  %v5403_v31 = vmul.f32 %v12912_v45, %v12894_v36  ;;  %v5470_v8 = vsub.f32 0.0, %v13066_v48 }
 0xa78   : > { %v8409_v35 = vpop.eup %8408  ;;  %8424 = vrcp.f32 %v5554_v17  ;;  %v5557_v53 = vadd.f32 1.0, %v8407_v50  ;;  %v13077_v17 = vadd.f32 %v12930_v14, %v5405_v49  ;;  %v5513_v50 = vmul.f32 1.442695, %v5469_v28 }
 0xa79   : > { %v8411_v25 = vpop.eup %8410  ;;  %8426 = vrcp.f32 %v5559_v30  ;;  %v5560_v40 = vadd.f32 1.0, %v8409_v35  ;;  %v13071_v26 = vpop.f32.mrb[44].mxu0  ;;  %v5517_v30 = vmul.f32 1.442695, %v5471_v23  ;;  %v13082_v35 = vadd.f32 %v12930_v14, %v5403_v31 }
 0xa7a   : > { %8428 = vrcp.f32 %v5557_v53  ;;  %v5558_v42 = vadd.f32 1.0, %v8411_v25  ;;  %13685 = vst [vmem:[#allocation82_spill] sm:$0xff] %v13077_v17  ;;  %v13079_v46 = vpop.f32.mrb[45].mxu0  ;;  %v8413_v3 = vpop.eup %8412  ;;  %v5475_v25 = vsub.f32 0.0, %v13077_v17  ;;  %v5406_v49 = vmul.f32 %v12912_v45, %v12900_v34 }
 0xa7b   : > { %8430 = vrcp.f32 %v5560_v40  ;;  %v13084_v29 = vpop.f32.mrb[46].mxu0  ;;  %v8415_v36 = vpop.eup %8414  ;;  %v5563_v53 = vadd.f32 1.0, %v8413_v3  ;;  %v5519_v23 = vmul.f32 1.442695, %v5472_v32  ;;  %v5473_v28 = vsub.f32 0.0, %v13082_v35 }
 0xa7c   : > { %13686 = vst [vmem:[#allocation74_spill] sm:$0xff] %v13084_v29  ;;  %8432 = vrcp.f32 %v5558_v42  ;;  %v13089_v48 = vpop.f32.mrb[47].mxu0  ;;  %v5561_v59 = vadd.f32 1.0, %v8415_v36  ;;  %v8417_v40 = vpop.eup %8416  ;;  %v5515_v31 = vmul.f32 1.442695, %v5470_v8  ;;  %v13093_v12 = vadd.f32 %v12930_v14, %v5406_v49 }
 0xa7d   : > { %13687 = vst [vmem:[#allocation40_spill] sm:$0xff] %v13089_v48  ;;  %8434 = vpow2.f32 %v5507_v51  ;;  %v5404_v42 = vmul.f32 %v12912_v45, %v12896_v47  ;;  %v5564_v34 = vadd.f32 1.0, %v8417_v40  ;;  %v5525_v17 = vmul.f32 1.442695, %v5475_v25 }
 0xa7e   : > { %8436 = vrcp.f32 %v5563_v53  ;;  %v5521_v48 = vmul.f32 1.442695, %v5473_v28  ;;  %v5476_v51 = vsub.f32 0.0, %v13093_v12  ;;  %v5409_v47 = vmul.f32 %v12912_v45, %v12908_v54 }
 0xa7f   : > { %v8419_v3 = vpop.eup %8418  ;;  %8438 = vrcp.f32 %v5561_v59  ;;  %v13101_v8 = vadd.f32 %v12930_v14, %v5404_v42  ;;  %v13110_v25 = vmul.f32 %v12912_v45, %v12904_v43 }
 0xa80   : > { %v8421_v29 = vpop.eup %8420  ;;  %v5619_v32 = vmul.f32 %v8419_v3, %v12937_v1  ;;  %8440 = vpow2.f32 %v5517_v30  ;;  %v5527_v28 = vmul.f32 1.442695, %v5476_v51 }
 0xa81   : > { %v8423_v36 = vpop.eup %8422  ;;  %v5617_v53 = vmul.f32 %v8421_v29, %v12940_v4  ;;  %8442 = vrcp.f32 %v5564_v34  ;;  %v13106_v59 = vpop.f32.mrb[48].mxu0  ;;  %v5474_v42 = vsub.f32 0.0, %v13101_v8 }
 0xa82   : > { %v8425_v1 = vpop.eup %8424  ;;  %v5919_v30 = vadd.f32 %v12977_v6, %v5619_v32  ;;  %v5620_v49 = vmul.f32 %v8423_v36, %v12944_v13  ;;  %8444 = vpow2.f32 %v5513_v50  ;;  %v13114_v40 = vpop.f32.mrb[49].mxu0 }
 0xa83   : > { %v8427_v29 = vpop.eup %8426  ;;  %v5917_v4 = vadd.f32 %v12983_v44, %v5617_v53  ;;  %v5618_v54 = vmul.f32 %v8425_v1, %v12947_v39  ;;  %8446 = vpow2.f32 %v5519_v23  ;;  %v13119_v43 = vpop.f32.mrb[50].mxu0 }
 0xa84   : > { %v8429_v3 = vpop.eup %8428  ;;  %v6473_v34 = vpack.c.bf16 %v5919_v30, %v5919_v30  ;;  %v5920_v6 = vadd.f32 %v12991_v7, %v5620_v49  ;;  %v5623_v13 = vmul.f32 %v8427_v29, %v12953_v52  ;;  %8448 = vpow2.f32 %v5515_v31  ;;  %v13123_v50 = vpop.f32.mrb[51].mxu0 }
 0xa85   : > { %v8431_v32 = vpop.eup %8430  ;;  %v6471_v51 = vpack.c.bf16 %v5917_v4, %v5917_v4  ;;  %v5918_v44 = vadd.f32 %v13003_v61, %v5618_v54  ;;  %v5621_v39 = vmul.f32 %v8429_v3, %v12961_v58  ;;  %8450 = vpow2.f32 %v5525_v17 }
 0xa86   : > { %v8433_v23 = vpop.eup %8432  ;;  %6080 = vst.msk [vmem:[%s13129_s28 + $0x8] sm:$0xf] %vm6077_vm0, %v6473_v34  ;;  %v6474_v52 = vpack.c.bf16 %v5920_v6, %v5920_v6  ;;  %v5923_v7 = vadd.f32 %v13010_v0, %v5623_v13  ;;  %v5624_v31 = vmul.f32 %v8431_v32, %v12965_v62  ;;  %8452 = vpow2.f32 %v5521_v48 }
 0xa87   : > { %v8435_v61 = vpop.eup %8434  ;;  %6078 = vst.msk [vmem:[%s13129_s28] sm:$0xf] %vm6077_vm0, %v6471_v51  ;;  %v6472_v58 = vpack.c.bf16 %v5918_v44, %v5918_v44  ;;  %v5921_v17 = vadd.f32 %v13021_v22, %v5621_v39  ;;  %v5622_v36 = vmul.f32 %v8433_v23, %v12971_v27  ;;  %8454 = vpow2.f32 %v5527_v28 }
 0xa88   : > { %v8437_v53 = vpop.eup %8436  ;;  %6081 = vst.msk [vmem:[%s13129_s28 + $0xc] sm:$0xf] %vm6077_vm0, %v6474_v52  ;;  %v6477_v1 = vpack.c.bf16 %v5923_v7, %v5923_v7  ;;  %v5924_v0 = vadd.f32 %v13024_v33, %v5624_v31  ;;  %v5562_v30 = vadd.f32 1.0, %v8435_v61  ;;  %v5523_v49 = vmul.f32 1.442695, %v5474_v42 }
 0xa89   : > { %v8439_v62 = vpop.eup %8438  ;;  %6079 = vst.msk [vmem:[%s13129_s28 + $0x4] sm:$0xf] %vm6077_vm0, %v6472_v58  ;;  %v6475_v48 = vpack.c.bf16 %v5921_v17, %v5921_v17  ;;  %v5922_v29 = vadd.f32 %v13031_v10, %v5622_v36  ;;  %v5627_v22 = vmul.f32 %v8437_v53, %v12987_v18  ;;  %v13147_v27 = vadd.f32 %v12930_v14, %v5409_v47  ;;  %v13149_v28 = vpop.f32.mrb[52].mxu0 }
 0xa8a   : > { %v8441_v4 = vpop.eup %8440  ;;  %6084 = vst.msk [vmem:[%s13129_s28 + $0x18] sm:$0xf] %vm6077_vm0, %v6477_v1  ;;  %v6478_v33 = vpack.c.bf16 %v5924_v0, %v5924_v0  ;;  %v5625_v54 = vmul.f32 %v8439_v62, %v12994_v9  ;;  %8456 = vrcp.f32 %v5562_v30  ;;  %v13156_v42 = vadd.f32 %v13026_v19, %v12956_v60  ;;  %v13158_v10 = vpop.f32.mrb[53].mxu0 }
 0xa8b   : > { %v8443_v18 = vpop.eup %8442  ;;  %6082 = vst.msk [vmem:[%s13129_s28 + $0x10] sm:$0xf] %vm6077_vm0, %v6475_v48  ;;  %v6476_v47 = vpack.c.bf16 %v5922_v29, %v5922_v29  ;;  %v5927_v3 = vadd.f32 %v13039_v56, %v5627_v22  ;;  %v5567_v34 = vadd.f32 1.0, %v8441_v4  ;;  %8458 = vpow2.f32 %v5523_v49  ;;  %v13163_v6 = vpop.f32.mrb[54].mxu0 }
 0xa8c   : > { %v8445_v13 = vpop.eup %8444  ;;  %6085 = vst.msk [vmem:[%s13129_s28 + $0x1c] sm:$0xf] %vm6077_vm0, %v6478_v33  ;;  %v5925_v9 = vadd.f32 %v13049_v20, %v5625_v54  ;;  %v5628_v19 = vmul.f32 %v8443_v18, %v13007_v38  ;;  %v13171_v32 = vadd.f32 %v12956_v60, %v13036_v37  ;;  %v13175_v51 = vadd.f32 %v12930_v14, %v13110_v25  ;;  %v13177_v56 = vpop.f32.mrb[55].mxu0 }
 0xa8d   : > { %v8447_v44 = vpop.eup %8446  ;;  %6083 = vst.msk [vmem:[%s13129_s28 + $0x14] sm:$0xf] %vm6077_vm0, %v6476_v47  ;;  %v6481_v39 = vpack.c.bf16 %v5927_v3, %v5927_v3  ;;  %8460 = vrcp.f32 %v5567_v34  ;;  %v5565_v20 = vadd.f32 1.0, %v8445_v13  ;;  %v5479_v38 = vsub.f32 0.0, %v13147_v27 }
 0xa8e   : > { %v8449_v23 = vpop.eup %8448  ;;  %v6479_v52 = vpack.c.bf16 %v5925_v9, %v5925_v9  ;;  %v5928_v37 = vadd.f32 %v13055_v15, %v5628_v19  ;;  %v5568_v7 = vadd.f32 1.0, %v8447_v44  ;;  %v13185_v25 = vadd.f32 %v13044_v63, %v12956_v60 }
 0xa8f   : > { %v8451_v31 = vpop.eup %8450  ;;  %6088 = vst.msk [vmem:[%s13129_s28 + $0x28] sm:$0xf] %vm6077_vm0, %v6481_v39  ;;  %8462 = vrcp.f32 %v5565_v20  ;;  %v5566_v61 = vadd.f32 1.0, %v8449_v23  ;;  %v5477_v58 = vsub.f32 0.0, %v13175_v51  ;;  %v5410_v17 = vmul.f32 %v12912_v45, %v12910_v41 }
 0xa90   : > { %v8453_v36 = vpop.eup %8452  ;;  %6086 = vst.msk [vmem:[%s13129_s28 + $0x20] sm:$0xf] %vm6077_vm0, %v6479_v52  ;;  %v6482_v15 = vpack.c.bf16 %v5928_v37, %v5928_v37  ;;  %8464 = vrcp.f32 %v5568_v7  ;;  %v13196_v63 = vadd.f32 %v12956_v60, %v13052_v5  ;;  %v5571_v53 = vadd.f32 1.0, %v8451_v31  ;;  %v13688_v31 = vld [vmem:[#allocation74_spill] sm:$0xff] }
 0xa91   : > { %v8455_v1 = vpop.eup %8454  ;;  %8466 = vrcp.f32 %v5566_v61  ;;  %v5569_v0 = vadd.f32 1.0, %v8453_v36  ;;  %v5533_v30 = vmul.f32 1.442695, %v5479_v38  ;;  %v13199_v49 = vadd.f32 %v12930_v14, %v5410_v17  ;;  %v13201_v62 = vpop.f32.mrb[56].mxu0 }
 0xa92   : > { %6089 = vst.msk [vmem:[%s13129_s28 + $0x2c] sm:$0xf] %vm6077_vm0, %v6482_v15  ;;  %8468 = vrcp.f32 %v5571_v53  ;;  %v5572_v41 = vadd.f32 1.0, %v8455_v1  ;;  %v5529_v48 = vmul.f32 1.442695, %v5477_v58  ;;  %v5408_v29 = vmul.f32 %v12912_v45, %v12906_v57  ;;  %v13207_v5 = vpop.f32.mrb[57].mxu0 }
 0xa93   : > { %v13211_v22 = vadd.f32 %v13071_v26, %v12956_v60  ;;  %8470 = vrcp.f32 %v5569_v0  ;;  %v5480_v4 = vsub.f32 0.0, %v13199_v49  ;;  %v5413_v33 = vmul.f32 %v12912_v45, %v12918_v16  ;;  %v13216_v54 = vpop.f32.mrb[58].mxu0  ;;  %v13690_v1 = vld [vmem:[#allocation80_spill] sm:$0xff] }
 0xa94   : > { %v8457_v18 = vpop.eup %8456  ;;  %v13220_v47 = vadd.f32 %v12956_v60, %v13079_v46  ;;  %8472 = vrcp.f32 %v5572_v41  ;;  %v13223_v57 = vadd.f32 %v12930_v14, %v5408_v29  ;;  %v5411_v26 = vmul.f32 %v12912_v45, %v12914_v21  ;;  %v13227_v3 = vpop.f32.mrb[59].mxu0  ;;  %v13691_v41 = vld [vmem:[#allocation75_spill] sm:$0xff] }
 0xa95   : > { %v8459_v34 = vpop.eup %8458  ;;  %v5626_v13 = vmul.f32 %v8457_v18, %v13016_v55  ;;  %8474 = vpow2.f32 %v5533_v30  ;;  %v5535_v16 = vmul.f32 1.442695, %v5480_v4  ;;  %v13231_v9 = vadd.f32 %v12930_v14, %v5413_v33  ;;  %v13692_v33 = vld [vmem:[#allocation81_spill] sm:$0xff] }
 0xa96   : > { %v5570_v19 = vadd.f32 1.0, %v8459_v34  ;;  %8476 = vpow2.f32 %v5529_v48  ;;  %v5478_v46 = vsub.f32 0.0, %v13223_v57  ;;  %v13235_v44 = vadd.f32 %v12930_v14, %v5411_v26 }
 0xa97   : > { %v8461_v39 = vpop.eup %8460  ;;  %v5926_v21 = vadd.f32 %v13061_v2, %v5626_v13  ;;  %8478 = vpow2.f32 %v5535_v16  ;;  %v5483_v20 = vsub.f32 0.0, %v13231_v9  ;;  %v5414_v55 = vmul.f32 %v12912_v45, %v12920_v24  ;;  %v13689_v24 = vld [vmem:[#allocation73_spill] sm:$0xff]  ;;  %v13693_v13 = vld [vmem:[#allocation82_spill] sm:$0xff] }
 0xa98   : > { %v5631_v38 = vmul.f32 %v8461_v39, %v13034_v11  ;;  %8480 = vrcp.f32 %v5570_v19  ;;  %v5531_v23 = vmul.f32 1.442695, %v5478_v46  ;;  %v5481_v52 = vsub.f32 0.0, %v13235_v44 }
 0xa99   : > { %v8463_v37 = vpop.eup %8462  ;;  %v6480_v7 = vpack.c.bf16 %v5926_v21, %v5926_v21  ;;  %v5866_v61 = vadd.f32 %v13688_v31, %v12956_v60  ;;  %v5541_v58 = vmul.f32 1.442695, %v5483_v20  ;;  %v13246_v2 = vadd.f32 %v12930_v14, %v5414_v55  ;;  %v13694_v55 = vld [vmem:[#allocation40_spill] sm:$0xff] }
 0xa9a   : > { %v8465_v17 = vpop.eup %8464  ;;  %v5931_v36 = vadd.f32 %v13156_v42, %v5631_v38  ;;  %v5629_v15 = vmul.f32 %v8463_v37, %v13689_v24  ;;  %8482 = vpow2.f32 %v5531_v23  ;;  %v5537_v11 = vmul.f32 1.442695, %v5481_v52 }
 0xa9b   : > { %v8467_v53 = vpop.eup %8466  ;;  %6087 = vst.msk [vmem:[%s13129_s28 + $0x24] sm:$0xf] %vm6077_vm0, %v6480_v7  ;;  %v5632_v0 = vmul.f32 %v8465_v17, %v13690_v1  ;;  %8484 = vpow2.f32 %v5541_v58  ;;  %v5484_v30 = vsub.f32 0.0, %v13246_v2  ;;  %v5412_v48 = vmul.f32 %v12912_v45, %v13691_v41 }
 0xa9c   : > { %v8469_v29 = vpop.eup %8468  ;;  %v6485_v4 = vpack.c.bf16 %v5931_v36, %v5931_v36  ;;  %v5929_v42 = vadd.f32 %v13171_v32, %v5629_v15  ;;  %v5630_v18 = vmul.f32 %v8467_v53, %v13692_v33  ;;  %8486 = vpow2.f32 %v5537_v11  ;;  %v13695_v15 = vld [vmem:[#allocation79_spill] sm:$0xff] }
 0xa9d   : > { %v8471_v26 = vpop.eup %8470  ;;  %v5932_v34 = vadd.f32 %v13185_v25, %v5632_v0  ;;  %v5635_v16 = vmul.f32 %v8469_v29, %v13693_v13  ;;  %v5543_v19 = vmul.f32 1.442695, %v5484_v30  ;;  %v13261_v46 = vadd.f32 %v12930_v14, %v5412_v48  ;;  %v13696_v48 = vld [vmem:[#allocation77_spill] sm:$0xff]  ;;  %v13697_v13 = vld [vmem:[#allocation78_spill] sm:$0xff] }
 0xa9e   : > { %v8473_v39 = vpop.eup %8472  ;;  %6092 = vst.msk [vmem:[%s13129_s28 + $0x38] sm:$0xf] %vm6077_vm0, %v6485_v4  ;;  %v6483_v21 = vpack.c.bf16 %v5929_v42, %v5929_v42  ;;  %v5930_v32 = vadd.f32 %v13196_v63, %v5630_v18  ;;  %v5633_v20 = vmul.f32 %v8471_v26, %v13082_v35  ;;  %v5858_v38 = vadd.f32 %v12956_v60, %v13694_v55  ;;  %v13698_v55 = vld [vmem:[#allocation76_spill] sm:$0xff] }
 0xa9f   : > { %v8475_v25 = vpop.eup %8474  ;;  %v6486_v23 = vpack.c.bf16 %v5932_v34, %v5932_v34  ;;  %v5935_v52 = vadd.f32 %v13211_v22, %v5635_v16  ;;  %v5636_v37 = vmul.f32 %v8473_v39, %v13093_v12  ;;  %8488 = vpow2.f32 %v5543_v19 }
 0xaa0   : > { %v8477_v7 = vpop.eup %8476  ;;  %6090 = vst.msk [vmem:[%s13129_s28 + $0x30] sm:$0xf] %vm6077_vm0, %v6483_v21  ;;  %v6484_v31 = vpack.c.bf16 %v5930_v32, %v5930_v32  ;;  %v5933_v63 = vadd.f32 %v13220_v47, %v5633_v20  ;;  %v5575_v58 = vadd.f32 1.0, %v8475_v25  ;;  %v5482_v35 = vsub.f32 0.0, %v13261_v46 }
 0xaa1   : > { %v8479_v17 = vpop.eup %8478  ;;  %6093 = vst.msk [vmem:[%s13129_s28 + $0x3c] sm:$0xf] %vm6077_vm0, %v6486_v23  ;;  %v6489_v36 = vpack.c.bf16 %v5935_v52, %v5935_v52  ;;  %v5936_v22 = vadd.f32 %v5866_v61, %v5636_v37  ;;  %v5573_v24 = vadd.f32 1.0, %v8477_v7  ;;  %v5417_v12 = vmul.f32 %v12912_v45, %v13695_v15 }
 0xaa2   : > { %v8481_v11 = vpop.eup %8480  ;;  %6091 = vst.msk [vmem:[%s13129_s28 + $0x34] sm:$0xf] %vm6077_vm0, %v6484_v31  ;;  %v6487_v53 = vpack.c.bf16 %v5933_v63, %v5933_v63  ;;  %8490 = vrcp.f32 %v5575_v58  ;;  %v5576_v47 = vadd.f32 1.0, %v8479_v17  ;;  %v5539_v1 = vmul.f32 1.442695, %v5482_v35 }
 0xaa3   : > { %6096 = vst.msk [vmem:[%s13129_s28 + $0x48] sm:$0xf] %vm6077_vm0, %v6489_v36  ;;  %v6490_v0 = vpack.c.bf16 %v5936_v22, %v5936_v22  ;;  %v5634_v30 = vmul.f32 %v8481_v11, %v13101_v8  ;;  %8492 = vrcp.f32 %v5573_v24  ;;  %v13285_v61 = vadd.f32 %v12930_v14, %v5417_v12 }
 0xaa4   : > { %v8483_v41 = vpop.eup %8482  ;;  %6094 = vst.msk [vmem:[%s13129_s28 + $0x40] sm:$0xf] %vm6077_vm0, %v6487_v53  ;;  %8494 = vrcp.f32 %v5576_v47  ;;  %v5415_v29 = vmul.f32 %v12912_v45, %v13696_v48  ;;  %v5418_v16 = vmul.f32 %v12912_v45, %v13697_v13  ;;  %v5879_v7 = vadd.f32 %v13106_v59, %v12956_v60 }
 0xaa5   : > { %v8485_v4 = vpop.eup %8484  ;;  %6097 = vst.msk [vmem:[%s13129_s28 + $0x4c] sm:$0xf] %vm6077_vm0, %v6490_v0  ;;  %v5934_v42 = vadd.f32 %v5858_v38, %v5634_v30  ;;  %v5574_v33 = vadd.f32 1.0, %v8483_v41  ;;  %8496 = vpow2.f32 %v5539_v1  ;;  %v5487_v8 = vsub.f32 0.0, %v13285_v61 }
 0xaa6   : > { %v8487_v18 = vpop.eup %8486  ;;  %v5579_v26 = vadd.f32 1.0, %v8485_v4  ;;  %v13295_v34 = vadd.f32 %v12930_v14, %v5415_v29  ;;  %v13301_v20 = vadd.f32 %v12930_v14, %v5418_v16  ;;  %v5416_v38 = vmul.f32 %v12912_v45, %v13698_v55 }
 0xaa7   : > { %v6488_v19 = vpack.c.bf16 %v5934_v42, %v5934_v42  ;;  %8498 = vrcp.f32 %v5574_v33  ;;  %v5577_v39 = vadd.f32 1.0, %v8487_v18  ;;  %v5549_v21 = vmul.f32 1.442695, %v5487_v8 }
 0xaa8   : > { %8500 = vrcp.f32 %v5579_v26  ;;  %v5485_v32 = vsub.f32 0.0, %v13295_v34  ;;  %v5488_v37 = vsub.f32 0.0, %v13301_v20  ;;  %v13311_v31 = vadd.f32 %v12930_v14, %v5416_v38 }
 0xaa9   : > { %v8489_v25 = vpop.eup %8488  ;;  %6095 = vst.msk [vmem:[%s13129_s28 + $0x44] sm:$0xf] %vm6077_vm0, %v6488_v19  ;;  %8502 = vrcp.f32 %v5577_v39  ;;  %v5871_v58 = vadd.f32 %v12956_v60, %v13114_v40  ;;  %v5882_v36 = vadd.f32 %v13119_v43, %v12956_v60  ;;  %v5887_v41 = vadd.f32 %v12956_v60, %v13158_v10 }
 0xaaa   : > { %v5580_v23 = vadd.f32 1.0, %v8489_v25  ;;  %8504 = vpow2.f32 %v5549_v21  ;;  %v5545_v52 = vmul.f32 1.442695, %v5485_v32  ;;  %v5551_v45 = vmul.f32 1.442695, %v5488_v37 }
 0xaab   : > { %v5486_v22 = vsub.f32 0.0, %v13311_v31  ;;  %v5898_v10 = vadd.f32 %v13163_v6, %v12956_v60  ;;  %v5911_v37 = vadd.f32 %v13201_v62, %v12956_v60 }
 0xaac   : > { %v8491_v63 = vpop.eup %8490  ;;  %8506 = vrcp.f32 %v5580_v23 }
 0xaad   : > { %v8493_v35 = vpop.eup %8492  ;;  %v5639_v17 = vmul.f32 %v8491_v63, %v13147_v27  ;;  %8508 = vpow2.f32 %v5545_v52  ;;  %v5547_v40 = vmul.f32 1.442695, %v5486_v22  ;;  %v5874_v27 = vadd.f32 %v12956_v60, %v13123_v50 }
 0xaae   : > { %v8495_v24 = vpop.eup %8494  ;;  %v5637_v59 = vmul.f32 %v8493_v35, %v13175_v51  ;;  %8510 = vpow2.f32 %v5551_v45  ;;  %v5895_v51 = vadd.f32 %v13149_v28, %v12956_v60 }
 0xaaf   : > { %v8497_v14 = vpop.eup %8496  ;;  %v5939_v15 = vadd.f32 %v5879_v7, %v5639_v17  ;;  %v5640_v12 = vmul.f32 %v8495_v24, %v13199_v49  ;;  %8512 = vpow2.f32 %v5547_v40 }
 0xab0   : > { %v5937_v11 = vadd.f32 %v5871_v58, %v5637_v59  ;;  %v5578_v53 = vadd.f32 1.0, %v8497_v14 }
 0xab1   : > { %v8499_v43 = vpop.eup %8498  ;;  %v6493_v47 = vpack.c.bf16 %v5939_v15, %v5939_v15  ;;  %v5940_v1 = vadd.f32 %v5882_v36, %v5640_v12 }
 0xab2   : > { %v8501_v0 = vpop.eup %8500  ;;  %v6491_v30 = vpack.c.bf16 %v5937_v11, %v5937_v11  ;;  %v5638_v49 = vmul.f32 %v8499_v43, %v13223_v57  ;;  %8514 = vrcp.f32 %v5578_v53 }
 0xab3   : > { %v8503_v48 = vpop.eup %8502  ;;  %6100 = vst.msk [vmem:[%s13129_s28 + $0x58] sm:$0xf] %vm6077_vm0, %v6493_v47  ;;  %v6494_v50 = vpack.c.bf16 %v5940_v1, %v5940_v1  ;;  %v5643_v29 = vmul.f32 %v8501_v0, %v13231_v9 }
 0xab4   : > { %v8505_v4 = vpop.eup %8504  ;;  %6098 = vst.msk [vmem:[%s13129_s28 + $0x50] sm:$0xf] %vm6077_vm0, %v6491_v30  ;;  %v5938_v28 = vadd.f32 %v5874_v27, %v5638_v49  ;;  %v5641_v42 = vmul.f32 %v8503_v48, %v13235_v44 }
 0xab5   : > { %6101 = vst.msk [vmem:[%s13129_s28 + $0x5c] sm:$0xf] %vm6077_vm0, %v6494_v50  ;;  %v5943_v57 = vadd.f32 %v5895_v51, %v5643_v29  ;;  %v5583_v33 = vadd.f32 1.0, %v8505_v4 }
 0xab6   : > { %v8507_v8 = vpop.eup %8506  ;;  %v6492_v18 = vpack.c.bf16 %v5938_v28, %v5938_v28  ;;  %v5941_v26 = vadd.f32 %v5887_v41, %v5641_v42 }
 0xab7   : > { %v8509_v9 = vpop.eup %8508  ;;  %v6497_v13 = vpack.c.bf16 %v5943_v57, %v5943_v57  ;;  %v5644_v16 = vmul.f32 %v8507_v8, %v13246_v2  ;;  %8516 = vrcp.f32 %v5583_v33  ;;  %v5890_v2 = vadd.f32 %v12956_v60, %v13177_v56 }
 0xab8   : > { %v8511_v19 = vpop.eup %8510  ;;  %6099 = vst.msk [vmem:[%s13129_s28 + $0x54] sm:$0xf] %vm6077_vm0, %v6492_v18  ;;  %v6495_v44 = vpack.c.bf16 %v5941_v26, %v5941_v26  ;;  %v5581_v39 = vadd.f32 1.0, %v8509_v9  ;;  %v5903_v56 = vadd.f32 %v12956_v60, %v13207_v5  ;;  %v5906_v5 = vadd.f32 %v12956_v60, %v13227_v3 }
 0xab9   : > { %6104 = vst.msk [vmem:[%s13129_s28 + $0x68] sm:$0xf] %vm6077_vm0, %v6497_v13  ;;  %v5944_v21 = vadd.f32 %v5898_v10, %v5644_v16  ;;  %v5584_v6 = vadd.f32 1.0, %v8511_v19  ;;  %v8513_v32 = vpop.eup %8512 }
 0xaba   : > { %6102 = vst.msk [vmem:[%s13129_s28 + $0x60] sm:$0xf] %vm6077_vm0, %v6495_v44  ;;  %8518 = vrcp.f32 %v5581_v39  ;;  %v5582_v25 = vadd.f32 1.0, %v8513_v32 }
 0xabb   : > { %v6498_v55 = vpack.c.bf16 %v5944_v21, %v5944_v21  ;;  %8520 = vrcp.f32 %v5584_v6 }
 0xabc   : > { %v8515_v38 = vpop.eup %8514  ;;  %8522 = vrcp.f32 %v5582_v25 }
 0xabd   : > { %6105 = vst.msk [vmem:[%s13129_s28 + $0x6c] sm:$0xf] %vm6077_vm0, %v6498_v55  ;;  %v5642_v23 = vmul.f32 %v8515_v38, %v13261_v46  ;;  %v5914_v46 = vadd.f32 %v13216_v54, %v12956_v60 }
 0xabf   : > { %v5942_v52 = vadd.f32 %v5890_v2, %v5642_v23 }
 0xac1   : > { %v8517_v7 = vpop.eup %8516  ;;  %v6496_v63 = vpack.c.bf16 %v5942_v52, %v5942_v52 }
 0xac2   : > { %v5647_v58 = vmul.f32 %v8517_v7, %v13285_v61 }
 0xac3   : > { %6103 = vst.msk [vmem:[%s13129_s28 + $0x64] sm:$0xf] %vm6077_vm0, %v6496_v63 }
 0xac4   : > { %v8519_v45 = vpop.eup %8518  ;;  %v5947_v35 = vadd.f32 %v5911_v37, %v5647_v58 }
 0xac5   : > { %v8521_v17 = vpop.eup %8520  ;;  %v5645_v62 = vmul.f32 %v8519_v45, %v13295_v34 }
 0xac6   : > { %v6501_v36 = vpack.c.bf16 %v5947_v35, %v5947_v35  ;;  %v5648_v61 = vmul.f32 %v8521_v17, %v13301_v20  ;;  %v8523_v24 = vpop.eup %8522 }
 0xac7   : > { %v5945_v22 = vadd.f32 %v5903_v56, %v5645_v62  ;;  %v5646_v54 = vmul.f32 %v8523_v24, %v13311_v31 }
 0xac8   : > { %6108 = vst.msk [vmem:[%s13129_s28 + $0x78] sm:$0xf] %vm6077_vm0, %v6501_v36  ;;  %v5948_v59 = vadd.f32 %v5914_v46, %v5648_v61 }
 0xac9   : > { %v6499_v14 = vpack.c.bf16 %v5945_v22, %v5945_v22  ;;  %v5946_v34 = vadd.f32 %v5906_v5, %v5646_v54 }
 0xaca   : > { %v6502_v15 = vpack.c.bf16 %v5948_v59, %v5948_v59 }
 0xacb   : > { %6106 = vst.msk [vmem:[%s13129_s28 + $0x70] sm:$0xf] %vm6077_vm0, %v6499_v14  ;;  %v6500_v20 = vpack.c.bf16 %v5946_v34, %v5946_v34 }
 0xacc   : > { %6109 = vst.msk [vmem:[%s13129_s28 + $0x7c] sm:$0xf] %vm6077_vm0, %v6502_v15 }
 0xacd   : > { %6107 = vst.msk [vmem:[%s13129_s28 + $0x74] sm:$0xf] %vm6077_vm0, %v6500_v20 }
 0xace   : > { %8968 = shalt.err (!%p8965_p2)
}
 0xacf   : > { %s8969_s3 = scalar_lea.hbm %s13375_s4, 2048  ;;  %s8973_s5 = scalar_lea.hbm %s13699_s6, 4096 }
 0xad0   : > { %p8970_p4 = scmp.ne.s32.totalorder %s13375_s4, %s8969_s3  ;;  %p8974_p7 = scmp.lt.u32.totalorder %s13375_s4, %s13699_s6 }
 0xad1   : > { %p8975_p0 = scmp.lt.u32.totalorder %s8973_s5, %s8969_s3  ;;  %p8977_p11 = scmp.lt.u32.totalorder %s8969_s3, %s13375_s4 }
 0xad2   : > { %p8971_p10 = pnand %p8970_p4, %p13700_p8 }
 0xad3   : > { %p8976_p5 = por %p8975_p0, %p8974_p7 }
 0xad4   : > { %p8972_p6 = pneg %p8971_p10 }
 0xad5   : > { %p8978_p9 = por %p8977_p11, %p8976_p5 }
 0xad7   : > { %p8979_p12 = pnand %p8978_p9, %p8972_p6 }
 0xad9   : > { %8982 = shalt.err (!%p8979_p12)
}
 0xada   : > { %6840 = dma.vmem_to_hbm [thread:$0]  (%p13700_p8), %s13377_s17, 2048, %s13375_s4, %s6111_s0, %s9084_s20, %s9084_s20, %s9073_s22  }
 0xadb PF: > { %s13701_s2 = sld [smem:[#allocation37_spill]]  ;;  %p13702_p13 = scmp.ne.s32.totalorder %s13542_s18, 0 }
 0xadc   : > { %p13703_p1 = scmp.ge.s32.totalorder %s9053_s16, 2 }
 0xade   : > { %p6887_p3 = pnand %p13703_p1, %p13702_p13 }
 0xae1   : > { %s6139_s1 = sand.u32 1, %s13701_s2  }
 0xae2   : > { %s6140_s8 = scalar_lea.sflag [#allocation5], %s6139_s1 }
 0xae3   : > { %9036 = dma.done.wait (!%p6887_p3), %s6140_s8, 2048  }
 0xae4   : > { %9038 = vsyncadd (!%p6887_p3), %s6140_s8, 4294965248  ;;  %s13704_s19 = smov %s9464_s29  ;;  %p36_p2 = scmp.ge.s32.totalorder %s9453_s23, 4  }
 0xae5   : > { %s13705_s29 = smov %s9045_s30  ;;  %s13706_s30 = smov %s9049_s15 }
 0xae6   : > { %s13707_s15 = smov %s13704_s19  ;;  %s13708_s16 = smov %s9453_s23 }
 0xae7   :  { %38 = sbr.rel (!%p36_p2) target bundleno = 24 (0x18), region = 183 }
 0xaee   :  { %6145 = vsyncpa [#allocation4], 1 }
 0xaef   :  { %6147 = vsyncpa [#allocation4 + $0x1], 1 }
 0xaf0   :  { %6148 = vsyncpa [#allocation7], 1 }
 0xaf1   :  { %6150 = vsyncpa [#allocation7 + $0x1], 1 }
 0xaf2   :  { %6151 = vsyncpa [#allocation10], 1 }
 0xaf3   :  { %6152 = vsyncpa [#allocation13], 1 }
 0xaf4   :  { %6153 = vsyncpa [#allocation16], 1 }
 0xaf5   :  { %6154 = vsyncpa [#allocation19], 1 }
 0xaf6   :  { %6155 = vsyncpa [#allocation22], 1 }
 0xaf7   :  { %6156 = vsyncpa [#allocation25], 1 }
 0xaf8   :  { %6157 = vsyncpa [#allocation5], 1 }
 0xaf9   :  { %6159 = vsyncpa [#allocation5 + $0x1], 1 }

</bundles_post_ra>
